<compile_context>
chip_gen: v7x
topology: tpu7x:2x2x1
jax: 0.10.0
libtpu: 0.0.40
codegen_flags: <defaults>
</compile_context>

<pallas_src>
import functools

import jax
import jax.numpy as jnp
from jax.experimental import pallas as pl
from jax.experimental.pallas import tpu as pltpu

D_MODEL = 192
N_HEAD = 12
D_HEAD = 16
LN_EPS = 1e-12                       # XLNetConfig.layer_norm_eps default
SCALE = 1.0 / (D_HEAD ** 0.5)
NEG_INF = -1e30                      # same constant HF uses for f32 masking


def _xlnet_attn_kernel(x_ref, r_ref, qidx_ref, negmask_ref,
                       wq_ref, wk_ref, wv_ref, wr_ref, wo_ref,
                       rwb_ref, rrb_ref, gamma_ref, beta_ref, out_ref,
                       *, qlen, rlen, bsz):
    """Single invocation: all heads batched, batch folded into rows.

    Row layout (from the free reshape of the (seq, batch, d) inputs):
      query/key row  = i * bsz + b      (i = position, b = batch)
      pos-emb row    = m * bsz + b
    """
    klen = qlen                       # mems=None -> cat == h
    QB = qlen * bsz
    KB = klen * bsz
    RB = rlen * bsz
    f32 = jnp.float32
    bf16 = jnp.bfloat16

    h = x_ref[...]                    # (QB, D)  f32
    r = r_ref[...]                    # (RB, D)  f32

    # Broadcast activations across the head axis and run every projection as
    # ONE head-batched MXU dot ('hrd,hde->hre').
    hb = jnp.broadcast_to(h.astype(bf16)[None], (N_HEAD, QB, D_MODEL))
    rb = jnp.broadcast_to(r.astype(bf16)[None], (N_HEAD, RB, D_MODEL))

    dn_proj = (((2,), (1,)), ((0,), (0,)))
    q3 = jax.lax.dot_general(hb, wq_ref[...], dn_proj, preferred_element_type=f32)   # (H, QB, dh)
    k3 = jax.lax.dot_general(hb, wk_ref[...], dn_proj, preferred_element_type=f32)   # (H, QB, dh)
    v3 = jax.lax.dot_general(hb, wv_ref[...], dn_proj, preferred_element_type=f32)   # (H, QB, dh)
    kr3 = jax.lax.dot_general(rb, wr_ref[...], dn_proj, preferred_element_type=f32)  # (H, RB, dh)

    # Content / position scores ('hqd,hkd->hqk'), still batched over heads.
    dn_score = (((2,), (2,)), ((0,), (0,)))
    ac = jax.lax.dot_general(q3 + rwb_ref[...], k3, dn_score,
                             preferred_element_type=f32)                             # (H, QB, KB)
    bd_raw = jax.lax.dot_general(q3 + rrb_ref[...], kr3, dn_score,
                                 preferred_element_type=f32)                         # (H, QB, RB)

    # rel_shift_bnij on the folded layout:
    #   bd[h, i*bsz+b, j*bsz+b'] = bd_raw[h, i*bsz+b, (j + qlen - i)*bsz + b']
    # -> rows of query position i take the lane window starting at (qlen-i)*bsz.
    qidx = qidx_ref[...][None]        # (1, QB, 1) int32: query position per row
    bd = jnp.zeros((N_HEAD, QB, KB), f32)
    for i in range(qlen):             # static; qlen is small
        # TODO(synk): for large qlen replace with a single strided pltpu.roll.
        s = (qlen - i) * bsz
        bd = jnp.where(qidx == i, bd_raw[:, :, s:s + KB], bd)

    # Merged score.  attn_mask is all zeros in Model.forward, so the only mask
    # is the additive cross-batch mask introduced by folding batch into rows.
    score = (ac + bd) * SCALE + negmask_ref[...][None]                                # (H, QB, KB)

    # Softmax over keys (f32; reciprocal runs on the EUP slot).
    m = jnp.max(score, axis=-1, keepdims=True)
    e = jnp.exp(score - m)
    p = e * pl.reciprocal(jnp.sum(e, axis=-1, keepdims=True), approx=True)

    # Attention-weighted values ('hqk,hkd->hqd').
    dn_av = (((2,), (1,)), ((0,), (0,)))
    attn3 = jax.lax.dot_general(p, v3, dn_av, preferred_element_type=f32)             # (H, QB, dh)

    # Output projection ('hqd,hdm->hqm') and head reduction -- output written once.
    proj3 = jax.lax.dot_general(attn3.astype(bf16), wo_ref[...], dn_av,
                                preferred_element_type=f32)                           # (H, QB, D)
    attn_out = jnp.sum(proj3, axis=0)                                                 # (QB, D)

    # Residual + LayerNorm (biased variance, eps=1e-12), all in f32.
    y = attn_out + h
    mean = jnp.mean(y, axis=-1, keepdims=True)
    var = jnp.mean(jnp.square(y - mean), axis=-1, keepdims=True)
    normed = (y - mean) * jax.lax.rsqrt(var + LN_EPS)
    out_ref[...] = normed * gamma_ref[...] + beta_ref[...]


def prepare_params(params, *, weight_dtype=jnp.bfloat16):
    """One-time repack of the torch-layout parameters into the kernel layout.

    Done outside the per-call path, so the forward pass itself performs no
    transposes / casts on the weights.
    """
    heads_first = lambda w: jnp.transpose(w, (1, 0, 2)).astype(weight_dtype)   # (H, D, dh)
    return {
        "q": heads_first(params["q"]),
        "k": heads_first(params["k"]),
        "v": heads_first(params["v"]),
        "r": heads_first(params["r"]),
        "o": jnp.transpose(params["o"], (1, 2, 0)).astype(weight_dtype),       # (H, dh, D)
        "r_w_bias": params["r_w_bias"].astype(jnp.float32)[:, None, :],        # (H, 1, dh)
        "r_r_bias": params["r_r_bias"].astype(jnp.float32)[:, None, :],
        "ln_w": params["ln_w"].astype(jnp.float32).reshape(1, D_MODEL),
        "ln_b": params["ln_b"].astype(jnp.float32).reshape(1, D_MODEL),
    }


def make_fold_constants(qlen, bsz):
    """Precomputed (one-time) index / mask arrays for the batch-folded layout."""
    klen = qlen
    rows = jnp.arange(qlen * bsz, dtype=jnp.int32)
    cols = jnp.arange(klen * bsz, dtype=jnp.int32)
    qidx = (rows // bsz)[:, None]                                        # (QB, 1)
    same_batch = (rows[:, None] % bsz) == (cols[None, :] % bsz)          # (QB, KB)
    negmask = jnp.where(same_batch, 0.0, NEG_INF).astype(jnp.float32)    # (QB, KB)
    return qidx, negmask


@jax.jit
def xlnet_relative_attention(x, r, mask0, kparams, qidx, negmask):
    """x: (qlen, bsz, d_model), r: (rlen, bsz, d_model), mask0: (qlen, klen, bsz, 1).
    Returns output_h: (qlen, bsz, d_model)."""
    del mask0  # Model.forward zeroes it -> it contributes nothing
    qlen, bsz, d_model = x.shape
    rlen = r.shape[0]
    assert d_model == D_MODEL
    assert r.shape[1] == bsz
    assert rlen >= 2 * qlen, "rel_shift closed form assumes rlen >= qlen + klen"

    # Free contiguous reshapes (no transpose / extra HBM pass): fold batch
    # into the row (sublane) dimension.
    x2 = x.reshape(qlen * bsz, D_MODEL)
    r2 = r.reshape(rlen * bsz, D_MODEL)

    kernel = functools.partial(_xlnet_attn_kernel, qlen=qlen, rlen=rlen, bsz=bsz)

    b2 = lambda i: (0, 0)
    b3 = lambda i: (0, 0, 0)

    out = pl.pallas_call(
        kernel,
        out_shape=jax.ShapeDtypeStruct((qlen * bsz, D_MODEL), jnp.float32),
        grid=(1,),
        in_specs=[
            pl.BlockSpec((qlen * bsz, D_MODEL), b2),          # x (batch folded)
            pl.BlockSpec((rlen * bsz, D_MODEL), b2),          # r (batch folded)
            pl.BlockSpec((qlen * bsz, 1), b2),                # query position per row
            pl.BlockSpec((qlen * bsz, qlen * bsz), b2),       # additive cross-batch mask
            pl.BlockSpec((N_HEAD, D_MODEL, D_HEAD), b3),      # Wq
            pl.BlockSpec((N_HEAD, D_MODEL, D_HEAD), b3),      # Wk
            pl.BlockSpec((N_HEAD, D_MODEL, D_HEAD), b3),      # Wv
            pl.BlockSpec((N_HEAD, D_MODEL, D_HEAD), b3),      # Wr
            pl.BlockSpec((N_HEAD, D_HEAD, D_MODEL), b3),      # Wo
            pl.BlockSpec((N_HEAD, 1, D_HEAD), b3),            # r_w_bias
            pl.BlockSpec((N_HEAD, 1, D_HEAD), b3),            # r_r_bias
            pl.BlockSpec((1, D_MODEL), b2),                   # LN gamma
            pl.BlockSpec((1, D_MODEL), b2),                   # LN beta
        ],
        out_specs=pl.BlockSpec((qlen * bsz, D_MODEL), b2),
        compiler_params=pltpu.CompilerParams(
            dimension_semantics=("arbitrary",)),
    )(x2, r2, qidx, negmask,
      kparams["q"], kparams["k"], kparams["v"], kparams["r"], kparams["o"],
      kparams["r_w_bias"], kparams["r_r_bias"], kparams["ln_w"], kparams["ln_b"])

    return out.reshape(qlen, bsz, D_MODEL)


def init_params(key):
    """Deterministic xavier_uniform-style init (torch fan conventions)."""
    def xavier(k, shape, fan_in, fan_out):
        bound = (6.0 / (fan_in + fan_out)) ** 0.5
        return jax.random.uniform(k, shape, jnp.float32, -bound, bound)

    ks = jax.random.split(key, 8)
    proj_shape = (D_MODEL, N_HEAD, D_HEAD)
    fi3, fo3 = N_HEAD * D_HEAD, D_MODEL * D_HEAD   # 3D torch fans: fan_in=b*c, fan_out=a*c
    fi2, fo2 = D_HEAD, N_HEAD                      # 2D (n_head, d_head)
    # seg_embed / r_s_bias are initialized in the module but unused (seg_mat=None)
    return {
        "q": xavier(ks[0], proj_shape, fi3, fo3),
        "k": xavier(ks[1], proj_shape, fi3, fo3),
        "v": xavier(ks[2], proj_shape, fi3, fo3),
        "o": xavier(ks[3], proj_shape, fi3, fo3),
        "r": xavier(ks[4], proj_shape, fi3, fo3),
        "r_w_bias": xavier(ks[5], (N_HEAD, D_HEAD), fi2, fo2),
        "r_r_bias": xavier(ks[6], (N_HEAD, D_HEAD), fi2, fo2),
        "ln_w": jnp.ones((D_MODEL,), jnp.float32),
        "ln_b": jnp.zeros((D_MODEL,), jnp.float32),
    }


if __name__ == "__main__":
    key = jax.random.PRNGKey(0)
    kx, krr, km, kp = jax.random.split(key, 4)

    qlen, bsz = 8, 2
    rlen = 2 * qlen                                    # standard XLNet pos-emb length
    x = jax.random.normal(kx, (qlen, bsz, D_MODEL), jnp.float32)
    r = jax.random.normal(krr, (rlen, bsz, D_MODEL), jnp.float32)
    mask0 = jax.random.uniform(km, (qlen, qlen, bsz, 1), jnp.float32)  # zeroed by the model

    params = init_params(kp)
    kparams = prepare_params(params)                   # one-time weight repack (not per call)
    qidx, negmask = make_fold_constants(qlen, bsz)     # one-time fold constants

    out = xlnet_relative_attention(x, r, mask0, kparams, qidx, negmask)
    jax.block_until_ready(out)
    assert out.shape == (qlen, bsz, D_MODEL)
    assert bool(jnp.all(jnp.isfinite(out)))
    print("KERNEL_OK")
</pallas_src>

<mosaic_0001>
module attributes {stable_mosaic.version = 11 : i64} {
  func.func @_xlnet_attn_kernel(%arg0: i32, %arg1: memref<16x192xf32, #tpu.memory_space<vmem>>, %arg2: memref<32x192xf32, #tpu.memory_space<vmem>>, %arg3: memref<16x1xi32, #tpu.memory_space<vmem>>, %arg4: memref<16x16xf32, #tpu.memory_space<vmem>>, %arg5: memref<12x192x16xbf16, #tpu.memory_space<vmem>>, %arg6: memref<12x192x16xbf16, #tpu.memory_space<vmem>>, %arg7: memref<12x192x16xbf16, #tpu.memory_space<vmem>>, %arg8: memref<12x192x16xbf16, #tpu.memory_space<vmem>>, %arg9: memref<12x16x192xbf16, #tpu.memory_space<vmem>>, %arg10: memref<12x1x16xf32, #tpu.memory_space<vmem>>, %arg11: memref<12x1x16xf32, #tpu.memory_space<vmem>>, %arg12: memref<1x192xf32, #tpu.memory_space<vmem>>, %arg13: memref<1x192xf32, #tpu.memory_space<vmem>>, %arg14: memref<16x192xf32, #tpu.memory_space<vmem>>) attributes {dimension_semantics = [#tpu.dimension_semantics<arbitrary>], iteration_bounds = array<i64: 1>, scalar_prefetch = 0 : i64, scratch_operands = 0 : i64, tpu.core_type = #tpu.core_type<tc>, window_params = [{pipeline_mode = #tpu.pipeline_mode<synchronous>, transform_indices = @transform_0, window_bounds = array<i64: 16, 192>}, {pipeline_mode = #tpu.pipeline_mode<synchronous>, transform_indices = @transform_1, window_bounds = array<i64: 32, 192>}, {pipeline_mode = #tpu.pipeline_mode<synchronous>, transform_indices = @transform_2, window_bounds = array<i64: 16, 1>}, {pipeline_mode = #tpu.pipeline_mode<synchronous>, transform_indices = @transform_3, window_bounds = array<i64: 16, 16>}, {pipeline_mode = #tpu.pipeline_mode<synchronous>, transform_indices = @transform_4, window_bounds = array<i64: 12, 192, 16>}, {pipeline_mode = #tpu.pipeline_mode<synchronous>, transform_indices = @transform_5, window_bounds = array<i64: 12, 192, 16>}, {pipeline_mode = #tpu.pipeline_mode<synchronous>, transform_indices = @transform_6, window_bounds = array<i64: 12, 192, 16>}, {pipeline_mode = #tpu.pipeline_mode<synchronous>, transform_indices = @transform_7, window_bounds = array<i64: 12, 192, 16>}, {pipeline_mode = #tpu.pipeline_mode<synchronous>, transform_indices = @transform_8, window_bounds = array<i64: 12, 16, 192>}, {pipeline_mode = #tpu.pipeline_mode<synchronous>, transform_indices = @transform_9, window_bounds = array<i64: 12, 1, 16>}, {pipeline_mode = #tpu.pipeline_mode<synchronous>, transform_indices = @transform_10, window_bounds = array<i64: 12, 1, 16>}, {pipeline_mode = #tpu.pipeline_mode<synchronous>, transform_indices = @transform_11, window_bounds = array<i64: 1, 192>}, {pipeline_mode = #tpu.pipeline_mode<synchronous>, transform_indices = @transform_12, window_bounds = array<i64: 1, 192>}, {pipeline_mode = #tpu.pipeline_mode<synchronous>, transform_indices = @transform_13, window_bounds = array<i64: 16, 192>}]} {
    %c0 = arith.constant 0 : index
    %c0_0 = arith.constant 0 : index
    %0 = vector.load %arg1[%c0, %c0_0] : memref<16x192xf32, #tpu.memory_space<vmem>>, vector<16x192xf32>
    %c0_1 = arith.constant 0 : index
    %c0_2 = arith.constant 0 : index
    %1 = vector.load %arg2[%c0_1, %c0_2] : memref<32x192xf32, #tpu.memory_space<vmem>>, vector<32x192xf32>
    %2 = arith.truncf %0 : vector<16x192xf32> to vector<16x192xbf16>
    %3 = vector.shape_cast %2 : vector<16x192xbf16> to vector<1x16x192xbf16>
    %4 = vector.shape_cast %3 : vector<1x16x192xbf16> to vector<1x16x192xbf16>
    %5 = vector.broadcast %4 : vector<1x16x192xbf16> to vector<12x16x192xbf16>
    %6 = arith.truncf %1 : vector<32x192xf32> to vector<32x192xbf16>
    %7 = vector.shape_cast %6 : vector<32x192xbf16> to vector<1x32x192xbf16>
    %8 = vector.shape_cast %7 : vector<1x32x192xbf16> to vector<1x32x192xbf16>
    %9 = vector.broadcast %8 : vector<1x32x192xbf16> to vector<12x32x192xbf16>
    %c0_3 = arith.constant 0 : index
    %c0_4 = arith.constant 0 : index
    %c0_5 = arith.constant 0 : index
    %10 = vector.load %arg5[%c0_3, %c0_4, %c0_5] : memref<12x192x16xbf16, #tpu.memory_space<vmem>>, vector<12x192x16xbf16>
    %cst = arith.constant dense<0.000000e+00> : vector<12x16x16xf32>
    %11 = tpu.matmul %5, %10, %cst {dimension_numbers = #tpu.dot_dimension_numbers<[2], [1], [1], [2], [0, 0, 0, 1, 1, 2], [0], [0]>} : vector<12x16x192xbf16>, vector<12x192x16xbf16>, vector<12x16x16xf32> -> vector<12x16x16xf32>
    %c0_6 = arith.constant 0 : index
    %c0_7 = arith.constant 0 : index
    %c0_8 = arith.constant 0 : index
    %12 = vector.load %arg6[%c0_6, %c0_7, %c0_8] : memref<12x192x16xbf16, #tpu.memory_space<vmem>>, vector<12x192x16xbf16>
    %cst_9 = arith.constant dense<0.000000e+00> : vector<12x16x16xf32>
    %13 = tpu.matmul %5, %12, %cst_9 {dimension_numbers = #tpu.dot_dimension_numbers<[2], [1], [1], [2], [0, 0, 0, 1, 1, 2], [0], [0]>} : vector<12x16x192xbf16>, vector<12x192x16xbf16>, vector<12x16x16xf32> -> vector<12x16x16xf32>
    %c0_10 = arith.constant 0 : index
    %c0_11 = arith.constant 0 : index
    %c0_12 = arith.constant 0 : index
    %14 = vector.load %arg7[%c0_10, %c0_11, %c0_12] : memref<12x192x16xbf16, #tpu.memory_space<vmem>>, vector<12x192x16xbf16>
    %cst_13 = arith.constant dense<0.000000e+00> : vector<12x16x16xf32>
    %15 = tpu.matmul %5, %14, %cst_13 {dimension_numbers = #tpu.dot_dimension_numbers<[2], [1], [1], [2], [0, 0, 0, 1, 1, 2], [0], [0]>} : vector<12x16x192xbf16>, vector<12x192x16xbf16>, vector<12x16x16xf32> -> vector<12x16x16xf32>
    %c0_14 = arith.constant 0 : index
    %c0_15 = arith.constant 0 : index
    %c0_16 = arith.constant 0 : index
    %16 = vector.load %arg8[%c0_14, %c0_15, %c0_16] : memref<12x192x16xbf16, #tpu.memory_space<vmem>>, vector<12x192x16xbf16>
    %cst_17 = arith.constant dense<0.000000e+00> : vector<12x32x16xf32>
    %17 = tpu.matmul %9, %16, %cst_17 {dimension_numbers = #tpu.dot_dimension_numbers<[2], [1], [1], [2], [0, 0, 0, 1, 1, 2], [0], [0]>} : vector<12x32x192xbf16>, vector<12x192x16xbf16>, vector<12x32x16xf32> -> vector<12x32x16xf32>
    %c0_18 = arith.constant 0 : index
    %c0_19 = arith.constant 0 : index
    %c0_20 = arith.constant 0 : index
    %18 = vector.load %arg10[%c0_18, %c0_19, %c0_20] : memref<12x1x16xf32, #tpu.memory_space<vmem>>, vector<12x1x16xf32>
    %19 = vector.broadcast %18 : vector<12x1x16xf32> to vector<12x16x16xf32>
    %20 = arith.addf %11, %19 : vector<12x16x16xf32>
    %cst_21 = arith.constant dense<0.000000e+00> : vector<12x16x16xf32>
    %21 = tpu.matmul %20, %13, %cst_21 {dimension_numbers = #tpu.dot_dimension_numbers<[2], [2], [1], [1], [0, 0, 0, 1, 1, 1], [0], [0]>} : vector<12x16x16xf32>, vector<12x16x16xf32>, vector<12x16x16xf32> -> vector<12x16x16xf32>
    %c0_22 = arith.constant 0 : index
    %c0_23 = arith.constant 0 : index
    %c0_24 = arith.constant 0 : index
    %22 = vector.load %arg11[%c0_22, %c0_23, %c0_24] : memref<12x1x16xf32, #tpu.memory_space<vmem>>, vector<12x1x16xf32>
    %23 = vector.broadcast %22 : vector<12x1x16xf32> to vector<12x16x16xf32>
    %24 = arith.addf %11, %23 : vector<12x16x16xf32>
    %cst_25 = arith.constant dense<0.000000e+00> : vector<12x16x32xf32>
    %25 = tpu.matmul %24, %17, %cst_25 {dimension_numbers = #tpu.dot_dimension_numbers<[2], [2], [1], [1], [0, 0, 0, 1, 1, 1], [0], [0]>} : vector<12x16x16xf32>, vector<12x32x16xf32>, vector<12x16x32xf32> -> vector<12x16x32xf32>
    %c0_26 = arith.constant 0 : index
    %c0_27 = arith.constant 0 : index
    %26 = vector.load %arg3[%c0_26, %c0_27] : memref<16x1xi32, #tpu.memory_space<vmem>>, vector<16x1xi32>
    %27 = vector.shape_cast %26 : vector<16x1xi32> to vector<1x16x1xi32>
    %cst_28 = arith.constant 0.000000e+00 : f32
    %28 = vector.broadcast %cst_28 : f32 to vector<12x16x16xf32>
    %c0_i32 = arith.constant 0 : i32
    %29 = vector.broadcast %c0_i32 : i32 to vector<1x16x1xi32>
    %30 = arith.cmpi eq, %27, %29 : vector<1x16x1xi32>
    %31 = vector.extract_strided_slice %25 {offsets = [0, 0, 16], sizes = [12, 16, 16], strides = [1, 1, 1]} : vector<12x16x32xf32> to vector<12x16x16xf32>
    %32 = vector.shape_cast %30 : vector<1x16x1xi1> to vector<1x16x1xi1>
    %33 = vector.broadcast %32 : vector<1x16x1xi1> to vector<12x16x16xi1>
    %34 = arith.select %33, %31, %28 : vector<12x16x16xi1>, vector<12x16x16xf32>
    %c1_i32 = arith.constant 1 : i32
    %35 = vector.broadcast %c1_i32 : i32 to vector<1x16x1xi32>
    %36 = arith.cmpi eq, %27, %35 : vector<1x16x1xi32>
    %37 = vector.extract_strided_slice %25 {offsets = [0, 0, 14], sizes = [12, 16, 16], strides = [1, 1, 1]} : vector<12x16x32xf32> to vector<12x16x16xf32>
    %38 = vector.shape_cast %36 : vector<1x16x1xi1> to vector<1x16x1xi1>
    %39 = vector.broadcast %38 : vector<1x16x1xi1> to vector<12x16x16xi1>
    %40 = arith.select %39, %37, %34 : vector<12x16x16xi1>, vector<12x16x16xf32>
    %c2_i32 = arith.constant 2 : i32
    %41 = vector.broadcast %c2_i32 : i32 to vector<1x16x1xi32>
    %42 = arith.cmpi eq, %27, %41 : vector<1x16x1xi32>
    %43 = vector.extract_strided_slice %25 {offsets = [0, 0, 12], sizes = [12, 16, 16], strides = [1, 1, 1]} : vector<12x16x32xf32> to vector<12x16x16xf32>
    %44 = vector.shape_cast %42 : vector<1x16x1xi1> to vector<1x16x1xi1>
    %45 = vector.broadcast %44 : vector<1x16x1xi1> to vector<12x16x16xi1>
    %46 = arith.select %45, %43, %40 : vector<12x16x16xi1>, vector<12x16x16xf32>
    %c3_i32 = arith.constant 3 : i32
    %47 = vector.broadcast %c3_i32 : i32 to vector<1x16x1xi32>
    %48 = arith.cmpi eq, %27, %47 : vector<1x16x1xi32>
    %49 = vector.extract_strided_slice %25 {offsets = [0, 0, 10], sizes = [12, 16, 16], strides = [1, 1, 1]} : vector<12x16x32xf32> to vector<12x16x16xf32>
    %50 = vector.shape_cast %48 : vector<1x16x1xi1> to vector<1x16x1xi1>
    %51 = vector.broadcast %50 : vector<1x16x1xi1> to vector<12x16x16xi1>
    %52 = arith.select %51, %49, %46 : vector<12x16x16xi1>, vector<12x16x16xf32>
    %c4_i32 = arith.constant 4 : i32
    %53 = vector.broadcast %c4_i32 : i32 to vector<1x16x1xi32>
    %54 = arith.cmpi eq, %27, %53 : vector<1x16x1xi32>
    %55 = vector.extract_strided_slice %25 {offsets = [0, 0, 8], sizes = [12, 16, 16], strides = [1, 1, 1]} : vector<12x16x32xf32> to vector<12x16x16xf32>
    %56 = vector.shape_cast %54 : vector<1x16x1xi1> to vector<1x16x1xi1>
    %57 = vector.broadcast %56 : vector<1x16x1xi1> to vector<12x16x16xi1>
    %58 = arith.select %57, %55, %52 : vector<12x16x16xi1>, vector<12x16x16xf32>
    %c5_i32 = arith.constant 5 : i32
    %59 = vector.broadcast %c5_i32 : i32 to vector<1x16x1xi32>
    %60 = arith.cmpi eq, %27, %59 : vector<1x16x1xi32>
    %61 = vector.extract_strided_slice %25 {offsets = [0, 0, 6], sizes = [12, 16, 16], strides = [1, 1, 1]} : vector<12x16x32xf32> to vector<12x16x16xf32>
    %62 = vector.shape_cast %60 : vector<1x16x1xi1> to vector<1x16x1xi1>
    %63 = vector.broadcast %62 : vector<1x16x1xi1> to vector<12x16x16xi1>
    %64 = arith.select %63, %61, %58 : vector<12x16x16xi1>, vector<12x16x16xf32>
    %c6_i32 = arith.constant 6 : i32
    %65 = vector.broadcast %c6_i32 : i32 to vector<1x16x1xi32>
    %66 = arith.cmpi eq, %27, %65 : vector<1x16x1xi32>
    %67 = vector.extract_strided_slice %25 {offsets = [0, 0, 4], sizes = [12, 16, 16], strides = [1, 1, 1]} : vector<12x16x32xf32> to vector<12x16x16xf32>
    %68 = vector.shape_cast %66 : vector<1x16x1xi1> to vector<1x16x1xi1>
    %69 = vector.broadcast %68 : vector<1x16x1xi1> to vector<12x16x16xi1>
    %70 = arith.select %69, %67, %64 : vector<12x16x16xi1>, vector<12x16x16xf32>
    %c7_i32 = arith.constant 7 : i32
    %71 = vector.broadcast %c7_i32 : i32 to vector<1x16x1xi32>
    %72 = arith.cmpi eq, %27, %71 : vector<1x16x1xi32>
    %73 = vector.extract_strided_slice %25 {offsets = [0, 0, 2], sizes = [12, 16, 16], strides = [1, 1, 1]} : vector<12x16x32xf32> to vector<12x16x16xf32>
    %74 = vector.shape_cast %72 : vector<1x16x1xi1> to vector<1x16x1xi1>
    %75 = vector.broadcast %74 : vector<1x16x1xi1> to vector<12x16x16xi1>
    %76 = arith.select %75, %73, %70 : vector<12x16x16xi1>, vector<12x16x16xf32>
    %77 = arith.addf %21, %76 : vector<12x16x16xf32>
    %cst_29 = arith.constant 2.500000e-01 : f32
    %78 = vector.broadcast %cst_29 : f32 to vector<12x16x16xf32>
    %79 = arith.mulf %77, %78 : vector<12x16x16xf32>
    %c0_30 = arith.constant 0 : index
    %c0_31 = arith.constant 0 : index
    %80 = vector.load %arg4[%c0_30, %c0_31] : memref<16x16xf32, #tpu.memory_space<vmem>>, vector<16x16xf32>
    %81 = vector.shape_cast %80 : vector<16x16xf32> to vector<1x16x16xf32>
    %82 = vector.broadcast %81 : vector<1x16x16xf32> to vector<12x16x16xf32>
    %83 = arith.addf %79, %82 : vector<12x16x16xf32>
    %cst_32 = arith.constant dense<0xFF800000> : vector<12x16xf32>
    %84 = vector.multi_reduction <maximumf>, %83, %cst_32 [2] : vector<12x16x16xf32> to vector<12x16xf32>
    %85 = vector.shape_cast %84 : vector<12x16xf32> to vector<12x16x1xf32>
    %86 = vector.broadcast %85 : vector<12x16x1xf32> to vector<12x16x16xf32>
    %87 = arith.subf %83, %86 : vector<12x16x16xf32>
    %88 = math.exp %87 : vector<12x16x16xf32>
    %cst_33 = arith.constant dense<0.000000e+00> : vector<12x16xf32>
    %89 = vector.multi_reduction <add>, %88, %cst_33 [2] : vector<12x16x16xf32> to vector<12x16xf32>
    %90 = vector.shape_cast %89 : vector<12x16xf32> to vector<12x16x1xf32>
    %91 = tpu.reciprocal %90 {approx = true} : vector<12x16x1xf32> -> vector<12x16x1xf32>
    %92 = vector.broadcast %91 : vector<12x16x1xf32> to vector<12x16x16xf32>
    %93 = arith.mulf %88, %92 : vector<12x16x16xf32>
    %cst_34 = arith.constant dense<0.000000e+00> : vector<12x16x16xf32>
    %94 = tpu.matmul %93, %15, %cst_34 {dimension_numbers = #tpu.dot_dimension_numbers<[2], [1], [1], [2], [0, 0, 0, 1, 1, 2], [0], [0]>} : vector<12x16x16xf32>, vector<12x16x16xf32>, vector<12x16x16xf32> -> vector<12x16x16xf32>
    %95 = arith.truncf %94 : vector<12x16x16xf32> to vector<12x16x16xbf16>
    %c0_35 = arith.constant 0 : index
    %c0_36 = arith.constant 0 : index
    %c0_37 = arith.constant 0 : index
    %96 = vector.load %arg9[%c0_35, %c0_36, %c0_37] : memref<12x16x192xbf16, #tpu.memory_space<vmem>>, vector<12x16x192xbf16>
    %cst_38 = arith.constant dense<0.000000e+00> : vector<12x16x192xf32>
    %97 = tpu.matmul %95, %96, %cst_38 {dimension_numbers = #tpu.dot_dimension_numbers<[2], [1], [1], [2], [0, 0, 0, 1, 1, 2], [0], [0]>} : vector<12x16x16xbf16>, vector<12x16x192xbf16>, vector<12x16x192xf32> -> vector<12x16x192xf32>
    %cst_39 = arith.constant dense<0.000000e+00> : vector<16x192xf32>
    %98 = vector.multi_reduction <add>, %97, %cst_39 [0] : vector<12x16x192xf32> to vector<16x192xf32>
    %99 = arith.addf %98, %0 : vector<16x192xf32>
    %cst_40 = arith.constant dense<0.000000e+00> : vector<16xf32>
    %100 = vector.multi_reduction <add>, %99, %cst_40 [1] : vector<16x192xf32> to vector<16xf32>
    %101 = vector.shape_cast %100 : vector<16xf32> to vector<16x1xf32>
    %cst_41 = arith.constant 1.920000e+02 : f32
    %102 = vector.broadcast %cst_41 : f32 to vector<16x1xf32>
    %103 = arith.divf %101, %102 : vector<16x1xf32>
    %104 = vector.broadcast %103 : vector<16x1xf32> to vector<16x192xf32>
    %105 = arith.subf %99, %104 : vector<16x192xf32>
    %106 = arith.mulf %105, %105 : vector<16x192xf32>
    %cst_42 = arith.constant dense<0.000000e+00> : vector<16xf32>
    %107 = vector.multi_reduction <add>, %106, %cst_42 [1] : vector<16x192xf32> to vector<16xf32>
    %108 = vector.shape_cast %107 : vector<16xf32> to vector<16x1xf32>
    %cst_43 = arith.constant 1.920000e+02 : f32
    %109 = vector.broadcast %cst_43 : f32 to vector<16x1xf32>
    %110 = arith.divf %108, %109 : vector<16x1xf32>
    %111 = vector.broadcast %103 : vector<16x1xf32> to vector<16x192xf32>
    %112 = arith.subf %99, %111 : vector<16x192xf32>
    %cst_44 = arith.constant 9.99999996E-13 : f32
    %113 = vector.broadcast %cst_44 : f32 to vector<16x1xf32>
    %114 = arith.addf %110, %113 : vector<16x1xf32>
    %115 = math.rsqrt %114 : vector<16x1xf32>
    %116 = vector.broadcast %115 : vector<16x1xf32> to vector<16x192xf32>
    %117 = arith.mulf %112, %116 : vector<16x192xf32>
    %c0_45 = arith.constant 0 : index
    %c0_46 = arith.constant 0 : index
    %118 = vector.load %arg12[%c0_45, %c0_46] : memref<1x192xf32, #tpu.memory_space<vmem>>, vector<1x192xf32>
    %119 = vector.broadcast %118 : vector<1x192xf32> to vector<16x192xf32>
    %120 = arith.mulf %117, %119 : vector<16x192xf32>
    %c0_47 = arith.constant 0 : index
    %c0_48 = arith.constant 0 : index
    %121 = vector.load %arg13[%c0_47, %c0_48] : memref<1x192xf32, #tpu.memory_space<vmem>>, vector<1x192xf32>
    %122 = vector.broadcast %121 : vector<1x192xf32> to vector<16x192xf32>
    %123 = arith.addf %120, %122 : vector<16x192xf32>
    %c0_49 = arith.constant 0 : index
    %c0_50 = arith.constant 0 : index
    %124 = vector.load %arg14[%c0_49, %c0_50] : memref<16x192xf32, #tpu.memory_space<vmem>>, vector<16x192xf32>
    tpu.vector_store %arg14[%c0_49, %c0_50], %123 {strides = array<i32>} : memref<16x192xf32, #tpu.memory_space<vmem>>, vector<16x192xf32>,
    return
  }
  func.func @transform_0(%arg0: i32) -> (i32, i32) {
    %c0_i32 = arith.constant 0 : i32
    %c0_i32_0 = arith.constant 0 : i32
    %c0_i32_1 = arith.constant 0 : i32
    return %c0_i32, %c0_i32_0 : i32, i32
  }
  func.func @transform_1(%arg0: i32) -> (i32, i32) {
    %c0_i32 = arith.constant 0 : i32
    %c0_i32_0 = arith.constant 0 : i32
    %c0_i32_1 = arith.constant 0 : i32
    return %c0_i32, %c0_i32_0 : i32, i32
  }
  func.func @transform_2(%arg0: i32) -> (i32, i32) {
    %c0_i32 = arith.constant 0 : i32
    %c0_i32_0 = arith.constant 0 : i32
    %c0_i32_1 = arith.constant 0 : i32
    return %c0_i32, %c0_i32_0 : i32, i32
  }
  func.func @transform_3(%arg0: i32) -> (i32, i32) {
    %c0_i32 = arith.constant 0 : i32
    %c0_i32_0 = arith.constant 0 : i32
    %c0_i32_1 = arith.constant 0 : i32
    return %c0_i32, %c0_i32_0 : i32, i32
  }
  func.func @transform_4(%arg0: i32) -> (i32, i32, i32) {
    %c0_i32 = arith.constant 0 : i32
    %c0_i32_0 = arith.constant 0 : i32
    %c0_i32_1 = arith.constant 0 : i32
    %c0_i32_2 = arith.constant 0 : i32
    return %c0_i32, %c0_i32_0, %c0_i32_1 : i32, i32, i32
  }
  func.func @transform_5(%arg0: i32) -> (i32, i32, i32) {
    %c0_i32 = arith.constant 0 : i32
    %c0_i32_0 = arith.constant 0 : i32
    %c0_i32_1 = arith.constant 0 : i32
    %c0_i32_2 = arith.constant 0 : i32
    return %c0_i32, %c0_i32_0, %c0_i32_1 : i32, i32, i32
  }
  func.func @transform_6(%arg0: i32) -> (i32, i32, i32) {
    %c0_i32 = arith.constant 0 : i32
    %c0_i32_0 = arith.constant 0 : i32
    %c0_i32_1 = arith.constant 0 : i32
    %c0_i32_2 = arith.constant 0 : i32
    return %c0_i32, %c0_i32_0, %c0_i32_1 : i32, i32, i32
  }
  func.func @transform_7(%arg0: i32) -> (i32, i32, i32) {
    %c0_i32 = arith.constant 0 : i32
    %c0_i32_0 = arith.constant 0 : i32
    %c0_i32_1 = arith.constant 0 : i32
    %c0_i32_2 = arith.constant 0 : i32
    return %c0_i32, %c0_i32_0, %c0_i32_1 : i32, i32, i32
  }
  func.func @transform_8(%arg0: i32) -> (i32, i32, i32) {
    %c0_i32 = arith.constant 0 : i32
    %c0_i32_0 = arith.constant 0 : i32
    %c0_i32_1 = arith.constant 0 : i32
    %c0_i32_2 = arith.constant 0 : i32
    return %c0_i32, %c0_i32_0, %c0_i32_1 : i32, i32, i32
  }
  func.func @transform_9(%arg0: i32) -> (i32, i32, i32) {
    %c0_i32 = arith.constant 0 : i32
    %c0_i32_0 = arith.constant 0 : i32
    %c0_i32_1 = arith.constant 0 : i32
    %c0_i32_2 = arith.constant 0 : i32
    return %c0_i32, %c0_i32_0, %c0_i32_1 : i32, i32, i32
  }
  func.func @transform_10(%arg0: i32) -> (i32, i32, i32) {
    %c0_i32 = arith.constant 0 : i32
    %c0_i32_0 = arith.constant 0 : i32
    %c0_i32_1 = arith.constant 0 : i32
    %c0_i32_2 = arith.constant 0 : i32
    return %c0_i32, %c0_i32_0, %c0_i32_1 : i32, i32, i32
  }
  func.func @transform_11(%arg0: i32) -> (i32, i32) {
    %c0_i32 = arith.constant 0 : i32
    %c0_i32_0 = arith.constant 0 : i32
    %c0_i32_1 = arith.constant 0 : i32
    return %c0_i32, %c0_i32_0 : i32, i32
  }
  func.func @transform_12(%arg0: i32) -> (i32, i32) {
    %c0_i32 = arith.constant 0 : i32
    %c0_i32_0 = arith.constant 0 : i32
    %c0_i32_1 = arith.constant 0 : i32
    return %c0_i32, %c0_i32_0 : i32, i32
  }
  func.func @transform_13(%arg0: i32) -> (i32, i32) {
    %c0_i32 = arith.constant 0 : i32
    %c0_i32_0 = arith.constant 0 : i32
    %c0_i32_1 = arith.constant 0 : i32
    return %c0_i32, %c0_i32_0 : i32, i32
  }
}

</mosaic_0001>

<bundles_post_ra>
// kernel: xlnet_relative_attention.1
= control target key start
LH: loop header
LB: loop body
LE: loop exit
PB: predicated region body
PF: predicated region fallthrough
CT: control target
= control target key end

     0   :  { %v19145_v0 = vmov 0   ;;  %vm423_vm0 = vcmask 523264   ;;  %vm6961_vm3 = vcmask 130048   ;;  %s14618_s18 = smov 126   ;;  %s19127_s4 = inlined_call_operand.vmem [shape: bf16[12,192,16], index: 4, kind: input, shape index: {}]   ;;  %s19128_s0 = inlined_call_operand.vmem [shape: f32[16,192], index: 0, kind: input, shape index: {}]   ;;  %s19129_s5 = inlined_call_operand.vmem [shape: bf16[12,192,16], index: 5, kind: input, shape index: {}]   ;;  %s19130_s6 = inlined_call_operand.vmem [shape: bf16[12,192,16], index: 6, kind: input, shape index: {}]   ;;  %s19131_s7 = inlined_call_operand.vmem [shape: bf16[12,192,16], index: 7, kind: input, shape index: {}]   ;;  %s19132_s1 = inlined_call_operand.vmem [shape: f32[32,192], index: 1, kind: input, shape index: {}]   ;;  %s19133_s2 = inlined_call_operand.vmem [shape: s32[16,1], index: 2, kind: input, shape index: {}]   ;;  %s19134_s10 = inlined_call_operand.vmem [shape: f32[12,1,16], index: 10, kind: input, shape index: {}]   ;;  %s19135_s9 = inlined_call_operand.vmem [shape: f32[12,1,16], index: 9, kind: input, shape index: {}]   ;;  %s19136_s3 = inlined_call_operand.vmem [shape: f32[16,16], index: 3, kind: input, shape index: {}]   ;;  %s19137_s8 = inlined_call_operand.vmem [shape: bf16[12,16,192], index: 8, kind: input, shape index: {}]   ;;  %s19138_s11 = inlined_call_operand.vmem [shape: f32[1,192], index: 11, kind: input, shape index: {}]   ;;  %s19139_s12 = inlined_call_operand.vmem [shape: f32[1,192], index: 12, kind: input, shape index: {}]   ;;  %s19140_s13 = inlined_call_operand.vmem [shape: f32[16,192], index: 13, kind: output, shape index: {}]  }
   0x1   :  { %427 = vmatprep.subr.bf16.mxu0 %v19145_v0  ;;  %540 = vmatprep.subr.bf16.mxu1 %v19145_v0  ;;  %v13899_v1 = vld [vmem:[%s19127_s4] sm:$0xff]   ;;  %v13901_v3 = vld [vmem:[%s19127_s4 + $0x8] sm:$0xff]   ;;  %v13903_v5 = vld [vmem:[%s19127_s4 + $0x10] sm:$0xff]  }
   0x2   :  { %v13900_v2 = vld [vmem:[%s19127_s4 + $0x60] sm:$0xff]   ;;  %13897 = vset.pattern.permute.xlu0 %v19145_v0  ;;  %13898 = vset.pattern.permute.xlu1 %v19145_v0  ;;  %v13902_v4 = vld [vmem:[%s19127_s4 + $0x68] sm:$0xff]   ;;  %v13904_v6 = vld [vmem:[%s19127_s4 + $0x70] sm:$0xff]  }
   0x3   :  { %428 = vmatpush1.bf16.msra.mxu0 %v13899_v1  ;;  %541 = vmatpush1.bf16.msra.mxu1 %v13900_v2  ;;  %v13905_v7 = vld [vmem:[%s19127_s4 + $0x18] sm:$0xff]   ;;  %v13907_v9 = vld [vmem:[%s19127_s4 + $0x20] sm:$0xff]   ;;  %v13909_v11 = vld [vmem:[%s19127_s4 + $0x28] sm:$0xff]  }
   0x4   :  { %429 = vmatprep.subr.bf16.mxu0 %v19145_v0  ;;  %542 = vmatprep.subr.bf16.mxu1 %v19145_v0  ;;  %v13906_v8 = vld [vmem:[%s19127_s4 + $0x78] sm:$0xff]   ;;  %v13908_v10 = vld [vmem:[%s19127_s4 + $0x80] sm:$0xff]   ;;  %v13910_v12 = vld [vmem:[%s19127_s4 + $0x88] sm:$0xff]  }
   0x5   :  { %v13911_v13 = vld [vmem:[%s19127_s4 + $0x30] sm:$0xff]   ;;  %v46_v15 = vld [vmem:[%s19128_s0 + $0x8] sm:$0xff]  ;;  %v48_v16 = vld [vmem:[%s19128_s0 + $0x18] sm:$0xff] }
   0x6   :  { %v13912_v14 = vld [vmem:[%s19127_s4 + $0x90] sm:$0xff]   ;;  %v14753_v17 = vpack.c.bf16 %v48_v16, %v46_v15  ;;  %v13913_v18 = vld [vmem:[%s19127_s4 + $0x38] sm:$0xff]   ;;  %v13915_v20 = vld [vmem:[%s19127_s4 + $0x40] sm:$0xff]  }
   0x7   :  { %430 = vmatpush1.bf16.msra.mxu0 %v13901_v3  ;;  %543 = vmatpush1.bf16.msra.mxu1 %v13902_v4  ;;  %v13914_v19 = vld [vmem:[%s19127_s4 + $0x98] sm:$0xff]   ;;  %v13916_v21 = vld [vmem:[%s19127_s4 + $0xa0] sm:$0xff]   ;;  %v13917_v22 = vld [vmem:[%s19127_s4 + $0x48] sm:$0xff]  }
   0x8   :  { %431 = vmatprep.subr.bf16.mxu0 %v19145_v0  ;;  %544 = vmatprep.subr.bf16.mxu1 %v19145_v0  ;;  %v13918_v23 = vld [vmem:[%s19127_s4 + $0xa8] sm:$0xff]   ;;  %v13919_v24 = vld [vmem:[%s19127_s4 + $0x50] sm:$0xff]   ;;  %v13921_v26 = vld [vmem:[%s19127_s4 + $0x58] sm:$0xff]  }
   0x9   :  { %12335 = vmatprep.mubr.msk.bf16.mxu0 %vm423_vm0, %v14753_v17  ;;  %12348 = vmatprep.mubr.msk.bf16.mxu1 %vm423_vm0, %v14753_v17  ;;  %v13920_v25 = vld [vmem:[%s19127_s4 + $0xb0] sm:$0xff]   ;;  %v45_v27 = vld [vmem:[%s19128_s0] sm:$0xff]  ;;  %v13922_v29 = vld [vmem:[%s19127_s4 + $0xb8] sm:$0xff]  }
   0xa   :  { %v47_v28 = vld [vmem:[%s19128_s0 + $0x10] sm:$0xff]  ;;  %v13923_v31 = vld [vmem:[%s19127_s4 + $0xc0] sm:$0xff]   ;;  %v13925_v33 = vld [vmem:[%s19127_s4 + $0xc8] sm:$0xff]  }
   0xb   :  { %432 = vmatpush1.bf16.msra.mxu0 %v13903_v5  ;;  %545 = vmatpush1.bf16.msra.mxu1 %v13904_v6  ;;  %v14805_v30 = vpack.c.bf16 %v47_v28, %v45_v27  ;;  %v13924_v32 = vld [vmem:[%s19127_s4 + $0x120] sm:$0xff]   ;;  %v13926_v34 = vld [vmem:[%s19127_s4 + $0x128] sm:$0xff]   ;;  %v13927_v35 = vld [vmem:[%s19127_s4 + $0xd0] sm:$0xff]  }
   0xc   :  { %433 = vmatprep.subr.bf16.mxu0 %v19145_v0  ;;  %546 = vmatprep.subr.bf16.mxu1 %v19145_v0  ;;  %v13928_v36 = vld [vmem:[%s19127_s4 + $0x130] sm:$0xff]   ;;  %v13929_v37 = vld [vmem:[%s19127_s4 + $0xd8] sm:$0xff]   ;;  %v13931_v39 = vld [vmem:[%s19127_s4 + $0xe0] sm:$0xff]  }
   0xd   :  { %v13930_v38 = vld [vmem:[%s19127_s4 + $0x138] sm:$0xff]   ;;  %v13932_v40 = vld [vmem:[%s19127_s4 + $0x140] sm:$0xff]   ;;  %v13933_v41 = vld [vmem:[%s19127_s4 + $0xe8] sm:$0xff]  }
   0xe   :  { %v13934_v42 = vld [vmem:[%s19127_s4 + $0x148] sm:$0xff]   ;;  %v13935_v43 = vld [vmem:[%s19127_s4 + $0xf0] sm:$0xff]   ;;  %v13937_v45 = vld [vmem:[%s19127_s4 + $0xf8] sm:$0xff]  }
   0xf   :  { %434 = vmatpush1.bf16.msra.mxu0 %v13905_v7  ;;  %547 = vmatpush1.bf16.msra.mxu1 %v13906_v8  ;;  %v13936_v44 = vld [vmem:[%s19127_s4 + $0x150] sm:$0xff]   ;;  %v13938_v46 = vld [vmem:[%s19127_s4 + $0x158] sm:$0xff]   ;;  %v13939_v47 = vld [vmem:[%s19127_s4 + $0x100] sm:$0xff]  }
  0x10   :  { %435 = vmatprep.subr.bf16.mxu0 %v19145_v0  ;;  %548 = vmatprep.subr.bf16.mxu1 %v19145_v0  ;;  %v13940_v48 = vld [vmem:[%s19127_s4 + $0x160] sm:$0xff]   ;;  %v13941_v49 = vld [vmem:[%s19127_s4 + $0x108] sm:$0xff]   ;;  %v13943_v51 = vld [vmem:[%s19127_s4 + $0x110] sm:$0xff]  }
  0x11   :  { %v13942_v50 = vld [vmem:[%s19127_s4 + $0x168] sm:$0xff]   ;;  %v13944_v52 = vld [vmem:[%s19127_s4 + $0x170] sm:$0xff]   ;;  %v13945_v53 = vld [vmem:[%s19127_s4 + $0x118] sm:$0xff]  }
  0x12   :  { %v13946_v54 = vld [vmem:[%s19127_s4 + $0x178] sm:$0xff]   ;;  %v13947_v55 = vld [vmem:[%s19127_s4 + $0x180] sm:$0xff]   ;;  %v13949_v57 = vld [vmem:[%s19127_s4 + $0x188] sm:$0xff]  }
  0x13   :  { %436 = vmatpush1.bf16.msra.mxu0 %v13907_v9  ;;  %549 = vmatpush1.bf16.msra.mxu1 %v13908_v10  ;;  %v13948_v56 = vld [vmem:[%s19127_s4 + $0x1e0] sm:$0xff]   ;;  %v13950_v58 = vld [vmem:[%s19127_s4 + $0x1e8] sm:$0xff]   ;;  %v13951_v59 = vld [vmem:[%s19127_s4 + $0x190] sm:$0xff]  }
  0x14   :  { %437 = vmatprep.subr.bf16.mxu0 %v19145_v0  ;;  %550 = vmatprep.subr.bf16.mxu1 %v19145_v0  ;;  %v13952_v60 = vld [vmem:[%s19127_s4 + $0x1f0] sm:$0xff]   ;;  %v13953_v61 = vld [vmem:[%s19127_s4 + $0x198] sm:$0xff]   ;;  %v13955_v63 = vld [vmem:[%s19127_s4 + $0x1a0] sm:$0xff]  }
  0x15   :  { %v13954_v62 = vld [vmem:[%s19127_s4 + $0x1f8] sm:$0xff]   ;;  %v13956_v1 = vld [vmem:[%s19127_s4 + $0x200] sm:$0xff]   ;;  %v13957_v2 = vld [vmem:[%s19127_s4 + $0x1a8] sm:$0xff]  }
  0x16   :  { %v13958_v3 = vld [vmem:[%s19127_s4 + $0x208] sm:$0xff]   ;;  %v13959_v4 = vld [vmem:[%s19127_s4 + $0x1b0] sm:$0xff]   ;;  %v13961_v6 = vld [vmem:[%s19127_s4 + $0x1b8] sm:$0xff]  }
  0x17   :  { %438 = vmatpush1.bf16.msra.mxu0 %v13909_v11  ;;  %551 = vmatpush1.bf16.msra.mxu1 %v13910_v12  ;;  %v13960_v5 = vld [vmem:[%s19127_s4 + $0x210] sm:$0xff]   ;;  %v13962_v7 = vld [vmem:[%s19127_s4 + $0x218] sm:$0xff]   ;;  %v13963_v8 = vld [vmem:[%s19127_s4 + $0x1c0] sm:$0xff]  }
  0x18   :  { %439 = vmatprep.subr.bf16.mxu0 %v19145_v0  ;;  %552 = vmatprep.subr.bf16.mxu1 %v19145_v0  ;;  %v13964_v9 = vld [vmem:[%s19127_s4 + $0x220] sm:$0xff]   ;;  %v13965_v10 = vld [vmem:[%s19127_s4 + $0x1c8] sm:$0xff]   ;;  %v13967_v12 = vld [vmem:[%s19127_s4 + $0x1d0] sm:$0xff]  }
  0x19   :  { %v13966_v11 = vld [vmem:[%s19127_s4 + $0x228] sm:$0xff]   ;;  %v13970_v15 = vld [vmem:[%s19127_s4 + $0x238] sm:$0xff]   ;;  %v13971_v16 = vld [vmem:[%s19127_s4 + $0x240] sm:$0xff]  }
  0x1a   :  { %v13981_v27 = vld [vmem:[%s19127_s4 + $0x268] sm:$0xff]   ;;  %vm17327_vm4 = vmpackc.low %vm6961_vm3, %vm6961_vm3 }
  0x1b   :  { %440 = vmatpush1.bf16.msra.mxu0 %v13911_v13  ;;  %553 = vmatpush1.bf16.msra.mxu1 %v13912_v14  ;;  %v13968_v13 = vld [vmem:[%s19127_s4 + $0x230] sm:$0xff]   ;;  %v13969_v14 = vld [vmem:[%s19127_s4 + $0x1d8] sm:$0xff]   ;;  %v13982_v28 = vld [vmem:[%s19127_s4 + $0x2c8] sm:$0xff]  }
  0x1c   :  { %441 = vmatprep.subr.bf16.mxu0 %v19145_v0  ;;  %554 = vmatprep.subr.bf16.mxu1 %v19145_v0 }
  0x1f   :  { %442 = vmatpush1.bf16.msra.mxu0 %v13913_v18  ;;  %555 = vmatpush1.bf16.msra.mxu1 %v13914_v19  ;;  %v13972_v18 = vld [vmem:[%s19127_s4 + $0x2a0] sm:$0xff]   ;;  %v13973_v19 = vld [vmem:[%s19127_s4 + $0x248] sm:$0xff]  }
  0x20   :  { %443 = vmatprep.subr.bf16.mxu0 %v19145_v0  ;;  %556 = vmatprep.subr.bf16.mxu1 %v19145_v0 }
  0x23   :  { %444 = vmatpush1.bf16.msra.mxu0 %v13915_v20  ;;  %557 = vmatpush1.bf16.msra.mxu1 %v13916_v21  ;;  %v13974_v20 = vld [vmem:[%s19127_s4 + $0x2a8] sm:$0xff]   ;;  %v13975_v21 = vld [vmem:[%s19127_s4 + $0x250] sm:$0xff]  }
  0x24   :  { %445 = vmatprep.subr.bf16.mxu0 %v19145_v0  ;;  %558 = vmatprep.subr.bf16.mxu1 %v19145_v0 }
  0x27   :  { %446 = vmatpush1.bf16.msra.mxu0 %v13917_v22  ;;  %559 = vmatpush1.bf16.msra.mxu1 %v13918_v23  ;;  %v13976_v22 = vld [vmem:[%s19127_s4 + $0x2b0] sm:$0xff]   ;;  %v13977_v23 = vld [vmem:[%s19127_s4 + $0x258] sm:$0xff]  }
  0x28   :  { %447 = vmatprep.subr.bf16.mxu0 %v19145_v0  ;;  %560 = vmatprep.subr.bf16.mxu1 %v19145_v0 }
  0x2b   :  { %448 = vmatpush1.bf16.msra.mxu0 %v13919_v24  ;;  %561 = vmatpush1.bf16.msra.mxu1 %v13920_v25  ;;  %v13978_v24 = vld [vmem:[%s19127_s4 + $0x2b8] sm:$0xff]   ;;  %v13979_v25 = vld [vmem:[%s19127_s4 + $0x260] sm:$0xff]  }
  0x2c   :  { %449 = vmatprep.subr.bf16.mxu0 %v19145_v0  ;;  %562 = vmatprep.subr.bf16.mxu1 %v19145_v0 }
  0x2f   :  { %450 = vmatpush1.bf16.msra.mxu0 %v13921_v26  ;;  %563 = vmatpush1.bf16.msra.mxu1 %v13922_v29  ;;  %v13980_v26 = vld [vmem:[%s19127_s4 + $0x2c0] sm:$0xff]   ;;  %v13983_v29 = vld [vmem:[%s19127_s4 + $0x270] sm:$0xff]  }
  0x30   :  { %653 = vmatprep.subr.bf16.mxu0 %v19145_v0  ;;  %766 = vmatprep.subr.bf16.mxu1 %v19145_v0 }
  0x32   :  { %460 = vmatmul.mubr.bf16.vlgmr.msra.gmra.mrb[0].mxu0 %v14805_v30  ;;  %573 = vmatmul.mubr.bf16.vlgmr.msra.gmra.mrb[0].mxu1 %v14805_v30 }
  0x33   :  { %654 = vmatpush1.bf16.msra.mxu0 %v13923_v31  ;;  %767 = vmatpush1.bf16.msra.mxu1 %v13924_v32  ;;  %v13984_v31 = vld [vmem:[%s19127_s4 + $0x2d0] sm:$0xff]   ;;  %v13985_v32 = vld [vmem:[%s19127_s4 + $0x278] sm:$0xff]  }
  0x34   :  { %655 = vmatprep.subr.bf16.mxu0 %v19145_v0  ;;  %768 = vmatprep.subr.bf16.mxu1 %v19145_v0 }
  0x35   :  { %12361 = vmatprep.mubr.msk.bf16.mxu0 %vm423_vm0, %v14753_v17  ;;  %12374 = vmatprep.mubr.msk.bf16.mxu1 %vm423_vm0, %v14753_v17 }
  0x37   :  { %656 = vmatpush1.bf16.msra.mxu0 %v13925_v33  ;;  %769 = vmatpush1.bf16.msra.mxu1 %v13926_v34  ;;  %v13986_v33 = vld [vmem:[%s19127_s4 + $0x2d8] sm:$0xff]   ;;  %v13987_v34 = vld [vmem:[%s19127_s4 + $0x280] sm:$0xff]  }
  0x38   :  { %657 = vmatprep.subr.bf16.mxu0 %v19145_v0  ;;  %770 = vmatprep.subr.bf16.mxu1 %v19145_v0 }
  0x3b   :  { %658 = vmatpush1.bf16.msra.mxu0 %v13927_v35  ;;  %771 = vmatpush1.bf16.msra.mxu1 %v13928_v36  ;;  %v13988_v35 = vld [vmem:[%s19127_s4 + $0x2e0] sm:$0xff]   ;;  %v13989_v36 = vld [vmem:[%s19127_s4 + $0x288] sm:$0xff]  }
  0x3c   :  { %659 = vmatprep.subr.bf16.mxu0 %v19145_v0  ;;  %772 = vmatprep.subr.bf16.mxu1 %v19145_v0 }
  0x3f   :  { %660 = vmatpush1.bf16.msra.mxu0 %v13929_v37  ;;  %773 = vmatpush1.bf16.msra.mxu1 %v13930_v38  ;;  %v13990_v37 = vld [vmem:[%s19127_s4 + $0x2e8] sm:$0xff]   ;;  %v13991_v38 = vld [vmem:[%s19127_s4 + $0x290] sm:$0xff]  }
  0x40   :  { %661 = vmatprep.subr.bf16.mxu0 %v19145_v0  ;;  %774 = vmatprep.subr.bf16.mxu1 %v19145_v0 }
  0x43   :  { %662 = vmatpush1.bf16.msra.mxu0 %v13931_v39  ;;  %775 = vmatpush1.bf16.msra.mxu1 %v13932_v40  ;;  %v13992_v39 = vld [vmem:[%s19127_s4 + $0x2f0] sm:$0xff]   ;;  %v13993_v40 = vld [vmem:[%s19127_s4 + $0x298] sm:$0xff]  }
  0x44   :  { %663 = vmatprep.subr.bf16.mxu0 %v19145_v0  ;;  %776 = vmatprep.subr.bf16.mxu1 %v19145_v0 }
  0x47   :  { %664 = vmatpush1.bf16.msra.mxu0 %v13933_v41  ;;  %777 = vmatpush1.bf16.msra.mxu1 %v13934_v42  ;;  %v13994_v41 = vld [vmem:[%s19127_s4 + $0x2f8] sm:$0xff]   ;;  %v13995_v42 = vld [vmem:[%s19127_s4 + $0x300] sm:$0xff]  }
  0x48   :  { %665 = vmatprep.subr.bf16.mxu0 %v19145_v0  ;;  %778 = vmatprep.subr.bf16.mxu1 %v19145_v0 }
  0x4b   :  { %666 = vmatpush1.bf16.msra.mxu0 %v13935_v43  ;;  %779 = vmatpush1.bf16.msra.mxu1 %v13936_v44  ;;  %v13996_v43 = vld [vmem:[%s19127_s4 + $0x360] sm:$0xff]   ;;  %v13997_v44 = vld [vmem:[%s19127_s4 + $0x308] sm:$0xff]  }
  0x4c   :  { %667 = vmatprep.subr.bf16.mxu0 %v19145_v0  ;;  %780 = vmatprep.subr.bf16.mxu1 %v19145_v0 }
  0x4f   :  { %668 = vmatpush1.bf16.msra.mxu0 %v13937_v45  ;;  %781 = vmatpush1.bf16.msra.mxu1 %v13938_v46  ;;  %v13998_v45 = vld [vmem:[%s19127_s4 + $0x368] sm:$0xff]   ;;  %v13999_v46 = vld [vmem:[%s19127_s4 + $0x310] sm:$0xff]  }
  0x50   :  { %669 = vmatprep.subr.bf16.mxu0 %v19145_v0  ;;  %782 = vmatprep.subr.bf16.mxu1 %v19145_v0 }
  0x53   :  { %670 = vmatpush1.bf16.msra.mxu0 %v13939_v47  ;;  %783 = vmatpush1.bf16.msra.mxu1 %v13940_v48  ;;  %v14000_v47 = vld [vmem:[%s19127_s4 + $0x370] sm:$0xff]   ;;  %v14001_v48 = vld [vmem:[%s19127_s4 + $0x318] sm:$0xff]  }
  0x54   :  { %671 = vmatprep.subr.bf16.mxu0 %v19145_v0  ;;  %784 = vmatprep.subr.bf16.mxu1 %v19145_v0 }
  0x57   :  { %672 = vmatpush1.bf16.msra.mxu0 %v13941_v49  ;;  %785 = vmatpush1.bf16.msra.mxu1 %v13942_v50  ;;  %v14002_v49 = vld [vmem:[%s19127_s4 + $0x378] sm:$0xff]   ;;  %v14003_v50 = vld [vmem:[%s19127_s4 + $0x320] sm:$0xff]  }
  0x58   :  { %673 = vmatprep.subr.bf16.mxu0 %v19145_v0  ;;  %786 = vmatprep.subr.bf16.mxu1 %v19145_v0 }
  0x5b   :  { %674 = vmatpush1.bf16.msra.mxu0 %v13943_v51  ;;  %787 = vmatpush1.bf16.msra.mxu1 %v13944_v52  ;;  %v14004_v51 = vld [vmem:[%s19127_s4 + $0x380] sm:$0xff]   ;;  %v14005_v52 = vld [vmem:[%s19127_s4 + $0x328] sm:$0xff]  }
  0x5c   :  { %675 = vmatprep.subr.bf16.mxu0 %v19145_v0  ;;  %788 = vmatprep.subr.bf16.mxu1 %v19145_v0 }
  0x5f   :  { %676 = vmatpush1.bf16.msra.mxu0 %v13945_v53  ;;  %789 = vmatpush1.bf16.msra.mxu1 %v13946_v54  ;;  %v14006_v53 = vld [vmem:[%s19127_s4 + $0x388] sm:$0xff]   ;;  %v14007_v54 = vld [vmem:[%s19127_s4 + $0x330] sm:$0xff]  }
  0x60   :  { %879 = vmatprep.subr.bf16.mxu0 %v19145_v0  ;;  %992 = vmatprep.subr.bf16.mxu1 %v19145_v0 }
  0x62   :  { %686 = vmatmul.mubr.bf16.vlgmr.msra.gmra.mrb[4].mxu0 %v14805_v30  ;;  %799 = vmatmul.mubr.bf16.vlgmr.msra.gmra.mrb[4].mxu1 %v14805_v30 }
  0x63   :  { %880 = vmatpush1.bf16.msra.mxu0 %v13947_v55  ;;  %993 = vmatpush1.bf16.msra.mxu1 %v13948_v56  ;;  %v14008_v55 = vld [vmem:[%s19127_s4 + $0x390] sm:$0xff]   ;;  %v14009_v56 = vld [vmem:[%s19127_s4 + $0x338] sm:$0xff]  }
  0x64   :  { %881 = vmatprep.subr.bf16.mxu0 %v19145_v0  ;;  %994 = vmatprep.subr.bf16.mxu1 %v19145_v0 }
  0x65   :  { %12387 = vmatprep.mubr.msk.bf16.mxu0 %vm423_vm0, %v14753_v17  ;;  %12400 = vmatprep.mubr.msk.bf16.mxu1 %vm423_vm0, %v14753_v17 }
  0x67   :  { %882 = vmatpush1.bf16.msra.mxu0 %v13949_v57  ;;  %995 = vmatpush1.bf16.msra.mxu1 %v13950_v58  ;;  %v14010_v57 = vld [vmem:[%s19127_s4 + $0x398] sm:$0xff]   ;;  %v14011_v58 = vld [vmem:[%s19127_s4 + $0x340] sm:$0xff]  }
  0x68   :  { %883 = vmatprep.subr.bf16.mxu0 %v19145_v0  ;;  %996 = vmatprep.subr.bf16.mxu1 %v19145_v0 }
  0x6b   :  { %884 = vmatpush1.bf16.msra.mxu0 %v13951_v59  ;;  %997 = vmatpush1.bf16.msra.mxu1 %v13952_v60  ;;  %v14012_v59 = vld [vmem:[%s19127_s4 + $0x3a0] sm:$0xff]   ;;  %v14013_v60 = vld [vmem:[%s19127_s4 + $0x348] sm:$0xff]  }
  0x6c   :  { %885 = vmatprep.subr.bf16.mxu0 %v19145_v0  ;;  %998 = vmatprep.subr.bf16.mxu1 %v19145_v0 }
  0x6f   :  { %886 = vmatpush1.bf16.msra.mxu0 %v13953_v61  ;;  %999 = vmatpush1.bf16.msra.mxu1 %v13954_v62  ;;  %v14014_v61 = vld [vmem:[%s19127_s4 + $0x3a8] sm:$0xff]   ;;  %v14015_v62 = vld [vmem:[%s19127_s4 + $0x350] sm:$0xff]  }
  0x70   :  { %887 = vmatprep.subr.bf16.mxu0 %v19145_v0  ;;  %1000 = vmatprep.subr.bf16.mxu1 %v19145_v0 }
  0x73   :  { %888 = vmatpush1.bf16.msra.mxu0 %v13955_v63  ;;  %1001 = vmatpush1.bf16.msra.mxu1 %v13956_v1  ;;  %v14016_v63 = vld [vmem:[%s19127_s4 + $0x3b0] sm:$0xff]   ;;  %v14017_v1 = vld [vmem:[%s19127_s4 + $0x358] sm:$0xff]  }
  0x74   :  { %889 = vmatprep.subr.bf16.mxu0 %v19145_v0  ;;  %1002 = vmatprep.subr.bf16.mxu1 %v19145_v0 }
  0x77   :  { %890 = vmatpush1.bf16.msra.mxu0 %v13957_v2  ;;  %1003 = vmatpush1.bf16.msra.mxu1 %v13958_v3  ;;  %v14018_v2 = vld [vmem:[%s19127_s4 + $0x3b8] sm:$0xff]   ;;  %v14019_v3 = vld [vmem:[%s19127_s4 + $0x3c0] sm:$0xff]  }
  0x78   :  { %891 = vmatprep.subr.bf16.mxu0 %v19145_v0  ;;  %1004 = vmatprep.subr.bf16.mxu1 %v19145_v0 }
  0x7b   :  { %892 = vmatpush1.bf16.msra.mxu0 %v13959_v4  ;;  %1005 = vmatpush1.bf16.msra.mxu1 %v13960_v5  ;;  %v14020_v4 = vld [vmem:[%s19127_s4 + $0x420] sm:$0xff]   ;;  %v14021_v5 = vld [vmem:[%s19127_s4 + $0x3c8] sm:$0xff]  }
  0x7c   :  { %893 = vmatprep.subr.bf16.mxu0 %v19145_v0  ;;  %1006 = vmatprep.subr.bf16.mxu1 %v19145_v0 }
  0x7f   :  { %894 = vmatpush1.bf16.msra.mxu0 %v13961_v6  ;;  %1007 = vmatpush1.bf16.msra.mxu1 %v13962_v7  ;;  %v14022_v6 = vld [vmem:[%s19127_s4 + $0x428] sm:$0xff]   ;;  %v14023_v7 = vld [vmem:[%s19127_s4 + $0x3d0] sm:$0xff]  }
  0x80   :  { %895 = vmatprep.subr.bf16.mxu0 %v19145_v0  ;;  %1008 = vmatprep.subr.bf16.mxu1 %v19145_v0 }
  0x83   :  { %896 = vmatpush1.bf16.msra.mxu0 %v13963_v8  ;;  %1009 = vmatpush1.bf16.msra.mxu1 %v13964_v9  ;;  %v14024_v8 = vld [vmem:[%s19127_s4 + $0x430] sm:$0xff]   ;;  %v14025_v9 = vld [vmem:[%s19127_s4 + $0x3d8] sm:$0xff]  }
  0x84   :  { %897 = vmatprep.subr.bf16.mxu0 %v19145_v0  ;;  %1010 = vmatprep.subr.bf16.mxu1 %v19145_v0 }
  0x87   :  { %898 = vmatpush1.bf16.msra.mxu0 %v13965_v10  ;;  %1011 = vmatpush1.bf16.msra.mxu1 %v13966_v11  ;;  %v14026_v10 = vld [vmem:[%s19127_s4 + $0x438] sm:$0xff]   ;;  %v14027_v11 = vld [vmem:[%s19127_s4 + $0x3e0] sm:$0xff]  }
  0x88   :  { %899 = vmatprep.subr.bf16.mxu0 %v19145_v0  ;;  %1012 = vmatprep.subr.bf16.mxu1 %v19145_v0 }
  0x8b   :  { %900 = vmatpush1.bf16.msra.mxu0 %v13967_v12  ;;  %1013 = vmatpush1.bf16.msra.mxu1 %v13968_v13  ;;  %v14028_v12 = vld [vmem:[%s19127_s4 + $0x440] sm:$0xff]   ;;  %v14029_v13 = vld [vmem:[%s19127_s4 + $0x3e8] sm:$0xff]  }
  0x8c   :  { %901 = vmatprep.subr.bf16.mxu0 %v19145_v0  ;;  %1014 = vmatprep.subr.bf16.mxu1 %v19145_v0 }
  0x8f   :  { %902 = vmatpush1.bf16.msra.mxu0 %v13969_v14  ;;  %1015 = vmatpush1.bf16.msra.mxu1 %v13970_v15  ;;  %v14030_v14 = vld [vmem:[%s19127_s4 + $0x448] sm:$0xff]  }
  0x90   :  { %1105 = vmatprep.subr.bf16.mxu0 %v19145_v0  ;;  %1218 = vmatprep.subr.bf16.mxu1 %v19145_v0 }
  0x92   :  { %912 = vmatmul.mubr.bf16.vlgmr.msra.gmra.mrb[8].mxu0 %v14805_v30  ;;  %1025 = vmatmul.mubr.bf16.vlgmr.msra.gmra.mrb[8].mxu1 %v14805_v30 }
  0x93   :  { %1106 = vmatpush1.bf16.msra.mxu0 %v13971_v16  ;;  %1219 = vmatpush1.bf16.msra.mxu1 %v13972_v18 }
  0x94   :  { %1107 = vmatprep.subr.bf16.mxu0 %v19145_v0  ;;  %1220 = vmatprep.subr.bf16.mxu1 %v19145_v0 }
  0x95   :  { %12413 = vmatprep.mubr.msk.bf16.mxu0 %vm423_vm0, %v14753_v17  ;;  %12426 = vmatprep.mubr.msk.bf16.mxu1 %vm423_vm0, %v14753_v17 }
  0x97   :  { %1108 = vmatpush1.bf16.msra.mxu0 %v13973_v19  ;;  %1221 = vmatpush1.bf16.msra.mxu1 %v13974_v20  ;;  %v14031_v19 = vld [vmem:[%s19127_s4 + $0x3f0] sm:$0xff]  }
  0x98   :  { %1109 = vmatprep.subr.bf16.mxu0 %v19145_v0  ;;  %1222 = vmatprep.subr.bf16.mxu1 %v19145_v0  ;;  %v14032_v20 = vld [vmem:[%s19127_s4 + $0x450] sm:$0xff]  }
  0x9b   :  { %1110 = vmatpush1.bf16.msra.mxu0 %v13975_v21  ;;  %1223 = vmatpush1.bf16.msra.mxu1 %v13976_v22 }
  0x9c   :  { %1111 = vmatprep.subr.bf16.mxu0 %v19145_v0  ;;  %1224 = vmatprep.subr.bf16.mxu1 %v19145_v0 }
  0x9f   :  { %1112 = vmatpush1.bf16.msra.mxu0 %v13977_v23  ;;  %1225 = vmatpush1.bf16.msra.mxu1 %v13978_v24 }
  0xa0   :  { %1113 = vmatprep.subr.bf16.mxu0 %v19145_v0  ;;  %1226 = vmatprep.subr.bf16.mxu1 %v19145_v0 }
  0xa3   :  { %1114 = vmatpush1.bf16.msra.mxu0 %v13979_v25  ;;  %1227 = vmatpush1.bf16.msra.mxu1 %v13980_v26  ;;  %v14033_v26 = vld [vmem:[%s19127_s4 + $0x3f8] sm:$0xff]  }
  0xa4   :  { %1115 = vmatprep.subr.bf16.mxu0 %v19145_v0  ;;  %1228 = vmatprep.subr.bf16.mxu1 %v19145_v0 }
  0xa7   :  { %1116 = vmatpush1.bf16.msra.mxu0 %v13981_v27  ;;  %1229 = vmatpush1.bf16.msra.mxu1 %v13982_v28  ;;  %v14034_v27 = vld [vmem:[%s19127_s4 + $0x458] sm:$0xff]   ;;  %v14035_v28 = vld [vmem:[%s19127_s4 + $0x400] sm:$0xff]  }
  0xa8   :  { %1117 = vmatprep.subr.bf16.mxu0 %v19145_v0  ;;  %1230 = vmatprep.subr.bf16.mxu1 %v19145_v0 }
  0xab   :  { %1118 = vmatpush1.bf16.msra.mxu0 %v13983_v29  ;;  %1231 = vmatpush1.bf16.msra.mxu1 %v13984_v31  ;;  %v14036_v29 = vld [vmem:[%s19127_s4 + $0x460] sm:$0xff]   ;;  %v14037_v31 = vld [vmem:[%s19127_s4 + $0x408] sm:$0xff]  }
  0xac   :  { %1119 = vmatprep.subr.bf16.mxu0 %v19145_v0  ;;  %1232 = vmatprep.subr.bf16.mxu1 %v19145_v0 }
  0xaf   :  { %1120 = vmatpush1.bf16.msra.mxu0 %v13985_v32  ;;  %1233 = vmatpush1.bf16.msra.mxu1 %v13986_v33  ;;  %v14038_v32 = vld [vmem:[%s19127_s4 + $0x468] sm:$0xff]   ;;  %v14039_v33 = vld [vmem:[%s19127_s4 + $0x410] sm:$0xff]  }
  0xb0   :  { %1121 = vmatprep.subr.bf16.mxu0 %v19145_v0  ;;  %1234 = vmatprep.subr.bf16.mxu1 %v19145_v0 }
  0xb3   :  { %1122 = vmatpush1.bf16.msra.mxu0 %v13987_v34  ;;  %1235 = vmatpush1.bf16.msra.mxu1 %v13988_v35  ;;  %v14040_v34 = vld [vmem:[%s19127_s4 + $0x470] sm:$0xff]   ;;  %v14041_v35 = vld [vmem:[%s19127_s4 + $0x418] sm:$0xff]  }
  0xb4   :  { %1123 = vmatprep.subr.bf16.mxu0 %v19145_v0  ;;  %1236 = vmatprep.subr.bf16.mxu1 %v19145_v0 }
  0xb7   :  { %1124 = vmatpush1.bf16.msra.mxu0 %v13989_v36  ;;  %1237 = vmatpush1.bf16.msra.mxu1 %v13990_v37  ;;  %v14042_v36 = vld [vmem:[%s19127_s4 + $0x478] sm:$0xff]   ;;  %v14043_v37 = vld [vmem:[%s19129_s5] sm:$0xff]  }
  0xb8   :  { %1125 = vmatprep.subr.bf16.mxu0 %v19145_v0  ;;  %1238 = vmatprep.subr.bf16.mxu1 %v19145_v0 }
  0xbb   :  { %1126 = vmatpush1.bf16.msra.mxu0 %v13991_v38  ;;  %1239 = vmatpush1.bf16.msra.mxu1 %v13992_v39  ;;  %v14044_v38 = vld [vmem:[%s19129_s5 + $0x60] sm:$0xff]   ;;  %v14045_v39 = vld [vmem:[%s19129_s5 + $0x8] sm:$0xff]  }
  0xbc   :  { %1127 = vmatprep.subr.bf16.mxu0 %v19145_v0  ;;  %1240 = vmatprep.subr.bf16.mxu1 %v19145_v0 }
  0xbf   :  { %1128 = vmatpush1.bf16.msra.mxu0 %v13993_v40  ;;  %1241 = vmatpush1.bf16.msra.mxu1 %v13994_v41  ;;  %v14046_v40 = vld [vmem:[%s19129_s5 + $0x68] sm:$0xff]   ;;  %v14047_v41 = vld [vmem:[%s19129_s5 + $0x10] sm:$0xff]  }
  0xc0   :  { %1331 = vmatprep.subr.bf16.mxu0 %v19145_v0  ;;  %1444 = vmatprep.subr.bf16.mxu1 %v19145_v0 }
  0xc2   :  { %1138 = vmatmul.mubr.bf16.vlgmr.msra.gmra.mrb[12].mxu0 %v14805_v30  ;;  %1251 = vmatmul.mubr.bf16.vlgmr.msra.gmra.mrb[12].mxu1 %v14805_v30 }
  0xc3   :  { %1332 = vmatpush1.bf16.msra.mxu0 %v13995_v42  ;;  %1445 = vmatpush1.bf16.msra.mxu1 %v13996_v43  ;;  %v14048_v42 = vld [vmem:[%s19129_s5 + $0x70] sm:$0xff]   ;;  %v14049_v43 = vld [vmem:[%s19129_s5 + $0x18] sm:$0xff]  }
  0xc4   :  { %1333 = vmatprep.subr.bf16.mxu0 %v19145_v0  ;;  %1446 = vmatprep.subr.bf16.mxu1 %v19145_v0 }
  0xc5   :  { %12439 = vmatprep.mubr.msk.bf16.mxu0 %vm423_vm0, %v14753_v17  ;;  %12452 = vmatprep.mubr.msk.bf16.mxu1 %vm423_vm0, %v14753_v17 }
  0xc7   :  { %1334 = vmatpush1.bf16.msra.mxu0 %v13997_v44  ;;  %1447 = vmatpush1.bf16.msra.mxu1 %v13998_v45  ;;  %v14050_v44 = vld [vmem:[%s19129_s5 + $0x78] sm:$0xff]   ;;  %v14051_v45 = vld [vmem:[%s19129_s5 + $0x20] sm:$0xff]  }
  0xc8   :  { %1335 = vmatprep.subr.bf16.mxu0 %v19145_v0  ;;  %1448 = vmatprep.subr.bf16.mxu1 %v19145_v0 }
  0xcb   :  { %1336 = vmatpush1.bf16.msra.mxu0 %v13999_v46  ;;  %1449 = vmatpush1.bf16.msra.mxu1 %v14000_v47  ;;  %v14052_v46 = vld [vmem:[%s19129_s5 + $0x80] sm:$0xff]   ;;  %v14053_v47 = vld [vmem:[%s19129_s5 + $0x28] sm:$0xff]  }
  0xcc   :  { %1337 = vmatprep.subr.bf16.mxu0 %v19145_v0  ;;  %1450 = vmatprep.subr.bf16.mxu1 %v19145_v0 }
  0xcf   :  { %1338 = vmatpush1.bf16.msra.mxu0 %v14001_v48  ;;  %1451 = vmatpush1.bf16.msra.mxu1 %v14002_v49  ;;  %v14054_v48 = vld [vmem:[%s19129_s5 + $0x88] sm:$0xff]  }
  0xd0   :  { %1339 = vmatprep.subr.bf16.mxu0 %v19145_v0  ;;  %1452 = vmatprep.subr.bf16.mxu1 %v19145_v0 }
  0xd3   :  { %1340 = vmatpush1.bf16.msra.mxu0 %v14003_v50  ;;  %1453 = vmatpush1.bf16.msra.mxu1 %v14004_v51 }
  0xd4   :  { %1341 = vmatprep.subr.bf16.mxu0 %v19145_v0  ;;  %1454 = vmatprep.subr.bf16.mxu1 %v19145_v0 }
  0xd7   :  { %1342 = vmatpush1.bf16.msra.mxu0 %v14005_v52  ;;  %1455 = vmatpush1.bf16.msra.mxu1 %v14006_v53 }
  0xd8   :  { %1343 = vmatprep.subr.bf16.mxu0 %v19145_v0  ;;  %1456 = vmatprep.subr.bf16.mxu1 %v19145_v0 }
  0xdb   :  { %1344 = vmatpush1.bf16.msra.mxu0 %v14007_v54  ;;  %1457 = vmatpush1.bf16.msra.mxu1 %v14008_v55  ;;  %v14055_v54 = vld [vmem:[%s19129_s5 + $0x30] sm:$0xff]  }
  0xdc   :  { %1345 = vmatprep.subr.bf16.mxu0 %v19145_v0  ;;  %1458 = vmatprep.subr.bf16.mxu1 %v19145_v0 }
  0xdf   :  { %1346 = vmatpush1.bf16.msra.mxu0 %v14009_v56  ;;  %1459 = vmatpush1.bf16.msra.mxu1 %v14010_v57  ;;  %v14056_v57 = vld [vmem:[%s19129_s5 + $0x90] sm:$0xff]  }
  0xe0   :  { %1347 = vmatprep.subr.bf16.mxu0 %v19145_v0  ;;  %1460 = vmatprep.subr.bf16.mxu1 %v19145_v0 }
  0xe3   :  { %1348 = vmatpush1.bf16.msra.mxu0 %v14011_v58  ;;  %1461 = vmatpush1.bf16.msra.mxu1 %v14012_v59  ;;  %v14057_v59 = vld [vmem:[%s19129_s5 + $0x38] sm:$0xff]  }
  0xe4   :  { %1349 = vmatprep.subr.bf16.mxu0 %v19145_v0  ;;  %1462 = vmatprep.subr.bf16.mxu1 %v19145_v0 }
  0xe7   :  { %1350 = vmatpush1.bf16.msra.mxu0 %v14013_v60  ;;  %1463 = vmatpush1.bf16.msra.mxu1 %v14014_v61  ;;  %v14058_v60 = vld [vmem:[%s19129_s5 + $0x98] sm:$0xff]   ;;  %v14059_v61 = vld [vmem:[%s19129_s5 + $0x40] sm:$0xff]  }
  0xe8   :  { %1351 = vmatprep.subr.bf16.mxu0 %v19145_v0  ;;  %1464 = vmatprep.subr.bf16.mxu1 %v19145_v0 }
  0xeb   :  { %1352 = vmatpush1.bf16.msra.mxu0 %v14015_v62  ;;  %1465 = vmatpush1.bf16.msra.mxu1 %v14016_v63  ;;  %v14060_v62 = vld [vmem:[%s19129_s5 + $0xa0] sm:$0xff]   ;;  %v14061_v63 = vld [vmem:[%s19129_s5 + $0x48] sm:$0xff]  }
  0xec   :  { %1353 = vmatprep.subr.bf16.mxu0 %v19145_v0  ;;  %1466 = vmatprep.subr.bf16.mxu1 %v19145_v0 }
  0xef   :  { %1354 = vmatpush1.bf16.msra.mxu0 %v14017_v1  ;;  %1467 = vmatpush1.bf16.msra.mxu1 %v14018_v2  ;;  %v14062_v1 = vld [vmem:[%s19129_s5 + $0xa8] sm:$0xff]   ;;  %v14063_v2 = vld [vmem:[%s19129_s5 + $0x50] sm:$0xff]  }
  0xf0   :  { %1557 = vmatprep.subr.bf16.mxu0 %v19145_v0  ;;  %1670 = vmatprep.subr.bf16.mxu1 %v19145_v0 }
  0xf2   :  { %1364 = vmatmul.mubr.bf16.vlgmr.msra.gmra.mrb[16].mxu0 %v14805_v30  ;;  %1477 = vmatmul.mubr.bf16.vlgmr.msra.gmra.mrb[16].mxu1 %v14805_v30 }
  0xf3   :  { %1558 = vmatpush1.bf16.msra.mxu0 %v14019_v3  ;;  %1671 = vmatpush1.bf16.msra.mxu1 %v14020_v4  ;;  %v14064_v3 = vld [vmem:[%s19129_s5 + $0xb0] sm:$0xff]   ;;  %v14065_v4 = vld [vmem:[%s19129_s5 + $0x58] sm:$0xff]  }
  0xf4   :  { %1559 = vmatprep.subr.bf16.mxu0 %v19145_v0  ;;  %1672 = vmatprep.subr.bf16.mxu1 %v19145_v0 }
  0xf5   :  { %12465 = vmatprep.mubr.msk.bf16.mxu0 %vm423_vm0, %v14753_v17  ;;  %12478 = vmatprep.mubr.msk.bf16.mxu1 %vm423_vm0, %v14753_v17 }
  0xf7   :  { %1560 = vmatpush1.bf16.msra.mxu0 %v14021_v5  ;;  %1673 = vmatpush1.bf16.msra.mxu1 %v14022_v6  ;;  %v14066_v5 = vld [vmem:[%s19129_s5 + $0xb8] sm:$0xff]   ;;  %v14067_v6 = vld [vmem:[%s19129_s5 + $0xc0] sm:$0xff]  }
  0xf8   :  { %1561 = vmatprep.subr.bf16.mxu0 %v19145_v0  ;;  %1674 = vmatprep.subr.bf16.mxu1 %v19145_v0 }
  0xfb   :  { %1562 = vmatpush1.bf16.msra.mxu0 %v14023_v7  ;;  %1675 = vmatpush1.bf16.msra.mxu1 %v14024_v8  ;;  %v14068_v7 = vld [vmem:[%s19129_s5 + $0x120] sm:$0xff]   ;;  %v14069_v8 = vld [vmem:[%s19129_s5 + $0xc8] sm:$0xff]  }
  0xfc   :  { %1563 = vmatprep.subr.bf16.mxu0 %v19145_v0  ;;  %1676 = vmatprep.subr.bf16.mxu1 %v19145_v0 }
  0xff   :  { %1564 = vmatpush1.bf16.msra.mxu0 %v14025_v9  ;;  %1677 = vmatpush1.bf16.msra.mxu1 %v14026_v10  ;;  %v14070_v9 = vld [vmem:[%s19129_s5 + $0x128] sm:$0xff]   ;;  %v14071_v10 = vld [vmem:[%s19129_s5 + $0xd0] sm:$0xff]  }
 0x100   :  { %1565 = vmatprep.subr.bf16.mxu0 %v19145_v0  ;;  %1678 = vmatprep.subr.bf16.mxu1 %v19145_v0 }
 0x103   :  { %1566 = vmatpush1.bf16.msra.mxu0 %v14027_v11  ;;  %1679 = vmatpush1.bf16.msra.mxu1 %v14028_v12  ;;  %v14072_v11 = vld [vmem:[%s19129_s5 + $0x130] sm:$0xff]   ;;  %v14073_v12 = vld [vmem:[%s19129_s5 + $0xd8] sm:$0xff]  }
 0x104   :  { %1567 = vmatprep.subr.bf16.mxu0 %v19145_v0  ;;  %1680 = vmatprep.subr.bf16.mxu1 %v19145_v0 }
 0x105   :  { %v15268_v15 = vpop.f32.mrb[0].mxu0  ;;  %v15271_v18 = vpop.f32.mrb[0].mxu1 }
 0x106   :  { %v463_v16 = vpop.f32.mrb[1].mxu0  ;;  %v576_v22 = vpop.f32.mrb[1].mxu1 }
 0x107   :  { %v15279_v21 = vpop.f32.mrb[2].mxu0  ;;  %1568 = vmatpush1.bf16.msra.mxu0 %v14029_v13  ;;  %1681 = vmatpush1.bf16.msra.mxu1 %v14030_v14  ;;  %v15281_v24 = vpop.f32.mrb[2].mxu1  ;;  %v14074_v13 = vld [vmem:[%s19129_s5 + $0x138] sm:$0xff]   ;;  %v14075_v14 = vld [vmem:[%s19129_s5 + $0xe0] sm:$0xff]  }
 0x108   :  { %v466_v23 = vpop.f32.mrb[3].mxu0  ;;  %1569 = vmatprep.subr.bf16.mxu0 %v19145_v0  ;;  %v579_v25 = vpop.f32.mrb[3].mxu1  ;;  %1682 = vmatprep.subr.bf16.mxu1 %v19145_v0  ;;  %v14076_v16 = vld [vmem:[%s19129_s5 + $0x140] sm:$0xff]  }
 0x10b   :  { %1570 = vmatpush1.bf16.msra.mxu0 %v14031_v19  ;;  %1683 = vmatpush1.bf16.msra.mxu1 %v14032_v20  ;;  %v14077_v19 = vld [vmem:[%s19129_s5 + $0xe8] sm:$0xff]  }
 0x10c   :  { %1571 = vmatprep.subr.bf16.mxu0 %v19145_v0  ;;  %1684 = vmatprep.subr.bf16.mxu1 %v19145_v0  ;;  %v14078_v20 = vld [vmem:[%s19129_s5 + $0x148] sm:$0xff]  }
 0x10f   :  { %1572 = vmatpush1.bf16.msra.mxu0 %v14033_v26  ;;  %1685 = vmatpush1.bf16.msra.mxu1 %v14034_v27 }
 0x110   :  { %1573 = vmatprep.subr.bf16.mxu0 %v19145_v0  ;;  %1686 = vmatprep.subr.bf16.mxu1 %v19145_v0 }
 0x113   :  { %1574 = vmatpush1.bf16.msra.mxu0 %v14035_v28  ;;  %1687 = vmatpush1.bf16.msra.mxu1 %v14036_v29  ;;  %v14079_v28 = vld [vmem:[%s19129_s5 + $0xf0] sm:$0xff]  }
 0x114   :  { %1575 = vmatprep.subr.bf16.mxu0 %v19145_v0  ;;  %1688 = vmatprep.subr.bf16.mxu1 %v19145_v0 }
 0x117   :  { %1576 = vmatpush1.bf16.msra.mxu0 %v14037_v31  ;;  %1689 = vmatpush1.bf16.msra.mxu1 %v14038_v32  ;;  %v14080_v32 = vld [vmem:[%s19129_s5 + $0x150] sm:$0xff]  }
 0x118   :  { %1577 = vmatprep.subr.bf16.mxu0 %v19145_v0  ;;  %1690 = vmatprep.subr.bf16.mxu1 %v19145_v0 }
 0x11b   :  { %1578 = vmatpush1.bf16.msra.mxu0 %v14039_v33  ;;  %1691 = vmatpush1.bf16.msra.mxu1 %v14040_v34  ;;  %v14081_v34 = vld [vmem:[%s19129_s5 + $0xf8] sm:$0xff]  }
 0x11c   :  { %1579 = vmatprep.subr.bf16.mxu0 %v19145_v0  ;;  %1692 = vmatprep.subr.bf16.mxu1 %v19145_v0 }
 0x11f   :  { %1580 = vmatpush1.bf16.msra.mxu0 %v14041_v35  ;;  %1693 = vmatpush1.bf16.msra.mxu1 %v14042_v36  ;;  %v14082_v35 = vld [vmem:[%s19129_s5 + $0x158] sm:$0xff]   ;;  %v14083_v36 = vld [vmem:[%s19129_s5 + $0x100] sm:$0xff]  }
 0x120   :  { %2071 = vmatprep.subr.bf16.mxu0 %v19145_v0  ;;  %2184 = vmatprep.subr.bf16.mxu1 %v19145_v0 }
 0x122   :  { %1590 = vmatmul.mubr.bf16.vlgmr.msra.gmra.mrb[20].mxu0 %v14805_v30  ;;  %1703 = vmatmul.mubr.bf16.vlgmr.msra.gmra.mrb[20].mxu1 %v14805_v30 }
 0x123   :  { %2072 = vmatpush1.bf16.msra.mxu0 %v14043_v37  ;;  %2185 = vmatpush1.bf16.msra.mxu1 %v14044_v38  ;;  %v14084_v37 = vld [vmem:[%s19129_s5 + $0x160] sm:$0xff]   ;;  %v14085_v38 = vld [vmem:[%s19129_s5 + $0x108] sm:$0xff]  }
 0x124   :  { %2073 = vmatprep.subr.bf16.mxu0 %v19145_v0  ;;  %2186 = vmatprep.subr.bf16.mxu1 %v19145_v0 }
 0x125   :  { %12491 = vmatprep.mubr.msk.bf16.mxu0 %vm423_vm0, %v14753_v17  ;;  %12504 = vmatprep.mubr.msk.bf16.mxu1 %vm423_vm0, %v14753_v17 }
 0x127   :  { %2074 = vmatpush1.bf16.msra.mxu0 %v14045_v39  ;;  %2187 = vmatpush1.bf16.msra.mxu1 %v14046_v40  ;;  %v14086_v39 = vld [vmem:[%s19129_s5 + $0x168] sm:$0xff]   ;;  %v14087_v40 = vld [vmem:[%s19129_s5 + $0x110] sm:$0xff]  }
 0x128   :  { %2075 = vmatprep.subr.bf16.mxu0 %v19145_v0  ;;  %2188 = vmatprep.subr.bf16.mxu1 %v19145_v0 }
 0x12b   :  { %2076 = vmatpush1.bf16.msra.mxu0 %v14047_v41  ;;  %2189 = vmatpush1.bf16.msra.mxu1 %v14048_v42  ;;  %v14088_v41 = vld [vmem:[%s19129_s5 + $0x170] sm:$0xff]   ;;  %v14089_v42 = vld [vmem:[%s19129_s5 + $0x118] sm:$0xff]  }
 0x12c   :  { %2077 = vmatprep.subr.bf16.mxu0 %v19145_v0  ;;  %2190 = vmatprep.subr.bf16.mxu1 %v19145_v0 }
 0x12f   :  { %2078 = vmatpush1.bf16.msra.mxu0 %v14049_v43  ;;  %2191 = vmatpush1.bf16.msra.mxu1 %v14050_v44  ;;  %v14090_v43 = vld [vmem:[%s19129_s5 + $0x178] sm:$0xff]   ;;  %v14091_v44 = vld [vmem:[%s19129_s5 + $0x180] sm:$0xff]  }
 0x130   :  { %2079 = vmatprep.subr.bf16.mxu0 %v19145_v0  ;;  %2192 = vmatprep.subr.bf16.mxu1 %v19145_v0 }
 0x133   :  { %2080 = vmatpush1.bf16.msra.mxu0 %v14051_v45  ;;  %2193 = vmatpush1.bf16.msra.mxu1 %v14052_v46  ;;  %v14092_v45 = vld [vmem:[%s19129_s5 + $0x1e0] sm:$0xff]   ;;  %v14093_v46 = vld [vmem:[%s19129_s5 + $0x188] sm:$0xff]  }
 0x134   :  { %2081 = vmatprep.subr.bf16.mxu0 %v19145_v0  ;;  %2194 = vmatprep.subr.bf16.mxu1 %v19145_v0 }
 0x135   :  { %v15378_v49 = vpop.f32.mrb[4].mxu0  ;;  %v15381_v51 = vpop.f32.mrb[4].mxu1 }
 0x136   :  { %v689_v50 = vpop.f32.mrb[5].mxu0  ;;  %v802_v53 = vpop.f32.mrb[5].mxu1 }
 0x137   :  { %v15383_v52 = vpop.f32.mrb[6].mxu0  ;;  %2082 = vmatpush1.bf16.msra.mxu0 %v14053_v47  ;;  %2195 = vmatpush1.bf16.msra.mxu1 %v14054_v48  ;;  %v15388_v56 = vpop.f32.mrb[6].mxu1  ;;  %v14094_v47 = vld [vmem:[%s19129_s5 + $0x1e8] sm:$0xff]   ;;  %v14095_v48 = vld [vmem:[%s19129_s5 + $0x190] sm:$0xff]   ;;  %v14097_v53 = vld [vmem:[%s19129_s5 + $0x198] sm:$0xff]  }
 0x138   :  { %v692_v55 = vpop.f32.mrb[7].mxu0  ;;  %2083 = vmatprep.subr.bf16.mxu0 %v19145_v0  ;;  %v805_v58 = vpop.f32.mrb[7].mxu1  ;;  %2196 = vmatprep.subr.bf16.mxu1 %v19145_v0  ;;  %v14096_v50 = vld [vmem:[%s19129_s5 + $0x1f0] sm:$0xff]  }
 0x139   :  { %v14099_v55 = vld [vmem:[%s19129_s5 + $0x1a0] sm:$0xff]   ;;  %v14101_v58 = vld [vmem:[%s19129_s5 + $0x1a8] sm:$0xff]  }
 0x13b   :  { %2084 = vmatpush1.bf16.msra.mxu0 %v14055_v54  ;;  %2197 = vmatpush1.bf16.msra.mxu1 %v14056_v57  ;;  %v14098_v54 = vld [vmem:[%s19129_s5 + $0x1f8] sm:$0xff]   ;;  %v14100_v57 = vld [vmem:[%s19129_s5 + $0x200] sm:$0xff]  }
 0x13c   :  { %2085 = vmatprep.subr.bf16.mxu0 %v19145_v0  ;;  %2198 = vmatprep.subr.bf16.mxu1 %v19145_v0 }
 0x13f   :  { %2086 = vmatpush1.bf16.msra.mxu0 %v14057_v59  ;;  %2199 = vmatpush1.bf16.msra.mxu1 %v14058_v60  ;;  %v14102_v59 = vld [vmem:[%s19129_s5 + $0x208] sm:$0xff]  }
 0x140   :  { %2087 = vmatprep.subr.bf16.mxu0 %v19145_v0  ;;  %2200 = vmatprep.subr.bf16.mxu1 %v19145_v0 }
 0x143   :  { %2088 = vmatpush1.bf16.msra.mxu0 %v14059_v61  ;;  %2201 = vmatpush1.bf16.msra.mxu1 %v14060_v62 }
 0x144   :  { %2089 = vmatprep.subr.bf16.mxu0 %v19145_v0  ;;  %2202 = vmatprep.subr.bf16.mxu1 %v19145_v0 }
 0x147   :  { %2090 = vmatpush1.bf16.msra.mxu0 %v14061_v63  ;;  %2203 = vmatpush1.bf16.msra.mxu1 %v14062_v1 }
 0x148   :  { %2091 = vmatprep.subr.bf16.mxu0 %v19145_v0  ;;  %2204 = vmatprep.subr.bf16.mxu1 %v19145_v0 }
 0x14b   :  { %2092 = vmatpush1.bf16.msra.mxu0 %v14063_v2  ;;  %2205 = vmatpush1.bf16.msra.mxu1 %v14064_v3  ;;  %v14103_v2 = vld [vmem:[%s19129_s5 + $0x1b0] sm:$0xff]  }
 0x14c   :  { %2093 = vmatprep.subr.bf16.mxu0 %v19145_v0  ;;  %2206 = vmatprep.subr.bf16.mxu1 %v19145_v0 }
 0x14f   :  { %2094 = vmatpush1.bf16.msra.mxu0 %v14065_v4  ;;  %2207 = vmatpush1.bf16.msra.mxu1 %v14066_v5  ;;  %v14104_v5 = vld [vmem:[%s19129_s5 + $0x210] sm:$0xff]  }
 0x150   :  { %2297 = vmatprep.subr.bf16.mxu0 %v19145_v0  ;;  %2410 = vmatprep.subr.bf16.mxu1 %v19145_v0 }
 0x152   :  { %2104 = vmatmul.mubr.bf16.vlgmr.msra.gmra.mrb[24].mxu0 %v14805_v30  ;;  %2217 = vmatmul.mubr.bf16.vlgmr.msra.gmra.mrb[24].mxu1 %v14805_v30 }
 0x153   :  { %2298 = vmatpush1.bf16.msra.mxu0 %v14067_v6  ;;  %2411 = vmatpush1.bf16.msra.mxu1 %v14068_v7  ;;  %v14105_v7 = vld [vmem:[%s19129_s5 + $0x1b8] sm:$0xff]  }
 0x154   :  { %2299 = vmatprep.subr.bf16.mxu0 %v19145_v0  ;;  %2412 = vmatprep.subr.bf16.mxu1 %v19145_v0 }
 0x155   :  { %12517 = vmatprep.mubr.msk.bf16.mxu0 %vm423_vm0, %v14753_v17  ;;  %12530 = vmatprep.mubr.msk.bf16.mxu1 %vm423_vm0, %v14753_v17 }
 0x157   :  { %2300 = vmatpush1.bf16.msra.mxu0 %v14069_v8  ;;  %2413 = vmatpush1.bf16.msra.mxu1 %v14070_v9  ;;  %v14106_v8 = vld [vmem:[%s19129_s5 + $0x218] sm:$0xff]   ;;  %v14107_v9 = vld [vmem:[%s19129_s5 + $0x1c0] sm:$0xff]  }
 0x158   :  { %2301 = vmatprep.subr.bf16.mxu0 %v19145_v0  ;;  %2414 = vmatprep.subr.bf16.mxu1 %v19145_v0 }
 0x15b   :  { %2302 = vmatpush1.bf16.msra.mxu0 %v14071_v10  ;;  %2415 = vmatpush1.bf16.msra.mxu1 %v14072_v11  ;;  %v14108_v10 = vld [vmem:[%s19129_s5 + $0x220] sm:$0xff]   ;;  %v14109_v11 = vld [vmem:[%s19129_s5 + $0x1c8] sm:$0xff]  }
 0x15c   :  { %2303 = vmatprep.subr.bf16.mxu0 %v19145_v0  ;;  %2416 = vmatprep.subr.bf16.mxu1 %v19145_v0 }
 0x15f   :  { %2304 = vmatpush1.bf16.msra.mxu0 %v14073_v12  ;;  %2417 = vmatpush1.bf16.msra.mxu1 %v14074_v13  ;;  %v14110_v12 = vld [vmem:[%s19129_s5 + $0x228] sm:$0xff]   ;;  %v14111_v13 = vld [vmem:[%s19129_s5 + $0x1d0] sm:$0xff]  }
 0x160   :  { %2305 = vmatprep.subr.bf16.mxu0 %v19145_v0  ;;  %2418 = vmatprep.subr.bf16.mxu1 %v19145_v0 }
 0x163   :  { %2306 = vmatpush1.bf16.msra.mxu0 %v14075_v14  ;;  %2419 = vmatpush1.bf16.msra.mxu1 %v14076_v16  ;;  %v14112_v14 = vld [vmem:[%s19129_s5 + $0x230] sm:$0xff]   ;;  %v14113_v16 = vld [vmem:[%s19129_s5 + $0x1d8] sm:$0xff]  }
 0x164   :  { %2307 = vmatprep.subr.bf16.mxu0 %v19145_v0  ;;  %2420 = vmatprep.subr.bf16.mxu1 %v19145_v0 }
 0x165   :  { %v15488_v22 = vpop.f32.mrb[8].mxu0  ;;  %v15491_v25 = vpop.f32.mrb[8].mxu1 }
 0x166   :  { %v915_v23 = vpop.f32.mrb[9].mxu0  ;;  %v1028_v27 = vpop.f32.mrb[9].mxu1 }
 0x167   :  { %v15493_v26 = vpop.f32.mrb[10].mxu0  ;;  %2308 = vmatpush1.bf16.msra.mxu0 %v14077_v19  ;;  %2421 = vmatpush1.bf16.msra.mxu1 %v14078_v20  ;;  %v15498_v31 = vpop.f32.mrb[10].mxu1  ;;  %v14114_v19 = vld [vmem:[%s19129_s5 + $0x238] sm:$0xff]   ;;  %v14115_v20 = vld [vmem:[%s19129_s5 + $0x240] sm:$0xff]   ;;  %v14117_v27 = vld [vmem:[%s19129_s5 + $0x248] sm:$0xff]  }
 0x168   :  { %v918_v29 = vpop.f32.mrb[11].mxu0  ;;  %2309 = vmatprep.subr.bf16.mxu0 %v19145_v0  ;;  %v1031_v33 = vpop.f32.mrb[11].mxu1  ;;  %2422 = vmatprep.subr.bf16.mxu1 %v19145_v0  ;;  %v14116_v23 = vld [vmem:[%s19129_s5 + $0x2a0] sm:$0xff]  }
 0x169   :  { %v14119_v29 = vld [vmem:[%s19129_s5 + $0x250] sm:$0xff]   ;;  %v14121_v33 = vld [vmem:[%s19129_s5 + $0x258] sm:$0xff]  }
 0x16b   :  { %2310 = vmatpush1.bf16.msra.mxu0 %v14079_v28  ;;  %2423 = vmatpush1.bf16.msra.mxu1 %v14080_v32  ;;  %v14118_v28 = vld [vmem:[%s19129_s5 + $0x2a8] sm:$0xff]   ;;  %v14120_v32 = vld [vmem:[%s19129_s5 + $0x2b0] sm:$0xff]  }
 0x16c   :  { %2311 = vmatprep.subr.bf16.mxu0 %v19145_v0  ;;  %2424 = vmatprep.subr.bf16.mxu1 %v19145_v0 }
 0x16f   :  { %2312 = vmatpush1.bf16.msra.mxu0 %v14081_v34  ;;  %2425 = vmatpush1.bf16.msra.mxu1 %v14082_v35  ;;  %v14122_v34 = vld [vmem:[%s19129_s5 + $0x2b8] sm:$0xff]   ;;  %v14123_v35 = vld [vmem:[%s19129_s5 + $0x260] sm:$0xff]  }
 0x170   :  { %2313 = vmatprep.subr.bf16.mxu0 %v19145_v0  ;;  %2426 = vmatprep.subr.bf16.mxu1 %v19145_v0 }
 0x173   :  { %2314 = vmatpush1.bf16.msra.mxu0 %v14083_v36  ;;  %2427 = vmatpush1.bf16.msra.mxu1 %v14084_v37  ;;  %v14124_v36 = vld [vmem:[%s19129_s5 + $0x2c0] sm:$0xff]   ;;  %v14125_v37 = vld [vmem:[%s19129_s5 + $0x268] sm:$0xff]  }
 0x174   :  { %2315 = vmatprep.subr.bf16.mxu0 %v19145_v0  ;;  %2428 = vmatprep.subr.bf16.mxu1 %v19145_v0 }
 0x177   :  { %2316 = vmatpush1.bf16.msra.mxu0 %v14085_v38  ;;  %2429 = vmatpush1.bf16.msra.mxu1 %v14086_v39  ;;  %v14126_v38 = vld [vmem:[%s19129_s5 + $0x2c8] sm:$0xff]  }
 0x178   :  { %2317 = vmatprep.subr.bf16.mxu0 %v19145_v0  ;;  %2430 = vmatprep.subr.bf16.mxu1 %v19145_v0 }
 0x17b   :  { %2318 = vmatpush1.bf16.msra.mxu0 %v14087_v40  ;;  %2431 = vmatpush1.bf16.msra.mxu1 %v14088_v41 }
 0x17c   :  { %2319 = vmatprep.subr.bf16.mxu0 %v19145_v0  ;;  %2432 = vmatprep.subr.bf16.mxu1 %v19145_v0 }
 0x17f   :  { %2320 = vmatpush1.bf16.msra.mxu0 %v14089_v42  ;;  %2433 = vmatpush1.bf16.msra.mxu1 %v14090_v43  ;;  %v14127_v42 = vld [vmem:[%s19129_s5 + $0x270] sm:$0xff]  }
 0x180   :  { %2523 = vmatprep.subr.bf16.mxu0 %v19145_v0  ;;  %2636 = vmatprep.subr.bf16.mxu1 %v19145_v0  ;;  %v14128_v43 = vld [vmem:[%s19129_s5 + $0x2d0] sm:$0xff]  }
 0x182   :  { %2330 = vmatmul.mubr.bf16.vlgmr.msra.gmra.mrb[28].mxu0 %v14805_v30  ;;  %2443 = vmatmul.mubr.bf16.vlgmr.msra.gmra.mrb[28].mxu1 %v14805_v30 }
 0x183   :  { %2524 = vmatpush1.bf16.msra.mxu0 %v14091_v44  ;;  %2637 = vmatpush1.bf16.msra.mxu1 %v14092_v45 }
 0x184   :  { %2525 = vmatprep.subr.bf16.mxu0 %v19145_v0  ;;  %2638 = vmatprep.subr.bf16.mxu1 %v19145_v0 }
 0x185   :  { %12543 = vmatprep.mubr.msk.bf16.mxu0 %vm423_vm0, %v14753_v17  ;;  %12556 = vmatprep.mubr.msk.bf16.mxu1 %vm423_vm0, %v14753_v17 }
 0x187   :  { %2526 = vmatpush1.bf16.msra.mxu0 %v14093_v46  ;;  %2639 = vmatpush1.bf16.msra.mxu1 %v14094_v47 }
 0x188   :  { %2527 = vmatprep.subr.bf16.mxu0 %v19145_v0  ;;  %2640 = vmatprep.subr.bf16.mxu1 %v19145_v0 }
 0x18b   :  { %2528 = vmatpush1.bf16.msra.mxu0 %v14095_v48  ;;  %2641 = vmatpush1.bf16.msra.mxu1 %v14096_v50  ;;  %v14129_v50 = vld [vmem:[%s19129_s5 + $0x278] sm:$0xff]  }
 0x18c   :  { %2529 = vmatprep.subr.bf16.mxu0 %v19145_v0  ;;  %2642 = vmatprep.subr.bf16.mxu1 %v19145_v0 }
 0x18f   :  { %2530 = vmatpush1.bf16.msra.mxu0 %v14097_v53  ;;  %2643 = vmatpush1.bf16.msra.mxu1 %v14098_v54  ;;  %v14130_v53 = vld [vmem:[%s19129_s5 + $0x2d8] sm:$0xff]   ;;  %v14131_v54 = vld [vmem:[%s19129_s5 + $0x280] sm:$0xff]  }
 0x190   :  { %2531 = vmatprep.subr.bf16.mxu0 %v19145_v0  ;;  %2644 = vmatprep.subr.bf16.mxu1 %v19145_v0 }
 0x193   :  { %2532 = vmatpush1.bf16.msra.mxu0 %v14099_v55  ;;  %2645 = vmatpush1.bf16.msra.mxu1 %v14100_v57  ;;  %v14132_v55 = vld [vmem:[%s19129_s5 + $0x2e0] sm:$0xff]   ;;  %v14133_v57 = vld [vmem:[%s19129_s5 + $0x288] sm:$0xff]  }
 0x194   :  { %2533 = vmatprep.subr.bf16.mxu0 %v19145_v0  ;;  %2646 = vmatprep.subr.bf16.mxu1 %v19145_v0 }
 0x195   :  { %v15598_v60 = vpop.f32.mrb[12].mxu0  ;;  %v15601_v62 = vpop.f32.mrb[12].mxu1 }
 0x196   :  { %v1141_v61 = vpop.f32.mrb[13].mxu0  ;;  %v1254_v1 = vpop.f32.mrb[13].mxu1 }
 0x197   :  { %v15603_v63 = vpop.f32.mrb[14].mxu0  ;;  %2534 = vmatpush1.bf16.msra.mxu0 %v14101_v58  ;;  %2647 = vmatpush1.bf16.msra.mxu1 %v14102_v59  ;;  %v15608_v4 = vpop.f32.mrb[14].mxu1  ;;  %v14134_v58 = vld [vmem:[%s19129_s5 + $0x2e8] sm:$0xff]   ;;  %v14135_v59 = vld [vmem:[%s19129_s5 + $0x290] sm:$0xff]   ;;  %v14137_v1 = vld [vmem:[%s19129_s5 + $0x298] sm:$0xff]  }
 0x198   :  { %v1144_v3 = vpop.f32.mrb[15].mxu0  ;;  %2535 = vmatprep.subr.bf16.mxu0 %v19145_v0  ;;  %v1257_v6 = vpop.f32.mrb[15].mxu1  ;;  %2648 = vmatprep.subr.bf16.mxu1 %v19145_v0  ;;  %v14136_v61 = vld [vmem:[%s19129_s5 + $0x2f0] sm:$0xff]  }
 0x199   :  { %v14139_v3 = vld [vmem:[%s19129_s5 + $0x300] sm:$0xff]   ;;  %v14141_v6 = vld [vmem:[%s19129_s5 + $0x308] sm:$0xff]  }
 0x19b   :  { %2536 = vmatpush1.bf16.msra.mxu0 %v14103_v2  ;;  %2649 = vmatpush1.bf16.msra.mxu1 %v14104_v5  ;;  %v14138_v2 = vld [vmem:[%s19129_s5 + $0x2f8] sm:$0xff]   ;;  %v14140_v5 = vld [vmem:[%s19129_s5 + $0x360] sm:$0xff]  }
 0x19c   :  { %2537 = vmatprep.subr.bf16.mxu0 %v19145_v0  ;;  %2650 = vmatprep.subr.bf16.mxu1 %v19145_v0 }
 0x19f   :  { %2538 = vmatpush1.bf16.msra.mxu0 %v14105_v7  ;;  %2651 = vmatpush1.bf16.msra.mxu1 %v14106_v8  ;;  %v14142_v7 = vld [vmem:[%s19129_s5 + $0x368] sm:$0xff]   ;;  %v14143_v8 = vld [vmem:[%s19129_s5 + $0x310] sm:$0xff]  }
 0x1a0   :  { %2539 = vmatprep.subr.bf16.mxu0 %v19145_v0  ;;  %2652 = vmatprep.subr.bf16.mxu1 %v19145_v0 }
 0x1a3   :  { %2540 = vmatpush1.bf16.msra.mxu0 %v14107_v9  ;;  %2653 = vmatpush1.bf16.msra.mxu1 %v14108_v10  ;;  %v14144_v9 = vld [vmem:[%s19129_s5 + $0x370] sm:$0xff]   ;;  %v14145_v10 = vld [vmem:[%s19129_s5 + $0x318] sm:$0xff]  }
 0x1a4   :  { %2541 = vmatprep.subr.bf16.mxu0 %v19145_v0  ;;  %2654 = vmatprep.subr.bf16.mxu1 %v19145_v0 }
 0x1a7   :  { %2542 = vmatpush1.bf16.msra.mxu0 %v14109_v11  ;;  %2655 = vmatpush1.bf16.msra.mxu1 %v14110_v12  ;;  %v14146_v11 = vld [vmem:[%s19129_s5 + $0x378] sm:$0xff]   ;;  %v14147_v12 = vld [vmem:[%s19129_s5 + $0x320] sm:$0xff]  }
 0x1a8   :  { %2543 = vmatprep.subr.bf16.mxu0 %v19145_v0  ;;  %2656 = vmatprep.subr.bf16.mxu1 %v19145_v0 }
 0x1ab   :  { %2544 = vmatpush1.bf16.msra.mxu0 %v14111_v13  ;;  %2657 = vmatpush1.bf16.msra.mxu1 %v14112_v14  ;;  %v14148_v13 = vld [vmem:[%s19129_s5 + $0x380] sm:$0xff]   ;;  %v14149_v14 = vld [vmem:[%s19129_s5 + $0x328] sm:$0xff]  }
 0x1ac   :  { %2545 = vmatprep.subr.bf16.mxu0 %v19145_v0  ;;  %2658 = vmatprep.subr.bf16.mxu1 %v19145_v0 }
 0x1af   :  { %2546 = vmatpush1.bf16.msra.mxu0 %v14113_v16  ;;  %2659 = vmatpush1.bf16.msra.mxu1 %v14114_v19  ;;  %v14150_v16 = vld [vmem:[%s19129_s5 + $0x388] sm:$0xff]  }
 0x1b0   :  { %2749 = vmatprep.subr.bf16.mxu0 %v19145_v0  ;;  %2862 = vmatprep.subr.bf16.mxu1 %v19145_v0 }
 0x1b2   :  { %2556 = vmatmul.mubr.bf16.vlgmr.msra.gmra.mrb[32].mxu0 %v14805_v30  ;;  %2669 = vmatmul.mubr.bf16.vlgmr.msra.gmra.mrb[32].mxu1 %v14805_v30 }
 0x1b3   :  { %2750 = vmatpush1.bf16.msra.mxu0 %v14115_v20  ;;  %2863 = vmatpush1.bf16.msra.mxu1 %v14116_v23 }
 0x1b4   :  { %2751 = vmatprep.subr.bf16.mxu0 %v19145_v0  ;;  %2864 = vmatprep.subr.bf16.mxu1 %v19145_v0 }
 0x1b5   :  { %12569 = vmatprep.mubr.msk.bf16.mxu0 %vm423_vm0, %v14753_v17  ;;  %12582 = vmatprep.mubr.msk.bf16.mxu1 %vm423_vm0, %v14753_v17 }
 0x1b7   :  { %2752 = vmatpush1.bf16.msra.mxu0 %v14117_v27  ;;  %2865 = vmatpush1.bf16.msra.mxu1 %v14118_v28  ;;  %v14151_v27 = vld [vmem:[%s19129_s5 + $0x330] sm:$0xff]  }
 0x1b8   :  { %2753 = vmatprep.subr.bf16.mxu0 %v19145_v0  ;;  %2866 = vmatprep.subr.bf16.mxu1 %v19145_v0  ;;  %v14152_v28 = vld [vmem:[%s19129_s5 + $0x390] sm:$0xff]  }
 0x1bb   :  { %2754 = vmatpush1.bf16.msra.mxu0 %v14119_v29  ;;  %2867 = vmatpush1.bf16.msra.mxu1 %v14120_v32 }
 0x1bc   :  { %2755 = vmatprep.subr.bf16.mxu0 %v19145_v0  ;;  %2868 = vmatprep.subr.bf16.mxu1 %v19145_v0 }
 0x1bf   :  { %2756 = vmatpush1.bf16.msra.mxu0 %v14121_v33  ;;  %2869 = vmatpush1.bf16.msra.mxu1 %v14122_v34 }
 0x1c0   :  { %2757 = vmatprep.subr.bf16.mxu0 %v19145_v0  ;;  %2870 = vmatprep.subr.bf16.mxu1 %v19145_v0 }
 0x1c3   :  { %2758 = vmatpush1.bf16.msra.mxu0 %v14123_v35  ;;  %2871 = vmatpush1.bf16.msra.mxu1 %v14124_v36  ;;  %v14153_v36 = vld [vmem:[%s19129_s5 + $0x338] sm:$0xff]  }
 0x1c4   :  { %2759 = vmatprep.subr.bf16.mxu0 %v19145_v0  ;;  %2872 = vmatprep.subr.bf16.mxu1 %v19145_v0 }
 0x1c5   :  { %v15708_v39 = vpop.f32.mrb[16].mxu0  ;;  %v15711_v41 = vpop.f32.mrb[16].mxu1 }
 0x1c6   :  { %v1367_v40 = vpop.f32.mrb[17].mxu0  ;;  %v1480_v45 = vpop.f32.mrb[17].mxu1 }
 0x1c7   :  { %v15719_v44 = vpop.f32.mrb[18].mxu0  ;;  %2760 = vmatpush1.bf16.msra.mxu0 %v14125_v37  ;;  %2873 = vmatpush1.bf16.msra.mxu1 %v14126_v38  ;;  %v15721_v47 = vpop.f32.mrb[18].mxu1  ;;  %v14154_v37 = vld [vmem:[%s19129_s5 + $0x398] sm:$0xff]   ;;  %v14155_v38 = vld [vmem:[%s19129_s5 + $0x340] sm:$0xff]   ;;  %v14159_v45 = vld [vmem:[%s19129_s5 + $0x350] sm:$0xff]  }
 0x1c8   :  { %v1370_v46 = vpop.f32.mrb[19].mxu0  ;;  %2761 = vmatprep.subr.bf16.mxu0 %v19145_v0  ;;  %v1483_v48 = vpop.f32.mrb[19].mxu1  ;;  %2874 = vmatprep.subr.bf16.mxu1 %v19145_v0  ;;  %v14156_v40 = vld [vmem:[%s19129_s5 + $0x3a0] sm:$0xff]  }
 0x1c9   :  { %v14160_v46 = vld [vmem:[%s19129_s5 + $0x3b0] sm:$0xff]   ;;  %v14161_v48 = vld [vmem:[%s19129_s5 + $0x358] sm:$0xff]  }
 0x1cb   :  { %2762 = vmatpush1.bf16.msra.mxu0 %v14127_v42  ;;  %2875 = vmatpush1.bf16.msra.mxu1 %v14128_v43  ;;  %v14157_v42 = vld [vmem:[%s19129_s5 + $0x348] sm:$0xff]  }
 0x1cc   :  { %2763 = vmatprep.subr.bf16.mxu0 %v19145_v0  ;;  %2876 = vmatprep.subr.bf16.mxu1 %v19145_v0  ;;  %v14158_v43 = vld [vmem:[%s19129_s5 + $0x3a8] sm:$0xff]  }
 0x1cf   :  { %2764 = vmatpush1.bf16.msra.mxu0 %v14129_v50  ;;  %2877 = vmatpush1.bf16.msra.mxu1 %v14130_v53  ;;  %v14162_v50 = vld [vmem:[%s19129_s5 + $0x3b8] sm:$0xff]   ;;  %v14163_v53 = vld [vmem:[%s19129_s5 + $0x3c0] sm:$0xff]  }
 0x1d0   :  { %2765 = vmatprep.subr.bf16.mxu0 %v19145_v0  ;;  %2878 = vmatprep.subr.bf16.mxu1 %v19145_v0 }
 0x1d3   :  { %2766 = vmatpush1.bf16.msra.mxu0 %v14131_v54  ;;  %2879 = vmatpush1.bf16.msra.mxu1 %v14132_v55  ;;  %v14164_v54 = vld [vmem:[%s19129_s5 + $0x420] sm:$0xff]   ;;  %v14165_v55 = vld [vmem:[%s19129_s5 + $0x3c8] sm:$0xff]  }
 0x1d4   :  { %2767 = vmatprep.subr.bf16.mxu0 %v19145_v0  ;;  %2880 = vmatprep.subr.bf16.mxu1 %v19145_v0 }
 0x1d7   :  { %2768 = vmatpush1.bf16.msra.mxu0 %v14133_v57  ;;  %2881 = vmatpush1.bf16.msra.mxu1 %v14134_v58  ;;  %v14166_v57 = vld [vmem:[%s19129_s5 + $0x428] sm:$0xff]   ;;  %v14167_v58 = vld [vmem:[%s19129_s5 + $0x3d0] sm:$0xff]  }
 0x1d8   :  { %2769 = vmatprep.subr.bf16.mxu0 %v19145_v0  ;;  %2882 = vmatprep.subr.bf16.mxu1 %v19145_v0 }
 0x1db   :  { %2770 = vmatpush1.bf16.msra.mxu0 %v14135_v59  ;;  %2883 = vmatpush1.bf16.msra.mxu1 %v14136_v61  ;;  %v14168_v59 = vld [vmem:[%s19129_s5 + $0x430] sm:$0xff]   ;;  %v14169_v61 = vld [vmem:[%s19129_s5 + $0x3d8] sm:$0xff]  }
 0x1dc   :  { %2771 = vmatprep.subr.bf16.mxu0 %v19145_v0  ;;  %2884 = vmatprep.subr.bf16.mxu1 %v19145_v0 }
 0x1df   :  { %2772 = vmatpush1.bf16.msra.mxu0 %v14137_v1  ;;  %2885 = vmatpush1.bf16.msra.mxu1 %v14138_v2  ;;  %v14170_v1 = vld [vmem:[%s19129_s5 + $0x438] sm:$0xff]   ;;  %v14171_v2 = vld [vmem:[%s19129_s5 + $0x3e0] sm:$0xff]  }
 0x1e0   :  { %2975 = vmatprep.subr.bf16.mxu0 %v19145_v0  ;;  %3088 = vmatprep.subr.bf16.mxu1 %v19145_v0 }
 0x1e2   :  { %2782 = vmatmul.mubr.bf16.vlgmr.msra.gmra.mrb[36].mxu0 %v14805_v30  ;;  %2895 = vmatmul.mubr.bf16.vlgmr.msra.gmra.mrb[36].mxu1 %v14805_v30 }
 0x1e3   :  { %2976 = vmatpush1.bf16.msra.mxu0 %v14139_v3  ;;  %3089 = vmatpush1.bf16.msra.mxu1 %v14140_v5  ;;  %v14172_v3 = vld [vmem:[%s19129_s5 + $0x440] sm:$0xff]   ;;  %v14173_v5 = vld [vmem:[%s19129_s5 + $0x3e8] sm:$0xff]  }
 0x1e4   :  { %2977 = vmatprep.subr.bf16.mxu0 %v19145_v0  ;;  %3090 = vmatprep.subr.bf16.mxu1 %v19145_v0 }
 0x1e5   :  { %12595 = vmatprep.mubr.msk.bf16.mxu0 %vm423_vm0, %v14753_v17  ;;  %12608 = vmatprep.mubr.msk.bf16.mxu1 %vm423_vm0, %v14753_v17 }
 0x1e7   :  { %2978 = vmatpush1.bf16.msra.mxu0 %v14141_v6  ;;  %3091 = vmatpush1.bf16.msra.mxu1 %v14142_v7  ;;  %v14174_v6 = vld [vmem:[%s19129_s5 + $0x448] sm:$0xff]  }
 0x1e8   :  { %2979 = vmatprep.subr.bf16.mxu0 %v19145_v0  ;;  %3092 = vmatprep.subr.bf16.mxu1 %v19145_v0 }
 0x1eb   :  { %2980 = vmatpush1.bf16.msra.mxu0 %v14143_v8  ;;  %3093 = vmatpush1.bf16.msra.mxu1 %v14144_v9 }
 0x1ec   :  { %2981 = vmatprep.subr.bf16.mxu0 %v19145_v0  ;;  %3094 = vmatprep.subr.bf16.mxu1 %v19145_v0 }
 0x1ef   :  { %2982 = vmatpush1.bf16.msra.mxu0 %v14145_v10  ;;  %3095 = vmatpush1.bf16.msra.mxu1 %v14146_v11  ;;  %v14175_v10 = vld [vmem:[%s19129_s5 + $0x3f0] sm:$0xff]  }
 0x1f0   :  { %2983 = vmatprep.subr.bf16.mxu0 %v19145_v0  ;;  %3096 = vmatprep.subr.bf16.mxu1 %v19145_v0  ;;  %v14176_v11 = vld [vmem:[%s19129_s5 + $0x450] sm:$0xff]  }
 0x1f3   :  { %2984 = vmatpush1.bf16.msra.mxu0 %v14147_v12  ;;  %3097 = vmatpush1.bf16.msra.mxu1 %v14148_v13 }
 0x1f4   :  { %2985 = vmatprep.subr.bf16.mxu0 %v19145_v0  ;;  %3098 = vmatprep.subr.bf16.mxu1 %v19145_v0 }
 0x1f5   :  { %v15818_v19 = vpop.f32.mrb[20].mxu0  ;;  %v15821_v23 = vpop.f32.mrb[20].mxu1 }
 0x1f6   :  { %v1593_v20 = vpop.f32.mrb[21].mxu0  ;;  %v1706_v32 = vpop.f32.mrb[21].mxu1 }
 0x1f7   :  { %v15829_v29 = vpop.f32.mrb[22].mxu0  ;;  %2986 = vmatpush1.bf16.msra.mxu0 %v14149_v14  ;;  %3099 = vmatpush1.bf16.msra.mxu1 %v14150_v16  ;;  %v15831_v34 = vpop.f32.mrb[22].mxu1  ;;  %v14177_v32 = vld [vmem:[%s19129_s5 + $0x3f8] sm:$0xff]  }
 0x1f8   :  { %v1596_v33 = vpop.f32.mrb[23].mxu0  ;;  %2987 = vmatprep.subr.bf16.mxu0 %v19145_v0  ;;  %v1709_v35 = vpop.f32.mrb[23].mxu1  ;;  %3100 = vmatprep.subr.bf16.mxu1 %v19145_v0 }
 0x1f9   :  { %v14178_v33 = vld [vmem:[%s19129_s5 + $0x458] sm:$0xff]   ;;  %v14179_v35 = vld [vmem:[%s19129_s5 + $0x400] sm:$0xff]  }
 0x1fb   :  { %2988 = vmatpush1.bf16.msra.mxu0 %v14151_v27  ;;  %3101 = vmatpush1.bf16.msra.mxu1 %v14152_v28 }
 0x1fc   :  { %2989 = vmatprep.subr.bf16.mxu0 %v19145_v0  ;;  %3102 = vmatprep.subr.bf16.mxu1 %v19145_v0 }
 0x1ff   :  { %2990 = vmatpush1.bf16.msra.mxu0 %v14153_v36  ;;  %3103 = vmatpush1.bf16.msra.mxu1 %v14154_v37  ;;  %v14180_v36 = vld [vmem:[%s19129_s5 + $0x460] sm:$0xff]   ;;  %v14181_v37 = vld [vmem:[%s19129_s5 + $0x408] sm:$0xff]  }
 0x200   :  { %2991 = vmatprep.subr.bf16.mxu0 %v19145_v0  ;;  %3104 = vmatprep.subr.bf16.mxu1 %v19145_v0 }
 0x203   :  { %2992 = vmatpush1.bf16.msra.mxu0 %v14155_v38  ;;  %3105 = vmatpush1.bf16.msra.mxu1 %v14156_v40  ;;  %v14182_v38 = vld [vmem:[%s19129_s5 + $0x468] sm:$0xff]   ;;  %v14183_v40 = vld [vmem:[%s19129_s5 + $0x410] sm:$0xff]  }
 0x204   :  { %2993 = vmatprep.subr.bf16.mxu0 %v19145_v0  ;;  %3106 = vmatprep.subr.bf16.mxu1 %v19145_v0 }
 0x207   :  { %2994 = vmatpush1.bf16.msra.mxu0 %v14157_v42  ;;  %3107 = vmatpush1.bf16.msra.mxu1 %v14158_v43  ;;  %v14184_v42 = vld [vmem:[%s19129_s5 + $0x470] sm:$0xff]   ;;  %v14185_v43 = vld [vmem:[%s19129_s5 + $0x418] sm:$0xff]  }
 0x208   :  { %2995 = vmatprep.subr.bf16.mxu0 %v19145_v0  ;;  %3108 = vmatprep.subr.bf16.mxu1 %v19145_v0 }
 0x20b   :  { %2996 = vmatpush1.bf16.msra.mxu0 %v14159_v45  ;;  %3109 = vmatpush1.bf16.msra.mxu1 %v14160_v46  ;;  %v14186_v45 = vld [vmem:[%s19129_s5 + $0x478] sm:$0xff]   ;;  %v14187_v46 = vld [vmem:[%s19130_s6] sm:$0xff]  }
 0x20c   :  { %2997 = vmatprep.subr.bf16.mxu0 %v19145_v0  ;;  %3110 = vmatprep.subr.bf16.mxu1 %v19145_v0 }
 0x20f   :  { %2998 = vmatpush1.bf16.msra.mxu0 %v14161_v48  ;;  %3111 = vmatpush1.bf16.msra.mxu1 %v14162_v50  ;;  %v14188_v48 = vld [vmem:[%s19130_s6 + $0x60] sm:$0xff]   ;;  %v14189_v50 = vld [vmem:[%s19130_s6 + $0x8] sm:$0xff]  }
 0x210   :  { %3201 = vmatprep.subr.bf16.mxu0 %v19145_v0  ;;  %3314 = vmatprep.subr.bf16.mxu1 %v19145_v0 }
 0x212   :  { %3008 = vmatmul.mubr.bf16.vlgmr.msra.gmra.mrb[40].mxu0 %v14805_v30  ;;  %3121 = vmatmul.mubr.bf16.vlgmr.msra.gmra.mrb[40].mxu1 %v14805_v30 }
 0x213   :  { %3202 = vmatpush1.bf16.msra.mxu0 %v14163_v53  ;;  %3315 = vmatpush1.bf16.msra.mxu1 %v14164_v54  ;;  %v14190_v53 = vld [vmem:[%s19130_s6 + $0x68] sm:$0xff]   ;;  %v14191_v54 = vld [vmem:[%s19130_s6 + $0x10] sm:$0xff]  }
 0x214   :  { %3203 = vmatprep.subr.bf16.mxu0 %v19145_v0  ;;  %3316 = vmatprep.subr.bf16.mxu1 %v19145_v0 }
 0x215   :  { %12621 = vmatprep.mubr.msk.bf16.mxu0 %vm423_vm0, %v14753_v17  ;;  %12634 = vmatprep.mubr.msk.bf16.mxu1 %vm423_vm0, %v14753_v17 }
 0x217   :  { %3204 = vmatpush1.bf16.msra.mxu0 %v14165_v55  ;;  %3317 = vmatpush1.bf16.msra.mxu1 %v14166_v57  ;;  %v14192_v55 = vld [vmem:[%s19130_s6 + $0x70] sm:$0xff]   ;;  %v14193_v57 = vld [vmem:[%s19130_s6 + $0x18] sm:$0xff]  }
 0x218   :  { %3205 = vmatprep.subr.bf16.mxu0 %v19145_v0  ;;  %3318 = vmatprep.subr.bf16.mxu1 %v19145_v0 }
 0x21b   :  { %3206 = vmatpush1.bf16.msra.mxu0 %v14167_v58  ;;  %3319 = vmatpush1.bf16.msra.mxu1 %v14168_v59  ;;  %v14194_v58 = vld [vmem:[%s19130_s6 + $0x78] sm:$0xff]   ;;  %v14195_v59 = vld [vmem:[%s19130_s6 + $0x20] sm:$0xff]  }
 0x21c   :  { %3207 = vmatprep.subr.bf16.mxu0 %v19145_v0  ;;  %3320 = vmatprep.subr.bf16.mxu1 %v19145_v0 }
 0x21f   :  { %3208 = vmatpush1.bf16.msra.mxu0 %v14169_v61  ;;  %3321 = vmatpush1.bf16.msra.mxu1 %v14170_v1  ;;  %v14196_v61 = vld [vmem:[%s19130_s6 + $0x80] sm:$0xff]   ;;  %v14197_v1 = vld [vmem:[%s19130_s6 + $0x28] sm:$0xff]  }
 0x220   :  { %3209 = vmatprep.subr.bf16.mxu0 %v19145_v0  ;;  %3322 = vmatprep.subr.bf16.mxu1 %v19145_v0 }
 0x223   :  { %3210 = vmatpush1.bf16.msra.mxu0 %v14171_v2  ;;  %3323 = vmatpush1.bf16.msra.mxu1 %v14172_v3  ;;  %v14198_v2 = vld [vmem:[%s19130_s6 + $0x88] sm:$0xff]  }
 0x224   :  { %3211 = vmatprep.subr.bf16.mxu0 %v19145_v0  ;;  %3324 = vmatprep.subr.bf16.mxu1 %v19145_v0 }
 0x225   :  { %v2105_v7 = vpop.f32.mrb[24].mxu0  ;;  %v2218_v9 = vpop.f32.mrb[24].mxu1 }
 0x226   :  { %v2107_v8 = vpop.f32.mrb[25].mxu0  ;;  %v2220_v13 = vpop.f32.mrb[25].mxu1 }
 0x227   :  { %v2108_v12 = vpop.f32.mrb[26].mxu0  ;;  %3212 = vmatpush1.bf16.msra.mxu0 %v14173_v5  ;;  %3325 = vmatpush1.bf16.msra.mxu1 %v14174_v6  ;;  %v2221_v20 = vpop.f32.mrb[26].mxu1  ;;  %v14200_v13 = vld [vmem:[%s19130_s6 + $0x90] sm:$0xff]  }
 0x228   :  { %v15935_v14 = vpack.c.bf16 %v2108_v12, %v2105_v7  ;;  %v2110_v16 = vpop.f32.mrb[27].mxu0  ;;  %3213 = vmatprep.subr.bf16.mxu0 %v19145_v0  ;;  %v15938_v27 = vpack.c.bf16 %v2221_v20, %v2218_v9  ;;  %v2223_v28 = vpop.f32.mrb[27].mxu1  ;;  %3326 = vmatprep.subr.bf16.mxu1 %v19145_v0  ;;  %v14199_v9 = vld [vmem:[%s19130_s6 + $0x30] sm:$0xff]  }
 0x229   :  { %v14201_v28 = vld [vmem:[%s19130_s6 + $0x38] sm:$0xff]  }
 0x22b   :  { %3214 = vmatpush1.bf16.msra.mxu0 %v14175_v10  ;;  %3327 = vmatpush1.bf16.msra.mxu1 %v14176_v11 }
 0x22c   :  { %3215 = vmatprep.subr.bf16.mxu0 %v19145_v0  ;;  %3328 = vmatprep.subr.bf16.mxu1 %v19145_v0 }
 0x22f   :  { %3216 = vmatpush1.bf16.msra.mxu0 %v14177_v32  ;;  %3329 = vmatpush1.bf16.msra.mxu1 %v14178_v33  ;;  %v14202_v32 = vld [vmem:[%s19130_s6 + $0x98] sm:$0xff]   ;;  %v14203_v33 = vld [vmem:[%s19130_s6 + $0x40] sm:$0xff]  }
 0x230   :  { %3217 = vmatprep.subr.bf16.mxu0 %v19145_v0  ;;  %3330 = vmatprep.subr.bf16.mxu1 %v19145_v0 }
 0x233   :  { %3218 = vmatpush1.bf16.msra.mxu0 %v14179_v35  ;;  %3331 = vmatpush1.bf16.msra.mxu1 %v14180_v36  ;;  %v14204_v35 = vld [vmem:[%s19130_s6 + $0xa0] sm:$0xff]   ;;  %v14205_v36 = vld [vmem:[%s19130_s6 + $0x48] sm:$0xff]  }
 0x234   :  { %3219 = vmatprep.subr.bf16.mxu0 %v19145_v0  ;;  %3332 = vmatprep.subr.bf16.mxu1 %v19145_v0 }
 0x237   :  { %3220 = vmatpush1.bf16.msra.mxu0 %v14181_v37  ;;  %3333 = vmatpush1.bf16.msra.mxu1 %v14182_v38  ;;  %v14206_v37 = vld [vmem:[%s19130_s6 + $0xa8] sm:$0xff]   ;;  %v14207_v38 = vld [vmem:[%s19130_s6 + $0x50] sm:$0xff]  }
 0x238   :  { %3221 = vmatprep.subr.bf16.mxu0 %v19145_v0  ;;  %3334 = vmatprep.subr.bf16.mxu1 %v19145_v0 }
 0x23b   :  { %3222 = vmatpush1.bf16.msra.mxu0 %v14183_v40  ;;  %3335 = vmatpush1.bf16.msra.mxu1 %v14184_v42  ;;  %v14208_v40 = vld [vmem:[%s19130_s6 + $0xb0] sm:$0xff]   ;;  %v14209_v42 = vld [vmem:[%s19130_s6 + $0x58] sm:$0xff]  }
 0x23c   :  { %3223 = vmatprep.subr.bf16.mxu0 %v19145_v0  ;;  %3336 = vmatprep.subr.bf16.mxu1 %v19145_v0 }
 0x23f   :  { %3224 = vmatpush1.bf16.msra.mxu0 %v14185_v43  ;;  %3337 = vmatpush1.bf16.msra.mxu1 %v14186_v45  ;;  %v14210_v43 = vld [vmem:[%s19130_s6 + $0xb8] sm:$0xff]   ;;  %v14211_v45 = vld [vmem:[%s19130_s6 + $0xc0] sm:$0xff]  }
 0x240   :  { %3715 = vmatprep.subr.bf16.mxu0 %v19145_v0  ;;  %3828 = vmatprep.subr.bf16.mxu1 %v19145_v0 }
 0x242   :  { %3234 = vmatmul.mubr.bf16.vlgmr.msra.gmra.mrb[44].mxu0 %v14805_v30  ;;  %3347 = vmatmul.mubr.bf16.vlgmr.msra.gmra.mrb[44].mxu1 %v14805_v30 }
 0x243   :  { %3716 = vmatpush1.bf16.msra.mxu0 %v14187_v46  ;;  %3829 = vmatpush1.bf16.msra.mxu1 %v14188_v48  ;;  %v14212_v46 = vld [vmem:[%s19130_s6 + $0x120] sm:$0xff]   ;;  %v14213_v48 = vld [vmem:[%s19130_s6 + $0xc8] sm:$0xff]  }
 0x244   :  { %3717 = vmatprep.subr.bf16.mxu0 %v19145_v0  ;;  %3830 = vmatprep.subr.bf16.mxu1 %v19145_v0 }
 0x245   :  { %12647 = vmatprep.mubr.msk.bf16.mxu0 %vm423_vm0, %v14753_v17  ;;  %12660 = vmatprep.mubr.msk.bf16.mxu1 %vm423_vm0, %v14753_v17 }
 0x247   :  { %3718 = vmatpush1.bf16.msra.mxu0 %v14189_v50  ;;  %3831 = vmatpush1.bf16.msra.mxu1 %v14190_v53  ;;  %v14214_v50 = vld [vmem:[%s19130_s6 + $0x128] sm:$0xff]   ;;  %v14215_v53 = vld [vmem:[%s19130_s6 + $0xd0] sm:$0xff]  }
 0x248   :  { %3719 = vmatprep.subr.bf16.mxu0 %v19145_v0  ;;  %3832 = vmatprep.subr.bf16.mxu1 %v19145_v0 }
 0x24b   :  { %3720 = vmatpush1.bf16.msra.mxu0 %v14191_v54  ;;  %3833 = vmatpush1.bf16.msra.mxu1 %v14192_v55  ;;  %v14216_v54 = vld [vmem:[%s19130_s6 + $0x130] sm:$0xff]   ;;  %v14217_v55 = vld [vmem:[%s19130_s6 + $0xd8] sm:$0xff]  }
 0x24c   :  { %3721 = vmatprep.subr.bf16.mxu0 %v19145_v0  ;;  %3834 = vmatprep.subr.bf16.mxu1 %v19145_v0 }
 0x24f   :  { %3722 = vmatpush1.bf16.msra.mxu0 %v14193_v57  ;;  %3835 = vmatpush1.bf16.msra.mxu1 %v14194_v58  ;;  %v14218_v57 = vld [vmem:[%s19130_s6 + $0x138] sm:$0xff]   ;;  %v14219_v58 = vld [vmem:[%s19130_s6 + $0xe0] sm:$0xff]  }
 0x250   :  { %3723 = vmatprep.subr.bf16.mxu0 %v19145_v0  ;;  %3836 = vmatprep.subr.bf16.mxu1 %v19145_v0 }
 0x253   :  { %3724 = vmatpush1.bf16.msra.mxu0 %v14195_v59  ;;  %3837 = vmatpush1.bf16.msra.mxu1 %v14196_v61  ;;  %v14220_v59 = vld [vmem:[%s19130_s6 + $0x140] sm:$0xff]   ;;  %v14221_v61 = vld [vmem:[%s19130_s6 + $0xe8] sm:$0xff]  }
 0x254   :  { %3725 = vmatprep.subr.bf16.mxu0 %v19145_v0  ;;  %3838 = vmatprep.subr.bf16.mxu1 %v19145_v0 }
 0x255   :  { %v2331_v3 = vpop.f32.mrb[28].mxu0  ;;  %v2444_v6 = vpop.f32.mrb[28].mxu1 }
 0x256   :  { %v2333_v5 = vpop.f32.mrb[29].mxu0  ;;  %v2446_v8 = vpop.f32.mrb[29].mxu1 }
 0x257   :  { %v2334_v7 = vpop.f32.mrb[30].mxu0  ;;  %3726 = vmatpush1.bf16.msra.mxu0 %v14197_v1  ;;  %3839 = vmatpush1.bf16.msra.mxu1 %v14198_v2  ;;  %v2447_v12 = vpop.f32.mrb[30].mxu1  ;;  %v14222_v1 = vld [vmem:[%s19130_s6 + $0x148] sm:$0xff]   ;;  %v14223_v8 = vld [vmem:[%s19130_s6 + $0xf0] sm:$0xff]  }
 0x258   :  { %v16038_v10 = vpack.c.bf16 %v2334_v7, %v2331_v3  ;;  %v2336_v11 = vpop.f32.mrb[31].mxu0  ;;  %3727 = vmatprep.subr.bf16.mxu0 %v19145_v0  ;;  %v16044_v16 = vpack.c.bf16 %v2447_v12, %v2444_v6  ;;  %v2449_v20 = vpop.f32.mrb[31].mxu1  ;;  %3840 = vmatprep.subr.bf16.mxu1 %v19145_v0 }
 0x25b   :  { %3728 = vmatpush1.bf16.msra.mxu0 %v14199_v9  ;;  %3841 = vmatpush1.bf16.msra.mxu1 %v14200_v13  ;;  %v14224_v13 = vld [vmem:[%s19130_s6 + $0x150] sm:$0xff]  }
 0x25c   :  { %3729 = vmatprep.subr.bf16.mxu0 %v19145_v0  ;;  %3842 = vmatprep.subr.bf16.mxu1 %v19145_v0 }
 0x25f   :  { %3730 = vmatpush1.bf16.msra.mxu0 %v14201_v28  ;;  %3843 = vmatpush1.bf16.msra.mxu1 %v14202_v32  ;;  %v14225_v32 = vld [vmem:[%s19130_s6 + $0xf8] sm:$0xff]  }
 0x260   :  { %3731 = vmatprep.subr.bf16.mxu0 %v19145_v0  ;;  %3844 = vmatprep.subr.bf16.mxu1 %v19145_v0 }
 0x263   :  { %3732 = vmatpush1.bf16.msra.mxu0 %v14203_v33  ;;  %3845 = vmatpush1.bf16.msra.mxu1 %v14204_v35  ;;  %v14226_v33 = vld [vmem:[%s19130_s6 + $0x158] sm:$0xff]   ;;  %v14227_v35 = vld [vmem:[%s19130_s6 + $0x100] sm:$0xff]  }
 0x264   :  { %3733 = vmatprep.subr.bf16.mxu0 %v19145_v0  ;;  %3846 = vmatprep.subr.bf16.mxu1 %v19145_v0 }
 0x267   :  { %3734 = vmatpush1.bf16.msra.mxu0 %v14205_v36  ;;  %3847 = vmatpush1.bf16.msra.mxu1 %v14206_v37  ;;  %v14228_v36 = vld [vmem:[%s19130_s6 + $0x160] sm:$0xff]   ;;  %v14229_v37 = vld [vmem:[%s19130_s6 + $0x108] sm:$0xff]  }
 0x268   :  { %3735 = vmatprep.subr.bf16.mxu0 %v19145_v0  ;;  %3848 = vmatprep.subr.bf16.mxu1 %v19145_v0 }
 0x26b   :  { %3736 = vmatpush1.bf16.msra.mxu0 %v14207_v38  ;;  %3849 = vmatpush1.bf16.msra.mxu1 %v14208_v40  ;;  %v14230_v38 = vld [vmem:[%s19130_s6 + $0x168] sm:$0xff]   ;;  %v14231_v40 = vld [vmem:[%s19130_s6 + $0x110] sm:$0xff]  }
 0x26c   :  { %3737 = vmatprep.subr.bf16.mxu0 %v19145_v0  ;;  %3850 = vmatprep.subr.bf16.mxu1 %v19145_v0 }
 0x26f   :  { %3738 = vmatpush1.bf16.msra.mxu0 %v14209_v42  ;;  %3851 = vmatpush1.bf16.msra.mxu1 %v14210_v43  ;;  %v14232_v42 = vld [vmem:[%s19130_s6 + $0x170] sm:$0xff]   ;;  %v14233_v43 = vld [vmem:[%s19130_s6 + $0x118] sm:$0xff]  }
 0x270   :  { %3941 = vmatprep.subr.bf16.mxu0 %v19145_v0  ;;  %4054 = vmatprep.subr.bf16.mxu1 %v19145_v0 }
 0x272   :  { %3748 = vmatmul.mubr.bf16.vlgmr.msra.gmra.mrb[48].mxu0 %v14805_v30  ;;  %3861 = vmatmul.mubr.bf16.vlgmr.msra.gmra.mrb[48].mxu1 %v14805_v30 }
 0x273   :  { %3942 = vmatpush1.bf16.msra.mxu0 %v14211_v45  ;;  %4055 = vmatpush1.bf16.msra.mxu1 %v14212_v46  ;;  %v14234_v45 = vld [vmem:[%s19130_s6 + $0x178] sm:$0xff]   ;;  %v14235_v46 = vld [vmem:[%s19130_s6 + $0x180] sm:$0xff]  }
 0x274   :  { %3943 = vmatprep.subr.bf16.mxu0 %v19145_v0  ;;  %4056 = vmatprep.subr.bf16.mxu1 %v19145_v0 }
 0x275   :  { %12673 = vmatprep.mubr.msk.bf16.mxu0 %vm423_vm0, %v14753_v17  ;;  %12686 = vmatprep.mubr.msk.bf16.mxu1 %vm423_vm0, %v14753_v17 }
 0x277   :  { %3944 = vmatpush1.bf16.msra.mxu0 %v14213_v48  ;;  %4057 = vmatpush1.bf16.msra.mxu1 %v14214_v50  ;;  %v14236_v48 = vld [vmem:[%s19130_s6 + $0x1e0] sm:$0xff]   ;;  %v14237_v50 = vld [vmem:[%s19130_s6 + $0x188] sm:$0xff]  }
 0x278   :  { %3945 = vmatprep.subr.bf16.mxu0 %v19145_v0  ;;  %4058 = vmatprep.subr.bf16.mxu1 %v19145_v0 }
 0x27b   :  { %3946 = vmatpush1.bf16.msra.mxu0 %v14215_v53  ;;  %4059 = vmatpush1.bf16.msra.mxu1 %v14216_v54  ;;  %v14238_v53 = vld [vmem:[%s19130_s6 + $0x1e8] sm:$0xff]   ;;  %v14239_v54 = vld [vmem:[%s19130_s6 + $0x190] sm:$0xff]  }
 0x27c   :  { %3947 = vmatprep.subr.bf16.mxu0 %v19145_v0  ;;  %4060 = vmatprep.subr.bf16.mxu1 %v19145_v0 }
 0x27f   :  { %3948 = vmatpush1.bf16.msra.mxu0 %v14217_v55  ;;  %4061 = vmatpush1.bf16.msra.mxu1 %v14218_v57  ;;  %v14240_v55 = vld [vmem:[%s19130_s6 + $0x1f0] sm:$0xff]   ;;  %v14241_v57 = vld [vmem:[%s19130_s6 + $0x198] sm:$0xff]  }
 0x280   :  { %3949 = vmatprep.subr.bf16.mxu0 %v19145_v0  ;;  %4062 = vmatprep.subr.bf16.mxu1 %v19145_v0 }
 0x283   :  { %3950 = vmatpush1.bf16.msra.mxu0 %v14219_v58  ;;  %4063 = vmatpush1.bf16.msra.mxu1 %v14220_v59  ;;  %v14242_v58 = vld [vmem:[%s19130_s6 + $0x1f8] sm:$0xff]   ;;  %v14243_v59 = vld [vmem:[%s19130_s6 + $0x1a0] sm:$0xff]  }
 0x284   :  { %3951 = vmatprep.subr.bf16.mxu0 %v19145_v0  ;;  %4064 = vmatprep.subr.bf16.mxu1 %v19145_v0 }
 0x285   :  { %v2557_v2 = vpop.f32.mrb[32].mxu0  ;;  %v2670_v5 = vpop.f32.mrb[32].mxu1 }
 0x286   :  { %v2559_v3 = vpop.f32.mrb[33].mxu0  ;;  %v2672_v7 = vpop.f32.mrb[33].mxu1 }
 0x287   :  { %v2560_v6 = vpop.f32.mrb[34].mxu0  ;;  %3952 = vmatpush1.bf16.msra.mxu0 %v14221_v61  ;;  %4065 = vmatpush1.bf16.msra.mxu1 %v14222_v1  ;;  %v2673_v12 = vpop.f32.mrb[34].mxu1  ;;  %v14244_v61 = vld [vmem:[%s19130_s6 + $0x200] sm:$0xff]   ;;  %v14245_v1 = vld [vmem:[%s19130_s6 + $0x1a8] sm:$0xff]  }
 0x288   :  { %v16144_v9 = vpack.c.bf16 %v2560_v6, %v2557_v2  ;;  %v2562_v11 = vpop.f32.mrb[35].mxu0  ;;  %3953 = vmatprep.subr.bf16.mxu0 %v19145_v0  ;;  %v16150_v20 = vpack.c.bf16 %v2673_v12, %v2670_v5  ;;  %v2675_v28 = vpop.f32.mrb[35].mxu1  ;;  %4066 = vmatprep.subr.bf16.mxu1 %v19145_v0  ;;  %v14246_v2 = vld [vmem:[%s19130_s6 + $0x208] sm:$0xff]  }
 0x289   :  { %v14247_v11 = vld [vmem:[%s19130_s6 + $0x1b0] sm:$0xff]  }
 0x28b   :  { %3954 = vmatpush1.bf16.msra.mxu0 %v14223_v8  ;;  %4067 = vmatpush1.bf16.msra.mxu1 %v14224_v13 }
 0x28c   :  { %3955 = vmatprep.subr.bf16.mxu0 %v19145_v0  ;;  %4068 = vmatprep.subr.bf16.mxu1 %v19145_v0 }
 0x28f   :  { %3956 = vmatpush1.bf16.msra.mxu0 %v14225_v32  ;;  %4069 = vmatpush1.bf16.msra.mxu1 %v14226_v33  ;;  %v14248_v32 = vld [vmem:[%s19130_s6 + $0x210] sm:$0xff]  }
 0x290   :  { %3957 = vmatprep.subr.bf16.mxu0 %v19145_v0  ;;  %4070 = vmatprep.subr.bf16.mxu1 %v19145_v0 }
 0x293   :  { %3958 = vmatpush1.bf16.msra.mxu0 %v14227_v35  ;;  %4071 = vmatpush1.bf16.msra.mxu1 %v14228_v36  ;;  %v14249_v36 = vld [vmem:[%s19130_s6 + $0x1b8] sm:$0xff]  }
 0x294   :  { %3959 = vmatprep.subr.bf16.mxu0 %v19145_v0  ;;  %4072 = vmatprep.subr.bf16.mxu1 %v19145_v0 }
 0x297   :  { %3960 = vmatpush1.bf16.msra.mxu0 %v14229_v37  ;;  %4073 = vmatpush1.bf16.msra.mxu1 %v14230_v38  ;;  %v14250_v37 = vld [vmem:[%s19130_s6 + $0x218] sm:$0xff]   ;;  %v14251_v38 = vld [vmem:[%s19130_s6 + $0x1c0] sm:$0xff]  }
 0x298   :  { %3961 = vmatprep.subr.bf16.mxu0 %v19145_v0  ;;  %4074 = vmatprep.subr.bf16.mxu1 %v19145_v0 }
 0x29b   :  { %3962 = vmatpush1.bf16.msra.mxu0 %v14231_v40  ;;  %4075 = vmatpush1.bf16.msra.mxu1 %v14232_v42  ;;  %v14252_v40 = vld [vmem:[%s19130_s6 + $0x220] sm:$0xff]   ;;  %v14253_v42 = vld [vmem:[%s19130_s6 + $0x1c8] sm:$0xff]  }
 0x29c   :  { %3963 = vmatprep.subr.bf16.mxu0 %v19145_v0  ;;  %4076 = vmatprep.subr.bf16.mxu1 %v19145_v0 }
 0x29f   :  { %3964 = vmatpush1.bf16.msra.mxu0 %v14233_v43  ;;  %4077 = vmatpush1.bf16.msra.mxu1 %v14234_v45  ;;  %v14254_v43 = vld [vmem:[%s19130_s6 + $0x228] sm:$0xff]   ;;  %v14255_v45 = vld [vmem:[%s19130_s6 + $0x1d0] sm:$0xff]  }
 0x2a0   :  { %4167 = vmatprep.subr.bf16.mxu0 %v19145_v0  ;;  %4280 = vmatprep.subr.bf16.mxu1 %v19145_v0 }
 0x2a2   :  { %3974 = vmatmul.mubr.bf16.vlgmr.msra.gmra.mrb[52].mxu0 %v14805_v30  ;;  %4087 = vmatmul.mubr.bf16.vlgmr.msra.gmra.mrb[52].mxu1 %v14805_v30 }
 0x2a3   :  { %4168 = vmatpush1.bf16.msra.mxu0 %v14235_v46  ;;  %4281 = vmatpush1.bf16.msra.mxu1 %v14236_v48  ;;  %v14256_v46 = vld [vmem:[%s19130_s6 + $0x230] sm:$0xff]   ;;  %v14257_v48 = vld [vmem:[%s19130_s6 + $0x1d8] sm:$0xff]  }
 0x2a4   :  { %4169 = vmatprep.subr.bf16.mxu0 %v19145_v0  ;;  %4282 = vmatprep.subr.bf16.mxu1 %v19145_v0 }
 0x2a5   :  { %12699 = vmatprep.mubr.msk.bf16.mxu0 %vm423_vm0, %v14753_v17  ;;  %12712 = vmatprep.mubr.msk.bf16.mxu1 %vm423_vm0, %v14753_v17 }
 0x2a7   :  { %4170 = vmatpush1.bf16.msra.mxu0 %v14237_v50  ;;  %4283 = vmatpush1.bf16.msra.mxu1 %v14238_v53  ;;  %v14258_v50 = vld [vmem:[%s19130_s6 + $0x238] sm:$0xff]   ;;  %v14259_v53 = vld [vmem:[%s19130_s6 + $0x240] sm:$0xff]  }
 0x2a8   :  { %4171 = vmatprep.subr.bf16.mxu0 %v19145_v0  ;;  %4284 = vmatprep.subr.bf16.mxu1 %v19145_v0 }
 0x2ab   :  { %4172 = vmatpush1.bf16.msra.mxu0 %v14239_v54  ;;  %4285 = vmatpush1.bf16.msra.mxu1 %v14240_v55  ;;  %v14260_v54 = vld [vmem:[%s19130_s6 + $0x2a0] sm:$0xff]   ;;  %v14261_v55 = vld [vmem:[%s19130_s6 + $0x248] sm:$0xff]  }
 0x2ac   :  { %4173 = vmatprep.subr.bf16.mxu0 %v19145_v0  ;;  %4286 = vmatprep.subr.bf16.mxu1 %v19145_v0 }
 0x2af   :  { %4174 = vmatpush1.bf16.msra.mxu0 %v14241_v57  ;;  %4287 = vmatpush1.bf16.msra.mxu1 %v14242_v58  ;;  %v14262_v57 = vld [vmem:[%s19130_s6 + $0x2a8] sm:$0xff]   ;;  %v14263_v58 = vld [vmem:[%s19130_s6 + $0x250] sm:$0xff]  }
 0x2b0   :  { %4175 = vmatprep.subr.bf16.mxu0 %v19145_v0  ;;  %4288 = vmatprep.subr.bf16.mxu1 %v19145_v0 }
 0x2b3   :  { %4176 = vmatpush1.bf16.msra.mxu0 %v14243_v59  ;;  %4289 = vmatpush1.bf16.msra.mxu1 %v14244_v61  ;;  %v14264_v59 = vld [vmem:[%s19130_s6 + $0x2b0] sm:$0xff]   ;;  %v14265_v61 = vld [vmem:[%s19130_s6 + $0x258] sm:$0xff]  }
 0x2b4   :  { %4177 = vmatprep.subr.bf16.mxu0 %v19145_v0  ;;  %4290 = vmatprep.subr.bf16.mxu1 %v19145_v0 }
 0x2b5   :  { %v2783_v3 = vpop.f32.mrb[36].mxu0  ;;  %v2896_v6 = vpop.f32.mrb[36].mxu1 }
 0x2b6   :  { %v2785_v5 = vpop.f32.mrb[37].mxu0  ;;  %v2898_v8 = vpop.f32.mrb[37].mxu1 }
 0x2b7   :  { %v2786_v7 = vpop.f32.mrb[38].mxu0  ;;  %4178 = vmatpush1.bf16.msra.mxu0 %v14245_v1  ;;  %4291 = vmatpush1.bf16.msra.mxu1 %v14246_v2  ;;  %v2899_v28 = vpop.f32.mrb[38].mxu1  ;;  %v14266_v1 = vld [vmem:[%s19130_s6 + $0x2b8] sm:$0xff]   ;;  %v14267_v2 = vld [vmem:[%s19130_s6 + $0x260] sm:$0xff]   ;;  %v14269_v5 = vld [vmem:[%s19130_s6 + $0x268] sm:$0xff]  }
 0x2b8   :  { %v16250_v12 = vpack.c.bf16 %v2786_v7, %v2783_v3  ;;  %v2788_v13 = vpop.f32.mrb[39].mxu0  ;;  %4179 = vmatprep.subr.bf16.mxu0 %v19145_v0  ;;  %v16256_v33 = vpack.c.bf16 %v2899_v28, %v2896_v6  ;;  %v2901_v35 = vpop.f32.mrb[39].mxu1  ;;  %4292 = vmatprep.subr.bf16.mxu1 %v19145_v0  ;;  %v14268_v3 = vld [vmem:[%s19130_s6 + $0x2c0] sm:$0xff]   ;;  %v14270_v6 = vld [vmem:[%s19130_s6 + $0x2c8] sm:$0xff]   ;;  %v14272_v28 = vld [vmem:[%s19130_s6 + $0x2d0] sm:$0xff]  }
 0x2b9   :  { %v14271_v13 = vld [vmem:[%s19130_s6 + $0x270] sm:$0xff]  }
 0x2bb   :  { %4180 = vmatpush1.bf16.msra.mxu0 %v14247_v11  ;;  %4293 = vmatpush1.bf16.msra.mxu1 %v14248_v32 }
 0x2bc   :  { %4181 = vmatprep.subr.bf16.mxu0 %v19145_v0  ;;  %4294 = vmatprep.subr.bf16.mxu1 %v19145_v0 }
 0x2bf   :  { %4182 = vmatpush1.bf16.msra.mxu0 %v14249_v36  ;;  %4295 = vmatpush1.bf16.msra.mxu1 %v14250_v37 }
 0x2c0   :  { %4183 = vmatprep.subr.bf16.mxu0 %v19145_v0  ;;  %4296 = vmatprep.subr.bf16.mxu1 %v19145_v0 }
 0x2c3   :  { %4184 = vmatpush1.bf16.msra.mxu0 %v14251_v38  ;;  %4297 = vmatpush1.bf16.msra.mxu1 %v14252_v40 }
 0x2c4   :  { %4185 = vmatprep.subr.bf16.mxu0 %v19145_v0  ;;  %4298 = vmatprep.subr.bf16.mxu1 %v19145_v0 }
 0x2c7   :  { %4186 = vmatpush1.bf16.msra.mxu0 %v14253_v42  ;;  %4299 = vmatpush1.bf16.msra.mxu1 %v14254_v43  ;;  %v14273_v43 = vld [vmem:[%s19130_s6 + $0x278] sm:$0xff]  }
 0x2c8   :  { %4187 = vmatprep.subr.bf16.mxu0 %v19145_v0  ;;  %4300 = vmatprep.subr.bf16.mxu1 %v19145_v0 }
 0x2cb   :  { %4188 = vmatpush1.bf16.msra.mxu0 %v14255_v45  ;;  %4301 = vmatpush1.bf16.msra.mxu1 %v14256_v46  ;;  %v14274_v45 = vld [vmem:[%s19130_s6 + $0x2d8] sm:$0xff]   ;;  %v14275_v46 = vld [vmem:[%s19130_s6 + $0x280] sm:$0xff]  }
 0x2cc   :  { %4189 = vmatprep.subr.bf16.mxu0 %v19145_v0  ;;  %4302 = vmatprep.subr.bf16.mxu1 %v19145_v0 }
 0x2cf   :  { %4190 = vmatpush1.bf16.msra.mxu0 %v14257_v48  ;;  %4303 = vmatpush1.bf16.msra.mxu1 %v14258_v50  ;;  %v14276_v48 = vld [vmem:[%s19130_s6 + $0x2e0] sm:$0xff]   ;;  %v14277_v50 = vld [vmem:[%s19130_s6 + $0x288] sm:$0xff]  }
 0x2d0   :  { %4393 = vmatprep.subr.bf16.mxu0 %v19145_v0  ;;  %4506 = vmatprep.subr.bf16.mxu1 %v19145_v0 }
 0x2d2   :  { %4200 = vmatmul.mubr.bf16.vlgmr.msra.gmra.mrb[56].mxu0 %v14805_v30  ;;  %4313 = vmatmul.mubr.bf16.vlgmr.msra.gmra.mrb[56].mxu1 %v14805_v30 }
 0x2d3   :  { %4394 = vmatpush1.bf16.msra.mxu0 %v14259_v53  ;;  %4507 = vmatpush1.bf16.msra.mxu1 %v14260_v54  ;;  %v14278_v53 = vld [vmem:[%s19130_s6 + $0x2e8] sm:$0xff]   ;;  %v14279_v54 = vld [vmem:[%s19130_s6 + $0x290] sm:$0xff]  }
 0x2d4   :  { %4395 = vmatprep.subr.bf16.mxu0 %v19145_v0  ;;  %4508 = vmatprep.subr.bf16.mxu1 %v19145_v0 }
 0x2d5   :  { %12725 = vmatprep.mubr.msk.bf16.mxu0 %vm423_vm0, %v14753_v17  ;;  %12738 = vmatprep.mubr.msk.bf16.mxu1 %vm423_vm0, %v14753_v17 }
 0x2d7   :  { %4396 = vmatpush1.bf16.msra.mxu0 %v14261_v55  ;;  %4509 = vmatpush1.bf16.msra.mxu1 %v14262_v57  ;;  %v14280_v55 = vld [vmem:[%s19130_s6 + $0x2f0] sm:$0xff]   ;;  %v14281_v57 = vld [vmem:[%s19130_s6 + $0x298] sm:$0xff]  }
 0x2d8   :  { %4397 = vmatprep.subr.bf16.mxu0 %v19145_v0  ;;  %4510 = vmatprep.subr.bf16.mxu1 %v19145_v0 }
 0x2db   :  { %4398 = vmatpush1.bf16.msra.mxu0 %v14263_v58  ;;  %4511 = vmatpush1.bf16.msra.mxu1 %v14264_v59  ;;  %v14282_v58 = vld [vmem:[%s19130_s6 + $0x2f8] sm:$0xff]   ;;  %v14283_v59 = vld [vmem:[%s19130_s6 + $0x300] sm:$0xff]  }
 0x2dc   :  { %4399 = vmatprep.subr.bf16.mxu0 %v19145_v0  ;;  %4512 = vmatprep.subr.bf16.mxu1 %v19145_v0 }
 0x2df   :  { %4400 = vmatpush1.bf16.msra.mxu0 %v14265_v61  ;;  %4513 = vmatpush1.bf16.msra.mxu1 %v14266_v1  ;;  %v14284_v61 = vld [vmem:[%s19130_s6 + $0x360] sm:$0xff]   ;;  %v14285_v1 = vld [vmem:[%s19130_s6 + $0x308] sm:$0xff]  }
 0x2e0   :  { %4401 = vmatprep.subr.bf16.mxu0 %v19145_v0  ;;  %4514 = vmatprep.subr.bf16.mxu1 %v19145_v0 }
 0x2e3   :  { %4402 = vmatpush1.bf16.msra.mxu0 %v14267_v2  ;;  %4515 = vmatpush1.bf16.msra.mxu1 %v14268_v3  ;;  %v14286_v2 = vld [vmem:[%s19130_s6 + $0x368] sm:$0xff]   ;;  %v14287_v3 = vld [vmem:[%s19130_s6 + $0x310] sm:$0xff]  }
 0x2e4   :  { %4403 = vmatprep.subr.bf16.mxu0 %v19145_v0  ;;  %4516 = vmatprep.subr.bf16.mxu1 %v19145_v0 }
 0x2e5   :  { %v3009_v7 = vpop.f32.mrb[40].mxu0  ;;  %v3122_v11 = vpop.f32.mrb[40].mxu1 }
 0x2e6   :  { %v3011_v8 = vpop.f32.mrb[41].mxu0  ;;  %v3124_v35 = vpop.f32.mrb[41].mxu1 }
 0x2e7   :  { %v3012_v32 = vpop.f32.mrb[42].mxu0  ;;  %4404 = vmatpush1.bf16.msra.mxu0 %v14269_v5  ;;  %4517 = vmatpush1.bf16.msra.mxu1 %v14270_v6  ;;  %v3125_v38 = vpop.f32.mrb[42].mxu1  ;;  %v14288_v5 = vld [vmem:[%s19130_s6 + $0x370] sm:$0xff]   ;;  %v14289_v6 = vld [vmem:[%s19130_s6 + $0x318] sm:$0xff]   ;;  %v14291_v8 = vld [vmem:[%s19130_s6 + $0x320] sm:$0xff]  }
 0x2e8   :  { %v16359_v36 = vpack.c.bf16 %v3012_v32, %v3009_v7  ;;  %v3014_v37 = vpop.f32.mrb[43].mxu0  ;;  %4405 = vmatprep.subr.bf16.mxu0 %v19145_v0  ;;  %v16362_v40 = vpack.c.bf16 %v3125_v38, %v3122_v11  ;;  %v3127_v42 = vpop.f32.mrb[43].mxu1  ;;  %4518 = vmatprep.subr.bf16.mxu1 %v19145_v0  ;;  %v14290_v7 = vld [vmem:[%s19130_s6 + $0x378] sm:$0xff]   ;;  %v14292_v11 = vld [vmem:[%s19130_s6 + $0x380] sm:$0xff]   ;;  %v14295_v38 = vld [vmem:[%s19130_s6 + $0x330] sm:$0xff]  }
 0x2e9   :  { %v14296_v42 = vld [vmem:[%s19130_s6 + $0x390] sm:$0xff]  }
 0x2eb   :  { %4406 = vmatpush1.bf16.msra.mxu0 %v14271_v13  ;;  %4519 = vmatpush1.bf16.msra.mxu1 %v14272_v28  ;;  %v14293_v13 = vld [vmem:[%s19130_s6 + $0x328] sm:$0xff]  }
 0x2ec   :  { %4407 = vmatprep.subr.bf16.mxu0 %v19145_v0  ;;  %4520 = vmatprep.subr.bf16.mxu1 %v19145_v0  ;;  %v14294_v28 = vld [vmem:[%s19130_s6 + $0x388] sm:$0xff]  }
 0x2ef   :  { %4408 = vmatpush1.bf16.msra.mxu0 %v14273_v43  ;;  %4521 = vmatpush1.bf16.msra.mxu1 %v14274_v45 }
 0x2f0   :  { %4409 = vmatprep.subr.bf16.mxu0 %v19145_v0  ;;  %4522 = vmatprep.subr.bf16.mxu1 %v19145_v0 }
 0x2f3   :  { %4410 = vmatpush1.bf16.msra.mxu0 %v14275_v46  ;;  %4523 = vmatpush1.bf16.msra.mxu1 %v14276_v48 }
 0x2f4   :  { %4411 = vmatprep.subr.bf16.mxu0 %v19145_v0  ;;  %4524 = vmatprep.subr.bf16.mxu1 %v19145_v0 }
 0x2f7   :  { %4412 = vmatpush1.bf16.msra.mxu0 %v14277_v50  ;;  %4525 = vmatpush1.bf16.msra.mxu1 %v14278_v53 }
 0x2f8   :  { %4413 = vmatprep.subr.bf16.mxu0 %v19145_v0  ;;  %4526 = vmatprep.subr.bf16.mxu1 %v19145_v0 }
 0x2fb   :  { %4414 = vmatpush1.bf16.msra.mxu0 %v14279_v54  ;;  %4527 = vmatpush1.bf16.msra.mxu1 %v14280_v55  ;;  %v14297_v55 = vld [vmem:[%s19130_s6 + $0x338] sm:$0xff]  }
 0x2fc   :  { %4415 = vmatprep.subr.bf16.mxu0 %v19145_v0  ;;  %4528 = vmatprep.subr.bf16.mxu1 %v19145_v0 }
 0x2ff   :  { %4416 = vmatpush1.bf16.msra.mxu0 %v14281_v57  ;;  %4529 = vmatpush1.bf16.msra.mxu1 %v14282_v58  ;;  %v14298_v57 = vld [vmem:[%s19130_s6 + $0x398] sm:$0xff]   ;;  %v14299_v58 = vld [vmem:[%s19130_s6 + $0x340] sm:$0xff]  }
 0x300   :  { %4619 = vmatprep.subr.bf16.mxu0 %v19145_v0  ;;  %4732 = vmatprep.subr.bf16.mxu1 %v19145_v0 }
 0x302   :  { %4426 = vmatmul.mubr.bf16.vlgmr.msra.gmra.mrb[60].mxu0 %v14805_v30  ;;  %4539 = vmatmul.mubr.bf16.vlgmr.msra.gmra.mrb[60].mxu1 %v14805_v30 }
 0x303   :  { %4620 = vmatpush1.bf16.msra.mxu0 %v14283_v59  ;;  %4733 = vmatpush1.bf16.msra.mxu1 %v14284_v61  ;;  %v14300_v59 = vld [vmem:[%s19130_s6 + $0x3a0] sm:$0xff]   ;;  %v14301_v61 = vld [vmem:[%s19130_s6 + $0x348] sm:$0xff]  }
 0x304   :  { %4621 = vmatprep.subr.bf16.mxu0 %v19145_v0  ;;  %4734 = vmatprep.subr.bf16.mxu1 %v19145_v0 }
 0x305   :  { %12751 = vmatprep.mubr.msk.bf16.mxu0 %vm423_vm0, %v14753_v17  ;;  %12764 = vmatprep.mubr.msk.bf16.mxu1 %vm423_vm0, %v14753_v17 }
 0x307   :  { %4622 = vmatpush1.bf16.msra.mxu0 %v14285_v1  ;;  %4735 = vmatpush1.bf16.msra.mxu1 %v14286_v2  ;;  %v14302_v1 = vld [vmem:[%s19130_s6 + $0x3a8] sm:$0xff]   ;;  %v14303_v2 = vld [vmem:[%s19130_s6 + $0x350] sm:$0xff]  }
 0x308   :  { %4623 = vmatprep.subr.bf16.mxu0 %v19145_v0  ;;  %4736 = vmatprep.subr.bf16.mxu1 %v19145_v0 }
 0x30b   :  { %4624 = vmatpush1.bf16.msra.mxu0 %v14287_v3  ;;  %4737 = vmatpush1.bf16.msra.mxu1 %v14288_v5  ;;  %v14304_v3 = vld [vmem:[%s19130_s6 + $0x3b0] sm:$0xff]   ;;  %v14305_v5 = vld [vmem:[%s19130_s6 + $0x358] sm:$0xff]  }
 0x30c   :  { %4625 = vmatprep.subr.bf16.mxu0 %v19145_v0  ;;  %4738 = vmatprep.subr.bf16.mxu1 %v19145_v0 }
 0x30f   :  { %4626 = vmatpush1.bf16.msra.mxu0 %v14289_v6  ;;  %4739 = vmatpush1.bf16.msra.mxu1 %v14290_v7  ;;  %v14306_v6 = vld [vmem:[%s19130_s6 + $0x3b8] sm:$0xff]   ;;  %v14307_v7 = vld [vmem:[%s19130_s6 + $0x3c0] sm:$0xff]  }
 0x310   :  { %4627 = vmatprep.subr.bf16.mxu0 %v19145_v0  ;;  %4740 = vmatprep.subr.bf16.mxu1 %v19145_v0 }
 0x313   :  { %4628 = vmatpush1.bf16.msra.mxu0 %v14291_v8  ;;  %4741 = vmatpush1.bf16.msra.mxu1 %v14292_v11  ;;  %v14308_v8 = vld [vmem:[%s19130_s6 + $0x420] sm:$0xff]   ;;  %v14309_v11 = vld [vmem:[%s19130_s6 + $0x3c8] sm:$0xff]  }
 0x314   :  { %4629 = vmatprep.subr.bf16.mxu0 %v19145_v0  ;;  %4742 = vmatprep.subr.bf16.mxu1 %v19145_v0 }
 0x315   :  { %v3235_v32 = vpop.f32.mrb[44].mxu0  ;;  %v3348_v37 = vpop.f32.mrb[44].mxu1 }
 0x316   :  { %v3237_v35 = vpop.f32.mrb[45].mxu0  ;;  %v3350_v45 = vpop.f32.mrb[45].mxu1 }
 0x317   :  { %v3238_v43 = vpop.f32.mrb[46].mxu0  ;;  %4630 = vmatpush1.bf16.msra.mxu0 %v14293_v13  ;;  %4743 = vmatpush1.bf16.msra.mxu1 %v14294_v28  ;;  %v3351_v50 = vpop.f32.mrb[46].mxu1  ;;  %v14310_v13 = vld [vmem:[%s19130_s6 + $0x428] sm:$0xff]   ;;  %v14311_v28 = vld [vmem:[%s19130_s6 + $0x3d0] sm:$0xff]   ;;  %v14313_v35 = vld [vmem:[%s19130_s6 + $0x3d8] sm:$0xff]  }
 0x318   :  { %v16465_v46 = vpack.c.bf16 %v3238_v43, %v3235_v32  ;;  %v3240_v48 = vpop.f32.mrb[47].mxu0  ;;  %4631 = vmatprep.subr.bf16.mxu0 %v19145_v0  ;;  %v16468_v53 = vpack.c.bf16 %v3351_v50, %v3348_v37  ;;  %v3353_v54 = vpop.f32.mrb[47].mxu1  ;;  %4744 = vmatprep.subr.bf16.mxu1 %v19145_v0  ;;  %v14312_v32 = vld [vmem:[%s19130_s6 + $0x430] sm:$0xff]   ;;  %v14314_v37 = vld [vmem:[%s19130_s6 + $0x438] sm:$0xff]   ;;  %v14318_v43 = vld [vmem:[%s19130_s6 + $0x448] sm:$0xff]  }
 0x319   :  { %v14319_v54 = vld [vmem:[%s19130_s6 + $0x3f0] sm:$0xff]  }
 0x31b   :  { %4632 = vmatpush1.bf16.msra.mxu0 %v14295_v38  ;;  %4745 = vmatpush1.bf16.msra.mxu1 %v14296_v42  ;;  %v14316_v38 = vld [vmem:[%s19130_s6 + $0x440] sm:$0xff]   ;;  %v14317_v42 = vld [vmem:[%s19130_s6 + $0x3e8] sm:$0xff]  }
 0x31c   :  { %4633 = vmatprep.subr.bf16.mxu0 %v19145_v0  ;;  %4746 = vmatprep.subr.bf16.mxu1 %v19145_v0 }
 0x31f   :  { %4634 = vmatpush1.bf16.msra.mxu0 %v14297_v55  ;;  %4747 = vmatpush1.bf16.msra.mxu1 %v14298_v57  ;;  %v14320_v55 = vld [vmem:[%s19130_s6 + $0x450] sm:$0xff]  }
 0x320   :  { %4635 = vmatprep.subr.bf16.mxu0 %v19145_v0  ;;  %4748 = vmatprep.subr.bf16.mxu1 %v19145_v0 }
 0x323   :  { %4636 = vmatpush1.bf16.msra.mxu0 %v14299_v58  ;;  %4749 = vmatpush1.bf16.msra.mxu1 %v14300_v59 }
 0x324   :  { %4637 = vmatprep.subr.bf16.mxu0 %v19145_v0  ;;  %4750 = vmatprep.subr.bf16.mxu1 %v19145_v0 }
 0x327   :  { %4638 = vmatpush1.bf16.msra.mxu0 %v14301_v61  ;;  %4751 = vmatpush1.bf16.msra.mxu1 %v14302_v1 }
 0x328   :  { %4639 = vmatprep.subr.bf16.mxu0 %v19145_v0  ;;  %4752 = vmatprep.subr.bf16.mxu1 %v19145_v0 }
 0x32b   :  { %4640 = vmatpush1.bf16.msra.mxu0 %v14303_v2  ;;  %4753 = vmatpush1.bf16.msra.mxu1 %v14304_v3 }
 0x32c   :  { %4641 = vmatprep.subr.bf16.mxu0 %v19145_v0  ;;  %4754 = vmatprep.subr.bf16.mxu1 %v19145_v0 }
 0x32f   :  { %4642 = vmatpush1.bf16.msra.mxu0 %v14305_v5  ;;  %4755 = vmatpush1.bf16.msra.mxu1 %v14306_v6  ;;  %v14321_v5 = vld [vmem:[%s19130_s6 + $0x3f8] sm:$0xff]  }
 0x330   :  { %4845 = vmatprep.subr.bf16.mxu0 %v19145_v0  ;;  %4958 = vmatprep.subr.bf16.mxu1 %v19145_v0  ;;  %v14322_v6 = vld [vmem:[%s19130_s6 + $0x458] sm:$0xff]  }
 0x332   :  { %4652 = vmatmul.mubr.bf16.vlgmr.msra.gmra.mrb[64].mxu0 %v14805_v30  ;;  %4765 = vmatmul.mubr.bf16.vlgmr.msra.gmra.mrb[64].mxu1 %v14805_v30 }
 0x333   :  { %4846 = vmatpush1.bf16.msra.mxu0 %v14307_v7  ;;  %4959 = vmatpush1.bf16.msra.mxu1 %v14308_v8  ;;  %v14323_v7 = vld [vmem:[%s19130_s6 + $0x400] sm:$0xff]  }
 0x334   :  { %4847 = vmatprep.subr.bf16.mxu0 %v19145_v0  ;;  %4960 = vmatprep.subr.bf16.mxu1 %v19145_v0  ;;  %v14324_v8 = vld [vmem:[%s19130_s6 + $0x460] sm:$0xff]  }
 0x335   :  { %12777 = vmatprep.mubr.msk.bf16.mxu0 %vm423_vm0, %v14753_v17  ;;  %12790 = vmatprep.mubr.msk.bf16.mxu1 %vm423_vm0, %v14753_v17  ;;  %v14315_v17 = vld [vmem:[%s19130_s6 + $0x3e0] sm:$0xff]  }
 0x337   :  { %4848 = vmatpush1.bf16.msra.mxu0 %v14309_v11  ;;  %4961 = vmatpush1.bf16.msra.mxu1 %v14310_v13  ;;  %v14325_v11 = vld [vmem:[%s19130_s6 + $0x408] sm:$0xff]  }
 0x338   :  { %4849 = vmatprep.subr.bf16.mxu0 %v19145_v0  ;;  %4962 = vmatprep.subr.bf16.mxu1 %v19145_v0  ;;  %v14326_v13 = vld [vmem:[%s19130_s6 + $0x468] sm:$0xff]  }
 0x33b   :  { %4850 = vmatpush1.bf16.msra.mxu0 %v14311_v28  ;;  %4963 = vmatpush1.bf16.msra.mxu1 %v14312_v32  ;;  %v14327_v28 = vld [vmem:[%s19130_s6 + $0x410] sm:$0xff]  }
 0x33c   :  { %4851 = vmatprep.subr.bf16.mxu0 %v19145_v0  ;;  %4964 = vmatprep.subr.bf16.mxu1 %v19145_v0  ;;  %v14328_v32 = vld [vmem:[%s19130_s6 + $0x470] sm:$0xff]  }
 0x33f   :  { %4852 = vmatpush1.bf16.msra.mxu0 %v14313_v35  ;;  %4965 = vmatpush1.bf16.msra.mxu1 %v14314_v37  ;;  %v14329_v35 = vld [vmem:[%s19130_s6 + $0x418] sm:$0xff]  }
 0x340   :  { %4853 = vmatprep.subr.bf16.mxu0 %v19145_v0  ;;  %4966 = vmatprep.subr.bf16.mxu1 %v19145_v0  ;;  %v14330_v37 = vld [vmem:[%s19130_s6 + $0x478] sm:$0xff]  }
 0x343   :  { %4854 = vmatpush1.bf16.msra.mxu0 %v14315_v17  ;;  %4967 = vmatpush1.bf16.msra.mxu1 %v14316_v38  ;;  %v50_v17 = vld [vmem:[%s19132_s1 + $0x8] sm:$0xff]  ;;  %v52_v38 = vld [vmem:[%s19132_s1 + $0x18] sm:$0xff] }
 0x344   :  { %4855 = vmatprep.subr.bf16.mxu0 %v19145_v0  ;;  %4968 = vmatprep.subr.bf16.mxu1 %v19145_v0 }
 0x345   :  { %v3749_v45 = vpop.f32.mrb[48].mxu0  ;;  %v3862_v50 = vpop.f32.mrb[48].mxu1 }
 0x346   :  { %v3751_v48 = vpop.f32.mrb[49].mxu0  ;;  %v3864_v58 = vpop.f32.mrb[49].mxu1 }
 0x347   :  { %v3752_v57 = vpop.f32.mrb[50].mxu0  ;;  %4856 = vmatpush1.bf16.msra.mxu0 %v14317_v42  ;;  %4969 = vmatpush1.bf16.msra.mxu1 %v14318_v43  ;;  %v3865_v1 = vpop.f32.mrb[50].mxu1  ;;  %v14331_v42 = vld [vmem:[%s19131_s7] sm:$0xff]   ;;  %v14333_v48 = vld [vmem:[%s19131_s7 + $0x8] sm:$0xff]  }
 0x348   :  { %v16571_v59 = vpack.c.bf16 %v3752_v57, %v3749_v45  ;;  %v3754_v61 = vpop.f32.mrb[51].mxu0  ;;  %4857 = vmatprep.subr.bf16.mxu0 %v19145_v0  ;;  %v16574_v2 = vpack.c.bf16 %v3865_v1, %v3862_v50  ;;  %v3867_v3 = vpop.f32.mrb[51].mxu1  ;;  %4970 = vmatprep.subr.bf16.mxu1 %v19145_v0  ;;  %v14332_v43 = vld [vmem:[%s19131_s7 + $0x60] sm:$0xff]   ;;  %v16631_v45 = vpack.c.bf16 %v52_v38, %v50_v17  ;;  %v14334_v50 = vld [vmem:[%s19131_s7 + $0x68] sm:$0xff]   ;;  %v14338_v57 = vld [vmem:[%s19131_s7 + $0x78] sm:$0xff]  }
 0x349   :  { %v14339_v58 = vld [vmem:[%s19131_s7 + $0x20] sm:$0xff]   ;;  %v14341_v1 = vld [vmem:[%s19131_s7 + $0x28] sm:$0xff]  }
 0x34a   :  { %v14340_v61 = vld [vmem:[%s19131_s7 + $0x80] sm:$0xff]   ;;  %v14342_v3 = vld [vmem:[%s19131_s7 + $0x88] sm:$0xff]  }
 0x34b   :  { %4858 = vmatpush1.bf16.msra.mxu0 %v14319_v54  ;;  %4971 = vmatpush1.bf16.msra.mxu1 %v14320_v55  ;;  %v14336_v54 = vld [vmem:[%s19131_s7 + $0x70] sm:$0xff]   ;;  %v14337_v55 = vld [vmem:[%s19131_s7 + $0x18] sm:$0xff]  }
 0x34c   :  { %4859 = vmatprep.subr.bf16.mxu0 %v19145_v0  ;;  %4972 = vmatprep.subr.bf16.mxu1 %v19145_v0 }
 0x34f   :  { %4860 = vmatpush1.bf16.msra.mxu0 %v14321_v5  ;;  %4973 = vmatpush1.bf16.msra.mxu1 %v14322_v6 }
 0x350   :  { %4861 = vmatprep.subr.bf16.mxu0 %v19145_v0  ;;  %4974 = vmatprep.subr.bf16.mxu1 %v19145_v0 }
 0x353   :  { %4862 = vmatpush1.bf16.msra.mxu0 %v14323_v7  ;;  %4975 = vmatpush1.bf16.msra.mxu1 %v14324_v8 }
 0x354   :  { %4863 = vmatprep.subr.bf16.mxu0 %v19145_v0  ;;  %4976 = vmatprep.subr.bf16.mxu1 %v19145_v0 }
 0x357   :  { %4864 = vmatpush1.bf16.msra.mxu0 %v14325_v11  ;;  %4977 = vmatpush1.bf16.msra.mxu1 %v14326_v13  ;;  %v14343_v13 = vld [vmem:[%s19131_s7 + $0x30] sm:$0xff]  }
 0x358   :  { %4865 = vmatprep.subr.bf16.mxu0 %v19145_v0  ;;  %4978 = vmatprep.subr.bf16.mxu1 %v19145_v0 }
 0x35b   :  { %4866 = vmatpush1.bf16.msra.mxu0 %v14327_v28  ;;  %4979 = vmatpush1.bf16.msra.mxu1 %v14328_v32 }
 0x35c   :  { %4867 = vmatprep.subr.bf16.mxu0 %v19145_v0  ;;  %4980 = vmatprep.subr.bf16.mxu1 %v19145_v0 }
 0x35f   :  { %4868 = vmatpush1.bf16.msra.mxu0 %v14329_v35  ;;  %4981 = vmatpush1.bf16.msra.mxu1 %v14330_v37  ;;  %v14344_v37 = vld [vmem:[%s19131_s7 + $0x90] sm:$0xff]  }
 0x360   :  { %5365 = vmatprep.subr.bf16.mxu0 %v19145_v0  ;;  %5486 = vmatprep.subr.bf16.mxu1 %v19145_v0 }
 0x362   :  { %4878 = vmatmul.mubr.bf16.vlgmr.msra.gmra.mrb[68].mxu0 %v14805_v30  ;;  %4991 = vmatmul.mubr.bf16.vlgmr.msra.gmra.mrb[68].mxu1 %v14805_v30  ;;  %v14335_v30 = vld [vmem:[%s19131_s7 + $0x10] sm:$0xff]  }
 0x363   :  { %5366 = vmatpush1.bf16.msra.mxu0 %v14331_v42  ;;  %5487 = vmatpush1.bf16.msra.mxu1 %v14332_v43  ;;  %v14345_v42 = vld [vmem:[%s19131_s7 + $0x38] sm:$0xff]  }
 0x364   :  { %5367 = vmatprep.subr.bf16.mxu0 %v19145_v0  ;;  %5488 = vmatprep.subr.bf16.mxu1 %v19145_v0  ;;  %v14346_v43 = vld [vmem:[%s19131_s7 + $0x98] sm:$0xff]  }
 0x365   :  { %12803 = vmatprep.mubr.msk.bf16.mxu0 %vm423_vm0, %v16631_v45  ;;  %12817 = vmatprep.mubr.msk.bf16.mxu1 %vm423_vm0, %v16631_v45 }
 0x367   :  { %5368 = vmatpush1.bf16.msra.mxu0 %v14333_v48  ;;  %5489 = vmatpush1.bf16.msra.mxu1 %v14334_v50  ;;  %v14347_v48 = vld [vmem:[%s19131_s7 + $0x40] sm:$0xff]  }
 0x368   :  { %5369 = vmatprep.subr.bf16.mxu0 %v19145_v0  ;;  %5490 = vmatprep.subr.bf16.mxu1 %v19145_v0  ;;  %v14348_v50 = vld [vmem:[%s19131_s7 + $0xa0] sm:$0xff]  }
 0x36b   :  { %5370 = vmatpush1.bf16.msra.mxu0 %v14335_v30  ;;  %5491 = vmatpush1.bf16.msra.mxu1 %v14336_v54  ;;  %v14349_v30 = vld [vmem:[%s19131_s7 + $0x48] sm:$0xff]  }
 0x36c   :  { %5371 = vmatprep.subr.bf16.mxu0 %v19145_v0  ;;  %5492 = vmatprep.subr.bf16.mxu1 %v19145_v0  ;;  %v14350_v54 = vld [vmem:[%s19131_s7 + $0xa8] sm:$0xff]  }
 0x36f   :  { %5372 = vmatpush1.bf16.msra.mxu0 %v14337_v55  ;;  %5493 = vmatpush1.bf16.msra.mxu1 %v14338_v57  ;;  %v14351_v55 = vld [vmem:[%s19131_s7 + $0x50] sm:$0xff]  }
 0x370   :  { %5373 = vmatprep.subr.bf16.mxu0 %v19145_v0  ;;  %5494 = vmatprep.subr.bf16.mxu1 %v19145_v0  ;;  %v14352_v57 = vld [vmem:[%s19131_s7 + $0xb0] sm:$0xff]  }
 0x373   :  { %5374 = vmatpush1.bf16.msra.mxu0 %v14339_v58  ;;  %5495 = vmatpush1.bf16.msra.mxu1 %v14340_v61  ;;  %v14353_v58 = vld [vmem:[%s19131_s7 + $0x58] sm:$0xff]   ;;  %v49_v61 = vld [vmem:[%s19132_s1] sm:$0xff] }
 0x374   :  { %5375 = vmatprep.subr.bf16.mxu0 %v19145_v0  ;;  %5496 = vmatprep.subr.bf16.mxu1 %v19145_v0 }
 0x375   :  { %v3975_v5 = vpop.f32.mrb[52].mxu0  ;;  %v4088_v7 = vpop.f32.mrb[52].mxu1 }
 0x376   :  { %v3977_v6 = vpop.f32.mrb[53].mxu0  ;;  %v4090_v11 = vpop.f32.mrb[53].mxu1 }
 0x377   :  { %v3978_v8 = vpop.f32.mrb[54].mxu0  ;;  %5376 = vmatpush1.bf16.msra.mxu0 %v14341_v1  ;;  %5497 = vmatpush1.bf16.msra.mxu1 %v14342_v3  ;;  %v4091_v35 = vpop.f32.mrb[54].mxu1  ;;  %v51_v1 = vld [vmem:[%s19132_s1 + $0x10] sm:$0xff]  ;;  %v14354_v3 = vld [vmem:[%s19131_s7 + $0xb8] sm:$0xff]   ;;  %v54_v6 = vld [vmem:[%s19132_s1 + $0x28] sm:$0xff] }
 0x378   :  { %v16682_v28 = vpack.c.bf16 %v3978_v8, %v3975_v5  ;;  %v3980_v32 = vpop.f32.mrb[55].mxu0  ;;  %5377 = vmatprep.subr.bf16.mxu0 %v19145_v0  ;;  %v16688_v17 = vpack.c.bf16 %v4091_v35, %v4088_v7  ;;  %v4093_v38 = vpop.f32.mrb[55].mxu1  ;;  %5498 = vmatprep.subr.bf16.mxu1 %v19145_v0  ;;  %v16737_v5 = vpack.c.bf16 %v51_v1, %v49_v61  ;;  %v56_v7 = vld [vmem:[%s19132_s1 + $0x38] sm:$0xff]  ;;  %v14355_v8 = vld [vmem:[%s19131_s7 + $0xc0] sm:$0xff]  }
 0x379   :  { %v14356_v11 = vld [vmem:[%s19131_s7 + $0x120] sm:$0xff]   ;;  %v14357_v32 = vld [vmem:[%s19131_s7 + $0xc8] sm:$0xff]  }
 0x37a   :  { %19153 = vst [vmem:[#allocation2_spill] sm:$0xff] %v16682_v28  ;;  %19154 = vst [vmem:[#allocation3_spill] sm:$0xff] %v16688_v17  ;;  %v53_v35 = vld [vmem:[%s19132_s1 + $0x20] sm:$0xff]  ;;  %v14358_v38 = vld [vmem:[%s19131_s7 + $0x128] sm:$0xff]  }
 0x37b   :  { %5378 = vmatpush1.bf16.msra.mxu0 %v14343_v13  ;;  %5499 = vmatpush1.bf16.msra.mxu1 %v14344_v37  ;;  %v16753_v13 = vpack.c.bf16 %v56_v7, %v54_v6  ;;  %v55_v37 = vld [vmem:[%s19132_s1 + $0x30] sm:$0xff] }
 0x37c   :  { %5379 = vmatprep.subr.bf16.mxu0 %v19145_v0  ;;  %5500 = vmatprep.subr.bf16.mxu1 %v19145_v0 }
 0x37f   :  { %5380 = vmatpush1.bf16.msra.mxu0 %v14345_v42  ;;  %5501 = vmatpush1.bf16.msra.mxu1 %v14346_v43  ;;  %v16775_v42 = vpack.c.bf16 %v55_v37, %v53_v35  ;;  %v14359_v43 = vld [vmem:[%s19131_s7 + $0xd0] sm:$0xff]  }
 0x380   :  { %5381 = vmatprep.subr.bf16.mxu0 %v19145_v0  ;;  %5502 = vmatprep.subr.bf16.mxu1 %v19145_v0  ;;  %v14368_v37 = vld [vmem:[%s19131_s7 + $0x150] sm:$0xff]  }
 0x383   :  { %5382 = vmatpush1.bf16.msra.mxu0 %v14347_v48  ;;  %5503 = vmatpush1.bf16.msra.mxu1 %v14348_v50  ;;  %v14360_v48 = vld [vmem:[%s19131_s7 + $0x130] sm:$0xff]   ;;  %v14361_v50 = vld [vmem:[%s19131_s7 + $0xd8] sm:$0xff]  }
 0x384   :  { %5383 = vmatprep.subr.bf16.mxu0 %v19145_v0  ;;  %5504 = vmatprep.subr.bf16.mxu1 %v19145_v0 }
 0x387   :  { %5384 = vmatpush1.bf16.msra.mxu0 %v14349_v30  ;;  %5505 = vmatpush1.bf16.msra.mxu1 %v14350_v54  ;;  %v14362_v30 = vld [vmem:[%s19131_s7 + $0x138] sm:$0xff]   ;;  %v14363_v54 = vld [vmem:[%s19131_s7 + $0xe0] sm:$0xff]  }
 0x388   :  { %5385 = vmatprep.subr.bf16.mxu0 %v19145_v0  ;;  %5506 = vmatprep.subr.bf16.mxu1 %v19145_v0 }
 0x38b   :  { %5386 = vmatpush1.bf16.msra.mxu0 %v14351_v55  ;;  %5507 = vmatpush1.bf16.msra.mxu1 %v14352_v57  ;;  %v14364_v55 = vld [vmem:[%s19131_s7 + $0x140] sm:$0xff]   ;;  %v14365_v57 = vld [vmem:[%s19131_s7 + $0xe8] sm:$0xff]  }
 0x38c   :  { %5387 = vmatprep.subr.bf16.mxu0 %v19145_v0  ;;  %5508 = vmatprep.subr.bf16.mxu1 %v19145_v0 }
 0x38f   :  { %5388 = vmatpush1.bf16.msra.mxu0 %v14353_v58  ;;  %5509 = vmatpush1.bf16.msra.mxu1 %v14354_v3  ;;  %v14366_v58 = vld [vmem:[%s19131_s7 + $0x148] sm:$0xff]  }
 0x390   :  { %5607 = vmatprep.subr.bf16.mxu0 %v19145_v0  ;;  %5728 = vmatprep.subr.bf16.mxu1 %v19145_v0 }
 0x392   :  { %5398 = vmatmul.mubr.bf16.vlgmr.msra.gmra.mrb[72].mxu0 %v16737_v5  ;;  %5519 = vmatmul.mubr.bf16.vlgmr.msra.gmra.mrb[72].mxu1 %v16737_v5 }
 0x393   :  { %5608 = vmatpush1.bf16.msra.mxu0 %v14355_v8  ;;  %5729 = vmatpush1.bf16.msra.mxu1 %v14356_v11  ;;  %v14367_v8 = vld [vmem:[%s19131_s7 + $0xf0] sm:$0xff]  }
 0x394   :  { %5609 = vmatprep.subr.bf16.mxu0 %v19145_v0  ;;  %5730 = vmatprep.subr.bf16.mxu1 %v19145_v0 }
 0x395   :  { %12804 = vmatprep.mubr.msk.bf16.mxu0 %vm423_vm0, %v16753_v13  ;;  %12818 = vmatprep.mubr.msk.bf16.mxu1 %vm423_vm0, %v16753_v13 }
 0x397   :  { %5610 = vmatpush1.bf16.msra.mxu0 %v14357_v32  ;;  %5731 = vmatpush1.bf16.msra.mxu1 %v14358_v38 }
 0x398   :  { %5611 = vmatprep.subr.bf16.mxu0 %v19145_v0  ;;  %5732 = vmatprep.subr.bf16.mxu1 %v19145_v0 }
 0x39a   :  { %5406 = vmatmul.mubr.bf16.gmra.mrb[76].mxu0 %v16775_v42  ;;  %5527 = vmatmul.mubr.bf16.gmra.mrb[76].mxu1 %v16775_v42 }
 0x39b   :  { %5612 = vmatpush1.bf16.msra.mxu0 %v14359_v43  ;;  %5733 = vmatpush1.bf16.msra.mxu1 %v14360_v48  ;;  %v14369_v48 = vld [vmem:[%s19131_s7 + $0xf8] sm:$0xff]  }
 0x39c   :  { %5613 = vmatprep.subr.bf16.mxu0 %v19145_v0  ;;  %5734 = vmatprep.subr.bf16.mxu1 %v19145_v0 }
 0x39d   :  { %12831 = vmatprep.mubr.msk.bf16.mxu0 %vm423_vm0, %v16631_v45  ;;  %12845 = vmatprep.mubr.msk.bf16.mxu1 %vm423_vm0, %v16631_v45 }
 0x39f   :  { %5614 = vmatpush1.bf16.msra.mxu0 %v14361_v50  ;;  %5735 = vmatpush1.bf16.msra.mxu1 %v14362_v30  ;;  %v14370_v50 = vld [vmem:[%s19131_s7 + $0x158] sm:$0xff]   ;;  %v14371_v30 = vld [vmem:[%s19131_s7 + $0x100] sm:$0xff]  }
 0x3a0   :  { %5615 = vmatprep.subr.bf16.mxu0 %v19145_v0  ;;  %5736 = vmatprep.subr.bf16.mxu1 %v19145_v0 }
 0x3a3   :  { %5616 = vmatpush1.bf16.msra.mxu0 %v14363_v54  ;;  %5737 = vmatpush1.bf16.msra.mxu1 %v14364_v55  ;;  %v14372_v54 = vld [vmem:[%s19131_s7 + $0x160] sm:$0xff]   ;;  %v14373_v55 = vld [vmem:[%s19131_s7 + $0x108] sm:$0xff]  }
 0x3a4   :  { %5617 = vmatprep.subr.bf16.mxu0 %v19145_v0  ;;  %5738 = vmatprep.subr.bf16.mxu1 %v19145_v0 }
 0x3a5   :  { %v4201_v61 = vpop.f32.mrb[56].mxu0  ;;  %v4314_v3 = vpop.f32.mrb[56].mxu1 }
 0x3a6   :  { %v4203_v1 = vpop.f32.mrb[57].mxu0  ;;  %v4316_v7 = vpop.f32.mrb[57].mxu1 }
 0x3a7   :  { %v4204_v6 = vpop.f32.mrb[58].mxu0  ;;  %5618 = vmatpush1.bf16.msra.mxu0 %v14365_v57  ;;  %5739 = vmatpush1.bf16.msra.mxu1 %v14366_v58  ;;  %v4317_v35 = vpop.f32.mrb[58].mxu1  ;;  %v14374_v57 = vld [vmem:[%s19131_s7 + $0x168] sm:$0xff]   ;;  %v14375_v58 = vld [vmem:[%s19131_s7 + $0x110] sm:$0xff]   ;;  %v14377_v1 = vld [vmem:[%s19131_s7 + $0x118] sm:$0xff]  }
 0x3a8   :  { %v16818_v11 = vpack.c.bf16 %v4204_v6, %v4201_v61  ;;  %v4206_v32 = vpop.f32.mrb[59].mxu0  ;;  %5619 = vmatprep.subr.bf16.mxu0 %v19145_v0  ;;  %v16824_v38 = vpack.c.bf16 %v4317_v35, %v4314_v3  ;;  %v4319_v43 = vpop.f32.mrb[59].mxu1  ;;  %5740 = vmatprep.subr.bf16.mxu1 %v19145_v0  ;;  %v14376_v61 = vld [vmem:[%s19131_s7 + $0x170] sm:$0xff]   ;;  %v14378_v3 = vld [vmem:[%s19131_s7 + $0x178] sm:$0xff]   ;;  %v14379_v6 = vld [vmem:[%s19131_s7 + $0x180] sm:$0xff]  }
 0x3a9   :  { %v14380_v7 = vld [vmem:[%s19131_s7 + $0x1e0] sm:$0xff]   ;;  %v14382_v32 = vld [vmem:[%s19131_s7 + $0x1e8] sm:$0xff]   ;;  %v14383_v35 = vld [vmem:[%s19131_s7 + $0x190] sm:$0xff]  }
 0x3aa   :  { %19155 = vst [vmem:[#allocation4_spill] sm:$0xff] %v16818_v11  ;;  %19156 = vst [vmem:[#allocation5_spill] sm:$0xff] %v16824_v38  ;;  %v14385_v43 = vld [vmem:[%s19131_s7 + $0x198] sm:$0xff]  }
 0x3ab   :  { %5620 = vmatpush1.bf16.msra.mxu0 %v14367_v8  ;;  %5741 = vmatpush1.bf16.msra.mxu1 %v14368_v37  ;;  %v14381_v8 = vld [vmem:[%s19131_s7 + $0x188] sm:$0xff]   ;;  %v14384_v37 = vld [vmem:[%s19131_s7 + $0x1f0] sm:$0xff]  }
 0x3ac   :  { %5621 = vmatprep.subr.bf16.mxu0 %v19145_v0  ;;  %5742 = vmatprep.subr.bf16.mxu1 %v19145_v0 }
 0x3af   :  { %5622 = vmatpush1.bf16.msra.mxu0 %v14369_v48  ;;  %5743 = vmatpush1.bf16.msra.mxu1 %v14370_v50  ;;  %v14386_v48 = vld [vmem:[%s19131_s7 + $0x1f8] sm:$0xff]   ;;  %v14387_v50 = vld [vmem:[%s19131_s7 + $0x1a0] sm:$0xff]  }
 0x3b0   :  { %5623 = vmatprep.subr.bf16.mxu0 %v19145_v0  ;;  %5744 = vmatprep.subr.bf16.mxu1 %v19145_v0 }
 0x3b3   :  { %5624 = vmatpush1.bf16.msra.mxu0 %v14371_v30  ;;  %5745 = vmatpush1.bf16.msra.mxu1 %v14372_v54  ;;  %v14388_v30 = vld [vmem:[%s19131_s7 + $0x200] sm:$0xff]   ;;  %v14389_v54 = vld [vmem:[%s19131_s7 + $0x1a8] sm:$0xff]  }
 0x3b4   :  { %5625 = vmatprep.subr.bf16.mxu0 %v19145_v0  ;;  %5746 = vmatprep.subr.bf16.mxu1 %v19145_v0 }
 0x3b7   :  { %5626 = vmatpush1.bf16.msra.mxu0 %v14373_v55  ;;  %5747 = vmatpush1.bf16.msra.mxu1 %v14374_v57  ;;  %v14390_v55 = vld [vmem:[%s19131_s7 + $0x208] sm:$0xff]  }
 0x3b8   :  { %5627 = vmatprep.subr.bf16.mxu0 %v19145_v0  ;;  %5748 = vmatprep.subr.bf16.mxu1 %v19145_v0 }
 0x3bb   :  { %5628 = vmatpush1.bf16.msra.mxu0 %v14375_v58  ;;  %5749 = vmatpush1.bf16.msra.mxu1 %v14376_v61 }
 0x3bc   :  { %5629 = vmatprep.subr.bf16.mxu0 %v19145_v0  ;;  %5750 = vmatprep.subr.bf16.mxu1 %v19145_v0 }
 0x3bf   :  { %5630 = vmatpush1.bf16.msra.mxu0 %v14377_v1  ;;  %5751 = vmatpush1.bf16.msra.mxu1 %v14378_v3 }
 0x3c0   :  { %5849 = vmatprep.subr.bf16.mxu0 %v19145_v0  ;;  %5970 = vmatprep.subr.bf16.mxu1 %v19145_v0 }
 0x3c2   :  { %5640 = vmatmul.mubr.bf16.vlgmr.msra.gmra.mrb[80].mxu0 %v16737_v5  ;;  %5761 = vmatmul.mubr.bf16.vlgmr.msra.gmra.mrb[80].mxu1 %v16737_v5 }
 0x3c3   :  { %5850 = vmatpush1.bf16.msra.mxu0 %v14379_v6  ;;  %5971 = vmatpush1.bf16.msra.mxu1 %v14380_v7  ;;  %v14391_v6 = vld [vmem:[%s19131_s7 + $0x1b0] sm:$0xff]  }
 0x3c4   :  { %5851 = vmatprep.subr.bf16.mxu0 %v19145_v0  ;;  %5972 = vmatprep.subr.bf16.mxu1 %v19145_v0 }
 0x3c5   :  { %12832 = vmatprep.mubr.msk.bf16.mxu0 %vm423_vm0, %v16753_v13  ;;  %12846 = vmatprep.mubr.msk.bf16.mxu1 %vm423_vm0, %v16753_v13 }
 0x3c7   :  { %5852 = vmatpush1.bf16.msra.mxu0 %v14381_v8  ;;  %5973 = vmatpush1.bf16.msra.mxu1 %v14382_v32 }
 0x3c8   :  { %5853 = vmatprep.subr.bf16.mxu0 %v19145_v0  ;;  %5974 = vmatprep.subr.bf16.mxu1 %v19145_v0 }
 0x3ca   :  { %5648 = vmatmul.mubr.bf16.gmra.mrb[84].mxu0 %v16775_v42  ;;  %5769 = vmatmul.mubr.bf16.gmra.mrb[84].mxu1 %v16775_v42 }
 0x3cb   :  { %5854 = vmatpush1.bf16.msra.mxu0 %v14383_v35  ;;  %5975 = vmatpush1.bf16.msra.mxu1 %v14384_v37  ;;  %v14392_v35 = vld [vmem:[%s19131_s7 + $0x210] sm:$0xff]  }
 0x3cc   :  { %5855 = vmatprep.subr.bf16.mxu0 %v19145_v0  ;;  %5976 = vmatprep.subr.bf16.mxu1 %v19145_v0 }
 0x3cd   :  { %12859 = vmatprep.mubr.msk.bf16.mxu0 %vm423_vm0, %v16631_v45  ;;  %12873 = vmatprep.mubr.msk.bf16.mxu1 %vm423_vm0, %v16631_v45 }
 0x3cf   :  { %5856 = vmatpush1.bf16.msra.mxu0 %v14385_v43  ;;  %5977 = vmatpush1.bf16.msra.mxu1 %v14386_v48  ;;  %v14393_v48 = vld [vmem:[%s19131_s7 + $0x1b8] sm:$0xff]  }
 0x3d0   :  { %5857 = vmatprep.subr.bf16.mxu0 %v19145_v0  ;;  %5978 = vmatprep.subr.bf16.mxu1 %v19145_v0 }
 0x3d3   :  { %5858 = vmatpush1.bf16.msra.mxu0 %v14387_v50  ;;  %5979 = vmatpush1.bf16.msra.mxu1 %v14388_v30  ;;  %v14394_v50 = vld [vmem:[%s19131_s7 + $0x218] sm:$0xff]   ;;  %v14395_v30 = vld [vmem:[%s19131_s7 + $0x1c0] sm:$0xff]  }
 0x3d4   :  { %5859 = vmatprep.subr.bf16.mxu0 %v19145_v0  ;;  %5980 = vmatprep.subr.bf16.mxu1 %v19145_v0 }
 0x3d5   :  { %v4427_v57 = vpop.f32.mrb[60].mxu0  ;;  %v4540_v61 = vpop.f32.mrb[60].mxu1 }
 0x3d6   :  { %v4429_v58 = vpop.f32.mrb[61].mxu0  ;;  %v4542_v3 = vpop.f32.mrb[61].mxu1 }
 0x3d7   :  { %v4430_v1 = vpop.f32.mrb[62].mxu0  ;;  %5860 = vmatpush1.bf16.msra.mxu0 %v14389_v54  ;;  %5981 = vmatpush1.bf16.msra.mxu1 %v14390_v55  ;;  %v4543_v32 = vpop.f32.mrb[62].mxu1  ;;  %v14396_v54 = vld [vmem:[%s19131_s7 + $0x220] sm:$0xff]   ;;  %v14397_v55 = vld [vmem:[%s19131_s7 + $0x1c8] sm:$0xff]   ;;  %v14399_v58 = vld [vmem:[%s19131_s7 + $0x1d0] sm:$0xff]  }
 0x3d8   :  { %v16930_v7 = vpack.c.bf16 %v4430_v1, %v4427_v57  ;;  %v4432_v8 = vpop.f32.mrb[63].mxu0  ;;  %5861 = vmatprep.subr.bf16.mxu0 %v19145_v0  ;;  %v16936_v37 = vpack.c.bf16 %v4543_v32, %v4540_v61  ;;  %v4545_v43 = vpop.f32.mrb[63].mxu1  ;;  %5982 = vmatprep.subr.bf16.mxu1 %v19145_v0  ;;  %v14398_v57 = vld [vmem:[%s19131_s7 + $0x228] sm:$0xff]   ;;  %v14400_v61 = vld [vmem:[%s19131_s7 + $0x230] sm:$0xff]   ;;  %v14401_v1 = vld [vmem:[%s19131_s7 + $0x1d8] sm:$0xff]  }
 0x3d9   :  { %v14402_v3 = vld [vmem:[%s19131_s7 + $0x238] sm:$0xff]   ;;  %v14404_v8 = vld [vmem:[%s19131_s7 + $0x2a0] sm:$0xff]   ;;  %v14405_v32 = vld [vmem:[%s19131_s7 + $0x248] sm:$0xff]  }
 0x3da   :  { %19157 = vst [vmem:[#allocation6_spill] sm:$0xff] %v16930_v7  ;;  %19158 = vst [vmem:[#allocation7_spill] sm:$0xff] %v16936_v37  ;;  %v14407_v43 = vld [vmem:[%s19131_s7 + $0x250] sm:$0xff]  }
 0x3db   :  { %5862 = vmatpush1.bf16.msra.mxu0 %v14391_v6  ;;  %5983 = vmatpush1.bf16.msra.mxu1 %v14392_v35  ;;  %v14403_v6 = vld [vmem:[%s19131_s7 + $0x240] sm:$0xff]   ;;  %v14406_v35 = vld [vmem:[%s19131_s7 + $0x2a8] sm:$0xff]  }
 0x3dc   :  { %5863 = vmatprep.subr.bf16.mxu0 %v19145_v0  ;;  %5984 = vmatprep.subr.bf16.mxu1 %v19145_v0 }
 0x3df   :  { %5864 = vmatpush1.bf16.msra.mxu0 %v14393_v48  ;;  %5985 = vmatpush1.bf16.msra.mxu1 %v14394_v50  ;;  %v14408_v48 = vld [vmem:[%s19131_s7 + $0x2b0] sm:$0xff]   ;;  %v14409_v50 = vld [vmem:[%s19131_s7 + $0x258] sm:$0xff]  }
 0x3e0   :  { %5865 = vmatprep.subr.bf16.mxu0 %v19145_v0  ;;  %5986 = vmatprep.subr.bf16.mxu1 %v19145_v0 }
 0x3e3   :  { %5866 = vmatpush1.bf16.msra.mxu0 %v14395_v30  ;;  %5987 = vmatpush1.bf16.msra.mxu1 %v14396_v54  ;;  %v14410_v30 = vld [vmem:[%s19131_s7 + $0x2b8] sm:$0xff]   ;;  %v14411_v54 = vld [vmem:[%s19131_s7 + $0x260] sm:$0xff]  }
 0x3e4   :  { %5867 = vmatprep.subr.bf16.mxu0 %v19145_v0  ;;  %5988 = vmatprep.subr.bf16.mxu1 %v19145_v0 }
 0x3e7   :  { %5868 = vmatpush1.bf16.msra.mxu0 %v14397_v55  ;;  %5989 = vmatpush1.bf16.msra.mxu1 %v14398_v57  ;;  %v14412_v55 = vld [vmem:[%s19131_s7 + $0x2c0] sm:$0xff]   ;;  %v14413_v57 = vld [vmem:[%s19131_s7 + $0x268] sm:$0xff]  }
 0x3e8   :  { %5869 = vmatprep.subr.bf16.mxu0 %v19145_v0  ;;  %5990 = vmatprep.subr.bf16.mxu1 %v19145_v0 }
 0x3eb   :  { %5870 = vmatpush1.bf16.msra.mxu0 %v14399_v58  ;;  %5991 = vmatpush1.bf16.msra.mxu1 %v14400_v61  ;;  %v14414_v58 = vld [vmem:[%s19131_s7 + $0x2c8] sm:$0xff]  }
 0x3ec   :  { %5871 = vmatprep.subr.bf16.mxu0 %v19145_v0  ;;  %5992 = vmatprep.subr.bf16.mxu1 %v19145_v0 }
 0x3ef   :  { %5872 = vmatpush1.bf16.msra.mxu0 %v14401_v1  ;;  %5993 = vmatpush1.bf16.msra.mxu1 %v14402_v3 }
 0x3f0   :  { %6091 = vmatprep.subr.bf16.mxu0 %v19145_v0  ;;  %6212 = vmatprep.subr.bf16.mxu1 %v19145_v0 }
 0x3f2   :  { %5882 = vmatmul.mubr.bf16.vlgmr.msra.gmra.mrb[88].mxu0 %v16737_v5  ;;  %6003 = vmatmul.mubr.bf16.vlgmr.msra.gmra.mrb[88].mxu1 %v16737_v5 }
 0x3f3   :  { %6092 = vmatpush1.bf16.msra.mxu0 %v14403_v6  ;;  %6213 = vmatpush1.bf16.msra.mxu1 %v14404_v8 }
 0x3f4   :  { %6093 = vmatprep.subr.bf16.mxu0 %v19145_v0  ;;  %6214 = vmatprep.subr.bf16.mxu1 %v19145_v0 }
 0x3f5   :  { %12860 = vmatprep.mubr.msk.bf16.mxu0 %vm423_vm0, %v16753_v13  ;;  %12874 = vmatprep.mubr.msk.bf16.mxu1 %vm423_vm0, %v16753_v13 }
 0x3f7   :  { %6094 = vmatpush1.bf16.msra.mxu0 %v14405_v32  ;;  %6215 = vmatpush1.bf16.msra.mxu1 %v14406_v35  ;;  %v14415_v32 = vld [vmem:[%s19131_s7 + $0x270] sm:$0xff]  }
 0x3f8   :  { %6095 = vmatprep.subr.bf16.mxu0 %v19145_v0  ;;  %6216 = vmatprep.subr.bf16.mxu1 %v19145_v0 }
 0x3fa   :  { %5890 = vmatmul.mubr.bf16.gmra.mrb[92].mxu0 %v16775_v42  ;;  %6011 = vmatmul.mubr.bf16.gmra.mrb[92].mxu1 %v16775_v42 }
 0x3fb   :  { %6096 = vmatpush1.bf16.msra.mxu0 %v14407_v43  ;;  %6217 = vmatpush1.bf16.msra.mxu1 %v14408_v48 }
 0x3fc   :  { %6097 = vmatprep.subr.bf16.mxu0 %v19145_v0  ;;  %6218 = vmatprep.subr.bf16.mxu1 %v19145_v0 }
 0x3fd   :  { %12887 = vmatprep.mubr.msk.bf16.mxu0 %vm423_vm0, %v16631_v45  ;;  %12901 = vmatprep.mubr.msk.bf16.mxu1 %vm423_vm0, %v16631_v45 }
 0x3ff   :  { %6098 = vmatpush1.bf16.msra.mxu0 %v14409_v50  ;;  %6219 = vmatpush1.bf16.msra.mxu1 %v14410_v30  ;;  %v14416_v50 = vld [vmem:[%s19131_s7 + $0x2d0] sm:$0xff]  }
 0x400   :  { %6099 = vmatprep.subr.bf16.mxu0 %v19145_v0  ;;  %6220 = vmatprep.subr.bf16.mxu1 %v19145_v0 }
 0x403   :  { %6100 = vmatpush1.bf16.msra.mxu0 %v14411_v54  ;;  %6221 = vmatpush1.bf16.msra.mxu1 %v14412_v55  ;;  %v14417_v55 = vld [vmem:[%s19131_s7 + $0x278] sm:$0xff]  }
 0x404   :  { %6101 = vmatprep.subr.bf16.mxu0 %v19145_v0  ;;  %6222 = vmatprep.subr.bf16.mxu1 %v19145_v0 }
 0x405   :  { %v4653_v61 = vpop.f32.mrb[64].mxu0  ;;  %v4766_v3 = vpop.f32.mrb[64].mxu1 }
 0x406   :  { %v4655_v1 = vpop.f32.mrb[65].mxu0  ;;  %v4768_v8 = vpop.f32.mrb[65].mxu1 }
 0x407   :  { %v4656_v6 = vpop.f32.mrb[66].mxu0  ;;  %6102 = vmatpush1.bf16.msra.mxu0 %v14413_v57  ;;  %6223 = vmatpush1.bf16.msra.mxu1 %v14414_v58  ;;  %v4769_v48 = vpop.f32.mrb[66].mxu1  ;;  %v14418_v57 = vld [vmem:[%s19131_s7 + $0x2d8] sm:$0xff]   ;;  %v14419_v58 = vld [vmem:[%s19131_s7 + $0x280] sm:$0xff]   ;;  %v14421_v1 = vld [vmem:[%s19131_s7 + $0x288] sm:$0xff]  }
 0x408   :  { %v17042_v35 = vpack.c.bf16 %v4656_v6, %v4653_v61  ;;  %v4658_v43 = vpop.f32.mrb[67].mxu0  ;;  %6103 = vmatprep.subr.bf16.mxu0 %v19145_v0  ;;  %v17048_v30 = vpack.c.bf16 %v4769_v48, %v4766_v3  ;;  %v4771_v54 = vpop.f32.mrb[67].mxu1  ;;  %6224 = vmatprep.subr.bf16.mxu1 %v19145_v0  ;;  %v14420_v61 = vld [vmem:[%s19131_s7 + $0x2e0] sm:$0xff]   ;;  %v14422_v3 = vld [vmem:[%s19131_s7 + $0x2e8] sm:$0xff]   ;;  %v14423_v6 = vld [vmem:[%s19131_s7 + $0x290] sm:$0xff]  }
 0x409   :  { %v14424_v8 = vld [vmem:[%s19131_s7 + $0x2f0] sm:$0xff]   ;;  %v14426_v43 = vld [vmem:[%s19131_s7 + $0x2f8] sm:$0xff]   ;;  %v14427_v48 = vld [vmem:[%s19131_s7 + $0x300] sm:$0xff]  }
 0x40a   :  { %19159 = vst [vmem:[#allocation8_spill] sm:$0xff] %v17042_v35  ;;  %19160 = vst [vmem:[#allocation9_spill] sm:$0xff] %v17048_v30  ;;  %v14429_v54 = vld [vmem:[%s19131_s7 + $0x308] sm:$0xff]   ;;  %v14464_v30 = vld [vmem:[%s19131_s7 + $0x450] sm:$0xff]  }
 0x40b   :  { %6104 = vmatpush1.bf16.msra.mxu0 %v14415_v32  ;;  %6225 = vmatpush1.bf16.msra.mxu1 %v14416_v50  ;;  %v14425_v32 = vld [vmem:[%s19131_s7 + $0x298] sm:$0xff]   ;;  %v14428_v50 = vld [vmem:[%s19131_s7 + $0x360] sm:$0xff]  }
 0x40c   :  { %6105 = vmatprep.subr.bf16.mxu0 %v19145_v0  ;;  %6226 = vmatprep.subr.bf16.mxu1 %v19145_v0 }
 0x40f   :  { %6106 = vmatpush1.bf16.msra.mxu0 %v14417_v55  ;;  %6227 = vmatpush1.bf16.msra.mxu1 %v14418_v57  ;;  %v14430_v55 = vld [vmem:[%s19131_s7 + $0x368] sm:$0xff]   ;;  %v14431_v57 = vld [vmem:[%s19131_s7 + $0x310] sm:$0xff]  }
 0x410   :  { %6107 = vmatprep.subr.bf16.mxu0 %v19145_v0  ;;  %6228 = vmatprep.subr.bf16.mxu1 %v19145_v0 }
 0x413   :  { %6108 = vmatpush1.bf16.msra.mxu0 %v14419_v58  ;;  %6229 = vmatpush1.bf16.msra.mxu1 %v14420_v61  ;;  %v14432_v58 = vld [vmem:[%s19131_s7 + $0x370] sm:$0xff]   ;;  %v14433_v61 = vld [vmem:[%s19131_s7 + $0x318] sm:$0xff]  }
 0x414   :  { %6109 = vmatprep.subr.bf16.mxu0 %v19145_v0  ;;  %6230 = vmatprep.subr.bf16.mxu1 %v19145_v0 }
 0x417   :  { %6110 = vmatpush1.bf16.msra.mxu0 %v14421_v1  ;;  %6231 = vmatpush1.bf16.msra.mxu1 %v14422_v3  ;;  %v14434_v1 = vld [vmem:[%s19131_s7 + $0x378] sm:$0xff]   ;;  %v14435_v3 = vld [vmem:[%s19131_s7 + $0x320] sm:$0xff]  }
 0x418   :  { %6111 = vmatprep.subr.bf16.mxu0 %v19145_v0  ;;  %6232 = vmatprep.subr.bf16.mxu1 %v19145_v0 }
 0x41b   :  { %6112 = vmatpush1.bf16.msra.mxu0 %v14423_v6  ;;  %6233 = vmatpush1.bf16.msra.mxu1 %v14424_v8  ;;  %v14436_v6 = vld [vmem:[%s19131_s7 + $0x380] sm:$0xff]   ;;  %v14437_v8 = vld [vmem:[%s19131_s7 + $0x328] sm:$0xff]  }
 0x41c   :  { %6113 = vmatprep.subr.bf16.mxu0 %v19145_v0  ;;  %6234 = vmatprep.subr.bf16.mxu1 %v19145_v0 }
 0x41f   :  { %6114 = vmatpush1.bf16.msra.mxu0 %v14425_v32  ;;  %6235 = vmatpush1.bf16.msra.mxu1 %v14426_v43  ;;  %v14438_v32 = vld [vmem:[%s19131_s7 + $0x388] sm:$0xff]  }
 0x420   :  { %6333 = vmatprep.subr.bf16.mxu0 %v19145_v0  ;;  %6454 = vmatprep.subr.bf16.mxu1 %v19145_v0 }
 0x422   :  { %6124 = vmatmul.mubr.bf16.vlgmr.msra.gmra.mrb[96].mxu0 %v16737_v5  ;;  %6245 = vmatmul.mubr.bf16.vlgmr.msra.gmra.mrb[96].mxu1 %v16737_v5 }
 0x423   :  { %6334 = vmatpush1.bf16.msra.mxu0 %v14427_v48  ;;  %6455 = vmatpush1.bf16.msra.mxu1 %v14428_v50 }
 0x424   :  { %6335 = vmatprep.subr.bf16.mxu0 %v19145_v0  ;;  %6456 = vmatprep.subr.bf16.mxu1 %v19145_v0 }
 0x425   :  { %12888 = vmatprep.mubr.msk.bf16.mxu0 %vm423_vm0, %v16753_v13  ;;  %12902 = vmatprep.mubr.msk.bf16.mxu1 %vm423_vm0, %v16753_v13 }
 0x427   :  { %6336 = vmatpush1.bf16.msra.mxu0 %v14429_v54  ;;  %6457 = vmatpush1.bf16.msra.mxu1 %v14430_v55 }
 0x428   :  { %6337 = vmatprep.subr.bf16.mxu0 %v19145_v0  ;;  %6458 = vmatprep.subr.bf16.mxu1 %v19145_v0 }
 0x42a   :  { %6132 = vmatmul.mubr.bf16.gmra.mrb[100].mxu0 %v16775_v42  ;;  %6253 = vmatmul.mubr.bf16.gmra.mrb[100].mxu1 %v16775_v42 }
 0x42b   :  { %6338 = vmatpush1.bf16.msra.mxu0 %v14431_v57  ;;  %6459 = vmatpush1.bf16.msra.mxu1 %v14432_v58  ;;  %v14439_v57 = vld [vmem:[%s19131_s7 + $0x330] sm:$0xff]  }
 0x42c   :  { %6339 = vmatprep.subr.bf16.mxu0 %v19145_v0  ;;  %6460 = vmatprep.subr.bf16.mxu1 %v19145_v0 }
 0x42d   :  { %12915 = vmatprep.mubr.msk.bf16.mxu0 %vm423_vm0, %v16631_v45  ;;  %12929 = vmatprep.mubr.msk.bf16.mxu1 %vm423_vm0, %v16631_v45 }
 0x42f   :  { %6340 = vmatpush1.bf16.msra.mxu0 %v14433_v61  ;;  %6461 = vmatpush1.bf16.msra.mxu1 %v14434_v1 }
 0x430   :  { %6341 = vmatprep.subr.bf16.mxu0 %v19145_v0  ;;  %6462 = vmatprep.subr.bf16.mxu1 %v19145_v0 }
 0x433   :  { %6342 = vmatpush1.bf16.msra.mxu0 %v14435_v3  ;;  %6463 = vmatpush1.bf16.msra.mxu1 %v14436_v6  ;;  %v14440_v3 = vld [vmem:[%s19131_s7 + $0x390] sm:$0xff]  }
 0x434   :  { %6343 = vmatprep.subr.bf16.mxu0 %v19145_v0  ;;  %6464 = vmatprep.subr.bf16.mxu1 %v19145_v0 }
 0x435   :  { %v4879_v43 = vpop.f32.mrb[68].mxu0  ;;  %v4992_v50 = vpop.f32.mrb[68].mxu1 }
 0x436   :  { %v4881_v48 = vpop.f32.mrb[69].mxu0  ;;  %v4994_v55 = vpop.f32.mrb[69].mxu1 }
 0x437   :  { %v4882_v54 = vpop.f32.mrb[70].mxu0  ;;  %6344 = vmatpush1.bf16.msra.mxu0 %v14437_v8  ;;  %6465 = vmatpush1.bf16.msra.mxu1 %v14438_v32  ;;  %v4995_v1 = vpop.f32.mrb[70].mxu1  ;;  %v14441_v8 = vld [vmem:[%s19131_s7 + $0x338] sm:$0xff]   ;;  %v14446_v55 = vld [vmem:[%s19131_s7 + $0x3a8] sm:$0xff]  }
 0x438   :  { %v17154_v58 = vpack.c.bf16 %v4882_v54, %v4879_v43  ;;  %v4884_v61 = vpop.f32.mrb[71].mxu0  ;;  %6345 = vmatprep.subr.bf16.mxu0 %v19145_v0  ;;  %v17160_v6 = vpack.c.bf16 %v4995_v1, %v4992_v50  ;;  %v4997_v48 = vpop.f32.mrb[71].mxu1  ;;  %6466 = vmatprep.subr.bf16.mxu1 %v19145_v0  ;;  %v14442_v32 = vld [vmem:[%s19131_s7 + $0x398] sm:$0xff]   ;;  %v14443_v43 = vld [vmem:[%s19131_s7 + $0x340] sm:$0xff]   ;;  %v14445_v54 = vld [vmem:[%s19131_s7 + $0x348] sm:$0xff]  }
 0x439   :  { %v14444_v50 = vld [vmem:[%s19131_s7 + $0x3a0] sm:$0xff]   ;;  %v14448_v61 = vld [vmem:[%s19131_s7 + $0x3b0] sm:$0xff]   ;;  %v14449_v1 = vld [vmem:[%s19131_s7 + $0x358] sm:$0xff]  }
 0x43a   :  { %19161 = vst [vmem:[#allocation10_spill] sm:$0xff] %v17154_v58  ;;  %19162 = vst [vmem:[#allocation11_spill] sm:$0xff] %v17160_v6  ;;  %v14451_v48 = vld [vmem:[%s19131_s7 + $0x3c0] sm:$0xff]  }
 0x43b   :  { %6346 = vmatpush1.bf16.msra.mxu0 %v14439_v57  ;;  %6467 = vmatpush1.bf16.msra.mxu1 %v14440_v3  ;;  %v14447_v57 = vld [vmem:[%s19131_s7 + $0x350] sm:$0xff]   ;;  %v14450_v3 = vld [vmem:[%s19131_s7 + $0x3b8] sm:$0xff]  }
 0x43c   :  { %6347 = vmatprep.subr.bf16.mxu0 %v19145_v0  ;;  %6468 = vmatprep.subr.bf16.mxu1 %v19145_v0 }
 0x43f   :  { %6348 = vmatpush1.bf16.msra.mxu0 %v14441_v8  ;;  %6469 = vmatpush1.bf16.msra.mxu1 %v14442_v32  ;;  %v14452_v8 = vld [vmem:[%s19131_s7 + $0x420] sm:$0xff]   ;;  %v14453_v32 = vld [vmem:[%s19131_s7 + $0x3c8] sm:$0xff]  }
 0x440   :  { %6349 = vmatprep.subr.bf16.mxu0 %v19145_v0  ;;  %6470 = vmatprep.subr.bf16.mxu1 %v19145_v0 }
 0x443   :  { %6350 = vmatpush1.bf16.msra.mxu0 %v14443_v43  ;;  %6471 = vmatpush1.bf16.msra.mxu1 %v14444_v50  ;;  %v14454_v43 = vld [vmem:[%s19131_s7 + $0x428] sm:$0xff]   ;;  %v14455_v50 = vld [vmem:[%s19131_s7 + $0x3d0] sm:$0xff]  }
 0x444   :  { %6351 = vmatprep.subr.bf16.mxu0 %v19145_v0  ;;  %6472 = vmatprep.subr.bf16.mxu1 %v19145_v0 }
 0x447   :  { %6352 = vmatpush1.bf16.msra.mxu0 %v14445_v54  ;;  %6473 = vmatpush1.bf16.msra.mxu1 %v14446_v55  ;;  %v14456_v54 = vld [vmem:[%s19131_s7 + $0x430] sm:$0xff]   ;;  %v14457_v55 = vld [vmem:[%s19131_s7 + $0x3d8] sm:$0xff]  }
 0x448   :  { %6353 = vmatprep.subr.bf16.mxu0 %v19145_v0  ;;  %6474 = vmatprep.subr.bf16.mxu1 %v19145_v0 }
 0x44b   :  { %6354 = vmatpush1.bf16.msra.mxu0 %v14447_v57  ;;  %6475 = vmatpush1.bf16.msra.mxu1 %v14448_v61  ;;  %v14458_v57 = vld [vmem:[%s19131_s7 + $0x438] sm:$0xff]   ;;  %v17248_v61 = vld [vmem:[%s19133_s2] sm:$0xff] }
 0x44c   :  { %6355 = vmatprep.subr.bf16.mxu0 %v19145_v0  ;;  %6476 = vmatprep.subr.bf16.mxu1 %v19145_v0  ;;  %vm8080_vm1 = vcmp.eq.s32.totalorder %v17248_v61, 0  ;;  %vm8116_vm5 = vcmp.eq.s32.totalorder %v17248_v61, 1  ;;  %vm8248_vm10 = vcmp.eq.s32.totalorder %v17248_v61, 2 }
 0x44f   :  { %6356 = vmatpush1.bf16.msra.mxu0 %v14449_v1  ;;  %6477 = vmatpush1.bf16.msra.mxu1 %v14450_v3  ;;  %v17253_v1 = vld [vmem:[%s19133_s2 + $0x8] sm:$0xff]  ;;  %v14459_v3 = vld [vmem:[%s19131_s7 + $0x3e0] sm:$0xff]  }
 0x450   :  { %6575 = vmatprep.subr.bf16.mxu0 %v19145_v0  ;;  %6696 = vmatprep.subr.bf16.mxu1 %v19145_v0  ;;  %vm8081_vm2 = vcmp.eq.s32.totalorder %v17253_v1, 0  ;;  %vm8117_vm6 = vcmp.eq.s32.totalorder %v17253_v1, 1  ;;  %vm8249_vm9 = vcmp.eq.s32.totalorder %v17253_v1, 2  ;;  %v8250_v1 = vsel %vm8248_vm10, 1, %v19145_v0 }
 0x452   :  { %6366 = vmatmul.mubr.bf16.vlgmr.msra.gmra.mrb[104].mxu0 %v16737_v5  ;;  %6487 = vmatmul.mubr.bf16.vlgmr.msra.gmra.mrb[104].mxu1 %v16737_v5 }
 0x453   :  { %6576 = vmatpush1.bf16.msra.mxu0 %v14451_v48  ;;  %6697 = vmatpush1.bf16.msra.mxu1 %v14452_v8  ;;  %v8082_v48 = vsel %vm8080_vm1, 1, %v19145_v0  ;;  %v14460_v8 = vld [vmem:[%s19131_s7 + $0x440] sm:$0xff]  }
 0x454   :  { %6577 = vmatprep.subr.bf16.mxu0 %v19145_v0  ;;  %6698 = vmatprep.subr.bf16.mxu1 %v19145_v0 }
 0x455   :  { %12916 = vmatprep.mubr.msk.bf16.mxu0 %vm423_vm0, %v16753_v13  ;;  %12930 = vmatprep.mubr.msk.bf16.mxu1 %vm423_vm0, %v16753_v13 }
 0x456   :  { %8085 = vperm.xlu0 %13897, %v8082_v48   ;;  %v14463_v48 = vld [vmem:[%s19131_s7 + $0x3f0] sm:$0xff]  }
 0x457   :  { %6578 = vmatpush1.bf16.msra.mxu0 %v14453_v32  ;;  %6699 = vmatpush1.bf16.msra.mxu1 %v14454_v43  ;;  %v14461_v32 = vld [vmem:[%s19131_s7 + $0x3e8] sm:$0xff]  }
 0x458   :  { %6579 = vmatprep.subr.bf16.mxu0 %v19145_v0  ;;  %6700 = vmatprep.subr.bf16.mxu1 %v19145_v0  ;;  %v14462_v43 = vld [vmem:[%s19131_s7 + $0x448] sm:$0xff]  }
 0x45a   :  { %6374 = vmatmul.mubr.bf16.gmra.mrb[108].mxu0 %v16775_v42  ;;  %6495 = vmatmul.mubr.bf16.gmra.mrb[108].mxu1 %v16775_v42 }
 0x45b   :  { %6580 = vmatpush1.bf16.msra.mxu0 %v14455_v50  ;;  %6701 = vmatpush1.bf16.msra.mxu1 %v14456_v54 }
 0x45c   :  { %6581 = vmatprep.subr.bf16.mxu0 %v19145_v0  ;;  %6702 = vmatprep.subr.bf16.mxu1 %v19145_v0 }
 0x45d   :  { %12943 = vmatprep.mubr.msk.bf16.mxu0 %vm423_vm0, %v16631_v45  ;;  %12957 = vmatprep.mubr.msk.bf16.mxu1 %vm423_vm0, %v16631_v45  ;;  %v8083_v45 = vsel %vm8081_vm2, 1, %v19145_v0 }
 0x45e   :  { %8088 = vperm.xlu0 %13897, %v8083_v45  }
 0x45f   :  { %6582 = vmatpush1.bf16.msra.mxu0 %v14457_v55  ;;  %6703 = vmatpush1.bf16.msra.mxu1 %v14458_v57 }
 0x460   :  { %6583 = vmatprep.subr.bf16.mxu0 %v19145_v0  ;;  %6704 = vmatprep.subr.bf16.mxu1 %v19145_v0 }
 0x463   :  { %6584 = vmatpush1.bf16.msra.mxu0 %v14459_v3  ;;  %6705 = vmatpush1.bf16.msra.mxu1 %v14460_v8 }
 0x464   :  { %6585 = vmatprep.subr.bf16.mxu0 %v19145_v0  ;;  %6706 = vmatprep.subr.bf16.mxu1 %v19145_v0 }
 0x465   :  { %v5399_v50 = vpop.f32.mrb[72].mxu0  ;;  %v5520_v55 = vpop.f32.mrb[72].mxu1 }
 0x466   :  { %v5401_v54 = vpop.f32.mrb[73].mxu0  ;;  %v5522_v3 = vpop.f32.mrb[73].mxu1 }
 0x467   :  { %v5402_v57 = vpop.f32.mrb[74].mxu0  ;;  %6586 = vmatpush1.bf16.msra.mxu0 %v14461_v32  ;;  %6707 = vmatpush1.bf16.msra.mxu1 %v14462_v43  ;;  %v5523_v58 = vpop.f32.mrb[74].mxu1  ;;  %v14465_v32 = vld [vmem:[%s19131_s7 + $0x3f8] sm:$0xff]  }
 0x468   :  { %v13631_v8 = vpack.c.bf16 %v5402_v57, %v5399_v50  ;;  %v5404_v6 = vpop.f32.mrb[75].mxu0  ;;  %6587 = vmatprep.subr.bf16.mxu0 %v19145_v0  ;;  %v13643_v45 = vpack.c.bf16 %v5523_v58, %v5520_v55  ;;  %v5525_v54 = vpop.f32.mrb[75].mxu1  ;;  %6708 = vmatprep.subr.bf16.mxu1 %v19145_v0  ;;  %v14467_v55 = vld [vmem:[%s19131_s7 + $0x400] sm:$0xff]  }
 0x469   :  { %v14466_v6 = vld [vmem:[%s19131_s7 + $0x458] sm:$0xff]  }
 0x46b   :  { %6588 = vmatpush1.bf16.msra.mxu0 %v14463_v48  ;;  %6709 = vmatpush1.bf16.msra.mxu1 %v14464_v30  ;;  %v14468_v30 = vld [vmem:[%s19131_s7 + $0x460] sm:$0xff]  }
 0x46c   :  { %6589 = vmatprep.subr.bf16.mxu0 %v19145_v0  ;;  %6710 = vmatprep.subr.bf16.mxu1 %v19145_v0 }
 0x46d   :  { %v5407_v43 = vpop.f32.mrb[76].mxu0  ;;  %v5528_v50 = vpop.f32.mrb[76].mxu1 }
 0x46e   :  { %v5409_v58 = vpop.f32.mrb[77].mxu0  ;;  %v5530_v57 = vpop.f32.mrb[77].mxu1 }
 0x46f   :  { %6590 = vmatpush1.bf16.msra.mxu0 %v14465_v32  ;;  %v5410_v3 = vpop.f32.mrb[78].mxu0  ;;  %6711 = vmatpush1.bf16.msra.mxu1 %v14466_v6  ;;  %v5531_v54 = vpop.f32.mrb[78].mxu1  ;;  %v14469_v57 = vld [vmem:[%s19131_s7 + $0x408] sm:$0xff]  }
 0x470   :  { %6591 = vmatprep.subr.bf16.mxu0 %v19145_v0  ;;  %v13637_v48 = vpack.c.bf16 %v5410_v3, %v5407_v43  ;;  %v5412_v35 = vpop.f32.mrb[79].mxu0  ;;  %6712 = vmatprep.subr.bf16.mxu1 %v19145_v0  ;;  %v13649_v58 = vpack.c.bf16 %v5531_v54, %v5528_v50  ;;  %v5533_v32 = vpop.f32.mrb[79].mxu1  ;;  %v14470_v6 = vld [vmem:[%s19131_s7 + $0x468] sm:$0xff]   ;;  %v14472_v43 = vld [vmem:[%s19131_s7 + $0x470] sm:$0xff]   ;;  %v14473_v50 = vld [vmem:[%s19131_s7 + $0x418] sm:$0xff]  }
 0x471   :  { %v14471_v35 = vld [vmem:[%s19131_s7 + $0x410] sm:$0xff]   ;;  %v12972_v54 = vld [vmem:[%s19134_s10 + $0x1] ss:$0 sm:$0xff] }
 0x473   :  { %6592 = vmatpush1.bf16.msra.mxu0 %v14467_v55  ;;  %6713 = vmatpush1.bf16.msra.mxu1 %v14468_v30  ;;  %v14474_v55 = vld [vmem:[%s19131_s7 + $0x478] sm:$0xff]   ;;  %v12971_v30 = vld [vmem:[%s19134_s10] ss:$0 sm:$0xff] }
 0x474   :  { %6593 = vmatprep.subr.bf16.mxu0 %v19145_v0  ;;  %6714 = vmatprep.subr.bf16.mxu1 %v19145_v0  ;;  %v6937_v32 = vadd.f32 %v12971_v30, %v15268_v15 }
 0x477   :  { %6594 = vmatpush1.bf16.msra.mxu0 %v14469_v57  ;;  %6715 = vmatpush1.bf16.msra.mxu1 %v14470_v6  ;;  %v6940_v57 = vadd.f32 %v12972_v54, %v15281_v24 }
 0x478   :  { %6595 = vmatprep.subr.bf16.mxu0 %v19145_v0  ;;  %6716 = vmatprep.subr.bf16.mxu1 %v19145_v0 }
 0x47b   :  { %6596 = vmatpush1.bf16.msra.mxu0 %v14471_v35  ;;  %6717 = vmatpush1.bf16.msra.mxu1 %v14472_v43 }
 0x47c   :  { %6597 = vmatprep.subr.bf16.mxu0 %v19145_v0  ;;  %6718 = vmatprep.subr.bf16.mxu1 %v19145_v0 }
 0x47f   :  { %6598 = vmatpush1.bf16.msra.mxu0 %v14473_v50  ;;  %6719 = vmatpush1.bf16.msra.mxu1 %v14474_v55 }
 0x480   :  { %13633 = vmatprep.subr.msk.bf16.mxu0 %vm17327_vm4, %v13631_v8  ;;  %13645 = vmatprep.subr.msk.bf16.mxu1 %vm17327_vm4, %v13643_v45 }
 0x482   :  { %6608 = vmatmul.mubr.bf16.vlgmr.msra.gmra.mrb[112].mxu0 %v16737_v5  ;;  %6729 = vmatmul.mubr.bf16.vlgmr.msra.gmra.mrb[112].mxu1 %v16737_v5  ;;  %v6939_v5 = vadd.f32 %v12972_v54, %v15271_v18 }
 0x483   :  { %12944 = vmatprep.mubr.msk.bf16.mxu0 %vm423_vm0, %v16753_v13  ;;  %12958 = vmatprep.mubr.msk.bf16.mxu1 %vm423_vm0, %v16753_v13  ;;  %v12973_v13 = vld [vmem:[%s19134_s10 + $0x2] ss:$0 sm:$0xff] }
 0x484   :  { %v6941_v6 = vadd.f32 %v12973_v13, %v15378_v49 }
 0x488   :  { %13636 = vmatpush3.bf16.xpose.msk.msra.mxu0 %vm17327_vm4, %v13631_v8  ;;  %13648 = vmatpush3.bf16.xpose.msk.msra.mxu1 %vm17327_vm4, %v13643_v45  ;;  %v12974_v8 = vld [vmem:[%s19134_s10 + $0x3] ss:$0 sm:$0xff] }
 0x489   :  { %13639 = vmatprep.subr.msk.bf16.mxu0 %vm17327_vm4, %v13637_v48  ;;  %13651 = vmatprep.subr.msk.bf16.mxu1 %vm17327_vm4, %v13649_v58  ;;  %v6943_v43 = vadd.f32 %v12974_v8, %v15381_v51 }
 0x48a   :  { %6616 = vmatmul.mubr.bf16.gmra.mrb[116].mxu0 %v16775_v42  ;;  %6737 = vmatmul.mubr.bf16.gmra.mrb[116].mxu1 %v16775_v42  ;;  %v6938_v42 = vadd.f32 %v12971_v30, %v15279_v21 }
 0x48b   :  { %13339 = vmatprep.mubr.msk.f32.mxu0 %vm6961_vm3, %v6937_v32  ;;  %13350 = vmatprep.mubr.msk.f32.mxu1 %vm6961_vm3, %v6939_v5 }
 0x490   :  { %13642 = vmatpush3.bf16.xpose.msk.msra.mxu0 %vm17327_vm4, %v13637_v48  ;;  %13654 = vmatpush3.bf16.xpose.msk.msra.mxu1 %vm17327_vm4, %v13649_v58 }
 0x495   :  { %v5641_v45 = vpop.f32.mrb[80].mxu0  ;;  %v5762_v35 = vpop.f32.mrb[80].mxu1 }
 0x496   :  { %v5643_v48 = vpop.f32.mrb[81].mxu0  ;;  %v5764_v58 = vpop.f32.mrb[81].mxu1 }
 0x497   :  { %v5644_v50 = vpop.f32.mrb[82].mxu0  ;;  %13340 = vmatmul.mubr.msk.f32.vlgmr.msra.gmra.mrb[120].mxu0 %vm6961_vm3, %v6938_v42  ;;  %v5765_v32 = vpop.f32.mrb[82].mxu1  ;;  %13351 = vmatmul.mubr.msk.f32.vlgmr.msra.gmra.mrb[120].mxu1 %vm6961_vm3, %v6940_v57 }
 0x498   :  { %v13655_v55 = vpack.c.bf16 %v5644_v50, %v5641_v45  ;;  %v5646_v5 = vpop.f32.mrb[83].mxu0  ;;  %13361 = vmatprep.mubr.msk.f32.mxu0 %vm6961_vm3, %v6941_v6  ;;  %v13667_v30 = vpack.c.bf16 %v5765_v32, %v5762_v35  ;;  %13372 = vmatprep.mubr.msk.f32.mxu1 %vm6961_vm3, %v6943_v43  ;;  %v5767_v54 = vpop.f32.mrb[83].mxu1 }
 0x499   :  { %v12976_v5 = vld [vmem:[%s19134_s10 + $0x5] ss:$0 sm:$0xff]  ;;  %v6944_v54 = vadd.f32 %v12974_v8, %v15388_v56 }
 0x49a   :  { %13657 = vmatprep.subr.msk.bf16.mxu0 %vm17327_vm4, %v13655_v55  ;;  %13669 = vmatprep.subr.msk.bf16.mxu1 %vm17327_vm4, %v13667_v30 }
 0x49b   :  { %13660 = vmatpush3.bf16.xpose.msk.msra.mxu0 %vm17327_vm4, %v13655_v55  ;;  %13672 = vmatpush3.bf16.xpose.msk.msra.mxu1 %vm17327_vm4, %v13667_v30  ;;  %v12975_v55 = vld [vmem:[%s19134_s10 + $0x4] ss:$0 sm:$0xff]  ;;  %v6942_v30 = vadd.f32 %v12973_v13, %v15383_v52 }
 0x49d   :  { %v5649_v42 = vpop.f32.mrb[84].mxu0  ;;  %v5770_v45 = vpop.f32.mrb[84].mxu1 }
 0x49e   :  { %v5651_v57 = vpop.f32.mrb[85].mxu0  ;;  %v5772_v6 = vpop.f32.mrb[85].mxu1 }
 0x49f   :  { %v5652_v35 = vpop.f32.mrb[86].mxu0  ;;  %v5773_v43 = vpop.f32.mrb[86].mxu1 }
 0x4a0   :  { %v13661_v48 = vpack.c.bf16 %v5652_v35, %v5649_v42  ;;  %v5654_v58 = vpop.f32.mrb[87].mxu0  ;;  %v13673_v50 = vpack.c.bf16 %v5773_v43, %v5770_v45  ;;  %v5775_v32 = vpop.f32.mrb[87].mxu1  ;;  %v6945_v42 = vadd.f32 %v12975_v55, %v15488_v22  ;;  %v6947_v45 = vadd.f32 %v12976_v5, %v15491_v25 }
 0x4a2   :  { %13663 = vmatprep.subr.msk.bf16.mxu0 %vm17327_vm4, %v13661_v48  ;;  %13675 = vmatprep.subr.msk.bf16.mxu1 %vm17327_vm4, %v13673_v50 }
 0x4a3   :  { %13666 = vmatpush3.bf16.xpose.msk.msra.mxu0 %vm17327_vm4, %v13661_v48  ;;  %13678 = vmatpush3.bf16.xpose.msk.msra.mxu1 %vm17327_vm4, %v13673_v50 }
 0x4aa   :  { %13362 = vmatmul.mubr.msk.f32.vlgmr.msra.gmra.mrb[122].mxu0 %vm6961_vm3, %v6942_v30  ;;  %13373 = vmatmul.mubr.msk.f32.vlgmr.msra.gmra.mrb[122].mxu1 %vm6961_vm3, %v6944_v54 }
 0x4ab   :  { %13383 = vmatprep.mubr.msk.f32.mxu0 %vm6961_vm3, %v6945_v42  ;;  %13394 = vmatprep.mubr.msk.f32.mxu1 %vm6961_vm3, %v6947_v45 }
 0x4c5   :  { %v5883_v57 = vpop.f32.mrb[88].mxu0  ;;  %v6004_v6 = vpop.f32.mrb[88].mxu1 }
 0x4c6   :  { %v5885_v35 = vpop.f32.mrb[89].mxu0  ;;  %v6006_v48 = vpop.f32.mrb[89].mxu1 }
 0x4c7   :  { %v5886_v43 = vpop.f32.mrb[90].mxu0  ;;  %v6007_v58 = vpop.f32.mrb[90].mxu1 }
 0x4c8   :  { %v13679_v13 = vpack.c.bf16 %v5886_v43, %v5883_v57  ;;  %v5888_v8 = vpop.f32.mrb[91].mxu0  ;;  %v13691_v50 = vpack.c.bf16 %v6007_v58, %v6004_v6  ;;  %v6009_v32 = vpop.f32.mrb[91].mxu1 }
 0x4c9   :  { %v12978_v8 = vld [vmem:[%s19134_s10 + $0x7] ss:$0 sm:$0xff]  ;;  %v6946_v32 = vadd.f32 %v12975_v55, %v15493_v26 }
 0x4ca   :  { %13681 = vmatprep.subr.msk.bf16.mxu0 %vm17327_vm4, %v13679_v13  ;;  %13693 = vmatprep.subr.msk.bf16.mxu1 %vm17327_vm4, %v13691_v50 }
 0x4cb   :  { %13684 = vmatpush3.bf16.xpose.msk.msra.mxu0 %vm17327_vm4, %v13679_v13  ;;  %13696 = vmatpush3.bf16.xpose.msk.msra.mxu1 %vm17327_vm4, %v13691_v50  ;;  %v12977_v13 = vld [vmem:[%s19134_s10 + $0x6] ss:$0 sm:$0xff]  ;;  %v8118_v50 = vsel %vm8116_vm5, 1, %v19145_v0 }
 0x4cc   :  { %8121 = vperm.xlu1 %13898, %v8118_v50  }
 0x4cd   :  { %v5891_v30 = vpop.f32.mrb[92].mxu0  ;;  %v6012_v54 = vpop.f32.mrb[92].mxu1 }
 0x4ce   :  { %v5893_v42 = vpop.f32.mrb[93].mxu0  ;;  %v6014_v45 = vpop.f32.mrb[93].mxu1 }
 0x4cf   :  { %v5894_v57 = vpop.f32.mrb[94].mxu0  ;;  %v6015_v6 = vpop.f32.mrb[94].mxu1  ;;  %v6951_v42 = vadd.f32 %v12978_v8, %v15601_v62  ;;  %v8119_v45 = vsel %vm8117_vm6, 1, %v19145_v0 }
 0x4d0   :  { %v13685_v35 = vpack.c.bf16 %v5894_v57, %v5891_v30  ;;  %v5896_v48 = vpop.f32.mrb[95].mxu0  ;;  %v13697_v43 = vpack.c.bf16 %v6015_v6, %v6012_v54  ;;  %v6017_v58 = vpop.f32.mrb[95].mxu1  ;;  %v6948_v30 = vadd.f32 %v12976_v5, %v15498_v31  ;;  %v6949_v54 = vadd.f32 %v12977_v13, %v15598_v60  ;;  %8124 = vperm.xlu1 %13898, %v8119_v45  }
 0x4d2   :  { %13687 = vmatprep.subr.msk.bf16.mxu0 %vm17327_vm4, %v13685_v35  ;;  %13699 = vmatprep.subr.msk.bf16.mxu1 %vm17327_vm4, %v13697_v43 }
 0x4d3   :  { %13690 = vmatpush3.bf16.xpose.msk.msra.mxu0 %vm17327_vm4, %v13685_v35  ;;  %13702 = vmatpush3.bf16.xpose.msk.msra.mxu1 %vm17327_vm4, %v13697_v43 }
 0x4da   :  { %13384 = vmatmul.mubr.msk.f32.vlgmr.msra.gmra.mrb[124].mxu0 %vm6961_vm3, %v6946_v32  ;;  %13395 = vmatmul.mubr.msk.f32.vlgmr.msra.gmra.mrb[124].mxu1 %vm6961_vm3, %v6948_v30 }
 0x4db   :  { %13405 = vmatprep.mubr.msk.f32.mxu0 %vm6961_vm3, %v6949_v54  ;;  %13416 = vmatprep.mubr.msk.f32.mxu1 %vm6961_vm3, %v6951_v42 }
 0x4f5   :  { %v6125_v55 = vpop.f32.mrb[96].mxu0  ;;  %v6246_v57 = vpop.f32.mrb[96].mxu1 }
 0x4f6   :  { %v6127_v5 = vpop.f32.mrb[97].mxu0  ;;  %v6248_v35 = vpop.f32.mrb[97].mxu1 }
 0x4f7   :  { %v6128_v6 = vpop.f32.mrb[98].mxu0  ;;  %v6249_v43 = vpop.f32.mrb[98].mxu1 }
 0x4f8   :  { %v13703_v48 = vpack.c.bf16 %v6128_v6, %v6125_v55  ;;  %v6130_v58 = vpop.f32.mrb[99].mxu0  ;;  %v13715_v50 = vpack.c.bf16 %v6249_v43, %v6246_v57  ;;  %v6251_v32 = vpop.f32.mrb[99].mxu1 }
 0x4f9   :  { %v12980_v58 = vld [vmem:[%s19134_s10 + $0x9] ss:$0 sm:$0xff]  ;;  %v6952_v32 = vadd.f32 %v12978_v8, %v15608_v4 }
 0x4fa   :  { %13705 = vmatprep.subr.msk.bf16.mxu0 %vm17327_vm4, %v13703_v48  ;;  %13717 = vmatprep.subr.msk.bf16.mxu1 %vm17327_vm4, %v13715_v50 }
 0x4fb   :  { %13708 = vmatpush3.bf16.xpose.msk.msra.mxu0 %vm17327_vm4, %v13703_v48  ;;  %13720 = vmatpush3.bf16.xpose.msk.msra.mxu1 %vm17327_vm4, %v13715_v50  ;;  %v12979_v48 = vld [vmem:[%s19134_s10 + $0x8] ss:$0 sm:$0xff]  ;;  %v6950_v50 = vadd.f32 %v12977_v13, %v15603_v63 }
 0x4fd   :  { %v6133_v30 = vpop.f32.mrb[100].mxu0  ;;  %v6254_v54 = vpop.f32.mrb[100].mxu1 }
 0x4fe   :  { %v6135_v42 = vpop.f32.mrb[101].mxu0  ;;  %v6256_v45 = vpop.f32.mrb[101].mxu1 }
 0x4ff   :  { %v6136_v55 = vpop.f32.mrb[102].mxu0  ;;  %v6257_v57 = vpop.f32.mrb[102].mxu1 }
 0x500   :  { %v13709_v5 = vpack.c.bf16 %v6136_v55, %v6133_v30  ;;  %v6138_v35 = vpop.f32.mrb[103].mxu0  ;;  %v13721_v6 = vpack.c.bf16 %v6257_v57, %v6254_v54  ;;  %v6259_v43 = vpop.f32.mrb[103].mxu1  ;;  %v6953_v30 = vadd.f32 %v12979_v48, %v15708_v39  ;;  %v6955_v54 = vadd.f32 %v12980_v58, %v15711_v41 }
 0x502   :  { %13711 = vmatprep.subr.msk.bf16.mxu0 %vm17327_vm4, %v13709_v5  ;;  %13723 = vmatprep.subr.msk.bf16.mxu1 %vm17327_vm4, %v13721_v6 }
 0x503   :  { %13714 = vmatpush3.bf16.xpose.msk.msra.mxu0 %vm17327_vm4, %v13709_v5  ;;  %13726 = vmatpush3.bf16.xpose.msk.msra.mxu1 %vm17327_vm4, %v13721_v6 }
 0x50a   :  { %13406 = vmatmul.mubr.msk.f32.vlgmr.msra.gmra.mrb[126].mxu0 %vm6961_vm3, %v6950_v50  ;;  %13417 = vmatmul.mubr.msk.f32.vlgmr.msra.gmra.mrb[126].mxu1 %vm6961_vm3, %v6952_v32 }
 0x50b   :  { %13427 = vmatprep.mubr.msk.f32.mxu0 %vm6961_vm3, %v6953_v30  ;;  %13438 = vmatprep.mubr.msk.f32.mxu1 %vm6961_vm3, %v6955_v54 }
 0x525   :  { %v6367_v42 = vpop.f32.mrb[104].mxu0  ;;  %v6488_v45 = vpop.f32.mrb[104].mxu1 }
 0x526   :  { %v6369_v55 = vpop.f32.mrb[105].mxu0  ;;  %v6490_v5 = vpop.f32.mrb[105].mxu1 }
 0x527   :  { %v6370_v57 = vpop.f32.mrb[106].mxu0  ;;  %v6491_v35 = vpop.f32.mrb[106].mxu1 }
 0x528   :  { %v13727_v13 = vpack.c.bf16 %v6370_v57, %v6367_v42  ;;  %v6372_v8 = vpop.f32.mrb[107].mxu0  ;;  %v13739_v6 = vpack.c.bf16 %v6491_v35, %v6488_v45  ;;  %v6493_v43 = vpop.f32.mrb[107].mxu1 }
 0x529   :  { %v12982_v8 = vld [vmem:[%s19134_s10 + $0xb] ss:$0 sm:$0xff]  ;;  %v6956_v43 = vadd.f32 %v12980_v58, %v15721_v47 }
 0x52a   :  { %13729 = vmatprep.subr.msk.bf16.mxu0 %vm17327_vm4, %v13727_v13  ;;  %13741 = vmatprep.subr.msk.bf16.mxu1 %vm17327_vm4, %v13739_v6 }
 0x52b   :  { %13732 = vmatpush3.bf16.xpose.msk.msra.mxu0 %vm17327_vm4, %v13727_v13  ;;  %13744 = vmatpush3.bf16.xpose.msk.msra.mxu1 %vm17327_vm4, %v13739_v6  ;;  %v12981_v13 = vld [vmem:[%s19134_s10 + $0xa] ss:$0 sm:$0xff]  ;;  %v6954_v6 = vadd.f32 %v12979_v48, %v15719_v44 }
 0x52d   :  { %v6375_v50 = vpop.f32.mrb[108].mxu0  ;;  %v6496_v32 = vpop.f32.mrb[108].mxu1 }
 0x52e   :  { %v6377_v30 = vpop.f32.mrb[109].mxu0  ;;  %v6498_v54 = vpop.f32.mrb[109].mxu1 }
 0x52f   :  { %v6378_v42 = vpop.f32.mrb[110].mxu0  ;;  %v6499_v45 = vpop.f32.mrb[110].mxu1 }
 0x530   :  { %v13733_v55 = vpack.c.bf16 %v6378_v42, %v6375_v50  ;;  %v6380_v5 = vpop.f32.mrb[111].mxu0  ;;  %v13745_v57 = vpack.c.bf16 %v6499_v45, %v6496_v32  ;;  %v6501_v35 = vpop.f32.mrb[111].mxu1  ;;  %v6957_v50 = vadd.f32 %v12981_v13, %v15818_v19  ;;  %v6959_v32 = vadd.f32 %v12982_v8, %v15821_v23 }
 0x532   :  { %13735 = vmatprep.subr.msk.bf16.mxu0 %vm17327_vm4, %v13733_v55  ;;  %13747 = vmatprep.subr.msk.bf16.mxu1 %vm17327_vm4, %v13745_v57 }
 0x533   :  { %13738 = vmatpush3.bf16.xpose.msk.msra.mxu0 %vm17327_vm4, %v13733_v55  ;;  %13750 = vmatpush3.bf16.xpose.msk.msra.mxu1 %vm17327_vm4, %v13745_v57 }
 0x53a   :  { %13428 = vmatmul.mubr.msk.f32.vlgmr.msra.gmra.mrb[128].mxu0 %vm6961_vm3, %v6954_v6  ;;  %13439 = vmatmul.mubr.msk.f32.vlgmr.msra.gmra.mrb[128].mxu1 %vm6961_vm3, %v6956_v43  ;;  %v17511_v43 = vpop.permute.xlu0 %8085 }
 0x53b   :  { %13449 = vmatprep.mubr.msk.f32.mxu0 %vm6961_vm3, %v6957_v50  ;;  %13460 = vmatprep.mubr.msk.f32.mxu1 %vm6961_vm3, %v6959_v32  ;;  %vm8090_vm8 = vcmp.eq.s32.totalorder %v17511_v43, 1 }
 0x555   :  { %v6609_v30 = vpop.f32.mrb[112].mxu0  ;;  %v6730_v54 = vpop.f32.mrb[112].mxu1 }
 0x556   :  { %v6611_v42 = vpop.f32.mrb[113].mxu0  ;;  %v6732_v55 = vpop.f32.mrb[113].mxu1 }
 0x557   :  { %v6612_v45 = vpop.f32.mrb[114].mxu0  ;;  %v6733_v5 = vpop.f32.mrb[114].mxu1 }
 0x558   :  { %v13751_v48 = vpack.c.bf16 %v6612_v45, %v6609_v30  ;;  %v6614_v58 = vpop.f32.mrb[115].mxu0  ;;  %v13763_v57 = vpack.c.bf16 %v6733_v5, %v6730_v54  ;;  %v6735_v35 = vpop.f32.mrb[115].mxu1 }
 0x559   :  { %v12960_v35 = vld [vmem:[%s19135_s9 + $0x1] ss:$0 sm:$0xff] }
 0x55a   :  { %13753 = vmatprep.subr.msk.bf16.mxu0 %vm17327_vm4, %v13751_v48  ;;  %13765 = vmatprep.subr.msk.bf16.mxu1 %vm17327_vm4, %v13763_v57 }
 0x55b   :  { %13756 = vmatpush3.bf16.xpose.msk.msra.mxu0 %vm17327_vm4, %v13751_v48  ;;  %13768 = vmatpush3.bf16.xpose.msk.msra.mxu1 %vm17327_vm4, %v13763_v57  ;;  %v17527_v48 = vpop.permute.xlu0 %8088  ;;  %v12959_v57 = vld [vmem:[%s19135_s9] ss:$0 sm:$0xff] }
 0x55c   :  { %vm8091_vm7 = vcmp.eq.s32.totalorder %v17527_v48, 1 }
 0x55d   :  { %v6617_v6 = vpop.f32.mrb[116].mxu0  ;;  %v6738_v50 = vpop.f32.mrb[116].mxu1 }
 0x55e   :  { %v6619_v32 = vpop.f32.mrb[117].mxu0  ;;  %v6740_v30 = vpop.f32.mrb[117].mxu1 }
 0x55f   :  { %v6620_v54 = vpop.f32.mrb[118].mxu0  ;;  %v6741_v55 = vpop.f32.mrb[118].mxu1  ;;  %v6829_v32 = vadd.f32 %v12959_v57, %v15268_v15 }
 0x560   :  { %v13757_v42 = vpack.c.bf16 %v6620_v54, %v6617_v6  ;;  %v6622_v45 = vpop.f32.mrb[119].mxu0  ;;  %v13769_v5 = vpack.c.bf16 %v6741_v55, %v6738_v50  ;;  %v6743_v58 = vpop.f32.mrb[119].mxu1  ;;  %v6958_v6 = vadd.f32 %v12981_v13, %v15829_v29  ;;  %v6960_v50 = vadd.f32 %v12982_v8, %v15831_v34  ;;  %v12962_v8 = vld [vmem:[%s19135_s9 + $0x3] ss:$0 sm:$0xff] }
 0x561   :  { %v6831_v54 = vadd.f32 %v12960_v35, %v15271_v18  ;;  %v6832_v45 = vadd.f32 %v12960_v35, %v15281_v24  ;;  %v12963_v24 = vld [vmem:[%s19135_s9 + $0x4] ss:$0 sm:$0xff]  ;;  %v12965_v35 = vld [vmem:[%s19135_s9 + $0x6] ss:$0 sm:$0xff] }
 0x562   :  { %13759 = vmatprep.subr.msk.bf16.mxu0 %vm17327_vm4, %v13757_v42  ;;  %13771 = vmatprep.subr.msk.bf16.mxu1 %vm17327_vm4, %v13769_v5 }
 0x563   :  { %13762 = vmatpush3.bf16.xpose.msk.msra.mxu0 %vm17327_vm4, %v13757_v42  ;;  %13774 = vmatpush3.bf16.xpose.msk.msra.mxu1 %vm17327_vm4, %v13769_v5 }
 0x564   :  { %13777 = vmatprep.subr.msk.bf16.mxu0 %vm17327_vm4, %v15935_v14  ;;  %13783 = vmatprep.subr.msk.bf16.mxu1 %vm17327_vm4, %v15938_v27 }
 0x56a   :  { %v17540_v30 = vpop.f32.mrb[120].mxu0  ;;  %13450 = vmatmul.mubr.msk.f32.vlgmr.msra.gmra.mrb[130].mxu0 %vm6961_vm3, %v6958_v6  ;;  %v17544_v42 = vpop.f32.mrb[120].mxu1  ;;  %13461 = vmatmul.mubr.msk.f32.vlgmr.msra.gmra.mrb[130].mxu1 %vm6961_vm3, %v6960_v50  ;;  %v6838_v50 = vadd.f32 %v12963_v24, %v15493_v26 }
 0x56b   :  { %v17547_v55 = vpop.f32.mrb[121].mxu0  ;;  %13780 = vmatpush3.bf16.xpose.msk.msra.mxu0 %vm17327_vm4, %v15935_v14  ;;  %v8093_v15 = vsel %vm8091_vm7, %v17540_v30, 0.0  ;;  %v17555_v13 = vpop.f32.mrb[121].mxu1  ;;  %13467 = vmatprep.mubr.msk.f32.mxu0 %vm6961_vm3, %v6829_v32  ;;  %v12961_v14 = vld [vmem:[%s19135_s9 + $0x2] ss:$0 sm:$0xff]  ;;  %v8095_v5 = vsel %vm8091_vm7, %v17544_v42, 0.0 }
 0x56c   :  { %13786 = vmatpush3.bf16.xpose.msk.msra.mxu1 %vm17327_vm4, %v15938_v27  ;;  %v8092_v18 = vsel %vm8090_vm8, %v17547_v55, 0.0  ;;  %13474 = vmatprep.mubr.msk.f32.mxu1 %vm6961_vm3, %v6831_v54  ;;  %v6830_v27 = vadd.f32 %v12959_v57, %v15279_v21  ;;  %v6833_v58 = vadd.f32 %v12961_v14, %v15378_v49  ;;  %v8094_v6 = vsel %vm8090_vm8, %v17555_v13, 0.0  ;;  %v12966_v32 = vld [vmem:[%s19135_s9 + $0x7] ss:$0 sm:$0xff] }
 0x56d   :  { %13789 = vmatprep.subr.msk.bf16.mxu0 %vm17327_vm4, %v16038_v10  ;;  %13795 = vmatprep.subr.msk.bf16.mxu1 %vm17327_vm4, %v16044_v16  ;;  %v6835_v21 = vadd.f32 %v12962_v8, %v15381_v51  ;;  %v6834_v49 = vadd.f32 %v12961_v14, %v15383_v52  ;;  %v12964_v51 = vld [vmem:[%s19135_s9 + $0x5] ss:$0 sm:$0xff]  ;;  %v6843_v14 = vadd.f32 %v12966_v32, %v15601_v62  ;;  %v12968_v62 = vld [vmem:[%s19135_s9 + $0x9] ss:$0 sm:$0xff] }
 0x56e   :  { %8154 = vrot.lane.b32.xlu1 %v8093_v15, %s14618_s18  ;;  %8152 = vrot.lane.b32.xlu0 %v8092_v18, %s14618_s18  ;;  %v6839_v57 = vadd.f32 %v12964_v51, %v15491_v25  ;;  %v6840_v54 = vadd.f32 %v12964_v51, %v15498_v31  ;;  %v6841_v18 = vadd.f32 %v12965_v35, %v15598_v60  ;;  %v12967_v31 = vld [vmem:[%s19135_s9 + $0x8] ss:$0 sm:$0xff] }
 0x56f   :  { %v6842_v60 = vadd.f32 %v12965_v35, %v15603_v63  ;;  %v12969_v63 = vld [vmem:[%s19135_s9 + $0xa] ss:$0 sm:$0xff] }
 0x572   :  { %8158 = vrot.lane.b32.xlu1 %v8095_v5, %s14618_s18  ;;  %13468 = vmatmul.mubr.msk.f32.vlgmr.msra.gmra.mrb[132].mxu0 %vm6961_vm3, %v6830_v27  ;;  %v6847_v27 = vadd.f32 %v12968_v62, %v15711_v41  ;;  %v6848_v41 = vadd.f32 %v12968_v62, %v15721_v47 }
 0x573   :  { %8156 = vrot.lane.b32.xlu0 %v8094_v6, %s14618_s18  ;;  %13475 = vmatmul.mubr.msk.f32.vlgmr.msra.gmra.mrb[132].mxu1 %vm6961_vm3, %v6832_v45 }
 0x574   :  { %13792 = vmatpush3.bf16.xpose.msk.msra.mxu0 %vm17327_vm4, %v16038_v10  ;;  %13481 = vmatprep.mubr.msk.f32.mxu0 %vm6961_vm3, %v6833_v58  ;;  %v6836_v10 = vadd.f32 %v12962_v8, %v15388_v56 }
 0x575   :  { %13798 = vmatpush3.bf16.xpose.msk.msra.mxu1 %vm17327_vm4, %v16044_v16  ;;  %13488 = vmatprep.mubr.msk.f32.mxu1 %vm6961_vm3, %v6835_v21  ;;  %v6837_v16 = vadd.f32 %v12963_v24, %v15488_v22 }
 0x576   :  { %13801 = vmatprep.subr.msk.bf16.mxu0 %vm17327_vm4, %v16144_v9  ;;  %13807 = vmatprep.subr.msk.bf16.mxu1 %vm17327_vm4, %v16150_v20 }
 0x57b   :  { %13482 = vmatmul.mubr.msk.f32.vlgmr.msra.gmra.mrb[134].mxu0 %vm6961_vm3, %v6834_v49 }
 0x57c   :  { %13489 = vmatmul.mubr.msk.f32.vlgmr.msra.gmra.mrb[134].mxu1 %vm6961_vm3, %v6836_v10  ;;  %13804 = vmatpush3.bf16.xpose.msk.msra.mxu0 %vm17327_vm4, %v16144_v9 }
 0x57d   :  { %13495 = vmatprep.mubr.msk.f32.mxu0 %vm6961_vm3, %v6837_v16  ;;  %13810 = vmatpush3.bf16.xpose.msk.msra.mxu1 %vm17327_vm4, %v16150_v20  ;;  %v17626_v52 = vpop.f32.mrb[122].mxu0  ;;  %v17632_v56 = vpop.f32.mrb[122].mxu1 }
 0x57e   :  { %13502 = vmatprep.mubr.msk.f32.mxu1 %vm6961_vm3, %v6839_v57  ;;  %13813 = vmatprep.subr.msk.bf16.mxu0 %vm17327_vm4, %v16250_v12  ;;  %v17634_v22 = vpop.f32.mrb[123].mxu0  ;;  %v8097_v25 = vsel %vm8091_vm7, %v17626_v52, 0.0  ;;  %v17642_v9 = vpop.f32.mrb[123].mxu1  ;;  %v8099_v15 = vsel %vm8091_vm7, %v17632_v56, 0.0 }
 0x57f   :  { %13819 = vmatprep.subr.msk.bf16.mxu1 %vm17327_vm4, %v16256_v33  ;;  %8162 = vrot.lane.b32.xlu1 %v8097_v25, %s14618_s18  ;;  %v8096_v20 = vsel %vm8090_vm8, %v17634_v22, 0.0  ;;  %v8098_v26 = vsel %vm8090_vm8, %v17642_v9, 0.0 }
 0x580   :  { %8160 = vrot.lane.b32.xlu0 %v8096_v20, %s14618_s18 }
 0x583   :  { %13496 = vmatmul.mubr.msk.f32.vlgmr.msra.gmra.mrb[136].mxu0 %vm6961_vm3, %v6838_v50  ;;  %8166 = vrot.lane.b32.xlu1 %v8099_v15, %s14618_s18  ;;  %v17811_v50 = vpop.permute.xlu1 %8121 }
 0x584   :  { %13503 = vmatmul.mubr.msk.f32.vlgmr.msra.gmra.mrb[136].mxu1 %vm6961_vm3, %v6840_v54  ;;  %13816 = vmatpush3.bf16.xpose.msk.msra.mxu0 %vm17327_vm4, %v16250_v12  ;;  %v6844_v12 = vadd.f32 %v12966_v32, %v15608_v4  ;;  %v6846_v4 = vadd.f32 %v12967_v31, %v15719_v44  ;;  %v6850_v44 = vadd.f32 %v12969_v63, %v15829_v29  ;;  %vm8126_vm12 = vcmp.eq.s32.totalorder %v17811_v50, 1 }
 0x585   :  { %13509 = vmatprep.mubr.msk.f32.mxu0 %vm6961_vm3, %v6841_v18  ;;  %13822 = vmatpush3.bf16.xpose.msk.msra.mxu1 %vm17327_vm4, %v16256_v33  ;;  %v6845_v33 = vadd.f32 %v12967_v31, %v15708_v39  ;;  %v12970_v39 = vld [vmem:[%s19135_s9 + $0xb] ss:$0 sm:$0xff] }
 0x586   :  { %13516 = vmatprep.mubr.msk.f32.mxu1 %vm6961_vm3, %v6843_v14  ;;  %13825 = vmatprep.subr.msk.bf16.mxu0 %vm17327_vm4, %v16359_v36  ;;  %v6852_v47 = vadd.f32 %v12970_v39, %v15831_v34 }
 0x587   :  { %13831 = vmatprep.subr.msk.bf16.mxu1 %vm17327_vm4, %v16362_v40  ;;  %8164 = vrot.lane.b32.xlu0 %v8098_v26, %s14618_s18  ;;  %v17813_v32 = vpop.permute.xlu1 %8124 }
 0x588   :  { %vm8127_vm11 = vcmp.eq.s32.totalorder %v17813_v32, 1 }
 0x58b   :  { %13510 = vmatmul.mubr.msk.f32.vlgmr.msra.gmra.mrb[138].mxu0 %vm6961_vm3, %v6842_v60 }
 0x58c   :  { %13517 = vmatmul.mubr.msk.f32.vlgmr.msra.gmra.mrb[138].mxu1 %vm6961_vm3, %v6844_v12  ;;  %13828 = vmatpush3.bf16.xpose.msk.msra.mxu0 %vm17327_vm4, %v16359_v36  ;;  %v6849_v36 = vadd.f32 %v12969_v63, %v15818_v19  ;;  %v8251_v63 = vsel %vm8249_vm9, 1, %v19145_v0  ;;  %v17971_v0 = vld [vmem:[%s19133_s2] sm:$0xff] }
 0x58d   :  { %13523 = vmatprep.mubr.msk.f32.mxu0 %vm6961_vm3, %v6845_v33  ;;  %13834 = vmatpush3.bf16.xpose.msk.msra.mxu1 %vm17327_vm4, %v16362_v40  ;;  %v6851_v40 = vadd.f32 %v12970_v39, %v15821_v23  ;;  %vm8380_vm13 = vcmp.eq.s32.totalorder %v17971_v0, 3  ;;  %vm8512_vm2 = vcmp.eq.s32.totalorder %v17971_v0, 4 }
 0x58e   :  { %13530 = vmatprep.mubr.msk.f32.mxu1 %vm6961_vm3, %v6847_v27  ;;  %13837 = vmatprep.subr.msk.bf16.mxu0 %vm17327_vm4, %v16465_v46 }
 0x58f   :  { %13843 = vmatprep.subr.msk.bf16.mxu1 %vm17327_vm4, %v16468_v53 }
 0x593   :  { %13524 = vmatmul.mubr.msk.f32.vlgmr.msra.gmra.mrb[140].mxu0 %vm6961_vm3, %v6846_v4 }
 0x594   :  { %13531 = vmatmul.mubr.msk.f32.vlgmr.msra.gmra.mrb[140].mxu1 %vm6961_vm3, %v6848_v41  ;;  %13840 = vmatpush3.bf16.xpose.msk.msra.mxu0 %vm17327_vm4, %v16465_v46 }
 0x595   :  { %13537 = vmatprep.mubr.msk.f32.mxu0 %vm6961_vm3, %v6849_v36  ;;  %13846 = vmatpush3.bf16.xpose.msk.msra.mxu1 %vm17327_vm4, %v16468_v53 }
 0x596   :  { %13544 = vmatprep.mubr.msk.f32.mxu1 %vm6961_vm3, %v6851_v40  ;;  %13848 = vmatprep.subr.bf16.mxu0 %v16571_v59 }
 0x597   :  { %13852 = vmatprep.subr.bf16.mxu1 %v16574_v2 }
 0x59b   :  { %13538 = vmatmul.mubr.msk.f32.vlgmr.msra.gmra.mrb[142].mxu0 %vm6961_vm3, %v6850_v44 }
 0x59c   :  { %13545 = vmatmul.mubr.msk.f32.vlgmr.msra.gmra.mrb[142].mxu1 %vm6961_vm3, %v6852_v47  ;;  %13850 = vmatpush3.bf16.msra.mxu0 %v16571_v59 }
 0x59d   :  { %13854 = vmatpush3.bf16.msra.mxu1 %v16574_v2  ;;  %13856 = vmatprep.subr.bf16.mxu0 %v16682_v28 }
 0x59e   :  { %13860 = vmatprep.subr.bf16.mxu1 %v16688_v17 }
 0x5ad   :  { %v17739_v19 = vpop.f32.mrb[124].mxu0  ;;  %v17741_v23 = vpop.f32.mrb[124].mxu1 }
 0x5ae   :  { %v17743_v46 = vpop.f32.mrb[125].mxu0  ;;  %v8101_v29 = vsel %vm8091_vm7, %v17739_v19, 0.0  ;;  %v17748_v34 = vpop.f32.mrb[125].mxu1  ;;  %v8103_v59 = vsel %vm8091_vm7, %v17741_v23, 0.0 }
 0x5af   :  { %8170 = vrot.lane.b32.xlu1 %v8101_v29, %s14618_s18  ;;  %v8100_v53 = vsel %vm8090_vm8, %v17743_v46, 0.0  ;;  %v8102_v2 = vsel %vm8090_vm8, %v17748_v34, 0.0 }
 0x5b0   :  { %8168 = vrot.lane.b32.xlu0 %v8100_v53, %s14618_s18 }
 0x5b3   :  { %8174 = vrot.lane.b32.xlu1 %v8103_v59, %s14618_s18 }
 0x5b4   :  { %8172 = vrot.lane.b32.xlu0 %v8102_v2, %s14618_s18 }
 0x5dd   :  { %v17763_v3 = vpop.f32.mrb[126].mxu0  ;;  %v17765_v8 = vpop.f32.mrb[126].mxu1 }
 0x5de   :  { %v17767_v45 = vpop.f32.mrb[127].mxu0  ;;  %v8105_v5 = vsel %vm8091_vm7, %v17763_v3, 0.0  ;;  %v17772_v58 = vpop.f32.mrb[127].mxu1  ;;  %v8107_v21 = vsel %vm8091_vm7, %v17765_v8, 0.0 }
 0x5df   :  { %8178 = vrot.lane.b32.xlu1 %v8105_v5, %s14618_s18  ;;  %v8104_v6 = vsel %vm8090_vm8, %v17767_v45, 0.0  ;;  %v8106_v24 = vsel %vm8090_vm8, %v17772_v58, 0.0 }
 0x5e0   :  { %8176 = vrot.lane.b32.xlu0 %v8104_v6, %s14618_s18  ;;  %v8155_v54 = vpop.permute.xlu1 %8154  ;;  %v8153_v31 = vpop.permute.xlu0 %8152 }
 0x5e1   :  { %v8225_v40 = vsel %vm8127_vm11, %v17540_v30, %v8155_v54  ;;  %v8224_v44 = vsel %vm8126_vm12, %v17547_v55, %v8153_v31 }
 0x5e3   :  { %8182 = vrot.lane.b32.xlu1 %v8107_v21, %s14618_s18 }
 0x5e4   :  { %8180 = vrot.lane.b32.xlu0 %v8106_v24, %s14618_s18  ;;  %v8159_v27 = vpop.permute.xlu1 %8158 }
 0x5e5   :  { %v8157_v4 = vpop.permute.xlu0 %8156  ;;  %v8227_v53 = vsel %vm8127_vm11, %v17544_v42, %v8159_v27 }
 0x5e6   :  { %v8226_v5 = vsel %vm8126_vm12, %v17555_v13, %v8157_v4 }
 0x5f1   :  { %v8163_v43 = vpop.permute.xlu1 %8162 }
 0x5f2   :  { %v8161_v36 = vpop.permute.xlu0 %8160  ;;  %v8229_v24 = vsel %vm8127_vm11, %v17626_v52, %v8163_v43 }
 0x5f5   :  { %v8167_v47 = vpop.permute.xlu1 %8166 }
 0x5f6   :  { %v8231_v54 = vsel %vm8127_vm11, %v17632_v56, %v8167_v47 }
 0x5f9   :  { %v8165_v6 = vpop.permute.xlu0 %8164 }
 0x60d   :  { %v17787_v49 = vpop.f32.mrb[128].mxu0  ;;  %v17789_v51 = vpop.f32.mrb[128].mxu1 }
 0x60e   :  { %v17791_v10 = vpop.f32.mrb[129].mxu0  ;;  %v8109_v16 = vsel %vm8091_vm7, %v17787_v49, 0.0  ;;  %v17796_v57 = vpop.f32.mrb[129].mxu1  ;;  %v8111_v20 = vsel %vm8091_vm7, %v17789_v51, 0.0 }
 0x60f   :  { %8186 = vrot.lane.b32.xlu1 %v8109_v16, %s14618_s18  ;;  %v8108_v25 = vsel %vm8090_vm8, %v17791_v10, 0.0  ;;  %v8110_v35 = vsel %vm8090_vm8, %v17796_v57, 0.0 }
 0x610   :  { %8184 = vrot.lane.b32.xlu0 %v8108_v25, %s14618_s18  ;;  %v8228_v25 = vsel %vm8126_vm12, %v17634_v22, %v8161_v36 }
 0x613   :  { %8190 = vrot.lane.b32.xlu1 %v8111_v20, %s14618_s18 }
 0x614   :  { %8188 = vrot.lane.b32.xlu0 %v8110_v35, %s14618_s18 }
 0x621   :  { %v8171_v16 = vpop.permute.xlu1 %8170 }
 0x622   :  { %v8169_v20 = vpop.permute.xlu0 %8168 }
 0x623   :  { %v8232_v4 = vsel %vm8126_vm12, %v17743_v46, %v8169_v20 }
 0x626   :  { %v8173_v27 = vpop.permute.xlu0 %8172 }
 0x63d   :  { %v17815_v15 = vpop.f32.mrb[130].mxu0  ;;  %v17817_v18 = vpop.f32.mrb[130].mxu1 }
 0x63e   :  { %v17819_v14 = vpop.f32.mrb[131].mxu0  ;;  %v8113_v26 = vsel %vm8091_vm7, %v17815_v15, 0.0  ;;  %v17824_v60 = vpop.f32.mrb[131].mxu1  ;;  %v8115_v12 = vsel %vm8091_vm7, %v17817_v18, 0.0  ;;  %vm8644_vm7 = vcmp.eq.s32.totalorder %v17971_v0, 5 }
 0x63f   :  { %8194 = vrot.lane.b32.xlu1 %v8113_v26, %s14618_s18  ;;  %v8112_v62 = vsel %vm8090_vm8, %v17819_v14, 0.0  ;;  %v8114_v33 = vsel %vm8090_vm8, %v17824_v60, 0.0 }
 0x640   :  { %8192 = vrot.lane.b32.xlu0 %v8112_v62, %s14618_s18  ;;  %v8230_v62 = vsel %vm8126_vm12, %v17642_v9, %v8165_v6 }
 0x643   :  { %8198 = vrot.lane.b32.xlu1 %v8115_v12, %s14618_s18 }
 0x644   :  { %8196 = vrot.lane.b32.xlu0 %v8114_v33, %s14618_s18  ;;  %v8175_v33 = vpop.permute.xlu1 %8174 }
 0x645   :  { %v17842_v39 = vpop.f32.mrb[132].mxu0 }
 0x646   :  { %v17845_v48 = vpop.f32.mrb[132].mxu1  ;;  %v17847_v41 = vpop.f32.mrb[133].mxu0 }
 0x647   :  { %v17850_v61 = vpop.f32.mrb[133].mxu1  ;;  %8256 = vperm.xlu1 %13898, %v8251_v63   ;;  %v8233_v63 = vsel %vm8127_vm11, %v17739_v19, %v8171_v16 }
 0x648   :  { %8253 = vperm.xlu0 %13897, %v8250_v1  }
 0x64b   :  { %8286 = vrot.lane.b32.xlu1 %v8225_v40, %s14618_s18  ;;  %v8235_v40 = vsel %vm8127_vm11, %v17741_v23, %v8175_v33 }
 0x64c   :  { %8284 = vrot.lane.b32.xlu0 %v8224_v44, %s14618_s18 }
 0x64e   :  { %v17861_v29 = vpop.f32.mrb[134].mxu0 }
 0x64f   :  { %v17866_v59 = vpop.f32.mrb[134].mxu1  ;;  %v17868_v2 = vpop.f32.mrb[135].mxu0  ;;  %8290 = vrot.lane.b32.xlu1 %v8227_v53, %s14618_s18  ;;  %v8234_v53 = vsel %vm8126_vm12, %v17748_v34, %v8173_v27 }
 0x650   :  { %v17874_v21 = vpop.f32.mrb[135].mxu1  ;;  %8288 = vrot.lane.b32.xlu0 %v8226_v5, %s14618_s18 }
 0x651   :  { %v8179_v1 = vpop.permute.xlu1 %8178 }
 0x652   :  { %v8177_v43 = vpop.permute.xlu0 %8176  ;;  %v8237_v6 = vsel %vm8127_vm11, %v17763_v3, %v8179_v1 }
 0x653   :  { %8294 = vrot.lane.b32.xlu1 %v8229_v24, %s14618_s18  ;;  %v8236_v16 = vsel %vm8126_vm12, %v17767_v45, %v8177_v43 }
 0x654   :  { %8292 = vrot.lane.b32.xlu0 %v8228_v25, %s14618_s18 }
 0x655   :  { %v8183_v24 = vpop.permute.xlu1 %8182 }
 0x656   :  { %v17885_v35 = vpop.f32.mrb[136].mxu0  ;;  %v8181_v25 = vpop.permute.xlu0 %8180 }
 0x657   :  { %v17890_v26 = vpop.f32.mrb[136].mxu1  ;;  %v17892_v31 = vpop.f32.mrb[137].mxu0  ;;  %8298 = vrot.lane.b32.xlu1 %v8231_v54, %s14618_s18  ;;  %v8239_v54 = vsel %vm8127_vm11, %v17765_v8, %v8183_v24  ;;  %v8238_v27 = vsel %vm8126_vm12, %v17772_v58, %v8181_v25 }
 0x658   :  { %v17898_v12 = vpop.f32.mrb[137].mxu1  ;;  %8296 = vrot.lane.b32.xlu0 %v8230_v62, %s14618_s18 }
 0x65b   :  { %8302 = vrot.lane.b32.xlu1 %v8233_v63, %s14618_s18 }
 0x65c   :  { %8300 = vrot.lane.b32.xlu0 %v8232_v4, %s14618_s18 }
 0x65e   :  { %v17909_v36 = vpop.f32.mrb[138].mxu0 }
 0x65f   :  { %v17914_v44 = vpop.f32.mrb[138].mxu1  ;;  %v17916_v47 = vpop.f32.mrb[139].mxu0  ;;  %8306 = vrot.lane.b32.xlu1 %v8235_v40, %s14618_s18 }
 0x660   :  { %v17922_v5 = vpop.f32.mrb[139].mxu1  ;;  %8304 = vrot.lane.b32.xlu0 %v8234_v53, %s14618_s18 }
 0x663   :  { %8310 = vrot.lane.b32.xlu1 %v8237_v6, %s14618_s18 }
 0x664   :  { %8308 = vrot.lane.b32.xlu0 %v8236_v16, %s14618_s18 }
 0x666   :  { %v17933_v20 = vpop.f32.mrb[140].mxu0 }
 0x667   :  { %v17938_v62 = vpop.f32.mrb[140].mxu1  ;;  %v17940_v33 = vpop.f32.mrb[141].mxu0  ;;  %8314 = vrot.lane.b32.xlu1 %v8239_v54, %s14618_s18 }
 0x668   :  { %v17946_v63 = vpop.f32.mrb[141].mxu1  ;;  %8312 = vrot.lane.b32.xlu0 %v8238_v27, %s14618_s18 }
 0x66e   :  { %v17949_v4 = vpop.f32.mrb[142].mxu0 }
 0x66f   :  { %v17951_v1 = vpop.f32.mrb[142].mxu1  ;;  %v17953_v43 = vpop.f32.mrb[143].mxu0 }
 0x670   :  { %v17955_v40 = vpop.f32.mrb[143].mxu1 }
 0x681   :  { %v8187_v53 = vpop.permute.xlu1 %8186 }
 0x682   :  { %v8185_v6 = vpop.permute.xlu0 %8184  ;;  %v8241_v24 = vsel %vm8127_vm11, %v17787_v49, %v8187_v53 }
 0x683   :  { %8318 = vrot.lane.b32.xlu1 %v8241_v24, %s14618_s18  ;;  %v8240_v16 = vsel %vm8126_vm12, %v17791_v10, %v8185_v6  ;;  %v19165_v6 = vmov 0  }
 0x684   :  { %8316 = vrot.lane.b32.xlu0 %v8240_v16, %s14618_s18  ;;  %v8382_v24 = vsel %vm8380_vm13, 1, %v19165_v6 }
 0x685   :  { %v8191_v25 = vpop.permute.xlu1 %8190 }
 0x686   :  { %v8189_v54 = vpop.permute.xlu0 %8188  ;;  %v8243_v27 = vsel %vm8127_vm11, %v17789_v51, %v8191_v25 }
 0x687   :  { %8322 = vrot.lane.b32.xlu1 %v8243_v27, %s14618_s18  ;;  %v8242_v53 = vsel %vm8126_vm12, %v17796_v57, %v8189_v54 }
 0x688   :  { %8320 = vrot.lane.b32.xlu0 %v8242_v53, %s14618_s18  ;;  %v17991_v53 = vld [vmem:[%s19133_s2 + $0x8] sm:$0xff] }
 0x689   :  { %vm8381_vm14 = vcmp.eq.s32.totalorder %v17991_v53, 3  ;;  %vm8513_vm4 = vcmp.eq.s32.totalorder %v17991_v53, 4  ;;  %vm8645_vm8 = vcmp.eq.s32.totalorder %v17991_v53, 5 }
 0x68c   :  { %8385 = vperm.xlu0 %13897, %v8382_v24  }
 0x6b1   :  { %v8195_v16 = vpop.permute.xlu1 %8194 }
 0x6b2   :  { %v8193_v25 = vpop.permute.xlu0 %8192  ;;  %v8245_v37 = vsel %vm8127_vm11, %v17815_v15, %v8195_v16 }
 0x6b3   :  { %8326 = vrot.lane.b32.xlu1 %v8245_v37, %s14618_s18  ;;  %v8244_v27 = vsel %vm8126_vm12, %v17819_v14, %v8193_v25  ;;  %v8383_v25 = vsel %vm8381_vm14, 1, %v19165_v6 }
 0x6b4   :  { %8324 = vrot.lane.b32.xlu0 %v8244_v27, %s14618_s18 }
 0x6b5   :  { %v8199_v54 = vpop.permute.xlu1 %8198 }
 0x6b6   :  { %v8197_v24 = vpop.permute.xlu0 %8196  ;;  %v8247_v16 = vsel %vm8127_vm11, %v17817_v18, %v8199_v54  ;;  %vm8776_vm11 = vcmp.eq.s32.totalorder %v17971_v0, 6 }
 0x6b7   :  { %8330 = vrot.lane.b32.xlu1 %v8247_v16, %s14618_s18  ;;  %v8246_v37 = vsel %vm8126_vm12, %v17824_v60, %v8197_v24  ;;  %vm8777_vm12 = vcmp.eq.s32.totalorder %v17991_v53, 6 }
 0x6b8   :  { %8328 = vrot.lane.b32.xlu0 %v8246_v37, %s14618_s18 }
 0x6bb   :  { %8388 = vperm.xlu1 %13898, %v8383_v25  }
 0x6c6   :  { %v18003_v27 = vpop.permute.xlu1 %8256 }
 0x6c7   :  { %v18005_v7 = vpop.permute.xlu0 %8253  ;;  %vm8259_vm15 = vcmp.eq.s32.totalorder %v18003_v27, 1 }
 0x6c8   :  { %vm8258_vm1 = vcmp.eq.s32.totalorder %v18005_v7, 1 }
 0x6ca   :  { %v8287_v38 = vpop.permute.xlu1 %8286 }
 0x6cb   :  { %v8285_v32 = vpop.permute.xlu0 %8284  ;;  %v8357_v50 = vsel %vm8259_vm15, %v17540_v30, %v8287_v38 }
 0x6cc   :  { %8418 = vrot.lane.b32.xlu1 %v8357_v50, %s14618_s18  ;;  %v8356_v54 = vsel %vm8258_vm1, %v17547_v55, %v8285_v32 }
 0x6cd   :  { %8416 = vrot.lane.b32.xlu0 %v8356_v54, %s14618_s18 }
 0x6ce   :  { %v8291_v24 = vpop.permute.xlu1 %8290 }
 0x6cf   :  { %v8289_v16 = vpop.permute.xlu0 %8288  ;;  %v8359_v37 = vsel %vm8259_vm15, %v17544_v42, %v8291_v24 }
 0x6d0   :  { %8422 = vrot.lane.b32.xlu1 %v8359_v37, %s14618_s18  ;;  %v8358_v38 = vsel %vm8258_vm1, %v17555_v13, %v8289_v16 }
 0x6d1   :  { %8420 = vrot.lane.b32.xlu0 %v8358_v38, %s14618_s18 }
 0x6d2   :  { %v8295_v25 = vpop.permute.xlu1 %8294 }
 0x6d3   :  { %v8293_v50 = vpop.permute.xlu0 %8292  ;;  %v8361_v32 = vsel %vm8259_vm15, %v17626_v52, %v8295_v25 }
 0x6d4   :  { %8426 = vrot.lane.b32.xlu1 %v8361_v32, %s14618_s18  ;;  %v8360_v54 = vsel %vm8258_vm1, %v17634_v22, %v8293_v50 }
 0x6d5   :  { %8424 = vrot.lane.b32.xlu0 %v8360_v54, %s14618_s18 }
 0x6d6   :  { %v8299_v24 = vpop.permute.xlu1 %8298 }
 0x6d7   :  { %v8297_v37 = vpop.permute.xlu0 %8296  ;;  %v8363_v16 = vsel %vm8259_vm15, %v17632_v56, %v8299_v24 }
 0x6d8   :  { %8430 = vrot.lane.b32.xlu1 %v8363_v16, %s14618_s18  ;;  %v8362_v38 = vsel %vm8258_vm1, %v17642_v9, %v8297_v37 }
 0x6d9   :  { %8428 = vrot.lane.b32.xlu0 %v8362_v38, %s14618_s18 }
 0x6da   :  { %v8303_v25 = vpop.permute.xlu1 %8302 }
 0x6db   :  { %v8301_v32 = vpop.permute.xlu0 %8300  ;;  %v8365_v50 = vsel %vm8259_vm15, %v17739_v19, %v8303_v25 }
 0x6dc   :  { %8434 = vrot.lane.b32.xlu1 %v8365_v50, %s14618_s18  ;;  %v8364_v54 = vsel %vm8258_vm1, %v17743_v46, %v8301_v32 }
 0x6dd   :  { %8432 = vrot.lane.b32.xlu0 %v8364_v54, %s14618_s18 }
 0x6de   :  { %v8307_v24 = vpop.permute.xlu1 %8306 }
 0x6df   :  { %v8305_v16 = vpop.permute.xlu0 %8304  ;;  %v8367_v37 = vsel %vm8259_vm15, %v17741_v23, %v8307_v24 }
 0x6e0   :  { %8438 = vrot.lane.b32.xlu1 %v8367_v37, %s14618_s18  ;;  %v8366_v38 = vsel %vm8258_vm1, %v17748_v34, %v8305_v16 }
 0x6e1   :  { %8436 = vrot.lane.b32.xlu0 %v8366_v38, %s14618_s18 }
 0x6e2   :  { %v8311_v25 = vpop.permute.xlu1 %8310 }
 0x6e3   :  { %v8309_v50 = vpop.permute.xlu0 %8308  ;;  %v8369_v32 = vsel %vm8259_vm15, %v17763_v3, %v8311_v25 }
 0x6e4   :  { %8442 = vrot.lane.b32.xlu1 %v8369_v32, %s14618_s18  ;;  %v8368_v54 = vsel %vm8258_vm1, %v17767_v45, %v8309_v50 }
 0x6e5   :  { %8440 = vrot.lane.b32.xlu0 %v8368_v54, %s14618_s18 }
 0x6e6   :  { %v8315_v24 = vpop.permute.xlu1 %8314 }
 0x6e7   :  { %v8313_v37 = vpop.permute.xlu0 %8312  ;;  %v8371_v16 = vsel %vm8259_vm15, %v17765_v8, %v8315_v24 }
 0x6e8   :  { %8446 = vrot.lane.b32.xlu1 %v8371_v16, %s14618_s18  ;;  %v8370_v38 = vsel %vm8258_vm1, %v17772_v58, %v8313_v37 }
 0x6e9   :  { %8444 = vrot.lane.b32.xlu0 %v8370_v38, %s14618_s18 }
 0x6f5   :  { %v8319_v25 = vpop.permute.xlu1 %8318 }
 0x6f6   :  { %v8317_v32 = vpop.permute.xlu0 %8316  ;;  %v8373_v50 = vsel %vm8259_vm15, %v17787_v49, %v8319_v25  ;;  %v8514_v25 = vsel %vm8512_vm2, 1, %v19165_v6 }
 0x6f7   :  { %8450 = vrot.lane.b32.xlu1 %v8373_v50, %s14618_s18  ;;  %v8372_v54 = vsel %vm8258_vm1, %v17791_v10, %v8317_v32 }
 0x6f8   :  { %8448 = vrot.lane.b32.xlu0 %v8372_v54, %s14618_s18 }
 0x6f9   :  { %v8323_v24 = vpop.permute.xlu1 %8322 }
 0x6fa   :  { %v8321_v16 = vpop.permute.xlu0 %8320  ;;  %v8375_v37 = vsel %vm8259_vm15, %v17789_v51, %v8323_v24 }
 0x6fb   :  { %8454 = vrot.lane.b32.xlu1 %v8375_v37, %s14618_s18  ;;  %v8374_v38 = vsel %vm8258_vm1, %v17796_v57, %v8321_v16  ;;  %v8515_v16 = vsel %vm8513_vm4, 1, %v19165_v6 }
 0x6fc   :  { %8452 = vrot.lane.b32.xlu0 %v8374_v38, %s14618_s18 }
 0x700   :  { %8517 = vperm.xlu0 %13897, %v8514_v25  }
 0x70b   :  { %v18101_v37 = vpop.permute.xlu0 %8385 }
 0x70c   :  { %vm8390_vm6 = vcmp.eq.s32.totalorder %v18101_v37, 1 }
 0x725   :  { %v8327_v32 = vpop.permute.xlu1 %8326 }
 0x726   :  { %v8377_v50 = vsel %vm8259_vm15, %v17815_v15, %v8327_v32  ;;  %v8325_v38 = vpop.permute.xlu0 %8324 }
 0x727   :  { %8458 = vrot.lane.b32.xlu1 %v8377_v50, %s14618_s18 }
 0x729   :  { %v8331_v54 = vpop.permute.xlu1 %8330 }
 0x72a   :  { %v8379_v24 = vsel %vm8259_vm15, %v17817_v18, %v8331_v54  ;;  %v8329_v32 = vpop.permute.xlu0 %8328  ;;  %vm8908_vm15 = vcmp.eq.s32.totalorder %v17971_v0, 7 }
 0x72b   :  { %8462 = vrot.lane.b32.xlu1 %v8379_v24, %s14618_s18 }
 0x72f   :  { %8520 = vperm.xlu1 %13898, %v8515_v16  }
 0x73a   :  { %v18103_v25 = vpop.permute.xlu1 %8388 }
 0x73b   :  { %vm8391_vm5 = vcmp.eq.s32.totalorder %v18103_v25, 1 }
 0x73e   :  { %v8419_v50 = vpop.permute.xlu1 %8418 }
 0x73f   :  { %v8417_v17 = vpop.permute.xlu0 %8416  ;;  %v8489_v27 = vsel %vm8391_vm5, %v17540_v30, %v8419_v50 }
 0x740   :  { %8550 = vrot.lane.b32.xlu1 %v8489_v27, %s14618_s18  ;;  %v8488_v54 = vsel %vm8390_vm6, %v17547_v55, %v8417_v17 }
 0x741   :  { %8548 = vrot.lane.b32.xlu0 %v8488_v54, %s14618_s18  ;;  %v8376_v54 = vsel %vm8258_vm1, %v17819_v14, %v8325_v38 }
 0x742   :  { %v8423_v24 = vpop.permute.xlu1 %8422 }
 0x743   :  { %v8421_v16 = vpop.permute.xlu0 %8420  ;;  %v8491_v11 = vsel %vm8391_vm5, %v17544_v42, %v8423_v24 }
 0x744   :  { %8554 = vrot.lane.b32.xlu1 %v8491_v11, %s14618_s18  ;;  %v8490_v50 = vsel %vm8390_vm6, %v17555_v13, %v8421_v16 }
 0x745   :  { %8552 = vrot.lane.b32.xlu0 %v8490_v50, %s14618_s18  ;;  %v8378_v50 = vsel %vm8258_vm1, %v17824_v60, %v8329_v32  ;;  %vm8909_vm1 = vcmp.eq.s32.totalorder %v17991_v53, 7 }
 0x746   :  { %v8427_v27 = vpop.permute.xlu1 %8426 }
 0x747   :  { %v8425_v28 = vpop.permute.xlu0 %8424  ;;  %v8493_v17 = vsel %vm8391_vm5, %v17626_v52, %v8427_v27 }
 0x748   :  { %8558 = vrot.lane.b32.xlu1 %v8493_v17, %s14618_s18 }
 0x749   :  { %8456 = vrot.lane.b32.xlu0 %v8376_v54, %s14618_s18  ;;  %v8492_v54 = vsel %vm8390_vm6, %v17634_v22, %v8425_v28 }
 0x74a   :  { %v8431_v11 = vpop.permute.xlu1 %8430 }
 0x74b   :  { %v8429_v24 = vpop.permute.xlu0 %8428  ;;  %v8495_v16 = vsel %vm8391_vm5, %v17632_v56, %v8431_v11 }
 0x74c   :  { %8562 = vrot.lane.b32.xlu1 %v8495_v16, %s14618_s18  ;;  %v8494_v32 = vsel %vm8390_vm6, %v17642_v9, %v8429_v24 }
 0x74d   :  { %8460 = vrot.lane.b32.xlu0 %v8378_v50, %s14618_s18 }
 0x74e   :  { %v8435_v27 = vpop.permute.xlu1 %8434 }
 0x74f   :  { %v8433_v17 = vpop.permute.xlu0 %8432  ;;  %v8497_v38 = vsel %vm8391_vm5, %v17739_v19, %v8435_v27 }
 0x750   :  { %8566 = vrot.lane.b32.xlu1 %v8497_v38, %s14618_s18  ;;  %v8496_v27 = vsel %vm8390_vm6, %v17743_v46, %v8433_v17 }
 0x751   :  { %8556 = vrot.lane.b32.xlu0 %v8492_v54, %s14618_s18 }
 0x752   :  { %v8439_v11 = vpop.permute.xlu1 %8438 }
 0x753   :  { %v8499_v7 = vsel %vm8391_vm5, %v17741_v23, %v8439_v11  ;;  %v8437_v16 = vpop.permute.xlu0 %8436 }
 0x754   :  { %8570 = vrot.lane.b32.xlu1 %v8499_v7, %s14618_s18  ;;  %v8498_v11 = vsel %vm8390_vm6, %v17748_v34, %v8437_v16 }
 0x755   :  { %8560 = vrot.lane.b32.xlu0 %v8494_v32, %s14618_s18 }
 0x756   :  { %v8443_v50 = vpop.permute.xlu1 %8442 }
 0x757   :  { %v8501_v28 = vsel %vm8391_vm5, %v17763_v3, %v8443_v50  ;;  %v8441_v54 = vpop.permute.xlu0 %8440 }
 0x758   :  { %8574 = vrot.lane.b32.xlu1 %v8501_v28, %s14618_s18  ;;  %v8500_v17 = vsel %vm8390_vm6, %v17767_v45, %v8441_v54 }
 0x759   :  { %8564 = vrot.lane.b32.xlu0 %v8496_v27, %s14618_s18 }
 0x75a   :  { %v8447_v38 = vpop.permute.xlu1 %8446 }
 0x75b   :  { %v8503_v24 = vsel %vm8391_vm5, %v17765_v8, %v8447_v38  ;;  %v8445_v7 = vpop.permute.xlu0 %8444 }
 0x75c   :  { %8578 = vrot.lane.b32.xlu1 %v8503_v24, %s14618_s18  ;;  %v8502_v32 = vsel %vm8390_vm6, %v17772_v58, %v8445_v7 }
 0x75d   :  { %8568 = vrot.lane.b32.xlu0 %v8498_v11, %s14618_s18 }
 0x761   :  { %8572 = vrot.lane.b32.xlu0 %v8500_v17, %s14618_s18  ;;  %v8646_v17 = vsel %vm8644_vm7, 1, %v19165_v6 }
 0x765   :  { %8576 = vrot.lane.b32.xlu0 %v8502_v32, %s14618_s18 }
 0x769   :  { %v8451_v50 = vpop.permute.xlu1 %8450 }
 0x76a   :  { %v8505_v16 = vsel %vm8391_vm5, %v17787_v49, %v8451_v50  ;;  %v8449_v28 = vpop.permute.xlu0 %8448 }
 0x76b   :  { %v8504_v27 = vsel %vm8390_vm6, %v17791_v10, %v8449_v28  ;;  %8582 = vrot.lane.b32.xlu1 %v8505_v16, %s14618_s18  ;;  %v8647_v28 = vsel %vm8645_vm8, 1, %v19165_v6 }
 0x76c   :  { %8580 = vrot.lane.b32.xlu0 %v8504_v27, %s14618_s18 }
 0x76d   :  { %v8455_v38 = vpop.permute.xlu1 %8454 }
 0x76e   :  { %v8507_v54 = vsel %vm8391_vm5, %v17789_v51, %v8455_v38  ;;  %v8453_v24 = vpop.permute.xlu0 %8452 }
 0x76f   :  { %v8506_v11 = vsel %vm8390_vm6, %v17796_v57, %v8453_v24  ;;  %8586 = vrot.lane.b32.xlu1 %v8507_v54, %s14618_s18 }
 0x770   :  { %8584 = vrot.lane.b32.xlu0 %v8506_v11, %s14618_s18 }
 0x774   :  { %8649 = vperm.xlu0 %13897, %v8646_v17  }
 0x77f   :  { %v18209_v38 = vpop.permute.xlu0 %8517 }
 0x780   :  { %vm8522_vm10 = vcmp.eq.s32.totalorder %v18209_v38, 1 }
 0x799   :  { %v8459_v7 = vpop.permute.xlu1 %8458 }
 0x79a   :  { %v8509_v32 = vsel %vm8391_vm5, %v17815_v15, %v8459_v7 }
 0x79b   :  { %8590 = vrot.lane.b32.xlu1 %v8509_v32, %s14618_s18 }
 0x79d   :  { %v8463_v50 = vpop.permute.xlu1 %8462 }
 0x79e   :  { %v8511_v16 = vsel %vm8391_vm5, %v17817_v18, %v8463_v50 }
 0x79f   :  { %8594 = vrot.lane.b32.xlu1 %v8511_v16, %s14618_s18 }
 0x7a3   :  { %8652 = vperm.xlu1 %13898, %v8647_v28  }
 0x7ae   :  { %v18207_v27 = vpop.permute.xlu1 %8520 }
 0x7af   :  { %vm8523_vm9 = vcmp.eq.s32.totalorder %v18207_v27, 1 }
 0x7b2   :  { %v8551_v54 = vpop.permute.xlu1 %8550 }
 0x7b3   :  { %v8621_v24 = vsel %vm8523_vm9, %v17540_v30, %v8551_v54  ;;  %v8549_v25 = vpop.permute.xlu0 %8548 }
 0x7b4   :  { %v8620_v11 = vsel %vm8522_vm10, %v17547_v55, %v8549_v25  ;;  %8682 = vrot.lane.b32.xlu1 %v8621_v24, %s14618_s18 }
 0x7b5   :  { %8680 = vrot.lane.b32.xlu0 %v8620_v11, %s14618_s18 }
 0x7b6   :  { %v8555_v17 = vpop.permute.xlu1 %8554 }
 0x7b7   :  { %v8623_v7 = vsel %vm8523_vm9, %v17544_v42, %v8555_v17  ;;  %v8553_v32 = vpop.permute.xlu0 %8552 }
 0x7b8   :  { %v8622_v50 = vsel %vm8522_vm10, %v17555_v13, %v8553_v32  ;;  %8686 = vrot.lane.b32.xlu1 %v8623_v7, %s14618_s18 }
 0x7b9   :  { %8684 = vrot.lane.b32.xlu0 %v8622_v50, %s14618_s18 }
 0x7ba   :  { %v8559_v16 = vpop.permute.xlu1 %8558 }
 0x7bb   :  { %v8625_v28 = vsel %vm8523_vm9, %v17626_v52, %v8559_v16  ;;  %v8457_v54 = vpop.permute.xlu0 %8456 }
 0x7bc   :  { %8690 = vrot.lane.b32.xlu1 %v8625_v28, %s14618_s18 }
 0x7be   :  { %v8563_v24 = vpop.permute.xlu1 %8562 }
 0x7bf   :  { %v8627_v25 = vsel %vm8523_vm9, %v17632_v56, %v8563_v24  ;;  %v8461_v11 = vpop.permute.xlu0 %8460 }
 0x7c0   :  { %8694 = vrot.lane.b32.xlu1 %v8627_v25, %s14618_s18 }
 0x7c2   :  { %v8567_v17 = vpop.permute.xlu1 %8566 }
 0x7c3   :  { %v8629_v7 = vsel %vm8523_vm9, %v17739_v19, %v8567_v17  ;;  %v8557_v32 = vpop.permute.xlu0 %8556 }
 0x7c4   :  { %v8624_v50 = vsel %vm8522_vm10, %v17634_v22, %v8557_v32  ;;  %8698 = vrot.lane.b32.xlu1 %v8629_v7, %s14618_s18 }
 0x7c5   :  { %8688 = vrot.lane.b32.xlu0 %v8624_v50, %s14618_s18  ;;  %v8508_v50 = vsel %vm8390_vm6, %v17819_v14, %v8457_v54 }
 0x7c6   :  { %v8571_v16 = vpop.permute.xlu1 %8570 }
 0x7c7   :  { %v8631_v28 = vsel %vm8523_vm9, %v17741_v23, %v8571_v16  ;;  %v8561_v24 = vpop.permute.xlu0 %8560 }
 0x7c8   :  { %v8626_v25 = vsel %vm8522_vm10, %v17642_v9, %v8561_v24  ;;  %8702 = vrot.lane.b32.xlu1 %v8631_v28, %s14618_s18 }
 0x7c9   :  { %8692 = vrot.lane.b32.xlu0 %v8626_v25, %s14618_s18  ;;  %v8510_v25 = vsel %vm8390_vm6, %v17824_v60, %v8461_v11 }
 0x7ca   :  { %v8575_v17 = vpop.permute.xlu1 %8574 }
 0x7cb   :  { %v8633_v7 = vsel %vm8523_vm9, %v17763_v3, %v8575_v17  ;;  %v8565_v32 = vpop.permute.xlu0 %8564 }
 0x7cc   :  { %8706 = vrot.lane.b32.xlu1 %v8633_v7, %s14618_s18  ;;  %v8628_v54 = vsel %vm8522_vm10, %v17743_v46, %v8565_v32 }
 0x7cd   :  { %8588 = vrot.lane.b32.xlu0 %v8508_v50, %s14618_s18 }
 0x7ce   :  { %v8579_v16 = vpop.permute.xlu1 %8578 }
 0x7cf   :  { %v8635_v28 = vsel %vm8523_vm9, %v17765_v8, %v8579_v16  ;;  %v8569_v24 = vpop.permute.xlu0 %8568 }
 0x7d0   :  { %8710 = vrot.lane.b32.xlu1 %v8635_v28, %s14618_s18  ;;  %v8630_v7 = vsel %vm8522_vm10, %v17748_v34, %v8569_v24 }
 0x7d1   :  { %8592 = vrot.lane.b32.xlu0 %v8510_v25, %s14618_s18 }
 0x7d3   :  { %v8573_v17 = vpop.permute.xlu0 %8572 }
 0x7d4   :  { %v8632_v37 = vsel %vm8522_vm10, %v17767_v45, %v8573_v17 }
 0x7d5   :  { %8696 = vrot.lane.b32.xlu0 %v8628_v54, %s14618_s18 }
 0x7d7   :  { %v8577_v50 = vpop.permute.xlu0 %8576 }
 0x7d8   :  { %v8634_v28 = vsel %vm8522_vm10, %v17772_v58, %v8577_v50  ;;  %v8778_v50 = vsel %vm8776_vm11, 1, %v19165_v6 }
 0x7d9   :  { %8700 = vrot.lane.b32.xlu0 %v8630_v7, %s14618_s18 }
 0x7dd   :  { %v8583_v11 = vpop.permute.xlu1 %8582  ;;  %8704 = vrot.lane.b32.xlu0 %v8632_v37, %s14618_s18 }
 0x7de   :  { %v8637_v32 = vsel %vm8523_vm9, %v17787_v49, %v8583_v11  ;;  %v8581_v16 = vpop.permute.xlu0 %8580 }
 0x7df   :  { %8714 = vrot.lane.b32.xlu1 %v8637_v32, %s14618_s18  ;;  %v8636_v54 = vsel %vm8522_vm10, %v17791_v10, %v8581_v16 }
 0x7e1   :  { %v8587_v24 = vpop.permute.xlu1 %8586  ;;  %8708 = vrot.lane.b32.xlu0 %v8634_v28, %s14618_s18  ;;  %v8779_v28 = vsel %vm8777_vm12, 1, %v19165_v6 }
 0x7e2   :  { %v8639_v25 = vsel %vm8523_vm9, %v17789_v51, %v8587_v24  ;;  %v8585_v17 = vpop.permute.xlu0 %8584 }
 0x7e3   :  { %8718 = vrot.lane.b32.xlu1 %v8639_v25, %s14618_s18  ;;  %v8638_v7 = vsel %vm8522_vm10, %v17796_v57, %v8585_v17 }
 0x7e5   :  { %8712 = vrot.lane.b32.xlu0 %v8636_v54, %s14618_s18 }
 0x7e9   :  { %8716 = vrot.lane.b32.xlu0 %v8638_v7, %s14618_s18 }
 0x7ed   :  { %8781 = vperm.xlu0 %13897, %v8778_v50  }
 0x7f3   :  { %v18315_v25 = vpop.permute.xlu0 %8649 }
 0x7f4   :  { %vm8654_vm14 = vcmp.eq.s32.totalorder %v18315_v25, 1 }
 0x80d   :  { %v8591_v37 = vpop.permute.xlu1 %8590 }
 0x80e   :  { %v8641_v11 = vsel %vm8523_vm9, %v17815_v15, %v8591_v37 }
 0x80f   :  { %8722 = vrot.lane.b32.xlu1 %v8641_v11, %s14618_s18 }
 0x811   :  { %v8595_v32 = vpop.permute.xlu1 %8594 }
 0x812   :  { %v8643_v16 = vsel %vm8523_vm9, %v17817_v18, %v8595_v32 }
 0x813   :  { %8726 = vrot.lane.b32.xlu1 %v8643_v16, %s14618_s18 }
 0x817   :  { %8784 = vperm.xlu1 %13898, %v8779_v28  }
 0x822   :  { %v18313_v24 = vpop.permute.xlu1 %8652 }
 0x823   :  { %vm8655_vm13 = vcmp.eq.s32.totalorder %v18313_v24, 1 }
 0x826   :  { %v8683_v54 = vpop.permute.xlu1 %8682 }
 0x827   :  { %v8753_v17 = vsel %vm8655_vm13, %v17540_v30, %v8683_v54  ;;  %v8681_v27 = vpop.permute.xlu0 %8680 }
 0x828   :  { %v8752_v7 = vsel %vm8654_vm14, %v17547_v55, %v8681_v27  ;;  %8814 = vrot.lane.b32.xlu1 %v8753_v17, %s14618_s18 }
 0x829   :  { %8812 = vrot.lane.b32.xlu0 %v8752_v7, %s14618_s18 }
 0x82a   :  { %v8687_v50 = vpop.permute.xlu1 %8686 }
 0x82b   :  { %v8755_v37 = vsel %vm8655_vm13, %v17544_v42, %v8687_v50  ;;  %v8685_v11 = vpop.permute.xlu0 %8684 }
 0x82c   :  { %v8754_v32 = vsel %vm8654_vm14, %v17555_v13, %v8685_v11  ;;  %8818 = vrot.lane.b32.xlu1 %v8755_v37, %s14618_s18 }
 0x82d   :  { %8816 = vrot.lane.b32.xlu0 %v8754_v32, %s14618_s18 }
 0x82e   :  { %v8691_v16 = vpop.permute.xlu1 %8690 }
 0x82f   :  { %v8757_v28 = vsel %vm8655_vm13, %v17626_v52, %v8691_v16 }
 0x830   :  { %8822 = vrot.lane.b32.xlu1 %v8757_v28, %s14618_s18 }
 0x832   :  { %v8695_v54 = vpop.permute.xlu1 %8694 }
 0x833   :  { %v8759_v17 = vsel %vm8655_vm13, %v17632_v56, %v8695_v54 }
 0x834   :  { %8826 = vrot.lane.b32.xlu1 %v8759_v17, %s14618_s18 }
 0x836   :  { %v8699_v27 = vpop.permute.xlu1 %8698 }
 0x837   :  { %v8761_v7 = vsel %vm8655_vm13, %v17739_v19, %v8699_v27  ;;  %v8689_v50 = vpop.permute.xlu0 %8688 }
 0x838   :  { %v8756_v37 = vsel %vm8654_vm14, %v17634_v22, %v8689_v50  ;;  %8830 = vrot.lane.b32.xlu1 %v8761_v7, %s14618_s18 }
 0x839   :  { %8820 = vrot.lane.b32.xlu0 %v8756_v37, %s14618_s18 }
 0x83a   :  { %v8703_v11 = vpop.permute.xlu1 %8702 }
 0x83b   :  { %v8763_v32 = vsel %vm8655_vm13, %v17741_v23, %v8703_v11  ;;  %v8693_v16 = vpop.permute.xlu0 %8692 }
 0x83c   :  { %v8758_v28 = vsel %vm8654_vm14, %v17642_v9, %v8693_v16  ;;  %8834 = vrot.lane.b32.xlu1 %v8763_v32, %s14618_s18 }
 0x83d   :  { %8824 = vrot.lane.b32.xlu0 %v8758_v28, %s14618_s18 }
 0x83e   :  { %v8707_v54 = vpop.permute.xlu1 %8706 }
 0x83f   :  { %v8765_v17 = vsel %vm8655_vm13, %v17763_v3, %v8707_v54  ;;  %v8589_v27 = vpop.permute.xlu0 %8588 }
 0x840   :  { %8838 = vrot.lane.b32.xlu1 %v8765_v17, %s14618_s18  ;;  %v8640_v17 = vsel %vm8522_vm10, %v17819_v14, %v8589_v27 }
 0x842   :  { %v8711_v7 = vpop.permute.xlu1 %8710 }
 0x843   :  { %v8767_v50 = vsel %vm8655_vm13, %v17765_v8, %v8711_v7  ;;  %v8593_v37 = vpop.permute.xlu0 %8592 }
 0x844   :  { %8842 = vrot.lane.b32.xlu1 %v8767_v50, %s14618_s18 }
 0x847   :  { %v8697_v11 = vpop.permute.xlu0 %8696 }
 0x848   :  { %v8760_v32 = vsel %vm8654_vm14, %v17743_v46, %v8697_v11  ;;  %v8642_v11 = vsel %vm8522_vm10, %v17824_v60, %v8593_v37 }
 0x849   :  { %8828 = vrot.lane.b32.xlu0 %v8760_v32, %s14618_s18 }
 0x84b   :  { %v8701_v16 = vpop.permute.xlu0 %8700 }
 0x84c   :  { %v8762_v28 = vsel %vm8654_vm14, %v17748_v34, %v8701_v16 }
 0x84d   :  { %8832 = vrot.lane.b32.xlu0 %v8762_v28, %s14618_s18 }
 0x84f   :  { %v8705_v54 = vpop.permute.xlu0 %8704 }
 0x850   :  { %v8764_v28 = vsel %vm8654_vm14, %v17767_v45, %v8705_v54 }
 0x851   :  { %v8715_v7 = vpop.permute.xlu1 %8714  ;;  %8720 = vrot.lane.b32.xlu0 %v8640_v17, %s14618_s18 }
 0x852   :  { %v8769_v50 = vsel %vm8655_vm13, %v17787_v49, %v8715_v7 }
 0x853   :  { %8846 = vrot.lane.b32.xlu1 %v8769_v50, %s14618_s18  ;;  %v8709_v32 = vpop.permute.xlu0 %8708  ;;  %v8910_v50 = vsel %vm8908_vm15, 1, %v19165_v6 }
 0x854   :  { %v8766_v38 = vsel %vm8654_vm14, %v17772_v58, %v8709_v32 }
 0x855   :  { %v8719_v16 = vpop.permute.xlu1 %8718  ;;  %8724 = vrot.lane.b32.xlu0 %v8642_v11, %s14618_s18 }
 0x856   :  { %v8771_v27 = vsel %vm8655_vm13, %v17789_v51, %v8719_v16 }
 0x857   :  { %8850 = vrot.lane.b32.xlu1 %v8771_v27, %s14618_s18  ;;  %v8713_v17 = vpop.permute.xlu0 %8712  ;;  %v8911_v27 = vsel %vm8909_vm1, 1, %v19165_v6 }
 0x858   :  { %v8768_v37 = vsel %vm8654_vm14, %v17791_v10, %v8713_v17 }
 0x859   :  { %8836 = vrot.lane.b32.xlu0 %v8764_v28, %s14618_s18 }
 0x85b   :  { %v8717_v7 = vpop.permute.xlu0 %8716 }
 0x85c   :  { %v8770_v54 = vsel %vm8654_vm14, %v17796_v57, %v8717_v7 }
 0x85d   :  { %8840 = vrot.lane.b32.xlu0 %v8766_v38, %s14618_s18 }
 0x861   :  { %8844 = vrot.lane.b32.xlu0 %v8768_v37, %s14618_s18 }
 0x865   :  { %8848 = vrot.lane.b32.xlu0 %v8770_v54, %s14618_s18 }
 0x869   :  { %8913 = vperm.xlu0 %13897, %v8910_v50  }
 0x86c   :  { %v18421_v17 = vpop.permute.xlu0 %8781 }
 0x86d   :  { %vm8786_vm4 = vcmp.eq.s32.totalorder %v18421_v17, 1 }
 0x881   :  { %v8723_v11 = vpop.permute.xlu1 %8722 }
 0x882   :  { %v8773_v32 = vsel %vm8655_vm13, %v17815_v15, %v8723_v11 }
 0x883   :  { %8854 = vrot.lane.b32.xlu1 %v8773_v32, %s14618_s18 }
 0x885   :  { %v8727_v16 = vpop.permute.xlu1 %8726 }
 0x886   :  { %v8775_v0 = vsel %vm8655_vm13, %v17817_v18, %v8727_v16 }
 0x887   :  { %8858 = vrot.lane.b32.xlu1 %v8775_v0, %s14618_s18 }
 0x88b   :  { %8916 = vperm.xlu1 %13898, %v8911_v27  }
 0x896   :  { %v18419_v28 = vpop.permute.xlu1 %8784 }
 0x897   :  { %vm8787_vm2 = vcmp.eq.s32.totalorder %v18419_v28, 1 }
 0x89a   :  { %v8815_v38 = vpop.permute.xlu1 %8814 }
 0x89b   :  { %v8885_v53 = vsel %vm8787_vm2, %v17540_v30, %v8815_v38  ;;  %v8813_v24 = vpop.permute.xlu0 %8812 }
 0x89c   :  { %v8884_v37 = vsel %vm8786_vm4, %v17547_v55, %v8813_v24  ;;  %8946 = vrot.lane.b32.xlu1 %v8885_v53, %s14618_s18 }
 0x89d   :  { %8944 = vrot.lane.b32.xlu0 %v8884_v37, %s14618_s18 }
 0x89e   :  { %v8819_v7 = vpop.permute.xlu1 %8818 }
 0x89f   :  { %v8887_v54 = vsel %vm8787_vm2, %v17544_v42, %v8819_v7  ;;  %v8817_v50 = vpop.permute.xlu0 %8816 }
 0x8a0   :  { %v8886_v11 = vsel %vm8786_vm4, %v17555_v13, %v8817_v50  ;;  %8950 = vrot.lane.b32.xlu1 %v8887_v54, %s14618_s18 }
 0x8a1   :  { %8948 = vrot.lane.b32.xlu0 %v8886_v11, %s14618_s18 }
 0x8a2   :  { %v8823_v32 = vpop.permute.xlu1 %8822 }
 0x8a3   :  { %v8889_v16 = vsel %vm8787_vm2, %v17626_v52, %v8823_v32 }
 0x8a4   :  { %8954 = vrot.lane.b32.xlu1 %v8889_v16, %s14618_s18 }
 0x8a6   :  { %v8827_v0 = vpop.permute.xlu1 %8826 }
 0x8a7   :  { %v8891_v27 = vsel %vm8787_vm2, %v17632_v56, %v8827_v0 }
 0x8a8   :  { %8958 = vrot.lane.b32.xlu1 %v8891_v27, %s14618_s18 }
 0x8aa   :  { %v8831_v38 = vpop.permute.xlu1 %8830 }
 0x8ab   :  { %v8893_v53 = vsel %vm8787_vm2, %v17739_v19, %v8831_v38  ;;  %v8821_v24 = vpop.permute.xlu0 %8820 }
 0x8ac   :  { %v8888_v37 = vsel %vm8786_vm4, %v17634_v22, %v8821_v24  ;;  %8962 = vrot.lane.b32.xlu1 %v8893_v53, %s14618_s18 }
 0x8ad   :  { %8952 = vrot.lane.b32.xlu0 %v8888_v37, %s14618_s18 }
 0x8ae   :  { %v8835_v7 = vpop.permute.xlu1 %8834 }
 0x8af   :  { %v8895_v54 = vsel %vm8787_vm2, %v17741_v23, %v8835_v7  ;;  %v8825_v50 = vpop.permute.xlu0 %8824 }
 0x8b0   :  { %v8890_v11 = vsel %vm8786_vm4, %v17642_v9, %v8825_v50  ;;  %8966 = vrot.lane.b32.xlu1 %v8895_v54, %s14618_s18 }
 0x8b1   :  { %8956 = vrot.lane.b32.xlu0 %v8890_v11, %s14618_s18 }
 0x8b2   :  { %v8839_v32 = vpop.permute.xlu1 %8838 }
 0x8b3   :  { %v8897_v16 = vsel %vm8787_vm2, %v17763_v3, %v8839_v32 }
 0x8b4   :  { %8970 = vrot.lane.b32.xlu1 %v8897_v16, %s14618_s18 }
 0x8b6   :  { %v8843_v0 = vpop.permute.xlu1 %8842 }
 0x8b7   :  { %v8899_v27 = vsel %vm8787_vm2, %v17765_v8, %v8843_v0 }
 0x8b8   :  { %8974 = vrot.lane.b32.xlu1 %v8899_v27, %s14618_s18 }
 0x8bb   :  { %v8829_v38 = vpop.permute.xlu0 %8828 }
 0x8bc   :  { %v8892_v53 = vsel %vm8786_vm4, %v17743_v46, %v8829_v38 }
 0x8bd   :  { %8960 = vrot.lane.b32.xlu0 %v8892_v53, %s14618_s18 }
 0x8bf   :  { %v8833_v24 = vpop.permute.xlu0 %8832 }
 0x8c0   :  { %v8894_v37 = vsel %vm8786_vm4, %v17748_v34, %v8833_v24 }
 0x8c1   :  { %8964 = vrot.lane.b32.xlu0 %v8894_v37, %s14618_s18 }
 0x8c3   :  { %v8721_v7 = vpop.permute.xlu0 %8720 }
 0x8c4   :  { %v8772_v54 = vsel %vm8654_vm14, %v17819_v14, %v8721_v7 }
 0x8c5   :  { %v8847_v50 = vpop.permute.xlu1 %8846  ;;  %8852 = vrot.lane.b32.xlu0 %v8772_v54, %s14618_s18 }
 0x8c6   :  { %v8901_v11 = vsel %vm8787_vm2, %v17787_v49, %v8847_v50 }
 0x8c7   :  { %8978 = vrot.lane.b32.xlu1 %v8901_v11, %s14618_s18  ;;  %v8725_v32 = vpop.permute.xlu0 %8724 }
 0x8c8   :  { %v8774_v16 = vsel %vm8654_vm14, %v17824_v60, %v8725_v32 }
 0x8c9   :  { %v8851_v0 = vpop.permute.xlu1 %8850  ;;  %8856 = vrot.lane.b32.xlu0 %v8774_v16, %s14618_s18 }
 0x8ca   :  { %v8903_v27 = vsel %vm8787_vm2, %v17789_v51, %v8851_v0 }
 0x8cb   :  { %8982 = vrot.lane.b32.xlu1 %v8903_v27, %s14618_s18  ;;  %v8837_v38 = vpop.permute.xlu0 %8836 }
 0x8cc   :  { %v8896_v53 = vsel %vm8786_vm4, %v17767_v45, %v8837_v38 }
 0x8cd   :  { %8968 = vrot.lane.b32.xlu0 %v8896_v53, %s14618_s18 }
 0x8cf   :  { %v8841_v24 = vpop.permute.xlu0 %8840 }
 0x8d0   :  { %v8898_v25 = vsel %vm8786_vm4, %v17772_v58, %v8841_v24 }
 0x8d1   :  { %8972 = vrot.lane.b32.xlu0 %v8898_v25, %s14618_s18 }
 0x8d3   :  { %v8845_v37 = vpop.permute.xlu0 %8844 }
 0x8d4   :  { %v8900_v7 = vsel %vm8786_vm4, %v17791_v10, %v8845_v37 }
 0x8d5   :  { %8976 = vrot.lane.b32.xlu0 %v8900_v7, %s14618_s18 }
 0x8d7   :  { %v8849_v54 = vpop.permute.xlu0 %8848 }
 0x8d8   :  { %v8902_v50 = vsel %vm8786_vm4, %v17796_v57, %v8849_v54 }
 0x8d9   :  { %8980 = vrot.lane.b32.xlu0 %v8902_v50, %s14618_s18 }
 0x8e8   :  { %v18523_v38 = vpop.permute.xlu0 %8913 }
 0x8e9   :  { %vm8918_vm6 = vcmp.eq.s32.totalorder %v18523_v38, 1 }
 0x8f5   :  { %v8855_v11 = vpop.permute.xlu1 %8854 }
 0x8f6   :  { %v8905_v32 = vsel %vm8787_vm2, %v17815_v15, %v8855_v11 }
 0x8f7   :  { %8986 = vrot.lane.b32.xlu1 %v8905_v32, %s14618_s18 }
 0x8f9   :  { %v8859_v16 = vpop.permute.xlu1 %8858 }
 0x8fa   :  { %v8907_v0 = vsel %vm8787_vm2, %v17817_v18, %v8859_v16 }
 0x8fb   :  { %8990 = vrot.lane.b32.xlu1 %v8907_v0, %s14618_s18 }
 0x90a   :  { %v18521_v27 = vpop.permute.xlu1 %8916 }
 0x90b   :  { %vm8919_vm5 = vcmp.eq.s32.totalorder %v18521_v27, 1  ;;  %v18638_v27 = vld [vmem:[%s19136_s3 + $0x8] sm:$0xff] }
 0x90e   :  { %v8947_v53 = vpop.permute.xlu1 %8946 }
 0x90f   :  { %v9017_v24 = vsel %vm8919_vm5, %v17540_v30, %v8947_v53  ;;  %v8945_v25 = vpop.permute.xlu0 %8944 }
 0x910   :  { %v9016_v28 = vsel %vm8918_vm6, %v17547_v55, %v8945_v25  ;;  %9044 = vrot.lane.b32.xlu1 %v9017_v24, %s14618_s18 }
 0x911   :  { %9042 = vrot.lane.b32.xlu0 %v9016_v28, %s14618_s18 }
 0x912   :  { %v8951_v37 = vpop.permute.xlu1 %8950 }
 0x913   :  { %v9019_v7 = vsel %vm8919_vm5, %v17544_v42, %v8951_v37  ;;  %v8949_v54 = vpop.permute.xlu0 %8948 }
 0x914   :  { %v9018_v50 = vsel %vm8918_vm6, %v17555_v13, %v8949_v54  ;;  %9139 = vrot.lane.b32.xlu1 %v9019_v7, %s14618_s18 }
 0x915   :  { %9137 = vrot.lane.b32.xlu0 %v9018_v50, %s14618_s18 }
 0x916   :  { %v8955_v30 = vpop.permute.xlu1 %8954 }
 0x917   :  { %v9021_v55 = vsel %vm8919_vm5, %v17626_v52, %v8955_v30 }
 0x918   :  { %9234 = vrot.lane.b32.xlu1 %v9021_v55, %s14618_s18 }
 0x91a   :  { %v8959_v11 = vpop.permute.xlu1 %8958 }
 0x91b   :  { %v9023_v42 = vsel %vm8919_vm5, %v17632_v56, %v8959_v11 }
 0x91c   :  { %9329 = vrot.lane.b32.xlu1 %v9023_v42, %s14618_s18 }
 0x91e   :  { %v8963_v32 = vpop.permute.xlu1 %8962 }
 0x91f   :  { %v9025_v13 = vsel %vm8919_vm5, %v17739_v19, %v8963_v32  ;;  %v8953_v16 = vpop.permute.xlu0 %8952 }
 0x920   :  { %v9020_v0 = vsel %vm8918_vm6, %v17634_v22, %v8953_v16  ;;  %9424 = vrot.lane.b32.xlu1 %v9025_v13, %s14618_s18 }
 0x921   :  { %9232 = vrot.lane.b32.xlu0 %v9020_v0, %s14618_s18 }
 0x922   :  { %v8967_v52 = vpop.permute.xlu1 %8966 }
 0x923   :  { %v9027_v56 = vsel %vm8919_vm5, %v17741_v23, %v8967_v52  ;;  %v8957_v53 = vpop.permute.xlu0 %8956 }
 0x924   :  { %v9022_v24 = vsel %vm8918_vm6, %v17642_v9, %v8957_v53  ;;  %9519 = vrot.lane.b32.xlu1 %v9027_v56, %s14618_s18  ;;  %v18627_v53 = vld [vmem:[%s19136_s3] sm:$0xff] }
 0x925   :  { %9327 = vrot.lane.b32.xlu0 %v9022_v24, %s14618_s18 }
 0x926   :  { %v8971_v19 = vpop.permute.xlu1 %8970 }
 0x927   :  { %v9029_v22 = vsel %vm8919_vm5, %v17763_v3, %v8971_v19 }
 0x928   :  { %9614 = vrot.lane.b32.xlu1 %v9029_v22, %s14618_s18 }
 0x92a   :  { %v8975_v25 = vpop.permute.xlu1 %8974 }
 0x92b   :  { %v9031_v23 = vsel %vm8919_vm5, %v17765_v8, %v8975_v25 }
 0x92c   :  { %9709 = vrot.lane.b32.xlu1 %v9031_v23, %s14618_s18 }
 0x92f   :  { %v8961_v28 = vpop.permute.xlu0 %8960 }
 0x930   :  { %v9024_v9 = vsel %vm8918_vm6, %v17743_v46, %v8961_v28 }
 0x931   :  { %9422 = vrot.lane.b32.xlu0 %v9024_v9, %s14618_s18 }
 0x933   :  { %v8965_v37 = vpop.permute.xlu0 %8964 }
 0x934   :  { %v9026_v3 = vsel %vm8918_vm6, %v17748_v34, %v8965_v37 }
 0x935   :  { %9517 = vrot.lane.b32.xlu0 %v9026_v3, %s14618_s18 }
 0x937   :  { %v8853_v7 = vpop.permute.xlu0 %8852 }
 0x938   :  { %v8904_v8 = vsel %vm8786_vm4, %v17819_v14, %v8853_v7 }
 0x939   :  { %v8979_v54 = vpop.permute.xlu1 %8978  ;;  %8984 = vrot.lane.b32.xlu0 %v8904_v8, %s14618_s18 }
 0x93a   :  { %v9033_v46 = vsel %vm8919_vm5, %v17787_v49, %v8979_v54 }
 0x93b   :  { %9804 = vrot.lane.b32.xlu1 %v9033_v46, %s14618_s18  ;;  %v8857_v50 = vpop.permute.xlu0 %8856 }
 0x93c   :  { %v8906_v34 = vsel %vm8786_vm4, %v17824_v60, %v8857_v50 }
 0x93d   :  { %v8983_v30 = vpop.permute.xlu1 %8982  ;;  %8988 = vrot.lane.b32.xlu0 %v8906_v34, %s14618_s18 }
 0x93e   :  { %v9035_v55 = vsel %vm8919_vm5, %v17789_v51, %v8983_v30 }
 0x93f   :  { %9899 = vrot.lane.b32.xlu1 %v9035_v55, %s14618_s18  ;;  %v8969_v11 = vpop.permute.xlu0 %8968 }
 0x940   :  { %v9028_v49 = vsel %vm8918_vm6, %v17767_v45, %v8969_v11 }
 0x941   :  { %9612 = vrot.lane.b32.xlu0 %v9028_v49, %s14618_s18 }
 0x943   :  { %v8973_v42 = vpop.permute.xlu0 %8972 }
 0x944   :  { %v9030_v17 = vsel %vm8918_vm6, %v17772_v58, %v8973_v42 }
 0x945   :  { %9707 = vrot.lane.b32.xlu0 %v9030_v17, %s14618_s18 }
 0x947   :  { %v8977_v32 = vpop.permute.xlu0 %8976 }
 0x948   :  { %v9032_v51 = vsel %vm8918_vm6, %v17791_v10, %v8977_v32 }
 0x949   :  { %9802 = vrot.lane.b32.xlu0 %v9032_v51, %s14618_s18 }
 0x94b   :  { %v8981_v13 = vpop.permute.xlu0 %8980 }
 0x94c   :  { %v9034_v45 = vsel %vm8918_vm6, %v17796_v57, %v8981_v13 }
 0x94d   :  { %9897 = vrot.lane.b32.xlu0 %v9034_v45, %s14618_s18 }
 0x969   :  { %v8987_v16 = vpop.permute.xlu1 %8986 }
 0x96a   :  { %v9037_v58 = vsel %vm8919_vm5, %v17815_v15, %v8987_v16 }
 0x96b   :  { %9994 = vrot.lane.b32.xlu1 %v9037_v58, %s14618_s18 }
 0x96d   :  { %v8991_v0 = vpop.permute.xlu1 %8990 }
 0x96e   :  { %v9039_v10 = vsel %vm8919_vm5, %v17817_v18, %v8991_v0 }
 0x96f   :  { %10089 = vrot.lane.b32.xlu1 %v9039_v10, %s14618_s18 }
 0x982   :  { %v9045_v52 = vpop.permute.xlu1 %9044 }
 0x983   :  { %v9043_v56 = vpop.permute.xlu0 %9042  ;;  %v9132_v15 = vadd.f32 %v17842_v39, %v9045_v52 }
 0x984   :  { %v9127_v57 = vadd.f32 %v17847_v41, %v9043_v56 }
 0x985   :  { %v10181_v22 = vmul.f32 0.25, %v9132_v15 }
 0x986   :  { %v10180_v24 = vmul.f32 0.25, %v9127_v57  ;;  %v9140_v16 = vpop.permute.xlu1 %9139 }
 0x987   :  { %v18641_v41 = vadd.f32 %v18638_v27, %v10181_v22  ;;  %v9138_v25 = vpop.permute.xlu0 %9137 }
 0x988   :  { %v18631_v19 = vadd.f32 %v18627_v53, %v10180_v24 }
 0x989   :  { %v10233_v39 = vsel %vm6961_vm3, %v18641_v41, -inf }
 0x98a   :  { %v10230_v18 = vsel %vm6961_vm3, %v18631_v19, -inf  ;;  %v9235_v56 = vpop.permute.xlu1 %9234 }
 0x98b   :  { %10231 = vmax.xlane.f32.xlu0 %v10230_v18 }
 0x993   :  { %10234 = vmax.xlane.f32.xlu1 %v10233_v39  ;;  %v9233_v23 = vpop.permute.xlu0 %9232  ;;  %v9330_v39 = vpop.permute.xlu1 %9329 }
 0x994   :  { %v9317_v28 = vadd.f32 %v17868_v2, %v9233_v23 }
 0x996   :  { %v10184_v9 = vmul.f32 0.25, %v9317_v28 }
 0x997   :  { %v9328_v37 = vpop.permute.xlu0 %9327 }
 0x998   :  { %v18647_v3 = vadd.f32 %v18627_v53, %v10184_v9  ;;  %v9412_v7 = vadd.f32 %v17874_v21, %v9328_v37  ;;  %v9222_v37 = vadd.f32 %v17850_v61, %v9138_v25 }
 0x99a   :  { %v10186_v8 = vmul.f32 0.25, %v9412_v7  ;;  %v10242_v54 = vsel %vm6961_vm3, %v18647_v3, -inf  ;;  %v9425_v7 = vpop.permute.xlu1 %9424 }
 0x99b   :  { %10243 = vmax.xlane.f32.xlu1 %v10242_v54  ;;  %v9227_v54 = vadd.f32 %v17845_v48, %v9140_v16 }
 0x99c   :  { %v18653_v46 = vadd.f32 %v18627_v53, %v10186_v8 }
 0x99e   :  { %v10248_v50 = vsel %vm6961_vm3, %v18653_v46, -inf }
 0x99f   :  { %10249 = vmax.xlane.f32.xlu1 %v10248_v50  ;;  %v10182_v50 = vmul.f32 0.25, %v9222_v37 }
 0x9a3   :  { %v9423_v2 = vpop.permute.xlu0 %9422 }
 0x9a4   :  { %v9507_v34 = vadd.f32 %v17892_v31, %v9423_v2  ;;  %v10183_v2 = vmul.f32 0.25, %v9227_v54 }
 0x9a6   :  { %v10188_v30 = vmul.f32 0.25, %v9507_v34  ;;  %v9322_v34 = vadd.f32 %v17861_v29, %v9235_v56  ;;  %v18708_v61 = vadd.f32 %v18638_v27, %v10183_v2 }
 0x9a7   :  { %v9518_v55 = vpop.permute.xlu0 %9517 }
 0x9a8   :  { %v18659_v11 = vadd.f32 %v18627_v53, %v10188_v30  ;;  %v9602_v21 = vadd.f32 %v17898_v12, %v9518_v55  ;;  %v9520_v30 = vpop.permute.xlu1 %9519  ;;  %v10185_v25 = vmul.f32 0.25, %v9322_v34  ;;  %v9417_v55 = vadd.f32 %v17866_v59, %v9330_v39 }
 0x9a9   :  { %v10239_v29 = vsel %vm6961_vm3, %v18708_v61, -inf  ;;  %v9607_v59 = vadd.f32 %v17890_v26, %v9520_v30 }
 0x9aa   :  { %v10190_v49 = vmul.f32 0.25, %v9602_v21  ;;  %v10254_v42 = vsel %vm6961_vm3, %v18659_v11, -inf }
 0x9ab   :  { %10255 = vmax.xlane.f32.xlu1 %v10254_v42  ;;  %v8985_v17 = vpop.permute.xlu0 %8984  ;;  %v10187_v42 = vmul.f32 0.25, %v9417_v55  ;;  %v10191_v16 = vmul.f32 0.25, %v9607_v59 }
 0x9ac   :  { %v18665_v32 = vadd.f32 %v18627_v53, %v10190_v49  ;;  %v9036_v31 = vsel %vm8918_vm6, %v17819_v14, %v8985_v17  ;;  %v9615_v48 = vpop.permute.xlu1 %9614  ;;  %v18714_v49 = vadd.f32 %v18638_v27, %v10185_v25  ;;  %v9512_v17 = vadd.f32 %v17885_v35, %v9425_v7 }
 0x9ad   :  { %9992 = vrot.lane.b32.xlu0 %v9036_v31, %s14618_s18  ;;  %v18720_v31 = vadd.f32 %v18638_v27, %v10187_v42  ;;  %v9702_v35 = vadd.f32 %v17909_v36, %v9615_v48 }
 0x9ae   :  { %v10260_v51 = vsel %vm6961_vm3, %v18665_v32, -inf }
 0x9af   :  { %10261 = vmax.xlane.f32.xlu1 %v10260_v51  ;;  %v8989_v12 = vpop.permute.xlu0 %8988  ;;  %v10189_v51 = vmul.f32 0.25, %v9512_v17  ;;  %v10193_v26 = vmul.f32 0.25, %v9702_v35 }
 0x9b0   :  { %v9038_v13 = vsel %vm8918_vm6, %v17824_v60, %v8989_v12  ;;  %v10245_v12 = vsel %vm6961_vm3, %v18714_v49, -inf }
 0x9b1   :  { %10087 = vrot.lane.b32.xlu0 %v9038_v13, %s14618_s18  ;;  %v9710_v13 = vpop.permute.xlu1 %9709 }
 0x9b3   :  { %v9613_v45 = vpop.permute.xlu0 %9612 }
 0x9b4   :  { %v9697_v58 = vadd.f32 %v17916_v47, %v9613_v45  ;;  %v18726_v45 = vadd.f32 %v18638_v27, %v10189_v51 }
 0x9b6   :  { %v10192_v0 = vmul.f32 0.25, %v9697_v58  ;;  %v10251_v58 = vsel %vm6961_vm3, %v18720_v31, -inf  ;;  %v10257_v56 = vsel %vm6961_vm3, %v18726_v45, -inf }
 0x9b7   :  { %v9708_v10 = vpop.permute.xlu0 %9707 }
 0x9b8   :  { %v18679_v14 = vadd.f32 %v18627_v53, %v10192_v0  ;;  %v9792_v52 = vadd.f32 %v17922_v5, %v9708_v10  ;;  %v9805_v0 = vpop.permute.xlu1 %9804  ;;  %v18732_v10 = vadd.f32 %v18638_v27, %v10191_v16 }
 0x9ba   :  { %v10194_v57 = vmul.f32 0.25, %v9792_v52  ;;  %v10266_v15 = vsel %vm6961_vm3, %v18679_v14, -inf  ;;  %v9797_v52 = vadd.f32 %v17914_v44, %v9710_v13 }
 0x9bb   :  { %10267 = vmax.xlane.f32.xlu1 %v10266_v15  ;;  %v9803_v60 = vpop.permute.xlu0 %9802  ;;  %v18738_v15 = vadd.f32 %v18638_v27, %v10193_v26 }
 0x9bc   :  { %v18685_v38 = vadd.f32 %v18627_v53, %v10194_v57  ;;  %v9887_v24 = vadd.f32 %v17940_v33, %v9803_v60  ;;  %v9900_v57 = vpop.permute.xlu1 %9899  ;;  %v10195_v36 = vmul.f32 0.25, %v9797_v52  ;;  %v9892_v60 = vadd.f32 %v17933_v20, %v9805_v0 }
 0x9bd   :  { %v10269_v39 = vsel %vm6961_vm3, %v18738_v15, -inf }
 0x9be   :  { %v10196_v47 = vmul.f32 0.25, %v9887_v24  ;;  %v10272_v22 = vsel %vm6961_vm3, %v18685_v38, -inf  ;;  %v10263_v24 = vsel %vm6961_vm3, %v18732_v10, -inf  ;;  %v10197_v44 = vmul.f32 0.25, %v9892_v60 }
 0x9bf   :  { %10273 = vmax.xlane.f32.xlu1 %v10272_v22  ;;  %v9898_v18 = vpop.permute.xlu0 %9897  ;;  %v18744_v22 = vadd.f32 %v18638_v27, %v10195_v36 }
 0x9c0   :  { %v18691_v5 = vadd.f32 %v18627_v53, %v10196_v47  ;;  %v9982_v23 = vadd.f32 %v17946_v63, %v9898_v18  ;;  %v18704_v63 = vadd.f32 %v18627_v53, %v10182_v50  ;;  %v9987_v18 = vadd.f32 %v17938_v62, %v9900_v57 }
 0x9c2   :  { %v10198_v28 = vmul.f32 0.25, %v9982_v23  ;;  %v10278_v9 = vsel %vm6961_vm3, %v18691_v5, -inf  ;;  %v10236_v21 = vsel %vm6961_vm3, %v18704_v63, -inf  ;;  %v18750_v23 = vadd.f32 %v18638_v27, %v10197_v44 }
 0x9c3   :  { %10279 = vmax.xlane.f32.xlu1 %v10278_v9  ;;  %v10275_v9 = vsel %vm6961_vm3, %v18744_v22, -inf }
 0x9c4   :  { %v18698_v33 = vadd.f32 %v18627_v53, %v10198_v28  ;;  %v10199_v28 = vmul.f32 0.25, %v9987_v18  ;;  %v10281_v54 = vsel %vm6961_vm3, %v18750_v23, -inf }
 0x9c6   :  { %v10284_v8 = vsel %vm6961_vm3, %v18698_v33, -inf  ;;  %v18756_v7 = vadd.f32 %v18638_v27, %v10199_v28 }
 0x9c7   :  { %10285 = vmax.xlane.f32.xlu1 %v10284_v8 }
 0x9d0   :  { %10237 = vmax.xlane.f32.xlu0 %v10236_v21 }
 0x9d4   :  { %10240 = vmax.xlane.f32.xlu0 %v10239_v29 }
 0x9d8   :  { %10246 = vmax.xlane.f32.xlu0 %v10245_v12 }
 0x9dc   :  { %10252 = vmax.xlane.f32.xlu0 %v10251_v58 }
 0x9dd   :  { %v9995_v47 = vpop.permute.xlu1 %9994 }
 0x9de   :  { %v10082_v20 = vadd.f32 %v17949_v4, %v9995_v47  ;;  %v10287_v4 = vsel %vm6961_vm3, %v18756_v7, -inf }
 0x9e0   :  { %10258 = vmax.xlane.f32.xlu0 %v10257_v56  ;;  %v10201_v8 = vmul.f32 0.25, %v10082_v20 }
 0x9e1   :  { %v10090_v37 = vpop.permute.xlu1 %10089 }
 0x9e2   :  { %v10177_v62 = vadd.f32 %v17951_v1, %v10090_v37  ;;  %v18762_v50 = vadd.f32 %v18638_v27, %v10201_v8 }
 0x9e4   :  { %10264 = vmax.xlane.f32.xlu0 %v10263_v24  ;;  %v10203_v2 = vmul.f32 0.25, %v10177_v62  ;;  %v10293_v30 = vsel %vm6961_vm3, %v18762_v50, -inf }
 0x9e6   :  { %v18767_v34 = vadd.f32 %v18638_v27, %v10203_v2 }
 0x9e8   :  { %10270 = vmax.xlane.f32.xlu0 %v10269_v39  ;;  %v10299_v1 = vsel %vm6961_vm3, %v18767_v34, -inf }
 0x9ec   :  { %10276 = vmax.xlane.f32.xlu0 %v10275_v9 }
 0x9f0   :  { %10282 = vmax.xlane.f32.xlu0 %v10281_v54 }
 0x9f4   :  { %10288 = vmax.xlane.f32.xlu0 %v10287_v4 }
 0x9f8   :  { %10294 = vmax.xlane.f32.xlu0 %v10293_v30 }
 0x9fc   :  { %10300 = vmax.xlane.f32.xlu0 %v10299_v1 }
 0xa18   :  { %v10232_v25 = vpop.xlane.xlu0 %10231 }
 0xa19   :  { %v10302_v55 = vsub.f32 %v18631_v19, %v10232_v25 }
 0xa1b   :  { %v10326_v21 = vmul.f32 1.442695, %v10302_v55 }
 0xa1d   :  { %14511 = vpow2.f32 %v10326_v21 }
 0xa1f   :  { %v9993_v48 = vpop.permute.xlu0 %9992 }
 0xa20   :  { %v10077_v42 = vadd.f32 %v17953_v43, %v9993_v48  ;;  %v10235_v17 = vpop.xlane.xlu1 %10234 }
 0xa21   :  { %v10303_v27 = vsub.f32 %v18641_v41, %v10235_v17 }
 0xa22   :  { %v10200_v29 = vmul.f32 0.25, %v10077_v42 }
 0xa23   :  { %v10328_v51 = vmul.f32 1.442695, %v10303_v27  ;;  %v10088_v59 = vpop.permute.xlu0 %10087 }
 0xa24   :  { %v18777_v12 = vadd.f32 %v18627_v53, %v10200_v29  ;;  %v10172_v13 = vadd.f32 %v17955_v40, %v10088_v59 }
 0xa25   :  { %14513 = vpow2.f32 %v10328_v51 }
 0xa26   :  { %v10202_v16 = vmul.f32 0.25, %v10172_v13  ;;  %v10290_v19 = vsel %vm6961_vm3, %v18777_v12, -inf }
 0xa27   :  { %10291 = vmax.xlane.f32.xlu1 %v10290_v19  ;;  %v18787_v35 = vpop.eup %14511 }
 0xa28   :  { %v18783_v43 = vadd.f32 %v18627_v53, %v10202_v16  ;;  %v10374_v58 = vsel %vm6961_vm3, %v18787_v35, 0.0  ;;  %v10244_v26 = vpop.xlane.xlu1 %10243 }
 0xa29   :  { %v10306_v56 = vsub.f32 %v18647_v3, %v10244_v26 }
 0xa2a   :  { %v10296_v41 = vsel %vm6961_vm3, %v18783_v43, -inf }
 0xa2b   :  { %10297 = vmax.xlane.f32.xlu1 %v10296_v41  ;;  %v10334_v24 = vmul.f32 1.442695, %v10306_v56 }
 0xa2c   :  { %v10250_v52 = vpop.xlane.xlu1 %10249 }
 0xa2d   :  { %v10308_v47 = vsub.f32 %v18653_v46, %v10250_v52 }
 0xa2f   :  { %v18791_v0 = vpop.eup %14513  ;;  %10375 = vadd.xlane.f32.xlu1 %v10374_v58  ;;  %v10338_v20 = vmul.f32 1.442695, %v10308_v47 }
 0xa30   :  { %v10377_v40 = vsel %vm6961_vm3, %v18791_v0, 0.0 }
 0xa31   :  { %10378 = vadd.xlane.f32.xlu0 %v10377_v40 }
 0xa38   :  { %v10256_v53 = vpop.xlane.xlu1 %10255 }
 0xa39   :  { %v10310_v9 = vsub.f32 %v18659_v11, %v10256_v53 }
 0xa3c   :  { %v10262_v60 = vpop.xlane.xlu1 %10261 }
 0xa3d   :  { %v10312_v62 = vsub.f32 %v18665_v32, %v10262_v60 }
 0xa3f   :  { %v10346_v30 = vmul.f32 1.442695, %v10312_v62 }
 0xa48   :  { %v10268_v28 = vpop.xlane.xlu1 %10267 }
 0xa49   :  { %v10314_v11 = vsub.f32 %v18679_v14, %v10268_v28 }
 0xa4c   :  { %v10274_v54 = vpop.xlane.xlu1 %10273 }
 0xa4d   :  { %v10316_v42 = vsub.f32 %v18685_v38, %v10274_v54 }
 0xa4f   :  { %v10354_v13 = vmul.f32 1.442695, %v10316_v42 }
 0xa50   :  { %v10280_v21 = vpop.xlane.xlu1 %10279 }
 0xa51   :  { %v10318_v38 = vsub.f32 %v18691_v5, %v10280_v21 }
 0xa53   :  { %v10358_v5 = vmul.f32 1.442695, %v10318_v38 }
 0xa54   :  { %v10286_v19 = vpop.xlane.xlu1 %10285 }
 0xa55   :  { %v10320_v53 = vsub.f32 %v18698_v33, %v10286_v19 }
 0xa5d   :  { %v10238_v57 = vpop.xlane.xlu0 %10237 }
 0xa5e   :  { %v10304_v36 = vsub.f32 %v18704_v63, %v10238_v57  ;;  %v10342_v63 = vmul.f32 1.442695, %v10310_v9 }
 0xa60   :  { %v10330_v44 = vmul.f32 1.442695, %v10304_v36 }
 0xa61   :  { %v10241_v18 = vpop.xlane.xlu0 %10240 }
 0xa62   :  { %14515 = vpow2.f32 %v10330_v44  ;;  %v10305_v39 = vsub.f32 %v18708_v61, %v10241_v18  ;;  %v10362_v44 = vmul.f32 1.442695, %v10320_v53 }
 0xa63   :  { %14517 = vpow2.f32 %v10334_v24 }
 0xa64   :  { %v10332_v37 = vmul.f32 1.442695, %v10305_v39 }
 0xa65   :  { %v10247_v8 = vpop.xlane.xlu0 %10246 }
 0xa66   :  { %14519 = vpow2.f32 %v10332_v37  ;;  %v10307_v3 = vsub.f32 %v18714_v49, %v10247_v8 }
 0xa67   :  { %14521 = vpow2.f32 %v10338_v20 }
 0xa68   :  { %v10336_v46 = vmul.f32 1.442695, %v10307_v3 }
 0xa69   :  { %v10253_v2 = vpop.xlane.xlu0 %10252 }
 0xa6a   :  { %14523 = vpow2.f32 %v10336_v46  ;;  %v10309_v61 = vsub.f32 %v18720_v31, %v10253_v2  ;;  %v10350_v31 = vmul.f32 1.442695, %v10314_v11 }
 0xa6b   :  { %14525 = vpow2.f32 %v10342_v63 }
 0xa6c   :  { %v18803_v4 = vpop.eup %14515  ;;  %v10340_v1 = vmul.f32 1.442695, %v10309_v61 }
 0xa6d   :  { %v10259_v25 = vpop.xlane.xlu0 %10258  ;;  %v10380_v49 = vsel %vm6961_vm3, %v18803_v4, 0.0  ;;  %v18808_v55 = vpop.eup %14517 }
 0xa6e   :  { %14527 = vpow2.f32 %v10340_v1  ;;  %v10311_v32 = vsub.f32 %v18726_v45, %v10259_v25  ;;  %10381 = vadd.xlane.f32.xlu1 %v10380_v49  ;;  %v10386_v27 = vsel %vm6961_vm3, %v18808_v55, 0.0 }
 0xa6f   :  { %14529 = vpow2.f32 %v10346_v30 }
 0xa70   :  { %v18811_v48 = vpop.eup %14519  ;;  %v10344_v17 = vmul.f32 1.442695, %v10311_v32 }
 0xa71   :  { %v10265_v14 = vpop.xlane.xlu0 %10264  ;;  %v10383_v29 = vsel %vm6961_vm3, %v18811_v48, 0.0  ;;  %v18818_v51 = vpop.eup %14521 }
 0xa72   :  { %14531 = vpow2.f32 %v10344_v17  ;;  %v10313_v45 = vsub.f32 %v18732_v10, %v10265_v14  ;;  %10387 = vadd.xlane.f32.xlu1 %v10386_v27  ;;  %10384 = vadd.xlane.f32.xlu0 %v10383_v29  ;;  %v10392_v58 = vsel %vm6961_vm3, %v18818_v51, 0.0 }
 0xa73   :  { %14533 = vpow2.f32 %v10350_v31 }
 0xa74   :  { %v18821_v59 = vpop.eup %14523  ;;  %v10348_v16 = vmul.f32 1.442695, %v10313_v45 }
 0xa75   :  { %v10271_v41 = vpop.xlane.xlu0 %10270  ;;  %v10389_v40 = vsel %vm6961_vm3, %v18821_v59, 0.0  ;;  %v18828_v26 = vpop.eup %14525 }
 0xa76   :  { %14535 = vpow2.f32 %v10348_v16  ;;  %v10315_v10 = vsub.f32 %v18738_v15, %v10271_v41  ;;  %10393 = vadd.xlane.f32.xlu1 %v10392_v58  ;;  %10390 = vadd.xlane.f32.xlu0 %v10389_v40  ;;  %v10398_v36 = vsel %vm6961_vm3, %v18828_v26, 0.0 }
 0xa77   :  { %14537 = vpow2.f32 %v10354_v13 }
 0xa78   :  { %v18831_v52 = vpop.eup %14527  ;;  %v10352_v56 = vmul.f32 1.442695, %v10315_v10 }
 0xa79   :  { %v10277_v57 = vpop.xlane.xlu0 %10276  ;;  %v10395_v60 = vsel %vm6961_vm3, %v18831_v52, 0.0  ;;  %v18838_v24 = vpop.eup %14529 }
 0xa7a   :  { %14539 = vpow2.f32 %v10352_v56  ;;  %v10317_v15 = vsub.f32 %v18744_v22, %v10277_v57  ;;  %10399 = vadd.xlane.f32.xlu1 %v10398_v36  ;;  %10396 = vadd.xlane.f32.xlu0 %v10395_v60  ;;  %v10404_v39 = vsel %vm6961_vm3, %v18838_v24, 0.0 }
 0xa7b   :  { %14541 = vpow2.f32 %v10358_v5 }
 0xa7c   :  { %v18841_v47 = vpop.eup %14531  ;;  %v10356_v33 = vmul.f32 1.442695, %v10317_v15 }
 0xa7d   :  { %v10283_v18 = vpop.xlane.xlu0 %10282  ;;  %v10401_v28 = vsel %vm6961_vm3, %v18841_v47, 0.0  ;;  %v18847_v20 = vpop.eup %14533 }
 0xa7e   :  { %14543 = vpow2.f32 %v10356_v33  ;;  %v10319_v9 = vsub.f32 %v18750_v23, %v10283_v18  ;;  %10405 = vadd.xlane.f32.xlu1 %v10404_v39  ;;  %10402 = vadd.xlane.f32.xlu0 %v10401_v28  ;;  %v10410_v3 = vsel %vm6961_vm3, %v18847_v20, 0.0  ;;  %v19166_v18 = vld [vmem:[#allocation2_spill] sm:$0xff]  ;;  %v19167_v39 = vld [vmem:[#allocation4_spill] sm:$0xff] }
 0xa7f   :  { %14545 = vpow2.f32 %v10362_v44 }
 0xa80   :  { %v18850_v22 = vpop.eup %14535  ;;  %v10360_v37 = vmul.f32 1.442695, %v10319_v9 }
 0xa81   :  { %v10289_v8 = vpop.xlane.xlu0 %10288  ;;  %v10407_v63 = vsel %vm6961_vm3, %v18850_v22, 0.0  ;;  %v18856_v62 = vpop.eup %14537 }
 0xa82   :  { %14547 = vpow2.f32 %v10360_v37  ;;  %v10321_v46 = vsub.f32 %v18756_v7, %v10289_v8  ;;  %10411 = vadd.xlane.f32.xlu1 %v10410_v3  ;;  %10408 = vadd.xlane.f32.xlu0 %v10407_v63  ;;  %v10416_v61 = vsel %vm6961_vm3, %v18856_v62, 0.0 }
 0xa84   :  { %v18859_v23 = vpop.eup %14539  ;;  %v10364_v54 = vmul.f32 1.442695, %v10321_v46 }
 0xa85   :  { %v10295_v2 = vpop.xlane.xlu0 %10294  ;;  %v10413_v30 = vsel %vm6961_vm3, %v18859_v23, 0.0  ;;  %v18865_v11 = vpop.eup %14541 }
 0xa86   :  { %14549 = vpow2.f32 %v10364_v54  ;;  %v10323_v1 = vsub.f32 %v18762_v50, %v10295_v2  ;;  %10417 = vadd.xlane.f32.xlu1 %v10416_v61  ;;  %10414 = vadd.xlane.f32.xlu0 %v10413_v30  ;;  %v10422_v32 = vsel %vm6961_vm3, %v18865_v11, 0.0 }
 0xa88   :  { %v18868_v7 = vpop.eup %14543  ;;  %v10368_v25 = vmul.f32 1.442695, %v10323_v1 }
 0xa89   :  { %v10301_v49 = vpop.xlane.xlu0 %10300  ;;  %v10419_v21 = vsel %vm6961_vm3, %v18868_v7, 0.0  ;;  %v18874_v31 = vpop.eup %14545 }
 0xa8a   :  { %14551 = vpow2.f32 %v10368_v25  ;;  %v10325_v42 = vsub.f32 %v18767_v34, %v10301_v49  ;;  %10423 = vadd.xlane.f32.xlu1 %v10422_v32  ;;  %10420 = vadd.xlane.f32.xlu0 %v10419_v21  ;;  %v10428_v14 = vsel %vm6961_vm3, %v18874_v31, 0.0  ;;  %v19168_v32 = vld [vmem:[#allocation3_spill] sm:$0xff] }
 0xa8c   :  { %v18877_v50 = vpop.eup %14547  ;;  %v10372_v17 = vmul.f32 1.442695, %v10325_v42 }
 0xa8d   :  { %v10425_v27 = vsel %vm6961_vm3, %v18877_v50, 0.0 }
 0xa8e   :  { %14553 = vpow2.f32 %v10372_v17  ;;  %10429 = vadd.xlane.f32.xlu1 %v10428_v14  ;;  %10426 = vadd.xlane.f32.xlu0 %v10425_v27  ;;  %v19169_v27 = vld [vmem:[#allocation5_spill] sm:$0xff] }
 0xa90   :  { %v18883_v29 = vpop.eup %14549 }
 0xa91   :  { %v10431_v45 = vsel %vm6961_vm3, %v18883_v29, 0.0 }
 0xa92   :  { %10432 = vadd.xlane.f32.xlu0 %v10431_v45 }
 0xa94   :  { %v18887_v34 = vpop.eup %14551 }
 0xa95   :  { %v10437_v13 = vsel %vm6961_vm3, %v18887_v34, 0.0 }
 0xa96   :  { %10438 = vadd.xlane.f32.xlu0 %v10437_v13 }
 0xa98   :  { %v18891_v38 = vpop.eup %14553 }
 0xa99   :  { %v10443_v16 = vsel %vm6961_vm3, %v18891_v38, 0.0 }
 0xa9a   :  { %10444 = vadd.xlane.f32.xlu0 %v10443_v16 }
 0xab4   :  { %v10292_v19 = vpop.xlane.xlu1 %10291 }
 0xab5   :  { %v10322_v41 = vsub.f32 %v18777_v12, %v10292_v19  ;;  %v19170_v19 = vld [vmem:[#allocation6_spill] sm:$0xff] }
 0xab7   :  { %v10366_v58 = vmul.f32 1.442695, %v10322_v41 }
 0xab8   :  { %v10298_v40 = vpop.xlane.xlu1 %10297 }
 0xab9   :  { %14555 = vpow2.f32 %v10366_v58  ;;  %v10324_v10 = vsub.f32 %v18783_v43, %v10298_v40 }
 0xabb   :  { %v10370_v5 = vmul.f32 1.442695, %v10324_v10 }
 0xabc   :  { %v10376_v53 = vpop.xlane.xlu1 %10375 }
 0xabd   :  { %14557 = vpow2.f32 %v10370_v5  ;;  %v19171_v5 = vld [vmem:[#allocation7_spill] sm:$0xff] }
 0xabe   :  { %14559 = vrcp.f32 %v10376_v53  ;;  %v10379_v56 = vpop.xlane.xlu0 %10378 }
 0xabf   :  { %14561 = vrcp.f32 %v10379_v56 }
 0xac3   :  { %v18897_v57 = vpop.eup %14555 }
 0xac4   :  { %v10434_v36 = vsel %vm6961_vm3, %v18897_v57, 0.0 }
 0xac5   :  { %10435 = vadd.xlane.f32.xlu1 %v10434_v36 }
 0xac7   :  { %v18901_v60 = vpop.eup %14557 }
 0xac8   :  { %v14560_v12 = vpop.eup %14559  ;;  %v10440_v15 = vsel %vm6961_vm3, %v18901_v60, 0.0 }
 0xac9   :  { %v14562_v44 = vpop.eup %14561  ;;  %10441 = vadd.xlane.f32.xlu1 %v10440_v15  ;;  %v10470_v43 = vmul.f32 %v14560_v12, %v18787_v35  ;;  %v19172_v15 = vld [vmem:[#allocation8_spill] sm:$0xff] }
 0xaca   :  { %v10471_v33 = vmul.f32 %v14562_v44, %v18791_v0 }
 0xacb   :  { %13551 = vmatprep.mubr.msk.f32.mxu0 %vm6961_vm3, %v10470_v43 }
 0xacc   :  { %13552 = vmatmul.mubr.msk.f32.vlgmr.msra.gmra.mrb[144].mxu0 %vm6961_vm3, %v10471_v33 }
 0xacd   :  { %13858 = vmatpush3.bf16.msra.mxu0 %v19166_v18 }
 0xace   :  { %13864 = vmatprep.subr.bf16.mxu0 %v19167_v39 }
 0xafb   :  { %v10382_v28 = vpop.xlane.xlu1 %10381 }
 0xafc   :  { %14563 = vrcp.f32 %v10382_v28 }
 0xaff   :  { %v10388_v9 = vpop.xlane.xlu1 %10387  ;;  %v10385_v37 = vpop.xlane.xlu0 %10384 }
 0xb00   :  { %14565 = vrcp.f32 %v10388_v9 }
 0xb01   :  { %14567 = vrcp.f32 %v10385_v37  ;;  %v19174_v37 = vld [vmem:[#allocation10_spill] sm:$0xff] }
 0xb03   :  { %v10394_v8 = vpop.xlane.xlu1 %10393  ;;  %v10391_v3 = vpop.xlane.xlu0 %10390 }
 0xb04   :  { %14569 = vrcp.f32 %v10394_v8 }
 0xb05   :  { %14571 = vrcp.f32 %v10391_v3 }
 0xb06   :  { %v14564_v35 = vpop.eup %14563 }
 0xb07   :  { %v10400_v0 = vpop.xlane.xlu1 %10399  ;;  %v10397_v63 = vpop.xlane.xlu0 %10396  ;;  %v10472_v46 = vmul.f32 %v14564_v35, %v18803_v4  ;;  %v19175_v35 = vld [vmem:[#allocation11_spill] sm:$0xff] }
 0xb08   :  { %14573 = vrcp.f32 %v10400_v0 }
 0xb09   :  { %14575 = vrcp.f32 %v10397_v63  ;;  %13558 = vmatprep.mubr.msk.f32.mxu1 %vm6961_vm3, %v10472_v46 }
 0xb0a   :  { %v14566_v54 = vpop.eup %14565 }
 0xb0b   :  { %v14568_v2 = vpop.eup %14567  ;;  %v10406_v61 = vpop.xlane.xlu1 %10405  ;;  %v10474_v1 = vmul.f32 %v14566_v54, %v18808_v55 }
 0xb0c   :  { %v10403_v30 = vpop.xlane.xlu0 %10402  ;;  %v10473_v25 = vmul.f32 %v14568_v2, %v18811_v48  ;;  %14577 = vrcp.f32 %v10406_v61 }
 0xb0d   :  { %14579 = vrcp.f32 %v10403_v30  ;;  %13565 = vmatprep.mubr.msk.f32.mxu0 %vm6961_vm3, %v10474_v1 }
 0xb0e   :  { %v14570_v49 = vpop.eup %14569  ;;  %13559 = vmatmul.mubr.msk.f32.vlgmr.msra.gmra.mrb[144].mxu1 %vm6961_vm3, %v10473_v25 }
 0xb0f   :  { %v14572_v4 = vpop.eup %14571  ;;  %13862 = vmatpush3.bf16.msra.mxu1 %v19168_v32  ;;  %v10412_v21 = vpop.xlane.xlu1 %10411  ;;  %v10476_v17 = vmul.f32 %v14570_v49, %v18818_v51  ;;  %v14480_v49 = vld [vmem:[%s19137_s8 + $0x14] ss:$8 sps:$4 sm:$0xff]   ;;  %v14483_v32 = vld [vmem:[%s19137_s8 + $0x24] ss:$8 sps:$4 sm:$0xff]  }
 0xb10   :  { %v10409_v42 = vpop.xlane.xlu0 %10408  ;;  %v10475_v14 = vmul.f32 %v14572_v4, %v18821_v59  ;;  %13868 = vmatprep.subr.bf16.mxu1 %v19169_v27  ;;  %14581 = vrcp.f32 %v10412_v21 }
 0xb11   :  { %14583 = vrcp.f32 %v10409_v42  ;;  %13572 = vmatprep.mubr.msk.f32.mxu1 %vm6961_vm3, %v10476_v17  ;;  %v14481_v42 = vld [vmem:[%s19137_s8 + $0x20] ss:$8 sps:$4 sm:$0xff]  }
 0xb12   :  { %v14574_v55 = vpop.eup %14573  ;;  %13566 = vmatmul.mubr.msk.f32.vlgmr.msra.gmra.mrb[146].mxu0 %vm6961_vm3, %v10475_v14  ;;  %v14489_v14 = vld [vmem:[%s19137_s8 + $0x44] ss:$8 sps:$4 sm:$0xff]  }
 0xb13   :  { %v14576_v48 = vpop.eup %14575  ;;  %13866 = vmatpush3.bf16.msra.mxu0 %v19167_v39  ;;  %v10418_v45 = vpop.xlane.xlu1 %10417  ;;  %v10478_v16 = vmul.f32 %v14574_v55, %v18828_v26 }
 0xb14   :  { %v10415_v13 = vpop.xlane.xlu0 %10414  ;;  %v10477_v51 = vmul.f32 %v14576_v48, %v18831_v52  ;;  %13872 = vmatprep.subr.bf16.mxu0 %v19170_v19  ;;  %14585 = vrcp.f32 %v10418_v45  ;;  %v14484_v48 = vld [vmem:[%s19137_s8 + $0x30] ss:$8 sps:$4 sm:$0xff]  }
 0xb15   :  { %14587 = vrcp.f32 %v10415_v13  ;;  %13579 = vmatprep.mubr.msk.f32.mxu0 %vm6961_vm3, %v10478_v16  ;;  %v14492_v13 = vld [vmem:[%s19137_s8 + $0x54] ss:$8 sps:$4 sm:$0xff]  }
 0xb16   :  { %v14578_v59 = vpop.eup %14577  ;;  %13573 = vmatmul.mubr.msk.f32.vlgmr.msra.gmra.mrb[146].mxu1 %vm6961_vm3, %v10477_v51 }
 0xb17   :  { %v14580_v41 = vpop.eup %14579  ;;  %13870 = vmatpush3.bf16.msra.mxu1 %v19169_v27  ;;  %v10424_v58 = vpop.xlane.xlu1 %10423  ;;  %v10480_v10 = vmul.f32 %v14578_v59, %v18838_v24 }
 0xb18   :  { %v10421_v40 = vpop.xlane.xlu0 %10420  ;;  %v10479_v26 = vmul.f32 %v14580_v41, %v18841_v47  ;;  %13876 = vmatprep.subr.bf16.mxu1 %v19171_v5  ;;  %14589 = vrcp.f32 %v10424_v58  ;;  %v14495_v41 = vld [vmem:[%s19137_s8 + $0x64] ss:$8 sps:$4 sm:$0xff]  }
 0xb19   :  { %14591 = vrcp.f32 %v10421_v40  ;;  %13586 = vmatprep.mubr.msk.f32.mxu1 %vm6961_vm3, %v10480_v10  ;;  %v14490_v10 = vld [vmem:[%s19137_s8 + $0x50] ss:$8 sps:$4 sm:$0xff]  }
 0xb1a   :  { %v14582_v52 = vpop.eup %14581  ;;  %13580 = vmatmul.mubr.msk.f32.vlgmr.msra.gmra.mrb[148].mxu0 %vm6961_vm3, %v10479_v26 }
 0xb1b   :  { %v14584_v53 = vpop.eup %14583  ;;  %13874 = vmatpush3.bf16.msra.mxu0 %v19170_v19  ;;  %v10430_v56 = vpop.xlane.xlu1 %10429  ;;  %v10482_v12 = vmul.f32 %v14582_v52, %v18847_v20  ;;  %v19173_v20 = vld [vmem:[#allocation9_spill] sm:$0xff]  ;;  %v14487_v19 = vld [vmem:[%s19137_s8 + $0x40] ss:$8 sps:$4 sm:$0xff]  }
 0xb1c   :  { %v10427_v36 = vpop.xlane.xlu0 %10426  ;;  %v10481_v24 = vmul.f32 %v14584_v53, %v18850_v22  ;;  %13880 = vmatprep.subr.bf16.mxu0 %v19172_v15  ;;  %14593 = vrcp.f32 %v10430_v56  ;;  %v14493_v56 = vld [vmem:[%s19137_s8 + $0x60] ss:$8 sps:$4 sm:$0xff]  }
 0xb1d   :  { %14595 = vrcp.f32 %v10427_v36  ;;  %13593 = vmatprep.mubr.msk.f32.mxu0 %vm6961_vm3, %v10482_v12  ;;  %v14501_v12 = vld [vmem:[%s19137_s8 + $0x84] ss:$8 sps:$4 sm:$0xff]  }
 0xb1e   :  { %v14586_v47 = vpop.eup %14585  ;;  %13587 = vmatmul.mubr.msk.f32.vlgmr.msra.gmra.mrb[148].mxu1 %vm6961_vm3, %v10481_v24 }
 0xb1f   :  { %v14588_v44 = vpop.eup %14587  ;;  %13878 = vmatpush3.bf16.msra.mxu1 %v19171_v5  ;;  %v10484_v33 = vmul.f32 %v14586_v47, %v18856_v62  ;;  %v14498_v5 = vld [vmem:[%s19137_s8 + $0x74] ss:$8 sps:$4 sm:$0xff]   ;;  %v14496_v47 = vld [vmem:[%s19137_s8 + $0x70] ss:$8 sps:$4 sm:$0xff]  }
 0xb20   :  { %v10433_v43 = vpop.xlane.xlu0 %10432  ;;  %v10483_v18 = vmul.f32 %v14588_v44, %v18859_v23  ;;  %13884 = vmatprep.subr.bf16.mxu1 %v19173_v20 }
 0xb21   :  { %14597 = vrcp.f32 %v10433_v43  ;;  %13600 = vmatprep.mubr.msk.f32.mxu1 %vm6961_vm3, %v10484_v33  ;;  %v14504_v43 = vld [vmem:[%s19137_s8 + $0x94] ss:$8 sps:$4 sm:$0xff]  }
 0xb22   :  { %v14590_v22 = vpop.eup %14589  ;;  %13594 = vmatmul.mubr.msk.f32.vlgmr.msra.gmra.mrb[150].mxu0 %vm6961_vm3, %v10483_v18 }
 0xb23   :  { %v14592_v39 = vpop.eup %14591  ;;  %13882 = vmatpush3.bf16.msra.mxu0 %v19172_v15  ;;  %v10486_v28 = vmul.f32 %v14590_v22, %v18865_v11  ;;  %v14477_v11 = vld [vmem:[%s19137_s8 + $0x4] ss:$8 sps:$4 sm:$0xff]  }
 0xb24   :  { %v10485_v9 = vmul.f32 %v14592_v39, %v18868_v7  ;;  %13888 = vmatprep.subr.bf16.mxu0 %v19174_v37  ;;  %v14507_v39 = vld [vmem:[%s19137_s8 + $0xa4] ss:$8 sps:$4 sm:$0xff]  }
 0xb25   :  { %13607 = vmatprep.mubr.msk.f32.mxu0 %vm6961_vm3, %v10486_v28 }
 0xb26   :  { %v14594_v62 = vpop.eup %14593  ;;  %13601 = vmatmul.mubr.msk.f32.vlgmr.msra.gmra.mrb[150].mxu1 %vm6961_vm3, %v10485_v9 }
 0xb27   :  { %v14596_v23 = vpop.eup %14595  ;;  %13886 = vmatpush3.bf16.msra.mxu1 %v19173_v20  ;;  %v10488_v8 = vmul.f32 %v14594_v62, %v18874_v31  ;;  %v10439_v31 = vpop.xlane.xlu0 %10438  ;;  %v14499_v20 = vld [vmem:[%s19137_s8 + $0x80] ss:$8 sps:$4 sm:$0xff]  }
 0xb28   :  { %v10487_v3 = vmul.f32 %v14596_v23, %v18877_v50  ;;  %13892 = vmatprep.subr.bf16.mxu1 %v19175_v35  ;;  %14599 = vrcp.f32 %v10439_v31  ;;  %v14510_v23 = vld [vmem:[%s19137_s8 + $0xb4] ss:$8 sps:$4 sm:$0xff]  }
 0xb29   :  { %13614 = vmatprep.mubr.msk.f32.mxu1 %vm6961_vm3, %v10488_v8 }
 0xb2a   :  { %13608 = vmatmul.mubr.msk.f32.vlgmr.msra.gmra.mrb[152].mxu0 %vm6961_vm3, %v10487_v3 }
 0xb2b   :  { %v14598_v7 = vpop.eup %14597  ;;  %13890 = vmatpush3.bf16.msra.mxu0 %v19174_v37  ;;  %v10445_v63 = vpop.xlane.xlu0 %10444  ;;  %v14502_v37 = vld [vmem:[%s19137_s8 + $0x90] ss:$8 sps:$4 sm:$0xff]  }
 0xb2c   :  { %v10489_v0 = vmul.f32 %v14598_v7, %v18883_v29  ;;  %11515 = vmatprep.subr.bf16.mxu0 %v14477_v11  ;;  %v14475_v29 = vld [vmem:[%s19137_s8] ss:$8 sps:$4 sm:$0xff]  }
 0xb2e   :  { %13615 = vmatmul.mubr.msk.f32.vlgmr.msra.gmra.mrb[152].mxu1 %vm6961_vm3, %v10489_v0 }
 0xb2f   :  { %13894 = vmatpush3.bf16.msra.mxu1 %v19175_v35  ;;  %v14505_v35 = vld [vmem:[%s19137_s8 + $0xa0] ss:$8 sps:$4 sm:$0xff]  }
 0xb30   :  { %11571 = vmatprep.subr.bf16.mxu1 %v14480_v49 }
 0xb32   :  { %v14600_v54 = vpop.eup %14599 }
 0xb33   :  { %v10491_v30 = vmul.f32 %v14600_v54, %v18887_v34 }
 0xb52   :  { %v10436_v50 = vpop.xlane.xlu1 %10435 }
 0xb53   :  { %14601 = vrcp.f32 %v10436_v50  ;;  %v14508_v50 = vld [vmem:[%s19137_s8 + $0xb0] ss:$8 sps:$4 sm:$0xff]  }
 0xb54   :  { %14603 = vrcp.f32 %v10445_v63 }
 0xb56   :  { %v10442_v46 = vpop.xlane.xlu1 %10441 }
 0xb57   :  { %14605 = vrcp.f32 %v10442_v46 }
 0xb5d   :  { %v14602_v2 = vpop.eup %14601 }
 0xb5e   :  { %v10490_v61 = vmul.f32 %v14602_v2, %v18897_v57  ;;  %v14604_v1 = vpop.eup %14603  ;;  %v14478_v57 = vld [vmem:[%s19137_s8 + $0x10] ss:$8 sps:$4 sm:$0xff]  }
 0xb5f   :  { %v10493_v34 = vmul.f32 %v14604_v1, %v18891_v38 }
 0xb60   :  { %13621 = vmatprep.mubr.msk.f32.mxu0 %vm6961_vm3, %v10490_v61 }
 0xb61   :  { %v14606_v25 = vpop.eup %14605  ;;  %13622 = vmatmul.mubr.msk.f32.vlgmr.msra.gmra.mrb[154].mxu0 %vm6961_vm3, %v10491_v30 }
 0xb62   :  { %v10492_v4 = vmul.f32 %v14606_v25, %v18901_v60  ;;  %11516 = vmatpush1.bf16.msra.mxu0 %v14475_v29  ;;  %11547 = vmatprep.mubr.bf16.mxu0 %v19165_v6  ;;  %v14486_v60 = vld [vmem:[%s19137_s8 + $0x34] ss:$8 sps:$4 sm:$0xff]  }
 0xb63   :  { %11627 = vmatprep.subr.bf16.mxu0 %v14483_v32 }
 0xb64   :  { %13628 = vmatprep.mubr.msk.f32.mxu1 %vm6961_vm3, %v10492_v4 }
 0xb65   :  { %13629 = vmatmul.mubr.msk.f32.vlgmr.msra.gmra.mrb[154].mxu1 %vm6961_vm3, %v10493_v34 }
 0xb66   :  { %11572 = vmatpush1.bf16.msra.mxu1 %v14478_v57  ;;  %11603 = vmatprep.mubr.bf16.mxu1 %v19165_v6 }
 0xb67   :  { %11683 = vmatprep.subr.bf16.mxu1 %v14486_v60 }
 0xb9f   :  { %v13553_v21 = vpop.f32.mrb[144].mxu0 }
 0xba0   :  { %v10566_v38 = vpop.f32.mrb[145].mxu0 }
 0xba1   :  { %v11466_v17 = vpack.c.bf16 %v13553_v21, %v10566_v38 }
 0xba3   :  { %13129 = vmatmul.mubr.msk.bf16.vlgmr.msra.gmra.mrb[156].mxu0 %vm6961_vm3, %v11466_v17 }
 0xba4   :  { %11628 = vmatpush1.bf16.msra.mxu0 %v14481_v42  ;;  %11659 = vmatprep.mubr.bf16.mxu0 %v19165_v6 }
 0xba5   :  { %11739 = vmatprep.subr.bf16.mxu0 %v14489_v14 }
 0xbe1   :  { %v13560_v27 = vpop.f32.mrb[144].mxu1 }
 0xbe2   :  { %v10647_v55 = vpop.f32.mrb[145].mxu1 }
 0xbe3   :  { %v11467_v45 = vpack.c.bf16 %v13560_v27, %v10647_v55 }
 0xbe5   :  { %v13567_v16 = vpop.f32.mrb[146].mxu0  ;;  %13132 = vmatmul.mubr.msk.bf16.vlgmr.msra.gmra.mrb[156].mxu1 %vm6961_vm3, %v11467_v45 }
 0xbe6   :  { %v10728_v51 = vpop.f32.mrb[147].mxu0  ;;  %11684 = vmatpush1.bf16.msra.mxu1 %v14484_v48  ;;  %11715 = vmatprep.mubr.bf16.mxu1 %v19165_v6 }
 0xbe7   :  { %v11468_v59 = vpack.c.bf16 %v13567_v16, %v10728_v51  ;;  %11795 = vmatprep.subr.bf16.mxu1 %v14492_v13 }
 0xbe9   :  { %v13574_v58 = vpop.f32.mrb[146].mxu1  ;;  %13135 = vmatmul.mubr.msk.bf16.vlgmr.msra.gmra.mrb[160].mxu0 %vm6961_vm3, %v11468_v59 }
 0xbea   :  { %v10809_v40 = vpop.f32.mrb[147].mxu1  ;;  %11740 = vmatpush1.bf16.msra.mxu0 %v14487_v19  ;;  %11771 = vmatprep.mubr.bf16.mxu0 %v19165_v6 }
 0xbeb   :  { %v11469_v26 = vpack.c.bf16 %v13574_v58, %v10809_v40  ;;  %11851 = vmatprep.subr.bf16.mxu0 %v14495_v41 }
 0xbed   :  { %v13581_v52 = vpop.f32.mrb[148].mxu0  ;;  %13138 = vmatmul.mubr.msk.bf16.vlgmr.msra.gmra.mrb[160].mxu1 %vm6961_vm3, %v11469_v26 }
 0xbee   :  { %v10890_v53 = vpop.f32.mrb[149].mxu0  ;;  %11796 = vmatpush1.bf16.msra.mxu1 %v14490_v10  ;;  %11827 = vmatprep.mubr.bf16.mxu1 %v19165_v6 }
 0xbef   :  { %v11470_v36 = vpack.c.bf16 %v13581_v52, %v10890_v53  ;;  %11907 = vmatprep.subr.bf16.mxu1 %v14498_v5 }
 0xbf1   :  { %v13588_v24 = vpop.f32.mrb[148].mxu1  ;;  %13141 = vmatmul.mubr.msk.bf16.vlgmr.msra.gmra.mrb[164].mxu0 %vm6961_vm3, %v11470_v36 }
 0xbf2   :  { %v10971_v15 = vpop.f32.mrb[149].mxu1  ;;  %11852 = vmatpush1.bf16.msra.mxu0 %v14493_v56  ;;  %11883 = vmatprep.mubr.bf16.mxu0 %v19165_v6 }
 0xbf3   :  { %v11471_v44 = vpack.c.bf16 %v13588_v24, %v10971_v15  ;;  %11963 = vmatprep.subr.bf16.mxu0 %v14501_v12 }
 0xbf5   :  { %v13595_v33 = vpop.f32.mrb[150].mxu0  ;;  %13144 = vmatmul.mubr.msk.bf16.vlgmr.msra.gmra.mrb[164].mxu1 %vm6961_vm3, %v11471_v44 }
 0xbf6   :  { %v11052_v18 = vpop.f32.mrb[151].mxu0  ;;  %11908 = vmatpush1.bf16.msra.mxu1 %v14496_v47  ;;  %11939 = vmatprep.mubr.bf16.mxu1 %v19165_v6 }
 0xbf7   :  { %v11472_v22 = vpack.c.bf16 %v13595_v33, %v11052_v18  ;;  %12019 = vmatprep.subr.bf16.mxu1 %v14504_v43 }
 0xbf9   :  { %v13602_v28 = vpop.f32.mrb[150].mxu1  ;;  %13147 = vmatmul.mubr.msk.bf16.vlgmr.msra.gmra.mrb[168].mxu0 %vm6961_vm3, %v11472_v22 }
 0xbfa   :  { %v11133_v9 = vpop.f32.mrb[151].mxu1  ;;  %11964 = vmatpush1.bf16.msra.mxu0 %v14499_v20  ;;  %11995 = vmatprep.mubr.bf16.mxu0 %v19165_v6 }
 0xbfb   :  { %v11473_v62 = vpack.c.bf16 %v13602_v28, %v11133_v9  ;;  %12075 = vmatprep.subr.bf16.mxu0 %v14507_v39 }
 0xbfd   :  { %v13609_v8 = vpop.f32.mrb[152].mxu0  ;;  %13150 = vmatmul.mubr.msk.bf16.vlgmr.msra.gmra.mrb[168].mxu1 %vm6961_vm3, %v11473_v62 }
 0xbfe   :  { %v11214_v3 = vpop.f32.mrb[153].mxu0  ;;  %12020 = vmatpush1.bf16.msra.mxu1 %v14502_v37  ;;  %12051 = vmatprep.mubr.bf16.mxu1 %v19165_v6 }
 0xbff   :  { %v11474_v11 = vpack.c.bf16 %v13609_v8, %v11214_v3  ;;  %12131 = vmatprep.subr.bf16.mxu1 %v14510_v23 }
 0xc01   :  { %v13616_v7 = vpop.f32.mrb[152].mxu1  ;;  %13153 = vmatmul.mubr.msk.bf16.vlgmr.msra.gmra.mrb[172].mxu0 %vm6961_vm3, %v11474_v11 }
 0xc02   :  { %v11295_v0 = vpop.f32.mrb[153].mxu1  ;;  %12076 = vmatpush1.bf16.msra.mxu0 %v14505_v35  ;;  %12107 = vmatprep.mubr.bf16.mxu0 %v19165_v6 }
 0xc03   :  { %v11475_v31 = vpack.c.bf16 %v13616_v7, %v11295_v0 }
 0xc05   :  { %13156 = vmatmul.mubr.msk.bf16.vlgmr.msra.gmra.mrb[172].mxu1 %vm6961_vm3, %v11475_v31 }
 0xc06   :  { %12132 = vmatpush1.bf16.msra.mxu1 %v14508_v50  ;;  %12163 = vmatprep.mubr.bf16.mxu1 %v19165_v6 }
 0xc34   :  { %v13623_v63 = vpop.f32.mrb[154].mxu0 }
 0xc35   :  { %v11376_v46 = vpop.f32.mrb[155].mxu0 }
 0xc36   :  { %v11476_v54 = vpack.c.bf16 %v13623_v63, %v11376_v46 }
 0xc38   :  { %v13630_v2 = vpop.f32.mrb[154].mxu1  ;;  %13159 = vmatmul.mubr.msk.bf16.vlgmr.msra.gmra.mrb[176].mxu0 %vm6961_vm3, %v11476_v54 }
 0xc39   :  { %v11457_v61 = vpop.f32.mrb[155].mxu1 }
 0xc3a   :  { %v11477_v29 = vpack.c.bf16 %v13630_v2, %v11457_v61 }
 0xc3c   :  { %13162 = vmatmul.mubr.msk.bf16.vlgmr.msra.gmra.mrb[176].mxu1 %vm6961_vm3, %v11477_v29 }
 0xc76   :  { %v11549_v30 = vpop.f32.mrb[156].mxu0 }
 0xc77   :  { %v11551_v1 = vpop.f32.mrb[157].mxu0 }
 0xc78   :  { %v11553_v25 = vpop.f32.mrb[158].mxu0  ;;  %v12185_v32 = vsel %vm423_vm0, %v11551_v1, 0.0 }
 0xc79   :  { %v11555_v49 = vpop.f32.mrb[159].mxu0 }
 0xc7a   :  { %v12219_v17 = vsel %vm423_vm0, %v11555_v49, 0.0 }
 0xcb8   :  { %v11605_v4 = vpop.f32.mrb[156].mxu1 }
 0xcb9   :  { %v12174_v57 = vadd.f32 %v11605_v4, %v11549_v30  ;;  %v11607_v34 = vpop.f32.mrb[157].mxu1 }
 0xcba   :  { %v12186_v6 = vsel %vm423_vm0, %v11607_v34, 0.0  ;;  %v11609_v60 = vpop.f32.mrb[158].mxu1 }
 0xcbb   :  { %v12187_v21 = vadd.f32 %v12186_v6, %v12185_v32  ;;  %v12208_v38 = vadd.f32 %v11609_v60, %v11553_v25  ;;  %v11611_v42 = vpop.f32.mrb[159].mxu1 }
 0xcbc   :  { %v12220_v14 = vsel %vm423_vm0, %v11611_v42, 0.0  ;;  %v11661_v27 = vpop.f32.mrb[160].mxu0 }
 0xcbd   :  { %v12221_v55 = vadd.f32 %v12220_v14, %v12219_v17  ;;  %v12175_v48 = vadd.f32 %v12174_v57, %v11661_v27  ;;  %v11663_v45 = vpop.f32.mrb[161].mxu0 }
 0xcbe   :  { %v12188_v13 = vsel %vm423_vm0, %v11663_v45, 0.0  ;;  %v11665_v16 = vpop.f32.mrb[162].mxu0 }
 0xcbf   :  { %v12189_v51 = vadd.f32 %v12188_v13, %v12187_v21  ;;  %v12209_v19 = vadd.f32 %v12208_v38, %v11665_v16  ;;  %v11667_v59 = vpop.f32.mrb[163].mxu0 }
 0xcc0   :  { %v12222_v41 = vsel %vm423_vm0, %v11667_v59, 0.0  ;;  %v11717_v58 = vpop.f32.mrb[160].mxu1 }
 0xcc1   :  { %v12223_v40 = vadd.f32 %v12222_v41, %v12221_v55  ;;  %v12176_v10 = vadd.f32 %v12175_v48, %v11717_v58  ;;  %v11719_v26 = vpop.f32.mrb[161].mxu1 }
 0xcc2   :  { %v12190_v5 = vsel %vm423_vm0, %v11719_v26, 0.0  ;;  %v11721_v52 = vpop.f32.mrb[162].mxu1 }
 0xcc3   :  { %v12191_v53 = vadd.f32 %v12190_v5, %v12189_v51  ;;  %v12210_v56 = vadd.f32 %v12209_v19, %v11721_v52  ;;  %v11723_v36 = vpop.f32.mrb[163].mxu1 }
 0xcc4   :  { %v12224_v12 = vsel %vm423_vm0, %v11723_v36, 0.0  ;;  %v11773_v24 = vpop.f32.mrb[164].mxu0 }
 0xcc5   :  { %v12225_v15 = vadd.f32 %v12224_v12, %v12223_v40  ;;  %v12177_v47 = vadd.f32 %v12176_v10, %v11773_v24  ;;  %v11775_v44 = vpop.f32.mrb[165].mxu0 }
 0xcc6   :  { %v12192_v43 = vsel %vm423_vm0, %v11775_v44, 0.0  ;;  %v11777_v33 = vpop.f32.mrb[166].mxu0 }
 0xcc7   :  { %v12193_v18 = vadd.f32 %v12192_v43, %v12191_v53  ;;  %v12211_v20 = vadd.f32 %v12210_v56, %v11777_v33  ;;  %v11779_v22 = vpop.f32.mrb[167].mxu0 }
 0xcc8   :  { %v12226_v39 = vsel %vm423_vm0, %v11779_v22, 0.0  ;;  %v11829_v28 = vpop.f32.mrb[164].mxu1 }
 0xcc9   :  { %v12227_v9 = vadd.f32 %v12226_v39, %v12225_v15  ;;  %v12178_v37 = vadd.f32 %v12177_v47, %v11829_v28  ;;  %v11831_v62 = vpop.f32.mrb[165].mxu1 }
 0xcca   :  { %v12194_v23 = vsel %vm423_vm0, %v11831_v62, 0.0  ;;  %v11833_v8 = vpop.f32.mrb[166].mxu1 }
 0xccb   :  { %v12195_v3 = vadd.f32 %v12194_v23, %v12193_v18  ;;  %v12212_v35 = vadd.f32 %v12211_v20, %v11833_v8  ;;  %v11835_v11 = vpop.f32.mrb[167].mxu1 }
 0xccc   :  { %v12228_v7 = vsel %vm423_vm0, %v11835_v11, 0.0  ;;  %v11885_v0 = vpop.f32.mrb[168].mxu0 }
 0xccd   :  { %v12229_v31 = vadd.f32 %v12228_v7, %v12227_v9  ;;  %v12179_v50 = vadd.f32 %v12178_v37, %v11885_v0  ;;  %v11887_v63 = vpop.f32.mrb[169].mxu0  ;;  %v14614_v7 = vld [vmem:[%s19128_s0] sm:$0xff] }
 0xcce   :  { %v12196_v46 = vsel %vm423_vm0, %v11887_v63, 0.0  ;;  %v11889_v54 = vpop.f32.mrb[170].mxu0 }
 0xccf   :  { %v12197_v2 = vadd.f32 %v12196_v46, %v12195_v3  ;;  %v12213_v61 = vadd.f32 %v12212_v35, %v11889_v54  ;;  %v11891_v29 = vpop.f32.mrb[171].mxu0  ;;  %v14613_v3 = vld [vmem:[%s19128_s0 + $0x8] sm:$0xff]  ;;  %v14616_v46 = vld [vmem:[%s19128_s0 + $0x10] sm:$0xff] }
 0xcd0   :  { %v12230_v30 = vsel %vm423_vm0, %v11891_v29, 0.0  ;;  %v11941_v1 = vpop.f32.mrb[168].mxu1 }
 0xcd1   :  { %v12231_v25 = vadd.f32 %v12230_v30, %v12229_v31  ;;  %v12180_v49 = vadd.f32 %v12179_v50, %v11941_v1  ;;  %v11943_v4 = vpop.f32.mrb[169].mxu1  ;;  %v14615_v31 = vld [vmem:[%s19128_s0 + $0x18] sm:$0xff] }
 0xcd2   :  { %v12198_v57 = vsel %vm423_vm0, %v11943_v4, 0.0  ;;  %v11945_v34 = vpop.f32.mrb[170].mxu1 }
 0xcd3   :  { %v12199_v32 = vadd.f32 %v12198_v57, %v12197_v2  ;;  %v12214_v6 = vadd.f32 %v12213_v61, %v11945_v34  ;;  %v11947_v60 = vpop.f32.mrb[171].mxu1 }
 0xcd4   :  { %v12232_v21 = vsel %vm423_vm0, %v11947_v60, 0.0  ;;  %v11997_v38 = vpop.f32.mrb[172].mxu0 }
 0xcd5   :  { %v12233_v42 = vadd.f32 %v12232_v21, %v12231_v25  ;;  %v12181_v17 = vadd.f32 %v12180_v49, %v11997_v38  ;;  %v11999_v14 = vpop.f32.mrb[173].mxu0 }
 0xcd6   :  { %v12200_v27 = vsel %vm423_vm0, %v11999_v14, 0.0  ;;  %v12001_v55 = vpop.f32.mrb[174].mxu0 }
 0xcd7   :  { %v12201_v48 = vadd.f32 %v12200_v27, %v12199_v32  ;;  %v12215_v45 = vadd.f32 %v12214_v6, %v12001_v55  ;;  %v12003_v13 = vpop.f32.mrb[175].mxu0 }
 0xcd8   :  { %v12234_v16 = vsel %vm423_vm0, %v12003_v13, 0.0  ;;  %v12053_v51 = vpop.f32.mrb[172].mxu1 }
 0xcd9   :  { %v12235_v19 = vadd.f32 %v12234_v16, %v12233_v42  ;;  %v12182_v59 = vadd.f32 %v12181_v17, %v12053_v51  ;;  %v12055_v41 = vpop.f32.mrb[173].mxu1 }
 0xcda   :  { %v12202_v58 = vsel %vm423_vm0, %v12055_v41, 0.0  ;;  %v12057_v40 = vpop.f32.mrb[174].mxu1 }
 0xcdb   :  { %v12203_v10 = vadd.f32 %v12202_v58, %v12201_v48  ;;  %v12216_v26 = vadd.f32 %v12215_v45, %v12057_v40  ;;  %v12059_v5 = vpop.f32.mrb[175].mxu1  ;;  %v12285_v45 = vlaneseq  ;;  %v12283_v40 = vld [vmem:[%s19138_s11] sm:$0x3] }
 0xcdc   :  { %v12236_v52 = vsel %vm423_vm0, %v12059_v5, 0.0 }
 0xcdd   :  { %v12237_v53 = vadd.f32 %v12236_v52, %v12235_v19 }
 0xd0b   :  { %v12109_v56 = vpop.f32.mrb[176].mxu0 }
 0xd0c   :  { %v12183_v36 = vadd.f32 %v12182_v59, %v12109_v56  ;;  %v12111_v12 = vpop.f32.mrb[177].mxu0  ;;  %v12286_v59 = vshrl.u32 %v12285_v45, 7 }
 0xd0d   :  { %v12204_v24 = vsel %vm423_vm0, %v12111_v12, 0.0  ;;  %v12113_v15 = vpop.f32.mrb[178].mxu0 }
 0xd0e   :  { %v12205_v47 = vadd.f32 %v12204_v24, %v12203_v10  ;;  %v12217_v44 = vadd.f32 %v12216_v26, %v12113_v15  ;;  %v12115_v43 = vpop.f32.mrb[179].mxu0  ;;  %v12287_v41 = vsub.s32 0, %v12286_v59  ;;  %v12291_v58 = vsub.s32 1, %v12286_v59  ;;  %v12299_v10 = vld [vmem:[%s19139_s12] sm:$0x3] }
 0xd0f   :  { %v12238_v33 = vsel %vm423_vm0, %v12115_v43, 0.0  ;;  %v12165_v18 = vpop.f32.mrb[176].mxu1 }
 0xd10   :  { %v12239_v20 = vadd.f32 %v12238_v33, %v12237_v53  ;;  %v12184_v22 = vadd.f32 %v12183_v36, %v12165_v18  ;;  %v12167_v39 = vpop.f32.mrb[177].mxu1  ;;  %v12288_v26 = vrot.slane %v12283_v40, %v12287_v41  ;;  %v12292_v5 = vrot.slane %v12283_v40, %v12291_v58 }
 0xd11   :  { %v12206_v28 = vsel %vm423_vm0, %v12167_v39, 0.0  ;;  %v12169_v9 = vpop.f32.mrb[178].mxu1  ;;  %v12304_v53 = vrot.slane %v12299_v10, %v12287_v41  ;;  %v12308_v56 = vrot.slane %v12299_v10, %v12291_v58 }
 0xd12   :  { %v12207_v37 = vadd.f32 %v12206_v28, %v12205_v47  ;;  %v12218_v62 = vadd.f32 %v12217_v44, %v12169_v9  ;;  %v12171_v23 = vpop.f32.mrb[179].mxu1  ;;  %v12242_v0 = vadd.f32 %v14614_v7, %v12184_v22 }
 0xd13   :  { %v12240_v8 = vsel %vm423_vm0, %v12171_v23, 0.0 }
 0xd14   :  { %v12243_v35 = vadd.f32 %v14613_v3, %v12207_v37  ;;  %v12241_v11 = vadd.f32 %v12240_v8, %v12239_v20  ;;  %v12244_v54 = vadd.f32 %v14616_v46, %v12218_v62 }
 0xd16   :  { %v12245_v50 = vadd.f32 %v14615_v31, %v12241_v11  ;;  %v12246_v63 = vsel %vm423_vm0, %v12243_v35, 0.0 }
 0xd17   :  { %v12247_v2 = vadd.f32 %v12246_v63, %v12242_v0 }
 0xd18   :  { %v12250_v61 = vsel %vm423_vm0, %v12245_v50, 0.0 }
 0xd19   :  { %12248 = vadd.xlane.f32.xlu1 %v12247_v2  ;;  %v12251_v29 = vadd.f32 %v12250_v61, %v12244_v54 }
 0xd1b   :  { %12252 = vadd.xlane.f32.xlu0 %v12251_v29 }
 0xda6   :  { %v12249_v30 = vpop.xlane.xlu1 %12248 }
 0xda7   :  { %v12255_v1 = vmul.f32 0.0052083335, %v12249_v30 }
 0xda8   :  { %v12253_v25 = vpop.xlane.xlu0 %12252 }
 0xda9   :  { %v12257_v49 = vsub.f32 %v12242_v0, %v12255_v1  ;;  %v12258_v4 = vsub.f32 %v12243_v35, %v12255_v1  ;;  %v12256_v57 = vmul.f32 0.0052083335, %v12253_v25 }
 0xdab   :  { %v12261_v34 = vmul.f32 %v12257_v49, %v12257_v49  ;;  %v12262_v32 = vmul.f32 %v12258_v4, %v12258_v4  ;;  %v12259_v6 = vsub.f32 %v12244_v54, %v12256_v57  ;;  %v12260_v60 = vsub.f32 %v12245_v50, %v12256_v57 }
 0xdad   :  { %v12263_v21 = vmul.f32 %v12259_v6, %v12259_v6  ;;  %v12264_v38 = vmul.f32 %v12260_v60, %v12260_v60  ;;  %v12265_v42 = vsel %vm423_vm0, %v12262_v32, 0.0 }
 0xdae   :  { %v12266_v17 = vadd.f32 %v12265_v42, %v12261_v34 }
 0xdaf   :  { %v12269_v14 = vsel %vm423_vm0, %v12264_v38, 0.0 }
 0xdb0   :  { %12267 = vadd.xlane.f32.xlu1 %v12266_v17  ;;  %v12270_v27 = vadd.f32 %v12269_v14, %v12263_v21 }
 0xdb2   :  { %12271 = vadd.xlane.f32.xlu0 %v12270_v27 }
 0xe3d   :  { %v12268_v55 = vpop.xlane.xlu1 %12267 }
 0xe3e   :  { %v12273_v48 = vmul.f32 0.0052083335, %v12268_v55 }
 0xe3f   :  { %v12272_v13 = vpop.xlane.xlu0 %12271 }
 0xe40   :  { %v12275_v16 = vadd.f32 1e-12, %v12273_v48  ;;  %v12274_v51 = vmul.f32 0.0052083335, %v12272_v13 }
 0xe42   :  { %14607 = vrsqrt.f32 %v12275_v16  ;;  %v12276_v19 = vadd.f32 1e-12, %v12274_v51 }
 0xe44   :  { %14609 = vrsqrt.f32 %v12276_v19 }
 0xe4c   :  { %v14608_v52 = vpop.eup %14607 }
 0xe4d   :  { %v12279_v36 = vmul.f32 %v14608_v52, %v12257_v49  ;;  %v12280_v12 = vmul.f32 %v14608_v52, %v12258_v4 }
 0xe4e   :  { %v14610_v24 = vpop.eup %14609 }
 0xe4f   :  { %v12295_v15 = vmul.f32 %v12288_v26, %v12279_v36  ;;  %v12296_v47 = vmul.f32 %v12292_v5, %v12280_v12  ;;  %v12281_v44 = vmul.f32 %v14610_v24, %v12259_v6  ;;  %v12282_v43 = vmul.f32 %v14610_v24, %v12260_v60 }
 0xe51   :  { %v12311_v33 = vadd.f32 %v12304_v53, %v12295_v15  ;;  %v12312_v18 = vadd.f32 %v12308_v56, %v12296_v47  ;;  %v12297_v20 = vmul.f32 %v12288_v26, %v12281_v44  ;;  %v12298_v22 = vmul.f32 %v12292_v5, %v12282_v43 }
 0xe53   :  { %12315 = vst [vmem:[%s19140_s13] sm:$0xff] %v12311_v33  ;;  %12316 = vst.msk [vmem:[%s19140_s13 + $0x8] sm:$0xff] %vm423_vm0, %v12312_v18  ;;  %v12313_v39 = vadd.f32 %v12304_v53, %v12297_v20  ;;  %v12314_v28 = vadd.f32 %v12308_v56, %v12298_v22 }
 0xe55   :  { %12317 = vst [vmem:[%s19140_s13 + $0x10] sm:$0xff] %v12313_v39  ;;  %12318 = vst.msk [vmem:[%s19140_s13 + $0x18] sm:$0xff] %vm423_vm0, %v12314_v28 }

</bundles_post_ra>
